<compile_context>
chip_gen: v6e
topology: v6e:2x2x1
jax: 0.10.0
libtpu: 0.0.40
codegen_flags: <defaults>
</compile_context>

<pallas_src>
import jax
import jax.numpy as jnp
from jax.experimental import pallas as pl
from jax.experimental.pallas import tpu as pltpu

IMU_LEN = 10
L = IMU_LEN + 1          # 11 samples per IMU window
CIN = 6                  # IMU channels
C1, C2, C3 = 64, 128, 256


def _round_up(x, m):
    return ((x + m - 1) // m) * m


# ---------------------------------------------------------------------------
# Pallas kernel
# ---------------------------------------------------------------------------
def _muscle_kernel(x_ref, w1_ref, b1_ref, w2_ref, b2_ref, w3_ref, b3_ref,
                   wp_ref, bp_ref, out_ref, h1_ref, h2_ref):
    num_l, tn, _ = x_ref.shape            # (11, TN, 18)
    rows = num_l * tn
    c1 = h1_ref.shape[1]                  # 64
    c2 = h2_ref.shape[1]                  # 128
    f32 = jnp.float32
    bf16 = jnp.bfloat16

    def lrelu(y):
        # Exact LeakyReLU(0.1): max(y, 0.1*y).  Dropout is identity at eval.
        return jnp.maximum(y, 0.1 * y)

    # --- zero the halo rows (cheap: 2*tn rows per layer, every step) ---------
    h1_ref[0:tn, :] = jnp.zeros((tn, c1), bf16)
    h1_ref[(num_l + 1) * tn:(num_l + 2) * tn, :] = jnp.zeros((tn, c1), bf16)
    h2_ref[0:tn, :] = jnp.zeros((tn, c2), bf16)
    h2_ref[(num_l + 1) * tn:(num_l + 2) * tn, :] = jnp.zeros((tn, c2), bf16)

    # --- conv1 (+BN folded): taps pre-concatenated in the wrapper (K=18) -----
    x0 = x_ref[...].reshape(rows, 3 * CIN)                               # bf16
    h1 = lrelu(jnp.dot(x0, w1_ref[...], preferred_element_type=f32) + b1_ref[...])
    h1_ref[tn:tn + rows, :] = h1.astype(bf16)

    # --- conv2 (+BN folded): per-tap dots on overlapping halo views ----------
    for l in range(num_l):                                               # static unroll
        lo = l * tn
        y2 = (jnp.dot(h1_ref[lo:lo + tn, :],              w2_ref[0],
                      preferred_element_type=f32)
              + jnp.dot(h1_ref[lo + tn:lo + 2 * tn, :],   w2_ref[1],
                        preferred_element_type=f32)
              + jnp.dot(h1_ref[lo + 2 * tn:lo + 3 * tn, :], w2_ref[2],
                        preferred_element_type=f32))
        h2_ref[lo + tn:lo + 2 * tn, :] = lrelu(y2 + b2_ref[...]).astype(bf16)

    # --- conv3 (+BN folded) fused with proj: accumulate into out_ref ---------
    for l in range(num_l):                                               # static unroll
        lo = l * tn
        y3 = (jnp.dot(h2_ref[lo:lo + tn, :],              w3_ref[0],
                      preferred_element_type=f32)
              + jnp.dot(h2_ref[lo + tn:lo + 2 * tn, :],   w3_ref[1],
                        preferred_element_type=f32)
              + jnp.dot(h2_ref[lo + 2 * tn:lo + 3 * tn, :], w3_ref[2],
                        preferred_element_type=f32))
        h3_l = lrelu(y3 + b3_ref[...]).astype(bf16)                      # (tn, 256)
        contrib = jnp.dot(h3_l, wp_ref[l], preferred_element_type=f32)
        if l == 0:
            out_ref[...] = contrib + bp_ref[...]     # bias folded into first write
        else:
            out_ref[...] += contrib


# ---------------------------------------------------------------------------
# Wrapper: windowing, l-major layout, padding, pallas_call
# ---------------------------------------------------------------------------
def muscle_driving_forward(imu, kernel_params, seq_len, i_f_len, tile_n=512):
    """imu: (B, T, 6) with T >= 10*seq_len + 1.  Returns (B, seq_len, i_f_len)."""
    B = imu.shape[0]
    S = seq_len
    # torch.cat([imu[:, i*10:i*10+11, :].unsqueeze(1) ...], dim=1)
    windows = jnp.stack([imu[:, i * 10:i * 10 + 11, :] for i in range(S)], axis=1)
    x = windows.reshape(B * S, L, CIN).astype(jnp.float32)        # (N, 11, 6)
    N = B * S

    # Layer-1 3-tap concat done once outside the kernel (pure layout plumbing).
    z = jnp.zeros((N, 1, CIN), x.dtype)
    prev = jnp.concatenate([z, x[:, :-1, :]], axis=1)             # x[l-1]
    nxt = jnp.concatenate([x[:, 1:, :], z], axis=1)               # x[l+1]
    xcat = jnp.concatenate([prev, x, nxt], axis=-1)               # (N, 11, 18)

    # Tile the window axis; keep TN a multiple of 16 (bf16 sublane tiling).
    tn = max(16, min(_round_up(tile_n, 16), _round_up(N, 16)))
    npad = _round_up(N, tn)
    if npad != N:
        xcat = jnp.concatenate(
            [xcat, jnp.zeros((npad - N, L, 3 * CIN), xcat.dtype)], axis=0)
    xk = jnp.transpose(xcat, (1, 0, 2)).astype(jnp.bfloat16)      # (11, NP, 18)

    w1, b1, w2, b2, w3, b3, wp, bp = kernel_params
    f_pad = wp.shape[-1]                                          # multiple of 128

    out = pl.pallas_call(
        _muscle_kernel,
        out_shape=jax.ShapeDtypeStruct((npad, f_pad), jnp.float32),
        grid=(npad // tn,),
        in_specs=[
            pl.BlockSpec((L, tn, 3 * CIN), lambda i: (0, i, 0)),  # x tile
            pl.BlockSpec(w1.shape, lambda i: (0, 0)),             # resident weights
            pl.BlockSpec(b1.shape, lambda i: (0, 0)),
            pl.BlockSpec(w2.shape, lambda i: (0, 0, 0)),
            pl.BlockSpec(b2.shape, lambda i: (0, 0)),
            pl.BlockSpec(w3.shape, lambda i: (0, 0, 0)),
            pl.BlockSpec(b3.shape, lambda i: (0, 0)),
            pl.BlockSpec(wp.shape, lambda i: (0, 0, 0)),
            pl.BlockSpec(bp.shape, lambda i: (0, 0)),
        ],
        out_specs=pl.BlockSpec((tn, f_pad), lambda i: (i, 0)),
        scratch_shapes=[
            pltpu.VMEM(((L + 2) * tn, C1), jnp.bfloat16),         # haloed h1
            pltpu.VMEM(((L + 2) * tn, C2), jnp.bfloat16),         # haloed h2
        ],
        compiler_params=pltpu.CompilerParams(
            dimension_semantics=("parallel",),
            vmem_limit_bytes=48 * 1024 * 1024),
    )(xk, w1, b1, w2, b2, w3, b3, wp, bp)

    return out[:N, :i_f_len].reshape(B, S, i_f_len)


# ---------------------------------------------------------------------------
# Parameter construction (torch-layout raw params -> kernel layout)
# ---------------------------------------------------------------------------
def _fold_bn(W, b, gamma, beta, mean, var, eps=1e-5):
    scale = gamma / jnp.sqrt(var + eps)
    return W * scale[:, None, None], (b - mean) * scale + beta


def _taps_flat(Wf):
    # (Cout, Cin, 3) -> (3*Cin, Cout), rows ordered [k=0 | k=1 | k=2] = prev|cur|next
    return jnp.concatenate([Wf[:, :, k].T for k in range(3)], axis=0)


def _taps_stack(Wf):
    # (Cout, Cin, 3) -> (3, Cin, Cout); tap k matmuls against x[l-1+k]
    return jnp.stack([Wf[:, :, k].T for k in range(3)], axis=0)


def prepare_kernel_params(raw, i_f_len):
    f_pad = _round_up(i_f_len, 128)
    W1, b1 = _fold_bn(*raw["c1"])
    W2, b2 = _fold_bn(*raw["c2"])
    W3, b3 = _fold_bn(*raw["c3"])

    w1k = _taps_flat(W1).astype(jnp.bfloat16)                 # (18, 64)  pre-concat taps
    b1k = b1[None, :].astype(jnp.float32)                     # (1, 64)   no zero padding
    w2k = _taps_stack(W2).astype(jnp.bfloat16)                # (3, 64, 128)
    b2k = b2[None, :].astype(jnp.float32)                     # (1, 128)
    w3k = _taps_stack(W3).astype(jnp.bfloat16)                # (3, 128, 256)
    b3k = b3[None, :].astype(jnp.float32)                     # (1, 256)

    Wp, bp = raw["proj_w"], raw["proj_b"]
    # torch flatten is channel-major: flat = c*L + l  ->  wpk[l, c, f]
    wpk = jnp.transpose(Wp.reshape(i_f_len, C3, L), (2, 1, 0))
    wpk = jnp.pad(wpk, ((0, 0), (0, 0), (0, f_pad - i_f_len))).astype(jnp.bfloat16)
    bpk = jnp.pad(bp, (0, f_pad - i_f_len))[None, :].astype(jnp.float32)
    return (w1k, b1k, w2k, b2k, w3k, b3k, wpk, bpk)


def init_raw_params(key, i_f_len):
    """Deterministic synthetic parameters in PyTorch layouts (BN in eval mode)."""
    ks = jax.random.split(key, 20)

    def conv_bn(kidx, cin, cout):
        kw, kb, kg, kbe, km, kv = ks[kidx:kidx + 6]
        W = 0.05 * jax.random.normal(kw, (cout, cin, 3), jnp.float32)
        b = 0.05 * jax.random.normal(kb, (cout,), jnp.float32)
        gamma = 1.0 + 0.1 * jax.random.normal(kg, (cout,), jnp.float32)
        beta = 0.1 * jax.random.normal(kbe, (cout,), jnp.float32)
        mean = 0.1 * jax.random.normal(km, (cout,), jnp.float32)
        var = 1.0 + 0.1 * jax.random.uniform(kv, (cout,), jnp.float32)
        return (W, b, gamma, beta, mean, var)

    return {
        "c1": conv_bn(0, CIN, C1),
        "c2": conv_bn(6, C1, C2),
        "c3": conv_bn(12, C2, C3),
        "proj_w": 0.02 * jax.random.normal(ks[18], (i_f_len, C3 * L), jnp.float32),
        "proj_b": 0.02 * jax.random.normal(ks[19], (i_f_len,), jnp.float32),
    }


# ---------------------------------------------------------------------------
# Pure-JAX reference mirroring the PyTorch module (Conv1d -> BN(eval) -> LReLU)
# ---------------------------------------------------------------------------
def reference_forward(imu, raw, seq_len, i_f_len):
    B = imu.shape[0]
    windows = jnp.stack([imu[:, i * 10:i * 10 + 11, :] for i in range(seq_len)],
                        axis=1)
    x = windows.reshape(B * seq_len, L, CIN).astype(jnp.float32)
    h = jnp.transpose(x, (0, 2, 1))                               # (N, C, L)
    for name in ("c1", "c2", "c3"):
        W, b, gamma, beta, mean, var = raw[name]
        h = jax.lax.conv_general_dilated(
            h, W, window_strides=(1,), padding=((1, 1),),
            dimension_numbers=("NCH", "OIH", "NCH"))
        h = h + b[None, :, None]
        h = (h - mean[None, :, None]) / jnp.sqrt(var[None, :, None] + 1e-5)
        h = h * gamma[None, :, None] + beta[None, :, None]
        h = jnp.where(h > 0, h, 0.1 * h)                          # LeakyReLU(0.1)
    hf = h.reshape(h.shape[0], -1)                                # (N, 256*11), c-major
    out = hf @ raw["proj_w"].T + raw["proj_b"]
    return out.reshape(B, seq_len, i_f_len)


if __name__ == "__main__":
    key = jax.random.PRNGKey(0)
    configs = [
        # (batch, opt.seq_len, i_f_len, tile_n)
        (2, 3, 256, 256),    # S = 2 windows, single tile
        (3, 8, 96, 16),      # S = 7 windows: N=21 -> padded, 2 tiles, F padded to 128
        (4, 10, 130, 32),    # S = 9 windows: N=36 -> 2 tiles, F padded to 256
    ]
    for (B, opt_seq_len, i_f_len, tile_n) in configs:
        key, k_in, k_par = jax.random.split(key, 3)
        S = opt_seq_len - 1                 # MuscleDriving_Module: seq_len = opt.seq_len - 1
        T = S * 10 + 1
        imu = jax.random.normal(k_in, (B, T, CIN), jnp.float32)

        raw = init_raw_params(k_par, i_f_len)
        kparams = prepare_kernel_params(raw, i_f_len)

        out = muscle_driving_forward(imu, kparams, S, i_f_len, tile_n=tile_n)
        out = jax.block_until_ready(out)
        assert out.shape == (B, S, i_f_len), out.shape

        ref = reference_forward(imu, raw, S, i_f_len)
        err = float(jnp.max(jnp.abs(out - ref)))
        # NOTE: weights/activations are bf16 in the kernel (f32 reference),
        # hence the loose tolerance -- a deliberate precision trade-off.
        assert jnp.allclose(out, ref, rtol=2e-2, atol=2e-2), f"max abs err {err}"

    print("KERNEL_OK")
</pallas_src>

<mosaic_0001>
module attributes {stable_mosaic.version = 11 : i64} {
  func.func @_muscle_kernel(%arg0: i32, %arg1: memref<11x16x18xbf16, #tpu.memory_space<vmem>>, %arg2: memref<18x64xbf16, #tpu.memory_space<vmem>>, %arg3: memref<1x64xf32, #tpu.memory_space<vmem>>, %arg4: memref<3x64x128xbf16, #tpu.memory_space<vmem>>, %arg5: memref<1x128xf32, #tpu.memory_space<vmem>>, %arg6: memref<3x128x256xbf16, #tpu.memory_space<vmem>>, %arg7: memref<1x256xf32, #tpu.memory_space<vmem>>, %arg8: memref<11x256x256xbf16, #tpu.memory_space<vmem>>, %arg9: memref<1x256xf32, #tpu.memory_space<vmem>>, %arg10: memref<16x256xf32, #tpu.memory_space<vmem>>, %arg11: memref<208x64xbf16, #tpu.memory_space<vmem>>, %arg12: memref<208x128xbf16, #tpu.memory_space<vmem>>) attributes {dimension_semantics = [#tpu.dimension_semantics<parallel>], iteration_bounds = array<i64: 1>, scalar_prefetch = 0 : i64, scratch_operands = 2 : i64, tpu.core_type = #tpu.core_type<tc>, window_params = [{transform_indices = @transform_0, window_bounds = array<i64: 11, 16, 18>}, {pipeline_mode = #tpu.pipeline_mode<synchronous>, transform_indices = @transform_1, window_bounds = array<i64: 18, 64>}, {pipeline_mode = #tpu.pipeline_mode<synchronous>, transform_indices = @transform_2, window_bounds = array<i64: 1, 64>}, {pipeline_mode = #tpu.pipeline_mode<synchronous>, transform_indices = @transform_3, window_bounds = array<i64: 3, 64, 128>}, {pipeline_mode = #tpu.pipeline_mode<synchronous>, transform_indices = @transform_4, window_bounds = array<i64: 1, 128>}, {pipeline_mode = #tpu.pipeline_mode<synchronous>, transform_indices = @transform_5, window_bounds = array<i64: 3, 128, 256>}, {pipeline_mode = #tpu.pipeline_mode<synchronous>, transform_indices = @transform_6, window_bounds = array<i64: 1, 256>}, {pipeline_mode = #tpu.pipeline_mode<synchronous>, transform_indices = @transform_7, window_bounds = array<i64: 11, 256, 256>}, {pipeline_mode = #tpu.pipeline_mode<synchronous>, transform_indices = @transform_8, window_bounds = array<i64: 1, 256>}, {transform_indices = @transform_9, window_bounds = array<i64: 16, 256>}]} {
    %cst = arith.constant 0.000000e+00 : bf16
    %0 = vector.broadcast %cst : bf16 to vector<16x64xbf16>
    %c0 = arith.constant 0 : index
    %c0_0 = arith.constant 0 : index
    %1 = vector.load %arg11[%c0, %c0_0] : memref<208x64xbf16, #tpu.memory_space<vmem>>, vector<16x64xbf16>
    tpu.vector_store %arg11[%c0, %c0_0], %0 {strides = array<i32>} : memref<208x64xbf16, #tpu.memory_space<vmem>>, vector<16x64xbf16>,
    %cst_1 = arith.constant 0.000000e+00 : bf16
    %2 = vector.broadcast %cst_1 : bf16 to vector<16x64xbf16>
    %c192 = arith.constant 192 : index
    %c0_2 = arith.constant 0 : index
    %3 = vector.load %arg11[%c192, %c0_2] : memref<208x64xbf16, #tpu.memory_space<vmem>>, vector<16x64xbf16>
    tpu.vector_store %arg11[%c192, %c0_2], %2 {strides = array<i32>} : memref<208x64xbf16, #tpu.memory_space<vmem>>, vector<16x64xbf16>,
    %cst_3 = arith.constant 0.000000e+00 : bf16
    %4 = vector.broadcast %cst_3 : bf16 to vector<16x128xbf16>
    %c0_4 = arith.constant 0 : index
    %c0_5 = arith.constant 0 : index
    %5 = vector.load %arg12[%c0_4, %c0_5] : memref<208x128xbf16, #tpu.memory_space<vmem>>, vector<16x128xbf16>
    tpu.vector_store %arg12[%c0_4, %c0_5], %4 {strides = array<i32>} : memref<208x128xbf16, #tpu.memory_space<vmem>>, vector<16x128xbf16>,
    %cst_6 = arith.constant 0.000000e+00 : bf16
    %6 = vector.broadcast %cst_6 : bf16 to vector<16x128xbf16>
    %c192_7 = arith.constant 192 : index
    %c0_8 = arith.constant 0 : index
    %7 = vector.load %arg12[%c192_7, %c0_8] : memref<208x128xbf16, #tpu.memory_space<vmem>>, vector<16x128xbf16>
    tpu.vector_store %arg12[%c192_7, %c0_8], %6 {strides = array<i32>} : memref<208x128xbf16, #tpu.memory_space<vmem>>, vector<16x128xbf16>,
    %c0_9 = arith.constant 0 : index
    %c0_10 = arith.constant 0 : index
    %c0_11 = arith.constant 0 : index
    %8 = vector.load %arg1[%c0_9, %c0_10, %c0_11] : memref<11x16x18xbf16, #tpu.memory_space<vmem>>, vector<11x16x18xbf16>
    %9 = vector.shape_cast %8 : vector<11x16x18xbf16> to vector<176x18xbf16>
    %c0_12 = arith.constant 0 : index
    %c0_13 = arith.constant 0 : index
    %10 = vector.load %arg2[%c0_12, %c0_13] : memref<18x64xbf16, #tpu.memory_space<vmem>>, vector<18x64xbf16>
    %cst_14 = arith.constant dense<0.000000e+00> : vector<176x64xf32>
    %11 = tpu.matmul %9, %10, %cst_14 {dimension_numbers = #tpu.dot_dimension_numbers<[1], [0], [0], [1], [0, 0, 1, 1], [], []>} : vector<176x18xbf16>, vector<18x64xbf16>, vector<176x64xf32> -> vector<176x64xf32>
    %c0_15 = arith.constant 0 : index
    %c0_16 = arith.constant 0 : index
    %12 = vector.load %arg3[%c0_15, %c0_16] : memref<1x64xf32, #tpu.memory_space<vmem>>, vector<1x64xf32>
    %13 = vector.broadcast %12 : vector<1x64xf32> to vector<176x64xf32>
    %14 = arith.addf %11, %13 : vector<176x64xf32>
    %cst_17 = arith.constant 1.000000e-01 : f32
    %15 = vector.broadcast %cst_17 : f32 to vector<176x64xf32>
    %16 = arith.mulf %15, %14 : vector<176x64xf32>
    %17 = arith.maximumf %14, %16 : vector<176x64xf32>
    %18 = arith.truncf %17 : vector<176x64xf32> to vector<176x64xbf16>
    %c16 = arith.constant 16 : index
    %c0_18 = arith.constant 0 : index
    %19 = vector.load %arg11[%c16, %c0_18] : memref<208x64xbf16, #tpu.memory_space<vmem>>, vector<176x64xbf16>
    tpu.vector_store %arg11[%c16, %c0_18], %18 {strides = array<i32>} : memref<208x64xbf16, #tpu.memory_space<vmem>>, vector<176x64xbf16>,
    %c0_19 = arith.constant 0 : index
    %c0_20 = arith.constant 0 : index
    %20 = vector.load %arg11[%c0_19, %c0_20] : memref<208x64xbf16, #tpu.memory_space<vmem>>, vector<16x64xbf16>
    %c0_21 = arith.constant 0 : index
    %c0_22 = arith.constant 0 : index
    %c0_23 = arith.constant 0 : index
    %21 = vector.load %arg4[%c0_21, %c0_22, %c0_23] : memref<3x64x128xbf16, #tpu.memory_space<vmem>>, vector<1x64x128xbf16>
    %22 = vector.shape_cast %21 : vector<1x64x128xbf16> to vector<64x128xbf16>
    %cst_24 = arith.constant dense<0.000000e+00> : vector<16x128xf32>
    %23 = tpu.matmul %20, %22, %cst_24 {dimension_numbers = #tpu.dot_dimension_numbers<[1], [0], [0], [1], [0, 0, 1, 1], [], []>} : vector<16x64xbf16>, vector<64x128xbf16>, vector<16x128xf32> -> vector<16x128xf32>
    %c16_25 = arith.constant 16 : index
    %c0_26 = arith.constant 0 : index
    %24 = vector.load %arg11[%c16_25, %c0_26] : memref<208x64xbf16, #tpu.memory_space<vmem>>, vector<16x64xbf16>
    %c1 = arith.constant 1 : index
    %c0_27 = arith.constant 0 : index
    %c0_28 = arith.constant 0 : index
    %25 = vector.load %arg4[%c1, %c0_27, %c0_28] : memref<3x64x128xbf16, #tpu.memory_space<vmem>>, vector<1x64x128xbf16>
    %26 = vector.shape_cast %25 : vector<1x64x128xbf16> to vector<64x128xbf16>
    %cst_29 = arith.constant dense<0.000000e+00> : vector<16x128xf32>
    %27 = tpu.matmul %24, %26, %cst_29 {dimension_numbers = #tpu.dot_dimension_numbers<[1], [0], [0], [1], [0, 0, 1, 1], [], []>} : vector<16x64xbf16>, vector<64x128xbf16>, vector<16x128xf32> -> vector<16x128xf32>
    %28 = arith.addf %23, %27 : vector<16x128xf32>
    %c32 = arith.constant 32 : index
    %c0_30 = arith.constant 0 : index
    %29 = vector.load %arg11[%c32, %c0_30] : memref<208x64xbf16, #tpu.memory_space<vmem>>, vector<16x64xbf16>
    %c2 = arith.constant 2 : index
    %c0_31 = arith.constant 0 : index
    %c0_32 = arith.constant 0 : index
    %30 = vector.load %arg4[%c2, %c0_31, %c0_32] : memref<3x64x128xbf16, #tpu.memory_space<vmem>>, vector<1x64x128xbf16>
    %31 = vector.shape_cast %30 : vector<1x64x128xbf16> to vector<64x128xbf16>
    %cst_33 = arith.constant dense<0.000000e+00> : vector<16x128xf32>
    %32 = tpu.matmul %29, %31, %cst_33 {dimension_numbers = #tpu.dot_dimension_numbers<[1], [0], [0], [1], [0, 0, 1, 1], [], []>} : vector<16x64xbf16>, vector<64x128xbf16>, vector<16x128xf32> -> vector<16x128xf32>
    %33 = arith.addf %28, %32 : vector<16x128xf32>
    %c0_34 = arith.constant 0 : index
    %c0_35 = arith.constant 0 : index
    %34 = vector.load %arg5[%c0_34, %c0_35] : memref<1x128xf32, #tpu.memory_space<vmem>>, vector<1x128xf32>
    %35 = vector.broadcast %34 : vector<1x128xf32> to vector<16x128xf32>
    %36 = arith.addf %33, %35 : vector<16x128xf32>
    %cst_36 = arith.constant 1.000000e-01 : f32
    %37 = vector.broadcast %cst_36 : f32 to vector<16x128xf32>
    %38 = arith.mulf %37, %36 : vector<16x128xf32>
    %39 = arith.maximumf %36, %38 : vector<16x128xf32>
    %40 = arith.truncf %39 : vector<16x128xf32> to vector<16x128xbf16>
    %c16_37 = arith.constant 16 : index
    %c0_38 = arith.constant 0 : index
    %41 = vector.load %arg12[%c16_37, %c0_38] : memref<208x128xbf16, #tpu.memory_space<vmem>>, vector<16x128xbf16>
    tpu.vector_store %arg12[%c16_37, %c0_38], %40 {strides = array<i32>} : memref<208x128xbf16, #tpu.memory_space<vmem>>, vector<16x128xbf16>,
    %c16_39 = arith.constant 16 : index
    %c0_40 = arith.constant 0 : index
    %42 = vector.load %arg11[%c16_39, %c0_40] : memref<208x64xbf16, #tpu.memory_space<vmem>>, vector<16x64xbf16>
    %c0_41 = arith.constant 0 : index
    %c0_42 = arith.constant 0 : index
    %c0_43 = arith.constant 0 : index
    %43 = vector.load %arg4[%c0_41, %c0_42, %c0_43] : memref<3x64x128xbf16, #tpu.memory_space<vmem>>, vector<1x64x128xbf16>
    %44 = vector.shape_cast %43 : vector<1x64x128xbf16> to vector<64x128xbf16>
    %cst_44 = arith.constant dense<0.000000e+00> : vector<16x128xf32>
    %45 = tpu.matmul %42, %44, %cst_44 {dimension_numbers = #tpu.dot_dimension_numbers<[1], [0], [0], [1], [0, 0, 1, 1], [], []>} : vector<16x64xbf16>, vector<64x128xbf16>, vector<16x128xf32> -> vector<16x128xf32>
    %c32_45 = arith.constant 32 : index
    %c0_46 = arith.constant 0 : index
    %46 = vector.load %arg11[%c32_45, %c0_46] : memref<208x64xbf16, #tpu.memory_space<vmem>>, vector<16x64xbf16>
    %c1_47 = arith.constant 1 : index
    %c0_48 = arith.constant 0 : index
    %c0_49 = arith.constant 0 : index
    %47 = vector.load %arg4[%c1_47, %c0_48, %c0_49] : memref<3x64x128xbf16, #tpu.memory_space<vmem>>, vector<1x64x128xbf16>
    %48 = vector.shape_cast %47 : vector<1x64x128xbf16> to vector<64x128xbf16>
    %cst_50 = arith.constant dense<0.000000e+00> : vector<16x128xf32>
    %49 = tpu.matmul %46, %48, %cst_50 {dimension_numbers = #tpu.dot_dimension_numbers<[1], [0], [0], [1], [0, 0, 1, 1], [], []>} : vector<16x64xbf16>, vector<64x128xbf16>, vector<16x128xf32> -> vector<16x128xf32>
    %50 = arith.addf %45, %49 : vector<16x128xf32>
    %c48 = arith.constant 48 : index
    %c0_51 = arith.constant 0 : index
    %51 = vector.load %arg11[%c48, %c0_51] : memref<208x64xbf16, #tpu.memory_space<vmem>>, vector<16x64xbf16>
    %c2_52 = arith.constant 2 : index
    %c0_53 = arith.constant 0 : index
    %c0_54 = arith.constant 0 : index
    %52 = vector.load %arg4[%c2_52, %c0_53, %c0_54] : memref<3x64x128xbf16, #tpu.memory_space<vmem>>, vector<1x64x128xbf16>
    %53 = vector.shape_cast %52 : vector<1x64x128xbf16> to vector<64x128xbf16>
    %cst_55 = arith.constant dense<0.000000e+00> : vector<16x128xf32>
    %54 = tpu.matmul %51, %53, %cst_55 {dimension_numbers = #tpu.dot_dimension_numbers<[1], [0], [0], [1], [0, 0, 1, 1], [], []>} : vector<16x64xbf16>, vector<64x128xbf16>, vector<16x128xf32> -> vector<16x128xf32>
    %55 = arith.addf %50, %54 : vector<16x128xf32>
    %c0_56 = arith.constant 0 : index
    %c0_57 = arith.constant 0 : index
    %56 = vector.load %arg5[%c0_56, %c0_57] : memref<1x128xf32, #tpu.memory_space<vmem>>, vector<1x128xf32>
    %57 = vector.broadcast %56 : vector<1x128xf32> to vector<16x128xf32>
    %58 = arith.addf %55, %57 : vector<16x128xf32>
    %cst_58 = arith.constant 1.000000e-01 : f32
    %59 = vector.broadcast %cst_58 : f32 to vector<16x128xf32>
    %60 = arith.mulf %59, %58 : vector<16x128xf32>
    %61 = arith.maximumf %58, %60 : vector<16x128xf32>
    %62 = arith.truncf %61 : vector<16x128xf32> to vector<16x128xbf16>
    %c32_59 = arith.constant 32 : index
    %c0_60 = arith.constant 0 : index
    %63 = vector.load %arg12[%c32_59, %c0_60] : memref<208x128xbf16, #tpu.memory_space<vmem>>, vector<16x128xbf16>
    tpu.vector_store %arg12[%c32_59, %c0_60], %62 {strides = array<i32>} : memref<208x128xbf16, #tpu.memory_space<vmem>>, vector<16x128xbf16>,
    %c32_61 = arith.constant 32 : index
    %c0_62 = arith.constant 0 : index
    %64 = vector.load %arg11[%c32_61, %c0_62] : memref<208x64xbf16, #tpu.memory_space<vmem>>, vector<16x64xbf16>
    %c0_63 = arith.constant 0 : index
    %c0_64 = arith.constant 0 : index
    %c0_65 = arith.constant 0 : index
    %65 = vector.load %arg4[%c0_63, %c0_64, %c0_65] : memref<3x64x128xbf16, #tpu.memory_space<vmem>>, vector<1x64x128xbf16>
    %66 = vector.shape_cast %65 : vector<1x64x128xbf16> to vector<64x128xbf16>
    %cst_66 = arith.constant dense<0.000000e+00> : vector<16x128xf32>
    %67 = tpu.matmul %64, %66, %cst_66 {dimension_numbers = #tpu.dot_dimension_numbers<[1], [0], [0], [1], [0, 0, 1, 1], [], []>} : vector<16x64xbf16>, vector<64x128xbf16>, vector<16x128xf32> -> vector<16x128xf32>
    %c48_67 = arith.constant 48 : index
    %c0_68 = arith.constant 0 : index
    %68 = vector.load %arg11[%c48_67, %c0_68] : memref<208x64xbf16, #tpu.memory_space<vmem>>, vector<16x64xbf16>
    %c1_69 = arith.constant 1 : index
    %c0_70 = arith.constant 0 : index
    %c0_71 = arith.constant 0 : index
    %69 = vector.load %arg4[%c1_69, %c0_70, %c0_71] : memref<3x64x128xbf16, #tpu.memory_space<vmem>>, vector<1x64x128xbf16>
    %70 = vector.shape_cast %69 : vector<1x64x128xbf16> to vector<64x128xbf16>
    %cst_72 = arith.constant dense<0.000000e+00> : vector<16x128xf32>
    %71 = tpu.matmul %68, %70, %cst_72 {dimension_numbers = #tpu.dot_dimension_numbers<[1], [0], [0], [1], [0, 0, 1, 1], [], []>} : vector<16x64xbf16>, vector<64x128xbf16>, vector<16x128xf32> -> vector<16x128xf32>
    %72 = arith.addf %67, %71 : vector<16x128xf32>
    %c64 = arith.constant 64 : index
    %c0_73 = arith.constant 0 : index
    %73 = vector.load %arg11[%c64, %c0_73] : memref<208x64xbf16, #tpu.memory_space<vmem>>, vector<16x64xbf16>
    %c2_74 = arith.constant 2 : index
    %c0_75 = arith.constant 0 : index
    %c0_76 = arith.constant 0 : index
    %74 = vector.load %arg4[%c2_74, %c0_75, %c0_76] : memref<3x64x128xbf16, #tpu.memory_space<vmem>>, vector<1x64x128xbf16>
    %75 = vector.shape_cast %74 : vector<1x64x128xbf16> to vector<64x128xbf16>
    %cst_77 = arith.constant dense<0.000000e+00> : vector<16x128xf32>
    %76 = tpu.matmul %73, %75, %cst_77 {dimension_numbers = #tpu.dot_dimension_numbers<[1], [0], [0], [1], [0, 0, 1, 1], [], []>} : vector<16x64xbf16>, vector<64x128xbf16>, vector<16x128xf32> -> vector<16x128xf32>
    %77 = arith.addf %72, %76 : vector<16x128xf32>
    %c0_78 = arith.constant 0 : index
    %c0_79 = arith.constant 0 : index
    %78 = vector.load %arg5[%c0_78, %c0_79] : memref<1x128xf32, #tpu.memory_space<vmem>>, vector<1x128xf32>
    %79 = vector.broadcast %78 : vector<1x128xf32> to vector<16x128xf32>
    %80 = arith.addf %77, %79 : vector<16x128xf32>
    %cst_80 = arith.constant 1.000000e-01 : f32
    %81 = vector.broadcast %cst_80 : f32 to vector<16x128xf32>
    %82 = arith.mulf %81, %80 : vector<16x128xf32>
    %83 = arith.maximumf %80, %82 : vector<16x128xf32>
    %84 = arith.truncf %83 : vector<16x128xf32> to vector<16x128xbf16>
    %c48_81 = arith.constant 48 : index
    %c0_82 = arith.constant 0 : index
    %85 = vector.load %arg12[%c48_81, %c0_82] : memref<208x128xbf16, #tpu.memory_space<vmem>>, vector<16x128xbf16>
    tpu.vector_store %arg12[%c48_81, %c0_82], %84 {strides = array<i32>} : memref<208x128xbf16, #tpu.memory_space<vmem>>, vector<16x128xbf16>,
    %c48_83 = arith.constant 48 : index
    %c0_84 = arith.constant 0 : index
    %86 = vector.load %arg11[%c48_83, %c0_84] : memref<208x64xbf16, #tpu.memory_space<vmem>>, vector<16x64xbf16>
    %c0_85 = arith.constant 0 : index
    %c0_86 = arith.constant 0 : index
    %c0_87 = arith.constant 0 : index
    %87 = vector.load %arg4[%c0_85, %c0_86, %c0_87] : memref<3x64x128xbf16, #tpu.memory_space<vmem>>, vector<1x64x128xbf16>
    %88 = vector.shape_cast %87 : vector<1x64x128xbf16> to vector<64x128xbf16>
    %cst_88 = arith.constant dense<0.000000e+00> : vector<16x128xf32>
    %89 = tpu.matmul %86, %88, %cst_88 {dimension_numbers = #tpu.dot_dimension_numbers<[1], [0], [0], [1], [0, 0, 1, 1], [], []>} : vector<16x64xbf16>, vector<64x128xbf16>, vector<16x128xf32> -> vector<16x128xf32>
    %c64_89 = arith.constant 64 : index
    %c0_90 = arith.constant 0 : index
    %90 = vector.load %arg11[%c64_89, %c0_90] : memref<208x64xbf16, #tpu.memory_space<vmem>>, vector<16x64xbf16>
    %c1_91 = arith.constant 1 : index
    %c0_92 = arith.constant 0 : index
    %c0_93 = arith.constant 0 : index
    %91 = vector.load %arg4[%c1_91, %c0_92, %c0_93] : memref<3x64x128xbf16, #tpu.memory_space<vmem>>, vector<1x64x128xbf16>
    %92 = vector.shape_cast %91 : vector<1x64x128xbf16> to vector<64x128xbf16>
    %cst_94 = arith.constant dense<0.000000e+00> : vector<16x128xf32>
    %93 = tpu.matmul %90, %92, %cst_94 {dimension_numbers = #tpu.dot_dimension_numbers<[1], [0], [0], [1], [0, 0, 1, 1], [], []>} : vector<16x64xbf16>, vector<64x128xbf16>, vector<16x128xf32> -> vector<16x128xf32>
    %94 = arith.addf %89, %93 : vector<16x128xf32>
    %c80 = arith.constant 80 : index
    %c0_95 = arith.constant 0 : index
    %95 = vector.load %arg11[%c80, %c0_95] : memref<208x64xbf16, #tpu.memory_space<vmem>>, vector<16x64xbf16>
    %c2_96 = arith.constant 2 : index
    %c0_97 = arith.constant 0 : index
    %c0_98 = arith.constant 0 : index
    %96 = vector.load %arg4[%c2_96, %c0_97, %c0_98] : memref<3x64x128xbf16, #tpu.memory_space<vmem>>, vector<1x64x128xbf16>
    %97 = vector.shape_cast %96 : vector<1x64x128xbf16> to vector<64x128xbf16>
    %cst_99 = arith.constant dense<0.000000e+00> : vector<16x128xf32>
    %98 = tpu.matmul %95, %97, %cst_99 {dimension_numbers = #tpu.dot_dimension_numbers<[1], [0], [0], [1], [0, 0, 1, 1], [], []>} : vector<16x64xbf16>, vector<64x128xbf16>, vector<16x128xf32> -> vector<16x128xf32>
    %99 = arith.addf %94, %98 : vector<16x128xf32>
    %c0_100 = arith.constant 0 : index
    %c0_101 = arith.constant 0 : index
    %100 = vector.load %arg5[%c0_100, %c0_101] : memref<1x128xf32, #tpu.memory_space<vmem>>, vector<1x128xf32>
    %101 = vector.broadcast %100 : vector<1x128xf32> to vector<16x128xf32>
    %102 = arith.addf %99, %101 : vector<16x128xf32>
    %cst_102 = arith.constant 1.000000e-01 : f32
    %103 = vector.broadcast %cst_102 : f32 to vector<16x128xf32>
    %104 = arith.mulf %103, %102 : vector<16x128xf32>
    %105 = arith.maximumf %102, %104 : vector<16x128xf32>
    %106 = arith.truncf %105 : vector<16x128xf32> to vector<16x128xbf16>
    %c64_103 = arith.constant 64 : index
    %c0_104 = arith.constant 0 : index
    %107 = vector.load %arg12[%c64_103, %c0_104] : memref<208x128xbf16, #tpu.memory_space<vmem>>, vector<16x128xbf16>
    tpu.vector_store %arg12[%c64_103, %c0_104], %106 {strides = array<i32>} : memref<208x128xbf16, #tpu.memory_space<vmem>>, vector<16x128xbf16>,
    %c64_105 = arith.constant 64 : index
    %c0_106 = arith.constant 0 : index
    %108 = vector.load %arg11[%c64_105, %c0_106] : memref<208x64xbf16, #tpu.memory_space<vmem>>, vector<16x64xbf16>
    %c0_107 = arith.constant 0 : index
    %c0_108 = arith.constant 0 : index
    %c0_109 = arith.constant 0 : index
    %109 = vector.load %arg4[%c0_107, %c0_108, %c0_109] : memref<3x64x128xbf16, #tpu.memory_space<vmem>>, vector<1x64x128xbf16>
    %110 = vector.shape_cast %109 : vector<1x64x128xbf16> to vector<64x128xbf16>
    %cst_110 = arith.constant dense<0.000000e+00> : vector<16x128xf32>
    %111 = tpu.matmul %108, %110, %cst_110 {dimension_numbers = #tpu.dot_dimension_numbers<[1], [0], [0], [1], [0, 0, 1, 1], [], []>} : vector<16x64xbf16>, vector<64x128xbf16>, vector<16x128xf32> -> vector<16x128xf32>
    %c80_111 = arith.constant 80 : index
    %c0_112 = arith.constant 0 : index
    %112 = vector.load %arg11[%c80_111, %c0_112] : memref<208x64xbf16, #tpu.memory_space<vmem>>, vector<16x64xbf16>
    %c1_113 = arith.constant 1 : index
    %c0_114 = arith.constant 0 : index
    %c0_115 = arith.constant 0 : index
    %113 = vector.load %arg4[%c1_113, %c0_114, %c0_115] : memref<3x64x128xbf16, #tpu.memory_space<vmem>>, vector<1x64x128xbf16>
    %114 = vector.shape_cast %113 : vector<1x64x128xbf16> to vector<64x128xbf16>
    %cst_116 = arith.constant dense<0.000000e+00> : vector<16x128xf32>
    %115 = tpu.matmul %112, %114, %cst_116 {dimension_numbers = #tpu.dot_dimension_numbers<[1], [0], [0], [1], [0, 0, 1, 1], [], []>} : vector<16x64xbf16>, vector<64x128xbf16>, vector<16x128xf32> -> vector<16x128xf32>
    %116 = arith.addf %111, %115 : vector<16x128xf32>
    %c96 = arith.constant 96 : index
    %c0_117 = arith.constant 0 : index
    %117 = vector.load %arg11[%c96, %c0_117] : memref<208x64xbf16, #tpu.memory_space<vmem>>, vector<16x64xbf16>
    %c2_118 = arith.constant 2 : index
    %c0_119 = arith.constant 0 : index
    %c0_120 = arith.constant 0 : index
    %118 = vector.load %arg4[%c2_118, %c0_119, %c0_120] : memref<3x64x128xbf16, #tpu.memory_space<vmem>>, vector<1x64x128xbf16>
    %119 = vector.shape_cast %118 : vector<1x64x128xbf16> to vector<64x128xbf16>
    %cst_121 = arith.constant dense<0.000000e+00> : vector<16x128xf32>
    %120 = tpu.matmul %117, %119, %cst_121 {dimension_numbers = #tpu.dot_dimension_numbers<[1], [0], [0], [1], [0, 0, 1, 1], [], []>} : vector<16x64xbf16>, vector<64x128xbf16>, vector<16x128xf32> -> vector<16x128xf32>
    %121 = arith.addf %116, %120 : vector<16x128xf32>
    %c0_122 = arith.constant 0 : index
    %c0_123 = arith.constant 0 : index
    %122 = vector.load %arg5[%c0_122, %c0_123] : memref<1x128xf32, #tpu.memory_space<vmem>>, vector<1x128xf32>
    %123 = vector.broadcast %122 : vector<1x128xf32> to vector<16x128xf32>
    %124 = arith.addf %121, %123 : vector<16x128xf32>
    %cst_124 = arith.constant 1.000000e-01 : f32
    %125 = vector.broadcast %cst_124 : f32 to vector<16x128xf32>
    %126 = arith.mulf %125, %124 : vector<16x128xf32>
    %127 = arith.maximumf %124, %126 : vector<16x128xf32>
    %128 = arith.truncf %127 : vector<16x128xf32> to vector<16x128xbf16>
    %c80_125 = arith.constant 80 : index
    %c0_126 = arith.constant 0 : index
    %129 = vector.load %arg12[%c80_125, %c0_126] : memref<208x128xbf16, #tpu.memory_space<vmem>>, vector<16x128xbf16>
    tpu.vector_store %arg12[%c80_125, %c0_126], %128 {strides = array<i32>} : memref<208x128xbf16, #tpu.memory_space<vmem>>, vector<16x128xbf16>,
    %c80_127 = arith.constant 80 : index
    %c0_128 = arith.constant 0 : index
    %130 = vector.load %arg11[%c80_127, %c0_128] : memref<208x64xbf16, #tpu.memory_space<vmem>>, vector<16x64xbf16>
    %c0_129 = arith.constant 0 : index
    %c0_130 = arith.constant 0 : index
    %c0_131 = arith.constant 0 : index
    %131 = vector.load %arg4[%c0_129, %c0_130, %c0_131] : memref<3x64x128xbf16, #tpu.memory_space<vmem>>, vector<1x64x128xbf16>
    %132 = vector.shape_cast %131 : vector<1x64x128xbf16> to vector<64x128xbf16>
    %cst_132 = arith.constant dense<0.000000e+00> : vector<16x128xf32>
    %133 = tpu.matmul %130, %132, %cst_132 {dimension_numbers = #tpu.dot_dimension_numbers<[1], [0], [0], [1], [0, 0, 1, 1], [], []>} : vector<16x64xbf16>, vector<64x128xbf16>, vector<16x128xf32> -> vector<16x128xf32>
    %c96_133 = arith.constant 96 : index
    %c0_134 = arith.constant 0 : index
    %134 = vector.load %arg11[%c96_133, %c0_134] : memref<208x64xbf16, #tpu.memory_space<vmem>>, vector<16x64xbf16>
    %c1_135 = arith.constant 1 : index
    %c0_136 = arith.constant 0 : index
    %c0_137 = arith.constant 0 : index
    %135 = vector.load %arg4[%c1_135, %c0_136, %c0_137] : memref<3x64x128xbf16, #tpu.memory_space<vmem>>, vector<1x64x128xbf16>
    %136 = vector.shape_cast %135 : vector<1x64x128xbf16> to vector<64x128xbf16>
    %cst_138 = arith.constant dense<0.000000e+00> : vector<16x128xf32>
    %137 = tpu.matmul %134, %136, %cst_138 {dimension_numbers = #tpu.dot_dimension_numbers<[1], [0], [0], [1], [0, 0, 1, 1], [], []>} : vector<16x64xbf16>, vector<64x128xbf16>, vector<16x128xf32> -> vector<16x128xf32>
    %138 = arith.addf %133, %137 : vector<16x128xf32>
    %c112 = arith.constant 112 : index
    %c0_139 = arith.constant 0 : index
    %139 = vector.load %arg11[%c112, %c0_139] : memref<208x64xbf16, #tpu.memory_space<vmem>>, vector<16x64xbf16>
    %c2_140 = arith.constant 2 : index
    %c0_141 = arith.constant 0 : index
    %c0_142 = arith.constant 0 : index
    %140 = vector.load %arg4[%c2_140, %c0_141, %c0_142] : memref<3x64x128xbf16, #tpu.memory_space<vmem>>, vector<1x64x128xbf16>
    %141 = vector.shape_cast %140 : vector<1x64x128xbf16> to vector<64x128xbf16>
    %cst_143 = arith.constant dense<0.000000e+00> : vector<16x128xf32>
    %142 = tpu.matmul %139, %141, %cst_143 {dimension_numbers = #tpu.dot_dimension_numbers<[1], [0], [0], [1], [0, 0, 1, 1], [], []>} : vector<16x64xbf16>, vector<64x128xbf16>, vector<16x128xf32> -> vector<16x128xf32>
    %143 = arith.addf %138, %142 : vector<16x128xf32>
    %c0_144 = arith.constant 0 : index
    %c0_145 = arith.constant 0 : index
    %144 = vector.load %arg5[%c0_144, %c0_145] : memref<1x128xf32, #tpu.memory_space<vmem>>, vector<1x128xf32>
    %145 = vector.broadcast %144 : vector<1x128xf32> to vector<16x128xf32>
    %146 = arith.addf %143, %145 : vector<16x128xf32>
    %cst_146 = arith.constant 1.000000e-01 : f32
    %147 = vector.broadcast %cst_146 : f32 to vector<16x128xf32>
    %148 = arith.mulf %147, %146 : vector<16x128xf32>
    %149 = arith.maximumf %146, %148 : vector<16x128xf32>
    %150 = arith.truncf %149 : vector<16x128xf32> to vector<16x128xbf16>
    %c96_147 = arith.constant 96 : index
    %c0_148 = arith.constant 0 : index
    %151 = vector.load %arg12[%c96_147, %c0_148] : memref<208x128xbf16, #tpu.memory_space<vmem>>, vector<16x128xbf16>
    tpu.vector_store %arg12[%c96_147, %c0_148], %150 {strides = array<i32>} : memref<208x128xbf16, #tpu.memory_space<vmem>>, vector<16x128xbf16>,
    %c96_149 = arith.constant 96 : index
    %c0_150 = arith.constant 0 : index
    %152 = vector.load %arg11[%c96_149, %c0_150] : memref<208x64xbf16, #tpu.memory_space<vmem>>, vector<16x64xbf16>
    %c0_151 = arith.constant 0 : index
    %c0_152 = arith.constant 0 : index
    %c0_153 = arith.constant 0 : index
    %153 = vector.load %arg4[%c0_151, %c0_152, %c0_153] : memref<3x64x128xbf16, #tpu.memory_space<vmem>>, vector<1x64x128xbf16>
    %154 = vector.shape_cast %153 : vector<1x64x128xbf16> to vector<64x128xbf16>
    %cst_154 = arith.constant dense<0.000000e+00> : vector<16x128xf32>
    %155 = tpu.matmul %152, %154, %cst_154 {dimension_numbers = #tpu.dot_dimension_numbers<[1], [0], [0], [1], [0, 0, 1, 1], [], []>} : vector<16x64xbf16>, vector<64x128xbf16>, vector<16x128xf32> -> vector<16x128xf32>
    %c112_155 = arith.constant 112 : index
    %c0_156 = arith.constant 0 : index
    %156 = vector.load %arg11[%c112_155, %c0_156] : memref<208x64xbf16, #tpu.memory_space<vmem>>, vector<16x64xbf16>
    %c1_157 = arith.constant 1 : index
    %c0_158 = arith.constant 0 : index
    %c0_159 = arith.constant 0 : index
    %157 = vector.load %arg4[%c1_157, %c0_158, %c0_159] : memref<3x64x128xbf16, #tpu.memory_space<vmem>>, vector<1x64x128xbf16>
    %158 = vector.shape_cast %157 : vector<1x64x128xbf16> to vector<64x128xbf16>
    %cst_160 = arith.constant dense<0.000000e+00> : vector<16x128xf32>
    %159 = tpu.matmul %156, %158, %cst_160 {dimension_numbers = #tpu.dot_dimension_numbers<[1], [0], [0], [1], [0, 0, 1, 1], [], []>} : vector<16x64xbf16>, vector<64x128xbf16>, vector<16x128xf32> -> vector<16x128xf32>
    %160 = arith.addf %155, %159 : vector<16x128xf32>
    %c128 = arith.constant 128 : index
    %c0_161 = arith.constant 0 : index
    %161 = vector.load %arg11[%c128, %c0_161] : memref<208x64xbf16, #tpu.memory_space<vmem>>, vector<16x64xbf16>
    %c2_162 = arith.constant 2 : index
    %c0_163 = arith.constant 0 : index
    %c0_164 = arith.constant 0 : index
    %162 = vector.load %arg4[%c2_162, %c0_163, %c0_164] : memref<3x64x128xbf16, #tpu.memory_space<vmem>>, vector<1x64x128xbf16>
    %163 = vector.shape_cast %162 : vector<1x64x128xbf16> to vector<64x128xbf16>
    %cst_165 = arith.constant dense<0.000000e+00> : vector<16x128xf32>
    %164 = tpu.matmul %161, %163, %cst_165 {dimension_numbers = #tpu.dot_dimension_numbers<[1], [0], [0], [1], [0, 0, 1, 1], [], []>} : vector<16x64xbf16>, vector<64x128xbf16>, vector<16x128xf32> -> vector<16x128xf32>
    %165 = arith.addf %160, %164 : vector<16x128xf32>
    %c0_166 = arith.constant 0 : index
    %c0_167 = arith.constant 0 : index
    %166 = vector.load %arg5[%c0_166, %c0_167] : memref<1x128xf32, #tpu.memory_space<vmem>>, vector<1x128xf32>
    %167 = vector.broadcast %166 : vector<1x128xf32> to vector<16x128xf32>
    %168 = arith.addf %165, %167 : vector<16x128xf32>
    %cst_168 = arith.constant 1.000000e-01 : f32
    %169 = vector.broadcast %cst_168 : f32 to vector<16x128xf32>
    %170 = arith.mulf %169, %168 : vector<16x128xf32>
    %171 = arith.maximumf %168, %170 : vector<16x128xf32>
    %172 = arith.truncf %171 : vector<16x128xf32> to vector<16x128xbf16>
    %c112_169 = arith.constant 112 : index
    %c0_170 = arith.constant 0 : index
    %173 = vector.load %arg12[%c112_169, %c0_170] : memref<208x128xbf16, #tpu.memory_space<vmem>>, vector<16x128xbf16>
    tpu.vector_store %arg12[%c112_169, %c0_170], %172 {strides = array<i32>} : memref<208x128xbf16, #tpu.memory_space<vmem>>, vector<16x128xbf16>,
    %c112_171 = arith.constant 112 : index
    %c0_172 = arith.constant 0 : index
    %174 = vector.load %arg11[%c112_171, %c0_172] : memref<208x64xbf16, #tpu.memory_space<vmem>>, vector<16x64xbf16>
    %c0_173 = arith.constant 0 : index
    %c0_174 = arith.constant 0 : index
    %c0_175 = arith.constant 0 : index
    %175 = vector.load %arg4[%c0_173, %c0_174, %c0_175] : memref<3x64x128xbf16, #tpu.memory_space<vmem>>, vector<1x64x128xbf16>
    %176 = vector.shape_cast %175 : vector<1x64x128xbf16> to vector<64x128xbf16>
    %cst_176 = arith.constant dense<0.000000e+00> : vector<16x128xf32>
    %177 = tpu.matmul %174, %176, %cst_176 {dimension_numbers = #tpu.dot_dimension_numbers<[1], [0], [0], [1], [0, 0, 1, 1], [], []>} : vector<16x64xbf16>, vector<64x128xbf16>, vector<16x128xf32> -> vector<16x128xf32>
    %c128_177 = arith.constant 128 : index
    %c0_178 = arith.constant 0 : index
    %178 = vector.load %arg11[%c128_177, %c0_178] : memref<208x64xbf16, #tpu.memory_space<vmem>>, vector<16x64xbf16>
    %c1_179 = arith.constant 1 : index
    %c0_180 = arith.constant 0 : index
    %c0_181 = arith.constant 0 : index
    %179 = vector.load %arg4[%c1_179, %c0_180, %c0_181] : memref<3x64x128xbf16, #tpu.memory_space<vmem>>, vector<1x64x128xbf16>
    %180 = vector.shape_cast %179 : vector<1x64x128xbf16> to vector<64x128xbf16>
    %cst_182 = arith.constant dense<0.000000e+00> : vector<16x128xf32>
    %181 = tpu.matmul %178, %180, %cst_182 {dimension_numbers = #tpu.dot_dimension_numbers<[1], [0], [0], [1], [0, 0, 1, 1], [], []>} : vector<16x64xbf16>, vector<64x128xbf16>, vector<16x128xf32> -> vector<16x128xf32>
    %182 = arith.addf %177, %181 : vector<16x128xf32>
    %c144 = arith.constant 144 : index
    %c0_183 = arith.constant 0 : index
    %183 = vector.load %arg11[%c144, %c0_183] : memref<208x64xbf16, #tpu.memory_space<vmem>>, vector<16x64xbf16>
    %c2_184 = arith.constant 2 : index
    %c0_185 = arith.constant 0 : index
    %c0_186 = arith.constant 0 : index
    %184 = vector.load %arg4[%c2_184, %c0_185, %c0_186] : memref<3x64x128xbf16, #tpu.memory_space<vmem>>, vector<1x64x128xbf16>
    %185 = vector.shape_cast %184 : vector<1x64x128xbf16> to vector<64x128xbf16>
    %cst_187 = arith.constant dense<0.000000e+00> : vector<16x128xf32>
    %186 = tpu.matmul %183, %185, %cst_187 {dimension_numbers = #tpu.dot_dimension_numbers<[1], [0], [0], [1], [0, 0, 1, 1], [], []>} : vector<16x64xbf16>, vector<64x128xbf16>, vector<16x128xf32> -> vector<16x128xf32>
    %187 = arith.addf %182, %186 : vector<16x128xf32>
    %c0_188 = arith.constant 0 : index
    %c0_189 = arith.constant 0 : index
    %188 = vector.load %arg5[%c0_188, %c0_189] : memref<1x128xf32, #tpu.memory_space<vmem>>, vector<1x128xf32>
    %189 = vector.broadcast %188 : vector<1x128xf32> to vector<16x128xf32>
    %190 = arith.addf %187, %189 : vector<16x128xf32>
    %cst_190 = arith.constant 1.000000e-01 : f32
    %191 = vector.broadcast %cst_190 : f32 to vector<16x128xf32>
    %192 = arith.mulf %191, %190 : vector<16x128xf32>
    %193 = arith.maximumf %190, %192 : vector<16x128xf32>
    %194 = arith.truncf %193 : vector<16x128xf32> to vector<16x128xbf16>
    %c128_191 = arith.constant 128 : index
    %c0_192 = arith.constant 0 : index
    %195 = vector.load %arg12[%c128_191, %c0_192] : memref<208x128xbf16, #tpu.memory_space<vmem>>, vector<16x128xbf16>
    tpu.vector_store %arg12[%c128_191, %c0_192], %194 {strides = array<i32>} : memref<208x128xbf16, #tpu.memory_space<vmem>>, vector<16x128xbf16>,
    %c128_193 = arith.constant 128 : index
    %c0_194 = arith.constant 0 : index
    %196 = vector.load %arg11[%c128_193, %c0_194] : memref<208x64xbf16, #tpu.memory_space<vmem>>, vector<16x64xbf16>
    %c0_195 = arith.constant 0 : index
    %c0_196 = arith.constant 0 : index
    %c0_197 = arith.constant 0 : index
    %197 = vector.load %arg4[%c0_195, %c0_196, %c0_197] : memref<3x64x128xbf16, #tpu.memory_space<vmem>>, vector<1x64x128xbf16>
    %198 = vector.shape_cast %197 : vector<1x64x128xbf16> to vector<64x128xbf16>
    %cst_198 = arith.constant dense<0.000000e+00> : vector<16x128xf32>
    %199 = tpu.matmul %196, %198, %cst_198 {dimension_numbers = #tpu.dot_dimension_numbers<[1], [0], [0], [1], [0, 0, 1, 1], [], []>} : vector<16x64xbf16>, vector<64x128xbf16>, vector<16x128xf32> -> vector<16x128xf32>
    %c144_199 = arith.constant 144 : index
    %c0_200 = arith.constant 0 : index
    %200 = vector.load %arg11[%c144_199, %c0_200] : memref<208x64xbf16, #tpu.memory_space<vmem>>, vector<16x64xbf16>
    %c1_201 = arith.constant 1 : index
    %c0_202 = arith.constant 0 : index
    %c0_203 = arith.constant 0 : index
    %201 = vector.load %arg4[%c1_201, %c0_202, %c0_203] : memref<3x64x128xbf16, #tpu.memory_space<vmem>>, vector<1x64x128xbf16>
    %202 = vector.shape_cast %201 : vector<1x64x128xbf16> to vector<64x128xbf16>
    %cst_204 = arith.constant dense<0.000000e+00> : vector<16x128xf32>
    %203 = tpu.matmul %200, %202, %cst_204 {dimension_numbers = #tpu.dot_dimension_numbers<[1], [0], [0], [1], [0, 0, 1, 1], [], []>} : vector<16x64xbf16>, vector<64x128xbf16>, vector<16x128xf32> -> vector<16x128xf32>
    %204 = arith.addf %199, %203 : vector<16x128xf32>
    %c160 = arith.constant 160 : index
    %c0_205 = arith.constant 0 : index
    %205 = vector.load %arg11[%c160, %c0_205] : memref<208x64xbf16, #tpu.memory_space<vmem>>, vector<16x64xbf16>
    %c2_206 = arith.constant 2 : index
    %c0_207 = arith.constant 0 : index
    %c0_208 = arith.constant 0 : index
    %206 = vector.load %arg4[%c2_206, %c0_207, %c0_208] : memref<3x64x128xbf16, #tpu.memory_space<vmem>>, vector<1x64x128xbf16>
    %207 = vector.shape_cast %206 : vector<1x64x128xbf16> to vector<64x128xbf16>
    %cst_209 = arith.constant dense<0.000000e+00> : vector<16x128xf32>
    %208 = tpu.matmul %205, %207, %cst_209 {dimension_numbers = #tpu.dot_dimension_numbers<[1], [0], [0], [1], [0, 0, 1, 1], [], []>} : vector<16x64xbf16>, vector<64x128xbf16>, vector<16x128xf32> -> vector<16x128xf32>
    %209 = arith.addf %204, %208 : vector<16x128xf32>
    %c0_210 = arith.constant 0 : index
    %c0_211 = arith.constant 0 : index
    %210 = vector.load %arg5[%c0_210, %c0_211] : memref<1x128xf32, #tpu.memory_space<vmem>>, vector<1x128xf32>
    %211 = vector.broadcast %210 : vector<1x128xf32> to vector<16x128xf32>
    %212 = arith.addf %209, %211 : vector<16x128xf32>
    %cst_212 = arith.constant 1.000000e-01 : f32
    %213 = vector.broadcast %cst_212 : f32 to vector<16x128xf32>
    %214 = arith.mulf %213, %212 : vector<16x128xf32>
    %215 = arith.maximumf %212, %214 : vector<16x128xf32>
    %216 = arith.truncf %215 : vector<16x128xf32> to vector<16x128xbf16>
    %c144_213 = arith.constant 144 : index
    %c0_214 = arith.constant 0 : index
    %217 = vector.load %arg12[%c144_213, %c0_214] : memref<208x128xbf16, #tpu.memory_space<vmem>>, vector<16x128xbf16>
    tpu.vector_store %arg12[%c144_213, %c0_214], %216 {strides = array<i32>} : memref<208x128xbf16, #tpu.memory_space<vmem>>, vector<16x128xbf16>,
    %c144_215 = arith.constant 144 : index
    %c0_216 = arith.constant 0 : index
    %218 = vector.load %arg11[%c144_215, %c0_216] : memref<208x64xbf16, #tpu.memory_space<vmem>>, vector<16x64xbf16>
    %c0_217 = arith.constant 0 : index
    %c0_218 = arith.constant 0 : index
    %c0_219 = arith.constant 0 : index
    %219 = vector.load %arg4[%c0_217, %c0_218, %c0_219] : memref<3x64x128xbf16, #tpu.memory_space<vmem>>, vector<1x64x128xbf16>
    %220 = vector.shape_cast %219 : vector<1x64x128xbf16> to vector<64x128xbf16>
    %cst_220 = arith.constant dense<0.000000e+00> : vector<16x128xf32>
    %221 = tpu.matmul %218, %220, %cst_220 {dimension_numbers = #tpu.dot_dimension_numbers<[1], [0], [0], [1], [0, 0, 1, 1], [], []>} : vector<16x64xbf16>, vector<64x128xbf16>, vector<16x128xf32> -> vector<16x128xf32>
    %c160_221 = arith.constant 160 : index
    %c0_222 = arith.constant 0 : index
    %222 = vector.load %arg11[%c160_221, %c0_222] : memref<208x64xbf16, #tpu.memory_space<vmem>>, vector<16x64xbf16>
    %c1_223 = arith.constant 1 : index
    %c0_224 = arith.constant 0 : index
    %c0_225 = arith.constant 0 : index
    %223 = vector.load %arg4[%c1_223, %c0_224, %c0_225] : memref<3x64x128xbf16, #tpu.memory_space<vmem>>, vector<1x64x128xbf16>
    %224 = vector.shape_cast %223 : vector<1x64x128xbf16> to vector<64x128xbf16>
    %cst_226 = arith.constant dense<0.000000e+00> : vector<16x128xf32>
    %225 = tpu.matmul %222, %224, %cst_226 {dimension_numbers = #tpu.dot_dimension_numbers<[1], [0], [0], [1], [0, 0, 1, 1], [], []>} : vector<16x64xbf16>, vector<64x128xbf16>, vector<16x128xf32> -> vector<16x128xf32>
    %226 = arith.addf %221, %225 : vector<16x128xf32>
    %c176 = arith.constant 176 : index
    %c0_227 = arith.constant 0 : index
    %227 = vector.load %arg11[%c176, %c0_227] : memref<208x64xbf16, #tpu.memory_space<vmem>>, vector<16x64xbf16>
    %c2_228 = arith.constant 2 : index
    %c0_229 = arith.constant 0 : index
    %c0_230 = arith.constant 0 : index
    %228 = vector.load %arg4[%c2_228, %c0_229, %c0_230] : memref<3x64x128xbf16, #tpu.memory_space<vmem>>, vector<1x64x128xbf16>
    %229 = vector.shape_cast %228 : vector<1x64x128xbf16> to vector<64x128xbf16>
    %cst_231 = arith.constant dense<0.000000e+00> : vector<16x128xf32>
    %230 = tpu.matmul %227, %229, %cst_231 {dimension_numbers = #tpu.dot_dimension_numbers<[1], [0], [0], [1], [0, 0, 1, 1], [], []>} : vector<16x64xbf16>, vector<64x128xbf16>, vector<16x128xf32> -> vector<16x128xf32>
    %231 = arith.addf %226, %230 : vector<16x128xf32>
    %c0_232 = arith.constant 0 : index
    %c0_233 = arith.constant 0 : index
    %232 = vector.load %arg5[%c0_232, %c0_233] : memref<1x128xf32, #tpu.memory_space<vmem>>, vector<1x128xf32>
    %233 = vector.broadcast %232 : vector<1x128xf32> to vector<16x128xf32>
    %234 = arith.addf %231, %233 : vector<16x128xf32>
    %cst_234 = arith.constant 1.000000e-01 : f32
    %235 = vector.broadcast %cst_234 : f32 to vector<16x128xf32>
    %236 = arith.mulf %235, %234 : vector<16x128xf32>
    %237 = arith.maximumf %234, %236 : vector<16x128xf32>
    %238 = arith.truncf %237 : vector<16x128xf32> to vector<16x128xbf16>
    %c160_235 = arith.constant 160 : index
    %c0_236 = arith.constant 0 : index
    %239 = vector.load %arg12[%c160_235, %c0_236] : memref<208x128xbf16, #tpu.memory_space<vmem>>, vector<16x128xbf16>
    tpu.vector_store %arg12[%c160_235, %c0_236], %238 {strides = array<i32>} : memref<208x128xbf16, #tpu.memory_space<vmem>>, vector<16x128xbf16>,
    %c160_237 = arith.constant 160 : index
    %c0_238 = arith.constant 0 : index
    %240 = vector.load %arg11[%c160_237, %c0_238] : memref<208x64xbf16, #tpu.memory_space<vmem>>, vector<16x64xbf16>
    %c0_239 = arith.constant 0 : index
    %c0_240 = arith.constant 0 : index
    %c0_241 = arith.constant 0 : index
    %241 = vector.load %arg4[%c0_239, %c0_240, %c0_241] : memref<3x64x128xbf16, #tpu.memory_space<vmem>>, vector<1x64x128xbf16>
    %242 = vector.shape_cast %241 : vector<1x64x128xbf16> to vector<64x128xbf16>
    %cst_242 = arith.constant dense<0.000000e+00> : vector<16x128xf32>
    %243 = tpu.matmul %240, %242, %cst_242 {dimension_numbers = #tpu.dot_dimension_numbers<[1], [0], [0], [1], [0, 0, 1, 1], [], []>} : vector<16x64xbf16>, vector<64x128xbf16>, vector<16x128xf32> -> vector<16x128xf32>
    %c176_243 = arith.constant 176 : index
    %c0_244 = arith.constant 0 : index
    %244 = vector.load %arg11[%c176_243, %c0_244] : memref<208x64xbf16, #tpu.memory_space<vmem>>, vector<16x64xbf16>
    %c1_245 = arith.constant 1 : index
    %c0_246 = arith.constant 0 : index
    %c0_247 = arith.constant 0 : index
    %245 = vector.load %arg4[%c1_245, %c0_246, %c0_247] : memref<3x64x128xbf16, #tpu.memory_space<vmem>>, vector<1x64x128xbf16>
    %246 = vector.shape_cast %245 : vector<1x64x128xbf16> to vector<64x128xbf16>
    %cst_248 = arith.constant dense<0.000000e+00> : vector<16x128xf32>
    %247 = tpu.matmul %244, %246, %cst_248 {dimension_numbers = #tpu.dot_dimension_numbers<[1], [0], [0], [1], [0, 0, 1, 1], [], []>} : vector<16x64xbf16>, vector<64x128xbf16>, vector<16x128xf32> -> vector<16x128xf32>
    %248 = arith.addf %243, %247 : vector<16x128xf32>
    %c192_249 = arith.constant 192 : index
    %c0_250 = arith.constant 0 : index
    %249 = vector.load %arg11[%c192_249, %c0_250] : memref<208x64xbf16, #tpu.memory_space<vmem>>, vector<16x64xbf16>
    %c2_251 = arith.constant 2 : index
    %c0_252 = arith.constant 0 : index
    %c0_253 = arith.constant 0 : index
    %250 = vector.load %arg4[%c2_251, %c0_252, %c0_253] : memref<3x64x128xbf16, #tpu.memory_space<vmem>>, vector<1x64x128xbf16>
    %251 = vector.shape_cast %250 : vector<1x64x128xbf16> to vector<64x128xbf16>
    %cst_254 = arith.constant dense<0.000000e+00> : vector<16x128xf32>
    %252 = tpu.matmul %249, %251, %cst_254 {dimension_numbers = #tpu.dot_dimension_numbers<[1], [0], [0], [1], [0, 0, 1, 1], [], []>} : vector<16x64xbf16>, vector<64x128xbf16>, vector<16x128xf32> -> vector<16x128xf32>
    %253 = arith.addf %248, %252 : vector<16x128xf32>
    %c0_255 = arith.constant 0 : index
    %c0_256 = arith.constant 0 : index
    %254 = vector.load %arg5[%c0_255, %c0_256] : memref<1x128xf32, #tpu.memory_space<vmem>>, vector<1x128xf32>
    %255 = vector.broadcast %254 : vector<1x128xf32> to vector<16x128xf32>
    %256 = arith.addf %253, %255 : vector<16x128xf32>
    %cst_257 = arith.constant 1.000000e-01 : f32
    %257 = vector.broadcast %cst_257 : f32 to vector<16x128xf32>
    %258 = arith.mulf %257, %256 : vector<16x128xf32>
    %259 = arith.maximumf %256, %258 : vector<16x128xf32>
    %260 = arith.truncf %259 : vector<16x128xf32> to vector<16x128xbf16>
    %c176_258 = arith.constant 176 : index
    %c0_259 = arith.constant 0 : index
    %261 = vector.load %arg12[%c176_258, %c0_259] : memref<208x128xbf16, #tpu.memory_space<vmem>>, vector<16x128xbf16>
    tpu.vector_store %arg12[%c176_258, %c0_259], %260 {strides = array<i32>} : memref<208x128xbf16, #tpu.memory_space<vmem>>, vector<16x128xbf16>,
    %c0_260 = arith.constant 0 : index
    %c0_261 = arith.constant 0 : index
    %262 = vector.load %arg12[%c0_260, %c0_261] : memref<208x128xbf16, #tpu.memory_space<vmem>>, vector<16x128xbf16>
    %c0_262 = arith.constant 0 : index
    %c0_263 = arith.constant 0 : index
    %c0_264 = arith.constant 0 : index
    %263 = vector.load %arg6[%c0_262, %c0_263, %c0_264] : memref<3x128x256xbf16, #tpu.memory_space<vmem>>, vector<1x128x256xbf16>
    %264 = vector.shape_cast %263 : vector<1x128x256xbf16> to vector<128x256xbf16>
    %cst_265 = arith.constant dense<0.000000e+00> : vector<16x256xf32>
    %265 = tpu.matmul %262, %264, %cst_265 {dimension_numbers = #tpu.dot_dimension_numbers<[1], [0], [0], [1], [0, 0, 1, 1], [], []>} : vector<16x128xbf16>, vector<128x256xbf16>, vector<16x256xf32> -> vector<16x256xf32>
    %c16_266 = arith.constant 16 : index
    %c0_267 = arith.constant 0 : index
    %266 = vector.load %arg12[%c16_266, %c0_267] : memref<208x128xbf16, #tpu.memory_space<vmem>>, vector<16x128xbf16>
    %c1_268 = arith.constant 1 : index
    %c0_269 = arith.constant 0 : index
    %c0_270 = arith.constant 0 : index
    %267 = vector.load %arg6[%c1_268, %c0_269, %c0_270] : memref<3x128x256xbf16, #tpu.memory_space<vmem>>, vector<1x128x256xbf16>
    %268 = vector.shape_cast %267 : vector<1x128x256xbf16> to vector<128x256xbf16>
    %cst_271 = arith.constant dense<0.000000e+00> : vector<16x256xf32>
    %269 = tpu.matmul %266, %268, %cst_271 {dimension_numbers = #tpu.dot_dimension_numbers<[1], [0], [0], [1], [0, 0, 1, 1], [], []>} : vector<16x128xbf16>, vector<128x256xbf16>, vector<16x256xf32> -> vector<16x256xf32>
    %270 = arith.addf %265, %269 : vector<16x256xf32>
    %c32_272 = arith.constant 32 : index
    %c0_273 = arith.constant 0 : index
    %271 = vector.load %arg12[%c32_272, %c0_273] : memref<208x128xbf16, #tpu.memory_space<vmem>>, vector<16x128xbf16>
    %c2_274 = arith.constant 2 : index
    %c0_275 = arith.constant 0 : index
    %c0_276 = arith.constant 0 : index
    %272 = vector.load %arg6[%c2_274, %c0_275, %c0_276] : memref<3x128x256xbf16, #tpu.memory_space<vmem>>, vector<1x128x256xbf16>
    %273 = vector.shape_cast %272 : vector<1x128x256xbf16> to vector<128x256xbf16>
    %cst_277 = arith.constant dense<0.000000e+00> : vector<16x256xf32>
    %274 = tpu.matmul %271, %273, %cst_277 {dimension_numbers = #tpu.dot_dimension_numbers<[1], [0], [0], [1], [0, 0, 1, 1], [], []>} : vector<16x128xbf16>, vector<128x256xbf16>, vector<16x256xf32> -> vector<16x256xf32>
    %275 = arith.addf %270, %274 : vector<16x256xf32>
    %c0_278 = arith.constant 0 : index
    %c0_279 = arith.constant 0 : index
    %276 = vector.load %arg7[%c0_278, %c0_279] : memref<1x256xf32, #tpu.memory_space<vmem>>, vector<1x256xf32>
    %277 = vector.broadcast %276 : vector<1x256xf32> to vector<16x256xf32>
    %278 = arith.addf %275, %277 : vector<16x256xf32>
    %cst_280 = arith.constant 1.000000e-01 : f32
    %279 = vector.broadcast %cst_280 : f32 to vector<16x256xf32>
    %280 = arith.mulf %279, %278 : vector<16x256xf32>
    %281 = arith.maximumf %278, %280 : vector<16x256xf32>
    %282 = arith.truncf %281 : vector<16x256xf32> to vector<16x256xbf16>
    %c0_281 = arith.constant 0 : index
    %c0_282 = arith.constant 0 : index
    %c0_283 = arith.constant 0 : index
    %283 = vector.load %arg8[%c0_281, %c0_282, %c0_283] : memref<11x256x256xbf16, #tpu.memory_space<vmem>>, vector<1x256x256xbf16>
    %284 = vector.shape_cast %283 : vector<1x256x256xbf16> to vector<256x256xbf16>
    %cst_284 = arith.constant dense<0.000000e+00> : vector<16x256xf32>
    %285 = tpu.matmul %282, %284, %cst_284 {dimension_numbers = #tpu.dot_dimension_numbers<[1], [0], [0], [1], [0, 0, 1, 1], [], []>} : vector<16x256xbf16>, vector<256x256xbf16>, vector<16x256xf32> -> vector<16x256xf32>
    %c0_285 = arith.constant 0 : index
    %c0_286 = arith.constant 0 : index
    %286 = vector.load %arg9[%c0_285, %c0_286] : memref<1x256xf32, #tpu.memory_space<vmem>>, vector<1x256xf32>
    %287 = vector.broadcast %286 : vector<1x256xf32> to vector<16x256xf32>
    %288 = arith.addf %285, %287 : vector<16x256xf32>
    %c0_287 = arith.constant 0 : index
    %c0_288 = arith.constant 0 : index
    %289 = vector.load %arg10[%c0_287, %c0_288] : memref<16x256xf32, #tpu.memory_space<vmem>>, vector<16x256xf32>
    tpu.vector_store %arg10[%c0_287, %c0_288], %288 {strides = array<i32>} : memref<16x256xf32, #tpu.memory_space<vmem>>, vector<16x256xf32>,
    %c16_289 = arith.constant 16 : index
    %c0_290 = arith.constant 0 : index
    %290 = vector.load %arg12[%c16_289, %c0_290] : memref<208x128xbf16, #tpu.memory_space<vmem>>, vector<16x128xbf16>
    %c0_291 = arith.constant 0 : index
    %c0_292 = arith.constant 0 : index
    %c0_293 = arith.constant 0 : index
    %291 = vector.load %arg6[%c0_291, %c0_292, %c0_293] : memref<3x128x256xbf16, #tpu.memory_space<vmem>>, vector<1x128x256xbf16>
    %292 = vector.shape_cast %291 : vector<1x128x256xbf16> to vector<128x256xbf16>
    %cst_294 = arith.constant dense<0.000000e+00> : vector<16x256xf32>
    %293 = tpu.matmul %290, %292, %cst_294 {dimension_numbers = #tpu.dot_dimension_numbers<[1], [0], [0], [1], [0, 0, 1, 1], [], []>} : vector<16x128xbf16>, vector<128x256xbf16>, vector<16x256xf32> -> vector<16x256xf32>
    %c32_295 = arith.constant 32 : index
    %c0_296 = arith.constant 0 : index
    %294 = vector.load %arg12[%c32_295, %c0_296] : memref<208x128xbf16, #tpu.memory_space<vmem>>, vector<16x128xbf16>
    %c1_297 = arith.constant 1 : index
    %c0_298 = arith.constant 0 : index
    %c0_299 = arith.constant 0 : index
    %295 = vector.load %arg6[%c1_297, %c0_298, %c0_299] : memref<3x128x256xbf16, #tpu.memory_space<vmem>>, vector<1x128x256xbf16>
    %296 = vector.shape_cast %295 : vector<1x128x256xbf16> to vector<128x256xbf16>
    %cst_300 = arith.constant dense<0.000000e+00> : vector<16x256xf32>
    %297 = tpu.matmul %294, %296, %cst_300 {dimension_numbers = #tpu.dot_dimension_numbers<[1], [0], [0], [1], [0, 0, 1, 1], [], []>} : vector<16x128xbf16>, vector<128x256xbf16>, vector<16x256xf32> -> vector<16x256xf32>
    %298 = arith.addf %293, %297 : vector<16x256xf32>
    %c48_301 = arith.constant 48 : index
    %c0_302 = arith.constant 0 : index
    %299 = vector.load %arg12[%c48_301, %c0_302] : memref<208x128xbf16, #tpu.memory_space<vmem>>, vector<16x128xbf16>
    %c2_303 = arith.constant 2 : index
    %c0_304 = arith.constant 0 : index
    %c0_305 = arith.constant 0 : index
    %300 = vector.load %arg6[%c2_303, %c0_304, %c0_305] : memref<3x128x256xbf16, #tpu.memory_space<vmem>>, vector<1x128x256xbf16>
    %301 = vector.shape_cast %300 : vector<1x128x256xbf16> to vector<128x256xbf16>
    %cst_306 = arith.constant dense<0.000000e+00> : vector<16x256xf32>
    %302 = tpu.matmul %299, %301, %cst_306 {dimension_numbers = #tpu.dot_dimension_numbers<[1], [0], [0], [1], [0, 0, 1, 1], [], []>} : vector<16x128xbf16>, vector<128x256xbf16>, vector<16x256xf32> -> vector<16x256xf32>
    %303 = arith.addf %298, %302 : vector<16x256xf32>
    %c0_307 = arith.constant 0 : index
    %c0_308 = arith.constant 0 : index
    %304 = vector.load %arg7[%c0_307, %c0_308] : memref<1x256xf32, #tpu.memory_space<vmem>>, vector<1x256xf32>
    %305 = vector.broadcast %304 : vector<1x256xf32> to vector<16x256xf32>
    %306 = arith.addf %303, %305 : vector<16x256xf32>
    %cst_309 = arith.constant 1.000000e-01 : f32
    %307 = vector.broadcast %cst_309 : f32 to vector<16x256xf32>
    %308 = arith.mulf %307, %306 : vector<16x256xf32>
    %309 = arith.maximumf %306, %308 : vector<16x256xf32>
    %310 = arith.truncf %309 : vector<16x256xf32> to vector<16x256xbf16>
    %c1_310 = arith.constant 1 : index
    %c0_311 = arith.constant 0 : index
    %c0_312 = arith.constant 0 : index
    %311 = vector.load %arg8[%c1_310, %c0_311, %c0_312] : memref<11x256x256xbf16, #tpu.memory_space<vmem>>, vector<1x256x256xbf16>
    %312 = vector.shape_cast %311 : vector<1x256x256xbf16> to vector<256x256xbf16>
    %cst_313 = arith.constant dense<0.000000e+00> : vector<16x256xf32>
    %313 = tpu.matmul %310, %312, %cst_313 {dimension_numbers = #tpu.dot_dimension_numbers<[1], [0], [0], [1], [0, 0, 1, 1], [], []>} : vector<16x256xbf16>, vector<256x256xbf16>, vector<16x256xf32> -> vector<16x256xf32>
    %c0_314 = arith.constant 0 : index
    %c0_315 = arith.constant 0 : index
    %314 = vector.load %arg10[%c0_314, %c0_315] : memref<16x256xf32, #tpu.memory_space<vmem>>, vector<16x256xf32>
    %315 = arith.addf %314, %313 : vector<16x256xf32>
    %c0_316 = arith.constant 0 : index
    %c0_317 = arith.constant 0 : index
    %316 = vector.load %arg10[%c0_316, %c0_317] : memref<16x256xf32, #tpu.memory_space<vmem>>, vector<16x256xf32>
    tpu.vector_store %arg10[%c0_316, %c0_317], %315 {strides = array<i32>} : memref<16x256xf32, #tpu.memory_space<vmem>>, vector<16x256xf32>,
    %c32_318 = arith.constant 32 : index
    %c0_319 = arith.constant 0 : index
    %317 = vector.load %arg12[%c32_318, %c0_319] : memref<208x128xbf16, #tpu.memory_space<vmem>>, vector<16x128xbf16>
    %c0_320 = arith.constant 0 : index
    %c0_321 = arith.constant 0 : index
    %c0_322 = arith.constant 0 : index
    %318 = vector.load %arg6[%c0_320, %c0_321, %c0_322] : memref<3x128x256xbf16, #tpu.memory_space<vmem>>, vector<1x128x256xbf16>
    %319 = vector.shape_cast %318 : vector<1x128x256xbf16> to vector<128x256xbf16>
    %cst_323 = arith.constant dense<0.000000e+00> : vector<16x256xf32>
    %320 = tpu.matmul %317, %319, %cst_323 {dimension_numbers = #tpu.dot_dimension_numbers<[1], [0], [0], [1], [0, 0, 1, 1], [], []>} : vector<16x128xbf16>, vector<128x256xbf16>, vector<16x256xf32> -> vector<16x256xf32>
    %c48_324 = arith.constant 48 : index
    %c0_325 = arith.constant 0 : index
    %321 = vector.load %arg12[%c48_324, %c0_325] : memref<208x128xbf16, #tpu.memory_space<vmem>>, vector<16x128xbf16>
    %c1_326 = arith.constant 1 : index
    %c0_327 = arith.constant 0 : index
    %c0_328 = arith.constant 0 : index
    %322 = vector.load %arg6[%c1_326, %c0_327, %c0_328] : memref<3x128x256xbf16, #tpu.memory_space<vmem>>, vector<1x128x256xbf16>
    %323 = vector.shape_cast %322 : vector<1x128x256xbf16> to vector<128x256xbf16>
    %cst_329 = arith.constant dense<0.000000e+00> : vector<16x256xf32>
    %324 = tpu.matmul %321, %323, %cst_329 {dimension_numbers = #tpu.dot_dimension_numbers<[1], [0], [0], [1], [0, 0, 1, 1], [], []>} : vector<16x128xbf16>, vector<128x256xbf16>, vector<16x256xf32> -> vector<16x256xf32>
    %325 = arith.addf %320, %324 : vector<16x256xf32>
    %c64_330 = arith.constant 64 : index
    %c0_331 = arith.constant 0 : index
    %326 = vector.load %arg12[%c64_330, %c0_331] : memref<208x128xbf16, #tpu.memory_space<vmem>>, vector<16x128xbf16>
    %c2_332 = arith.constant 2 : index
    %c0_333 = arith.constant 0 : index
    %c0_334 = arith.constant 0 : index
    %327 = vector.load %arg6[%c2_332, %c0_333, %c0_334] : memref<3x128x256xbf16, #tpu.memory_space<vmem>>, vector<1x128x256xbf16>
    %328 = vector.shape_cast %327 : vector<1x128x256xbf16> to vector<128x256xbf16>
    %cst_335 = arith.constant dense<0.000000e+00> : vector<16x256xf32>
    %329 = tpu.matmul %326, %328, %cst_335 {dimension_numbers = #tpu.dot_dimension_numbers<[1], [0], [0], [1], [0, 0, 1, 1], [], []>} : vector<16x128xbf16>, vector<128x256xbf16>, vector<16x256xf32> -> vector<16x256xf32>
    %330 = arith.addf %325, %329 : vector<16x256xf32>
    %c0_336 = arith.constant 0 : index
    %c0_337 = arith.constant 0 : index
    %331 = vector.load %arg7[%c0_336, %c0_337] : memref<1x256xf32, #tpu.memory_space<vmem>>, vector<1x256xf32>
    %332 = vector.broadcast %331 : vector<1x256xf32> to vector<16x256xf32>
    %333 = arith.addf %330, %332 : vector<16x256xf32>
    %cst_338 = arith.constant 1.000000e-01 : f32
    %334 = vector.broadcast %cst_338 : f32 to vector<16x256xf32>
    %335 = arith.mulf %334, %333 : vector<16x256xf32>
    %336 = arith.maximumf %333, %335 : vector<16x256xf32>
    %337 = arith.truncf %336 : vector<16x256xf32> to vector<16x256xbf16>
    %c2_339 = arith.constant 2 : index
    %c0_340 = arith.constant 0 : index
    %c0_341 = arith.constant 0 : index
    %338 = vector.load %arg8[%c2_339, %c0_340, %c0_341] : memref<11x256x256xbf16, #tpu.memory_space<vmem>>, vector<1x256x256xbf16>
    %339 = vector.shape_cast %338 : vector<1x256x256xbf16> to vector<256x256xbf16>
    %cst_342 = arith.constant dense<0.000000e+00> : vector<16x256xf32>
    %340 = tpu.matmul %337, %339, %cst_342 {dimension_numbers = #tpu.dot_dimension_numbers<[1], [0], [0], [1], [0, 0, 1, 1], [], []>} : vector<16x256xbf16>, vector<256x256xbf16>, vector<16x256xf32> -> vector<16x256xf32>
    %c0_343 = arith.constant 0 : index
    %c0_344 = arith.constant 0 : index
    %341 = vector.load %arg10[%c0_343, %c0_344] : memref<16x256xf32, #tpu.memory_space<vmem>>, vector<16x256xf32>
    %342 = arith.addf %341, %340 : vector<16x256xf32>
    %c0_345 = arith.constant 0 : index
    %c0_346 = arith.constant 0 : index
    %343 = vector.load %arg10[%c0_345, %c0_346] : memref<16x256xf32, #tpu.memory_space<vmem>>, vector<16x256xf32>
    tpu.vector_store %arg10[%c0_345, %c0_346], %342 {strides = array<i32>} : memref<16x256xf32, #tpu.memory_space<vmem>>, vector<16x256xf32>,
    %c48_347 = arith.constant 48 : index
    %c0_348 = arith.constant 0 : index
    %344 = vector.load %arg12[%c48_347, %c0_348] : memref<208x128xbf16, #tpu.memory_space<vmem>>, vector<16x128xbf16>
    %c0_349 = arith.constant 0 : index
    %c0_350 = arith.constant 0 : index
    %c0_351 = arith.constant 0 : index
    %345 = vector.load %arg6[%c0_349, %c0_350, %c0_351] : memref<3x128x256xbf16, #tpu.memory_space<vmem>>, vector<1x128x256xbf16>
    %346 = vector.shape_cast %345 : vector<1x128x256xbf16> to vector<128x256xbf16>
    %cst_352 = arith.constant dense<0.000000e+00> : vector<16x256xf32>
    %347 = tpu.matmul %344, %346, %cst_352 {dimension_numbers = #tpu.dot_dimension_numbers<[1], [0], [0], [1], [0, 0, 1, 1], [], []>} : vector<16x128xbf16>, vector<128x256xbf16>, vector<16x256xf32> -> vector<16x256xf32>
    %c64_353 = arith.constant 64 : index
    %c0_354 = arith.constant 0 : index
    %348 = vector.load %arg12[%c64_353, %c0_354] : memref<208x128xbf16, #tpu.memory_space<vmem>>, vector<16x128xbf16>
    %c1_355 = arith.constant 1 : index
    %c0_356 = arith.constant 0 : index
    %c0_357 = arith.constant 0 : index
    %349 = vector.load %arg6[%c1_355, %c0_356, %c0_357] : memref<3x128x256xbf16, #tpu.memory_space<vmem>>, vector<1x128x256xbf16>
    %350 = vector.shape_cast %349 : vector<1x128x256xbf16> to vector<128x256xbf16>
    %cst_358 = arith.constant dense<0.000000e+00> : vector<16x256xf32>
    %351 = tpu.matmul %348, %350, %cst_358 {dimension_numbers = #tpu.dot_dimension_numbers<[1], [0], [0], [1], [0, 0, 1, 1], [], []>} : vector<16x128xbf16>, vector<128x256xbf16>, vector<16x256xf32> -> vector<16x256xf32>
    %352 = arith.addf %347, %351 : vector<16x256xf32>
    %c80_359 = arith.constant 80 : index
    %c0_360 = arith.constant 0 : index
    %353 = vector.load %arg12[%c80_359, %c0_360] : memref<208x128xbf16, #tpu.memory_space<vmem>>, vector<16x128xbf16>
    %c2_361 = arith.constant 2 : index
    %c0_362 = arith.constant 0 : index
    %c0_363 = arith.constant 0 : index
    %354 = vector.load %arg6[%c2_361, %c0_362, %c0_363] : memref<3x128x256xbf16, #tpu.memory_space<vmem>>, vector<1x128x256xbf16>
    %355 = vector.shape_cast %354 : vector<1x128x256xbf16> to vector<128x256xbf16>
    %cst_364 = arith.constant dense<0.000000e+00> : vector<16x256xf32>
    %356 = tpu.matmul %353, %355, %cst_364 {dimension_numbers = #tpu.dot_dimension_numbers<[1], [0], [0], [1], [0, 0, 1, 1], [], []>} : vector<16x128xbf16>, vector<128x256xbf16>, vector<16x256xf32> -> vector<16x256xf32>
    %357 = arith.addf %352, %356 : vector<16x256xf32>
    %c0_365 = arith.constant 0 : index
    %c0_366 = arith.constant 0 : index
    %358 = vector.load %arg7[%c0_365, %c0_366] : memref<1x256xf32, #tpu.memory_space<vmem>>, vector<1x256xf32>
    %359 = vector.broadcast %358 : vector<1x256xf32> to vector<16x256xf32>
    %360 = arith.addf %357, %359 : vector<16x256xf32>
    %cst_367 = arith.constant 1.000000e-01 : f32
    %361 = vector.broadcast %cst_367 : f32 to vector<16x256xf32>
    %362 = arith.mulf %361, %360 : vector<16x256xf32>
    %363 = arith.maximumf %360, %362 : vector<16x256xf32>
    %364 = arith.truncf %363 : vector<16x256xf32> to vector<16x256xbf16>
    %c3 = arith.constant 3 : index
    %c0_368 = arith.constant 0 : index
    %c0_369 = arith.constant 0 : index
    %365 = vector.load %arg8[%c3, %c0_368, %c0_369] : memref<11x256x256xbf16, #tpu.memory_space<vmem>>, vector<1x256x256xbf16>
    %366 = vector.shape_cast %365 : vector<1x256x256xbf16> to vector<256x256xbf16>
    %cst_370 = arith.constant dense<0.000000e+00> : vector<16x256xf32>
    %367 = tpu.matmul %364, %366, %cst_370 {dimension_numbers = #tpu.dot_dimension_numbers<[1], [0], [0], [1], [0, 0, 1, 1], [], []>} : vector<16x256xbf16>, vector<256x256xbf16>, vector<16x256xf32> -> vector<16x256xf32>
    %c0_371 = arith.constant 0 : index
    %c0_372 = arith.constant 0 : index
    %368 = vector.load %arg10[%c0_371, %c0_372] : memref<16x256xf32, #tpu.memory_space<vmem>>, vector<16x256xf32>
    %369 = arith.addf %368, %367 : vector<16x256xf32>
    %c0_373 = arith.constant 0 : index
    %c0_374 = arith.constant 0 : index
    %370 = vector.load %arg10[%c0_373, %c0_374] : memref<16x256xf32, #tpu.memory_space<vmem>>, vector<16x256xf32>
    tpu.vector_store %arg10[%c0_373, %c0_374], %369 {strides = array<i32>} : memref<16x256xf32, #tpu.memory_space<vmem>>, vector<16x256xf32>,
    %c64_375 = arith.constant 64 : index
    %c0_376 = arith.constant 0 : index
    %371 = vector.load %arg12[%c64_375, %c0_376] : memref<208x128xbf16, #tpu.memory_space<vmem>>, vector<16x128xbf16>
    %c0_377 = arith.constant 0 : index
    %c0_378 = arith.constant 0 : index
    %c0_379 = arith.constant 0 : index
    %372 = vector.load %arg6[%c0_377, %c0_378, %c0_379] : memref<3x128x256xbf16, #tpu.memory_space<vmem>>, vector<1x128x256xbf16>
    %373 = vector.shape_cast %372 : vector<1x128x256xbf16> to vector<128x256xbf16>
    %cst_380 = arith.constant dense<0.000000e+00> : vector<16x256xf32>
    %374 = tpu.matmul %371, %373, %cst_380 {dimension_numbers = #tpu.dot_dimension_numbers<[1], [0], [0], [1], [0, 0, 1, 1], [], []>} : vector<16x128xbf16>, vector<128x256xbf16>, vector<16x256xf32> -> vector<16x256xf32>
    %c80_381 = arith.constant 80 : index
    %c0_382 = arith.constant 0 : index
    %375 = vector.load %arg12[%c80_381, %c0_382] : memref<208x128xbf16, #tpu.memory_space<vmem>>, vector<16x128xbf16>
    %c1_383 = arith.constant 1 : index
    %c0_384 = arith.constant 0 : index
    %c0_385 = arith.constant 0 : index
    %376 = vector.load %arg6[%c1_383, %c0_384, %c0_385] : memref<3x128x256xbf16, #tpu.memory_space<vmem>>, vector<1x128x256xbf16>
    %377 = vector.shape_cast %376 : vector<1x128x256xbf16> to vector<128x256xbf16>
    %cst_386 = arith.constant dense<0.000000e+00> : vector<16x256xf32>
    %378 = tpu.matmul %375, %377, %cst_386 {dimension_numbers = #tpu.dot_dimension_numbers<[1], [0], [0], [1], [0, 0, 1, 1], [], []>} : vector<16x128xbf16>, vector<128x256xbf16>, vector<16x256xf32> -> vector<16x256xf32>
    %379 = arith.addf %374, %378 : vector<16x256xf32>
    %c96_387 = arith.constant 96 : index
    %c0_388 = arith.constant 0 : index
    %380 = vector.load %arg12[%c96_387, %c0_388] : memref<208x128xbf16, #tpu.memory_space<vmem>>, vector<16x128xbf16>
    %c2_389 = arith.constant 2 : index
    %c0_390 = arith.constant 0 : index
    %c0_391 = arith.constant 0 : index
    %381 = vector.load %arg6[%c2_389, %c0_390, %c0_391] : memref<3x128x256xbf16, #tpu.memory_space<vmem>>, vector<1x128x256xbf16>
    %382 = vector.shape_cast %381 : vector<1x128x256xbf16> to vector<128x256xbf16>
    %cst_392 = arith.constant dense<0.000000e+00> : vector<16x256xf32>
    %383 = tpu.matmul %380, %382, %cst_392 {dimension_numbers = #tpu.dot_dimension_numbers<[1], [0], [0], [1], [0, 0, 1, 1], [], []>} : vector<16x128xbf16>, vector<128x256xbf16>, vector<16x256xf32> -> vector<16x256xf32>
    %384 = arith.addf %379, %383 : vector<16x256xf32>
    %c0_393 = arith.constant 0 : index
    %c0_394 = arith.constant 0 : index
    %385 = vector.load %arg7[%c0_393, %c0_394] : memref<1x256xf32, #tpu.memory_space<vmem>>, vector<1x256xf32>
    %386 = vector.broadcast %385 : vector<1x256xf32> to vector<16x256xf32>
    %387 = arith.addf %384, %386 : vector<16x256xf32>
    %cst_395 = arith.constant 1.000000e-01 : f32
    %388 = vector.broadcast %cst_395 : f32 to vector<16x256xf32>
    %389 = arith.mulf %388, %387 : vector<16x256xf32>
    %390 = arith.maximumf %387, %389 : vector<16x256xf32>
    %391 = arith.truncf %390 : vector<16x256xf32> to vector<16x256xbf16>
    %c4 = arith.constant 4 : index
    %c0_396 = arith.constant 0 : index
    %c0_397 = arith.constant 0 : index
    %392 = vector.load %arg8[%c4, %c0_396, %c0_397] : memref<11x256x256xbf16, #tpu.memory_space<vmem>>, vector<1x256x256xbf16>
    %393 = vector.shape_cast %392 : vector<1x256x256xbf16> to vector<256x256xbf16>
    %cst_398 = arith.constant dense<0.000000e+00> : vector<16x256xf32>
    %394 = tpu.matmul %391, %393, %cst_398 {dimension_numbers = #tpu.dot_dimension_numbers<[1], [0], [0], [1], [0, 0, 1, 1], [], []>} : vector<16x256xbf16>, vector<256x256xbf16>, vector<16x256xf32> -> vector<16x256xf32>
    %c0_399 = arith.constant 0 : index
    %c0_400 = arith.constant 0 : index
    %395 = vector.load %arg10[%c0_399, %c0_400] : memref<16x256xf32, #tpu.memory_space<vmem>>, vector<16x256xf32>
    %396 = arith.addf %395, %394 : vector<16x256xf32>
    %c0_401 = arith.constant 0 : index
    %c0_402 = arith.constant 0 : index
    %397 = vector.load %arg10[%c0_401, %c0_402] : memref<16x256xf32, #tpu.memory_space<vmem>>, vector<16x256xf32>
    tpu.vector_store %arg10[%c0_401, %c0_402], %396 {strides = array<i32>} : memref<16x256xf32, #tpu.memory_space<vmem>>, vector<16x256xf32>,
    %c80_403 = arith.constant 80 : index
    %c0_404 = arith.constant 0 : index
    %398 = vector.load %arg12[%c80_403, %c0_404] : memref<208x128xbf16, #tpu.memory_space<vmem>>, vector<16x128xbf16>
    %c0_405 = arith.constant 0 : index
    %c0_406 = arith.constant 0 : index
    %c0_407 = arith.constant 0 : index
    %399 = vector.load %arg6[%c0_405, %c0_406, %c0_407] : memref<3x128x256xbf16, #tpu.memory_space<vmem>>, vector<1x128x256xbf16>
    %400 = vector.shape_cast %399 : vector<1x128x256xbf16> to vector<128x256xbf16>
    %cst_408 = arith.constant dense<0.000000e+00> : vector<16x256xf32>
    %401 = tpu.matmul %398, %400, %cst_408 {dimension_numbers = #tpu.dot_dimension_numbers<[1], [0], [0], [1], [0, 0, 1, 1], [], []>} : vector<16x128xbf16>, vector<128x256xbf16>, vector<16x256xf32> -> vector<16x256xf32>
    %c96_409 = arith.constant 96 : index
    %c0_410 = arith.constant 0 : index
    %402 = vector.load %arg12[%c96_409, %c0_410] : memref<208x128xbf16, #tpu.memory_space<vmem>>, vector<16x128xbf16>
    %c1_411 = arith.constant 1 : index
    %c0_412 = arith.constant 0 : index
    %c0_413 = arith.constant 0 : index
    %403 = vector.load %arg6[%c1_411, %c0_412, %c0_413] : memref<3x128x256xbf16, #tpu.memory_space<vmem>>, vector<1x128x256xbf16>
    %404 = vector.shape_cast %403 : vector<1x128x256xbf16> to vector<128x256xbf16>
    %cst_414 = arith.constant dense<0.000000e+00> : vector<16x256xf32>
    %405 = tpu.matmul %402, %404, %cst_414 {dimension_numbers = #tpu.dot_dimension_numbers<[1], [0], [0], [1], [0, 0, 1, 1], [], []>} : vector<16x128xbf16>, vector<128x256xbf16>, vector<16x256xf32> -> vector<16x256xf32>
    %406 = arith.addf %401, %405 : vector<16x256xf32>
    %c112_415 = arith.constant 112 : index
    %c0_416 = arith.constant 0 : index
    %407 = vector.load %arg12[%c112_415, %c0_416] : memref<208x128xbf16, #tpu.memory_space<vmem>>, vector<16x128xbf16>
    %c2_417 = arith.constant 2 : index
    %c0_418 = arith.constant 0 : index
    %c0_419 = arith.constant 0 : index
    %408 = vector.load %arg6[%c2_417, %c0_418, %c0_419] : memref<3x128x256xbf16, #tpu.memory_space<vmem>>, vector<1x128x256xbf16>
    %409 = vector.shape_cast %408 : vector<1x128x256xbf16> to vector<128x256xbf16>
    %cst_420 = arith.constant dense<0.000000e+00> : vector<16x256xf32>
    %410 = tpu.matmul %407, %409, %cst_420 {dimension_numbers = #tpu.dot_dimension_numbers<[1], [0], [0], [1], [0, 0, 1, 1], [], []>} : vector<16x128xbf16>, vector<128x256xbf16>, vector<16x256xf32> -> vector<16x256xf32>
    %411 = arith.addf %406, %410 : vector<16x256xf32>
    %c0_421 = arith.constant 0 : index
    %c0_422 = arith.constant 0 : index
    %412 = vector.load %arg7[%c0_421, %c0_422] : memref<1x256xf32, #tpu.memory_space<vmem>>, vector<1x256xf32>
    %413 = vector.broadcast %412 : vector<1x256xf32> to vector<16x256xf32>
    %414 = arith.addf %411, %413 : vector<16x256xf32>
    %cst_423 = arith.constant 1.000000e-01 : f32
    %415 = vector.broadcast %cst_423 : f32 to vector<16x256xf32>
    %416 = arith.mulf %415, %414 : vector<16x256xf32>
    %417 = arith.maximumf %414, %416 : vector<16x256xf32>
    %418 = arith.truncf %417 : vector<16x256xf32> to vector<16x256xbf16>
    %c5 = arith.constant 5 : index
    %c0_424 = arith.constant 0 : index
    %c0_425 = arith.constant 0 : index
    %419 = vector.load %arg8[%c5, %c0_424, %c0_425] : memref<11x256x256xbf16, #tpu.memory_space<vmem>>, vector<1x256x256xbf16>
    %420 = vector.shape_cast %419 : vector<1x256x256xbf16> to vector<256x256xbf16>
    %cst_426 = arith.constant dense<0.000000e+00> : vector<16x256xf32>
    %421 = tpu.matmul %418, %420, %cst_426 {dimension_numbers = #tpu.dot_dimension_numbers<[1], [0], [0], [1], [0, 0, 1, 1], [], []>} : vector<16x256xbf16>, vector<256x256xbf16>, vector<16x256xf32> -> vector<16x256xf32>
    %c0_427 = arith.constant 0 : index
    %c0_428 = arith.constant 0 : index
    %422 = vector.load %arg10[%c0_427, %c0_428] : memref<16x256xf32, #tpu.memory_space<vmem>>, vector<16x256xf32>
    %423 = arith.addf %422, %421 : vector<16x256xf32>
    %c0_429 = arith.constant 0 : index
    %c0_430 = arith.constant 0 : index
    %424 = vector.load %arg10[%c0_429, %c0_430] : memref<16x256xf32, #tpu.memory_space<vmem>>, vector<16x256xf32>
    tpu.vector_store %arg10[%c0_429, %c0_430], %423 {strides = array<i32>} : memref<16x256xf32, #tpu.memory_space<vmem>>, vector<16x256xf32>,
    %c96_431 = arith.constant 96 : index
    %c0_432 = arith.constant 0 : index
    %425 = vector.load %arg12[%c96_431, %c0_432] : memref<208x128xbf16, #tpu.memory_space<vmem>>, vector<16x128xbf16>
    %c0_433 = arith.constant 0 : index
    %c0_434 = arith.constant 0 : index
    %c0_435 = arith.constant 0 : index
    %426 = vector.load %arg6[%c0_433, %c0_434, %c0_435] : memref<3x128x256xbf16, #tpu.memory_space<vmem>>, vector<1x128x256xbf16>
    %427 = vector.shape_cast %426 : vector<1x128x256xbf16> to vector<128x256xbf16>
    %cst_436 = arith.constant dense<0.000000e+00> : vector<16x256xf32>
    %428 = tpu.matmul %425, %427, %cst_436 {dimension_numbers = #tpu.dot_dimension_numbers<[1], [0], [0], [1], [0, 0, 1, 1], [], []>} : vector<16x128xbf16>, vector<128x256xbf16>, vector<16x256xf32> -> vector<16x256xf32>
    %c112_437 = arith.constant 112 : index
    %c0_438 = arith.constant 0 : index
    %429 = vector.load %arg12[%c112_437, %c0_438] : memref<208x128xbf16, #tpu.memory_space<vmem>>, vector<16x128xbf16>
    %c1_439 = arith.constant 1 : index
    %c0_440 = arith.constant 0 : index
    %c0_441 = arith.constant 0 : index
    %430 = vector.load %arg6[%c1_439, %c0_440, %c0_441] : memref<3x128x256xbf16, #tpu.memory_space<vmem>>, vector<1x128x256xbf16>
    %431 = vector.shape_cast %430 : vector<1x128x256xbf16> to vector<128x256xbf16>
    %cst_442 = arith.constant dense<0.000000e+00> : vector<16x256xf32>
    %432 = tpu.matmul %429, %431, %cst_442 {dimension_numbers = #tpu.dot_dimension_numbers<[1], [0], [0], [1], [0, 0, 1, 1], [], []>} : vector<16x128xbf16>, vector<128x256xbf16>, vector<16x256xf32> -> vector<16x256xf32>
    %433 = arith.addf %428, %432 : vector<16x256xf32>
    %c128_443 = arith.constant 128 : index
    %c0_444 = arith.constant 0 : index
    %434 = vector.load %arg12[%c128_443, %c0_444] : memref<208x128xbf16, #tpu.memory_space<vmem>>, vector<16x128xbf16>
    %c2_445 = arith.constant 2 : index
    %c0_446 = arith.constant 0 : index
    %c0_447 = arith.constant 0 : index
    %435 = vector.load %arg6[%c2_445, %c0_446, %c0_447] : memref<3x128x256xbf16, #tpu.memory_space<vmem>>, vector<1x128x256xbf16>
    %436 = vector.shape_cast %435 : vector<1x128x256xbf16> to vector<128x256xbf16>
    %cst_448 = arith.constant dense<0.000000e+00> : vector<16x256xf32>
    %437 = tpu.matmul %434, %436, %cst_448 {dimension_numbers = #tpu.dot_dimension_numbers<[1], [0], [0], [1], [0, 0, 1, 1], [], []>} : vector<16x128xbf16>, vector<128x256xbf16>, vector<16x256xf32> -> vector<16x256xf32>
    %438 = arith.addf %433, %437 : vector<16x256xf32>
    %c0_449 = arith.constant 0 : index
    %c0_450 = arith.constant 0 : index
    %439 = vector.load %arg7[%c0_449, %c0_450] : memref<1x256xf32, #tpu.memory_space<vmem>>, vector<1x256xf32>
    %440 = vector.broadcast %439 : vector<1x256xf32> to vector<16x256xf32>
    %441 = arith.addf %438, %440 : vector<16x256xf32>
    %cst_451 = arith.constant 1.000000e-01 : f32
    %442 = vector.broadcast %cst_451 : f32 to vector<16x256xf32>
    %443 = arith.mulf %442, %441 : vector<16x256xf32>
    %444 = arith.maximumf %441, %443 : vector<16x256xf32>
    %445 = arith.truncf %444 : vector<16x256xf32> to vector<16x256xbf16>
    %c6 = arith.constant 6 : index
    %c0_452 = arith.constant 0 : index
    %c0_453 = arith.constant 0 : index
    %446 = vector.load %arg8[%c6, %c0_452, %c0_453] : memref<11x256x256xbf16, #tpu.memory_space<vmem>>, vector<1x256x256xbf16>
    %447 = vector.shape_cast %446 : vector<1x256x256xbf16> to vector<256x256xbf16>
    %cst_454 = arith.constant dense<0.000000e+00> : vector<16x256xf32>
    %448 = tpu.matmul %445, %447, %cst_454 {dimension_numbers = #tpu.dot_dimension_numbers<[1], [0], [0], [1], [0, 0, 1, 1], [], []>} : vector<16x256xbf16>, vector<256x256xbf16>, vector<16x256xf32> -> vector<16x256xf32>
    %c0_455 = arith.constant 0 : index
    %c0_456 = arith.constant 0 : index
    %449 = vector.load %arg10[%c0_455, %c0_456] : memref<16x256xf32, #tpu.memory_space<vmem>>, vector<16x256xf32>
    %450 = arith.addf %449, %448 : vector<16x256xf32>
    %c0_457 = arith.constant 0 : index
    %c0_458 = arith.constant 0 : index
    %451 = vector.load %arg10[%c0_457, %c0_458] : memref<16x256xf32, #tpu.memory_space<vmem>>, vector<16x256xf32>
    tpu.vector_store %arg10[%c0_457, %c0_458], %450 {strides = array<i32>} : memref<16x256xf32, #tpu.memory_space<vmem>>, vector<16x256xf32>,
    %c112_459 = arith.constant 112 : index
    %c0_460 = arith.constant 0 : index
    %452 = vector.load %arg12[%c112_459, %c0_460] : memref<208x128xbf16, #tpu.memory_space<vmem>>, vector<16x128xbf16>
    %c0_461 = arith.constant 0 : index
    %c0_462 = arith.constant 0 : index
    %c0_463 = arith.constant 0 : index
    %453 = vector.load %arg6[%c0_461, %c0_462, %c0_463] : memref<3x128x256xbf16, #tpu.memory_space<vmem>>, vector<1x128x256xbf16>
    %454 = vector.shape_cast %453 : vector<1x128x256xbf16> to vector<128x256xbf16>
    %cst_464 = arith.constant dense<0.000000e+00> : vector<16x256xf32>
    %455 = tpu.matmul %452, %454, %cst_464 {dimension_numbers = #tpu.dot_dimension_numbers<[1], [0], [0], [1], [0, 0, 1, 1], [], []>} : vector<16x128xbf16>, vector<128x256xbf16>, vector<16x256xf32> -> vector<16x256xf32>
    %c128_465 = arith.constant 128 : index
    %c0_466 = arith.constant 0 : index
    %456 = vector.load %arg12[%c128_465, %c0_466] : memref<208x128xbf16, #tpu.memory_space<vmem>>, vector<16x128xbf16>
    %c1_467 = arith.constant 1 : index
    %c0_468 = arith.constant 0 : index
    %c0_469 = arith.constant 0 : index
    %457 = vector.load %arg6[%c1_467, %c0_468, %c0_469] : memref<3x128x256xbf16, #tpu.memory_space<vmem>>, vector<1x128x256xbf16>
    %458 = vector.shape_cast %457 : vector<1x128x256xbf16> to vector<128x256xbf16>
    %cst_470 = arith.constant dense<0.000000e+00> : vector<16x256xf32>
    %459 = tpu.matmul %456, %458, %cst_470 {dimension_numbers = #tpu.dot_dimension_numbers<[1], [0], [0], [1], [0, 0, 1, 1], [], []>} : vector<16x128xbf16>, vector<128x256xbf16>, vector<16x256xf32> -> vector<16x256xf32>
    %460 = arith.addf %455, %459 : vector<16x256xf32>
    %c144_471 = arith.constant 144 : index
    %c0_472 = arith.constant 0 : index
    %461 = vector.load %arg12[%c144_471, %c0_472] : memref<208x128xbf16, #tpu.memory_space<vmem>>, vector<16x128xbf16>
    %c2_473 = arith.constant 2 : index
    %c0_474 = arith.constant 0 : index
    %c0_475 = arith.constant 0 : index
    %462 = vector.load %arg6[%c2_473, %c0_474, %c0_475] : memref<3x128x256xbf16, #tpu.memory_space<vmem>>, vector<1x128x256xbf16>
    %463 = vector.shape_cast %462 : vector<1x128x256xbf16> to vector<128x256xbf16>
    %cst_476 = arith.constant dense<0.000000e+00> : vector<16x256xf32>
    %464 = tpu.matmul %461, %463, %cst_476 {dimension_numbers = #tpu.dot_dimension_numbers<[1], [0], [0], [1], [0, 0, 1, 1], [], []>} : vector<16x128xbf16>, vector<128x256xbf16>, vector<16x256xf32> -> vector<16x256xf32>
    %465 = arith.addf %460, %464 : vector<16x256xf32>
    %c0_477 = arith.constant 0 : index
    %c0_478 = arith.constant 0 : index
    %466 = vector.load %arg7[%c0_477, %c0_478] : memref<1x256xf32, #tpu.memory_space<vmem>>, vector<1x256xf32>
    %467 = vector.broadcast %466 : vector<1x256xf32> to vector<16x256xf32>
    %468 = arith.addf %465, %467 : vector<16x256xf32>
    %cst_479 = arith.constant 1.000000e-01 : f32
    %469 = vector.broadcast %cst_479 : f32 to vector<16x256xf32>
    %470 = arith.mulf %469, %468 : vector<16x256xf32>
    %471 = arith.maximumf %468, %470 : vector<16x256xf32>
    %472 = arith.truncf %471 : vector<16x256xf32> to vector<16x256xbf16>
    %c7 = arith.constant 7 : index
    %c0_480 = arith.constant 0 : index
    %c0_481 = arith.constant 0 : index
    %473 = vector.load %arg8[%c7, %c0_480, %c0_481] : memref<11x256x256xbf16, #tpu.memory_space<vmem>>, vector<1x256x256xbf16>
    %474 = vector.shape_cast %473 : vector<1x256x256xbf16> to vector<256x256xbf16>
    %cst_482 = arith.constant dense<0.000000e+00> : vector<16x256xf32>
    %475 = tpu.matmul %472, %474, %cst_482 {dimension_numbers = #tpu.dot_dimension_numbers<[1], [0], [0], [1], [0, 0, 1, 1], [], []>} : vector<16x256xbf16>, vector<256x256xbf16>, vector<16x256xf32> -> vector<16x256xf32>
    %c0_483 = arith.constant 0 : index
    %c0_484 = arith.constant 0 : index
    %476 = vector.load %arg10[%c0_483, %c0_484] : memref<16x256xf32, #tpu.memory_space<vmem>>, vector<16x256xf32>
    %477 = arith.addf %476, %475 : vector<16x256xf32>
    %c0_485 = arith.constant 0 : index
    %c0_486 = arith.constant 0 : index
    %478 = vector.load %arg10[%c0_485, %c0_486] : memref<16x256xf32, #tpu.memory_space<vmem>>, vector<16x256xf32>
    tpu.vector_store %arg10[%c0_485, %c0_486], %477 {strides = array<i32>} : memref<16x256xf32, #tpu.memory_space<vmem>>, vector<16x256xf32>,
    %c128_487 = arith.constant 128 : index
    %c0_488 = arith.constant 0 : index
    %479 = vector.load %arg12[%c128_487, %c0_488] : memref<208x128xbf16, #tpu.memory_space<vmem>>, vector<16x128xbf16>
    %c0_489 = arith.constant 0 : index
    %c0_490 = arith.constant 0 : index
    %c0_491 = arith.constant 0 : index
    %480 = vector.load %arg6[%c0_489, %c0_490, %c0_491] : memref<3x128x256xbf16, #tpu.memory_space<vmem>>, vector<1x128x256xbf16>
    %481 = vector.shape_cast %480 : vector<1x128x256xbf16> to vector<128x256xbf16>
    %cst_492 = arith.constant dense<0.000000e+00> : vector<16x256xf32>
    %482 = tpu.matmul %479, %481, %cst_492 {dimension_numbers = #tpu.dot_dimension_numbers<[1], [0], [0], [1], [0, 0, 1, 1], [], []>} : vector<16x128xbf16>, vector<128x256xbf16>, vector<16x256xf32> -> vector<16x256xf32>
    %c144_493 = arith.constant 144 : index
    %c0_494 = arith.constant 0 : index
    %483 = vector.load %arg12[%c144_493, %c0_494] : memref<208x128xbf16, #tpu.memory_space<vmem>>, vector<16x128xbf16>
    %c1_495 = arith.constant 1 : index
    %c0_496 = arith.constant 0 : index
    %c0_497 = arith.constant 0 : index
    %484 = vector.load %arg6[%c1_495, %c0_496, %c0_497] : memref<3x128x256xbf16, #tpu.memory_space<vmem>>, vector<1x128x256xbf16>
    %485 = vector.shape_cast %484 : vector<1x128x256xbf16> to vector<128x256xbf16>
    %cst_498 = arith.constant dense<0.000000e+00> : vector<16x256xf32>
    %486 = tpu.matmul %483, %485, %cst_498 {dimension_numbers = #tpu.dot_dimension_numbers<[1], [0], [0], [1], [0, 0, 1, 1], [], []>} : vector<16x128xbf16>, vector<128x256xbf16>, vector<16x256xf32> -> vector<16x256xf32>
    %487 = arith.addf %482, %486 : vector<16x256xf32>
    %c160_499 = arith.constant 160 : index
    %c0_500 = arith.constant 0 : index
    %488 = vector.load %arg12[%c160_499, %c0_500] : memref<208x128xbf16, #tpu.memory_space<vmem>>, vector<16x128xbf16>
    %c2_501 = arith.constant 2 : index
    %c0_502 = arith.constant 0 : index
    %c0_503 = arith.constant 0 : index
    %489 = vector.load %arg6[%c2_501, %c0_502, %c0_503] : memref<3x128x256xbf16, #tpu.memory_space<vmem>>, vector<1x128x256xbf16>
    %490 = vector.shape_cast %489 : vector<1x128x256xbf16> to vector<128x256xbf16>
    %cst_504 = arith.constant dense<0.000000e+00> : vector<16x256xf32>
    %491 = tpu.matmul %488, %490, %cst_504 {dimension_numbers = #tpu.dot_dimension_numbers<[1], [0], [0], [1], [0, 0, 1, 1], [], []>} : vector<16x128xbf16>, vector<128x256xbf16>, vector<16x256xf32> -> vector<16x256xf32>
    %492 = arith.addf %487, %491 : vector<16x256xf32>
    %c0_505 = arith.constant 0 : index
    %c0_506 = arith.constant 0 : index
    %493 = vector.load %arg7[%c0_505, %c0_506] : memref<1x256xf32, #tpu.memory_space<vmem>>, vector<1x256xf32>
    %494 = vector.broadcast %493 : vector<1x256xf32> to vector<16x256xf32>
    %495 = arith.addf %492, %494 : vector<16x256xf32>
    %cst_507 = arith.constant 1.000000e-01 : f32
    %496 = vector.broadcast %cst_507 : f32 to vector<16x256xf32>
    %497 = arith.mulf %496, %495 : vector<16x256xf32>
    %498 = arith.maximumf %495, %497 : vector<16x256xf32>
    %499 = arith.truncf %498 : vector<16x256xf32> to vector<16x256xbf16>
    %c8 = arith.constant 8 : index
    %c0_508 = arith.constant 0 : index
    %c0_509 = arith.constant 0 : index
    %500 = vector.load %arg8[%c8, %c0_508, %c0_509] : memref<11x256x256xbf16, #tpu.memory_space<vmem>>, vector<1x256x256xbf16>
    %501 = vector.shape_cast %500 : vector<1x256x256xbf16> to vector<256x256xbf16>
    %cst_510 = arith.constant dense<0.000000e+00> : vector<16x256xf32>
    %502 = tpu.matmul %499, %501, %cst_510 {dimension_numbers = #tpu.dot_dimension_numbers<[1], [0], [0], [1], [0, 0, 1, 1], [], []>} : vector<16x256xbf16>, vector<256x256xbf16>, vector<16x256xf32> -> vector<16x256xf32>
    %c0_511 = arith.constant 0 : index
    %c0_512 = arith.constant 0 : index
    %503 = vector.load %arg10[%c0_511, %c0_512] : memref<16x256xf32, #tpu.memory_space<vmem>>, vector<16x256xf32>
    %504 = arith.addf %503, %502 : vector<16x256xf32>
    %c0_513 = arith.constant 0 : index
    %c0_514 = arith.constant 0 : index
    %505 = vector.load %arg10[%c0_513, %c0_514] : memref<16x256xf32, #tpu.memory_space<vmem>>, vector<16x256xf32>
    tpu.vector_store %arg10[%c0_513, %c0_514], %504 {strides = array<i32>} : memref<16x256xf32, #tpu.memory_space<vmem>>, vector<16x256xf32>,
    %c144_515 = arith.constant 144 : index
    %c0_516 = arith.constant 0 : index
    %506 = vector.load %arg12[%c144_515, %c0_516] : memref<208x128xbf16, #tpu.memory_space<vmem>>, vector<16x128xbf16>
    %c0_517 = arith.constant 0 : index
    %c0_518 = arith.constant 0 : index
    %c0_519 = arith.constant 0 : index
    %507 = vector.load %arg6[%c0_517, %c0_518, %c0_519] : memref<3x128x256xbf16, #tpu.memory_space<vmem>>, vector<1x128x256xbf16>
    %508 = vector.shape_cast %507 : vector<1x128x256xbf16> to vector<128x256xbf16>
    %cst_520 = arith.constant dense<0.000000e+00> : vector<16x256xf32>
    %509 = tpu.matmul %506, %508, %cst_520 {dimension_numbers = #tpu.dot_dimension_numbers<[1], [0], [0], [1], [0, 0, 1, 1], [], []>} : vector<16x128xbf16>, vector<128x256xbf16>, vector<16x256xf32> -> vector<16x256xf32>
    %c160_521 = arith.constant 160 : index
    %c0_522 = arith.constant 0 : index
    %510 = vector.load %arg12[%c160_521, %c0_522] : memref<208x128xbf16, #tpu.memory_space<vmem>>, vector<16x128xbf16>
    %c1_523 = arith.constant 1 : index
    %c0_524 = arith.constant 0 : index
    %c0_525 = arith.constant 0 : index
    %511 = vector.load %arg6[%c1_523, %c0_524, %c0_525] : memref<3x128x256xbf16, #tpu.memory_space<vmem>>, vector<1x128x256xbf16>
    %512 = vector.shape_cast %511 : vector<1x128x256xbf16> to vector<128x256xbf16>
    %cst_526 = arith.constant dense<0.000000e+00> : vector<16x256xf32>
    %513 = tpu.matmul %510, %512, %cst_526 {dimension_numbers = #tpu.dot_dimension_numbers<[1], [0], [0], [1], [0, 0, 1, 1], [], []>} : vector<16x128xbf16>, vector<128x256xbf16>, vector<16x256xf32> -> vector<16x256xf32>
    %514 = arith.addf %509, %513 : vector<16x256xf32>
    %c176_527 = arith.constant 176 : index
    %c0_528 = arith.constant 0 : index
    %515 = vector.load %arg12[%c176_527, %c0_528] : memref<208x128xbf16, #tpu.memory_space<vmem>>, vector<16x128xbf16>
    %c2_529 = arith.constant 2 : index
    %c0_530 = arith.constant 0 : index
    %c0_531 = arith.constant 0 : index
    %516 = vector.load %arg6[%c2_529, %c0_530, %c0_531] : memref<3x128x256xbf16, #tpu.memory_space<vmem>>, vector<1x128x256xbf16>
    %517 = vector.shape_cast %516 : vector<1x128x256xbf16> to vector<128x256xbf16>
    %cst_532 = arith.constant dense<0.000000e+00> : vector<16x256xf32>
    %518 = tpu.matmul %515, %517, %cst_532 {dimension_numbers = #tpu.dot_dimension_numbers<[1], [0], [0], [1], [0, 0, 1, 1], [], []>} : vector<16x128xbf16>, vector<128x256xbf16>, vector<16x256xf32> -> vector<16x256xf32>
    %519 = arith.addf %514, %518 : vector<16x256xf32>
    %c0_533 = arith.constant 0 : index
    %c0_534 = arith.constant 0 : index
    %520 = vector.load %arg7[%c0_533, %c0_534] : memref<1x256xf32, #tpu.memory_space<vmem>>, vector<1x256xf32>
    %521 = vector.broadcast %520 : vector<1x256xf32> to vector<16x256xf32>
    %522 = arith.addf %519, %521 : vector<16x256xf32>
    %cst_535 = arith.constant 1.000000e-01 : f32
    %523 = vector.broadcast %cst_535 : f32 to vector<16x256xf32>
    %524 = arith.mulf %523, %522 : vector<16x256xf32>
    %525 = arith.maximumf %522, %524 : vector<16x256xf32>
    %526 = arith.truncf %525 : vector<16x256xf32> to vector<16x256xbf16>
    %c9 = arith.constant 9 : index
    %c0_536 = arith.constant 0 : index
    %c0_537 = arith.constant 0 : index
    %527 = vector.load %arg8[%c9, %c0_536, %c0_537] : memref<11x256x256xbf16, #tpu.memory_space<vmem>>, vector<1x256x256xbf16>
    %528 = vector.shape_cast %527 : vector<1x256x256xbf16> to vector<256x256xbf16>
    %cst_538 = arith.constant dense<0.000000e+00> : vector<16x256xf32>
    %529 = tpu.matmul %526, %528, %cst_538 {dimension_numbers = #tpu.dot_dimension_numbers<[1], [0], [0], [1], [0, 0, 1, 1], [], []>} : vector<16x256xbf16>, vector<256x256xbf16>, vector<16x256xf32> -> vector<16x256xf32>
    %c0_539 = arith.constant 0 : index
    %c0_540 = arith.constant 0 : index
    %530 = vector.load %arg10[%c0_539, %c0_540] : memref<16x256xf32, #tpu.memory_space<vmem>>, vector<16x256xf32>
    %531 = arith.addf %530, %529 : vector<16x256xf32>
    %c0_541 = arith.constant 0 : index
    %c0_542 = arith.constant 0 : index
    %532 = vector.load %arg10[%c0_541, %c0_542] : memref<16x256xf32, #tpu.memory_space<vmem>>, vector<16x256xf32>
    tpu.vector_store %arg10[%c0_541, %c0_542], %531 {strides = array<i32>} : memref<16x256xf32, #tpu.memory_space<vmem>>, vector<16x256xf32>,
    %c160_543 = arith.constant 160 : index
    %c0_544 = arith.constant 0 : index
    %533 = vector.load %arg12[%c160_543, %c0_544] : memref<208x128xbf16, #tpu.memory_space<vmem>>, vector<16x128xbf16>
    %c0_545 = arith.constant 0 : index
    %c0_546 = arith.constant 0 : index
    %c0_547 = arith.constant 0 : index
    %534 = vector.load %arg6[%c0_545, %c0_546, %c0_547] : memref<3x128x256xbf16, #tpu.memory_space<vmem>>, vector<1x128x256xbf16>
    %535 = vector.shape_cast %534 : vector<1x128x256xbf16> to vector<128x256xbf16>
    %cst_548 = arith.constant dense<0.000000e+00> : vector<16x256xf32>
    %536 = tpu.matmul %533, %535, %cst_548 {dimension_numbers = #tpu.dot_dimension_numbers<[1], [0], [0], [1], [0, 0, 1, 1], [], []>} : vector<16x128xbf16>, vector<128x256xbf16>, vector<16x256xf32> -> vector<16x256xf32>
    %c176_549 = arith.constant 176 : index
    %c0_550 = arith.constant 0 : index
    %537 = vector.load %arg12[%c176_549, %c0_550] : memref<208x128xbf16, #tpu.memory_space<vmem>>, vector<16x128xbf16>
    %c1_551 = arith.constant 1 : index
    %c0_552 = arith.constant 0 : index
    %c0_553 = arith.constant 0 : index
    %538 = vector.load %arg6[%c1_551, %c0_552, %c0_553] : memref<3x128x256xbf16, #tpu.memory_space<vmem>>, vector<1x128x256xbf16>
    %539 = vector.shape_cast %538 : vector<1x128x256xbf16> to vector<128x256xbf16>
    %cst_554 = arith.constant dense<0.000000e+00> : vector<16x256xf32>
    %540 = tpu.matmul %537, %539, %cst_554 {dimension_numbers = #tpu.dot_dimension_numbers<[1], [0], [0], [1], [0, 0, 1, 1], [], []>} : vector<16x128xbf16>, vector<128x256xbf16>, vector<16x256xf32> -> vector<16x256xf32>
    %541 = arith.addf %536, %540 : vector<16x256xf32>
    %c192_555 = arith.constant 192 : index
    %c0_556 = arith.constant 0 : index
    %542 = vector.load %arg12[%c192_555, %c0_556] : memref<208x128xbf16, #tpu.memory_space<vmem>>, vector<16x128xbf16>
    %c2_557 = arith.constant 2 : index
    %c0_558 = arith.constant 0 : index
    %c0_559 = arith.constant 0 : index
    %543 = vector.load %arg6[%c2_557, %c0_558, %c0_559] : memref<3x128x256xbf16, #tpu.memory_space<vmem>>, vector<1x128x256xbf16>
    %544 = vector.shape_cast %543 : vector<1x128x256xbf16> to vector<128x256xbf16>
    %cst_560 = arith.constant dense<0.000000e+00> : vector<16x256xf32>
    %545 = tpu.matmul %542, %544, %cst_560 {dimension_numbers = #tpu.dot_dimension_numbers<[1], [0], [0], [1], [0, 0, 1, 1], [], []>} : vector<16x128xbf16>, vector<128x256xbf16>, vector<16x256xf32> -> vector<16x256xf32>
    %546 = arith.addf %541, %545 : vector<16x256xf32>
    %c0_561 = arith.constant 0 : index
    %c0_562 = arith.constant 0 : index
    %547 = vector.load %arg7[%c0_561, %c0_562] : memref<1x256xf32, #tpu.memory_space<vmem>>, vector<1x256xf32>
    %548 = vector.broadcast %547 : vector<1x256xf32> to vector<16x256xf32>
    %549 = arith.addf %546, %548 : vector<16x256xf32>
    %cst_563 = arith.constant 1.000000e-01 : f32
    %550 = vector.broadcast %cst_563 : f32 to vector<16x256xf32>
    %551 = arith.mulf %550, %549 : vector<16x256xf32>
    %552 = arith.maximumf %549, %551 : vector<16x256xf32>
    %553 = arith.truncf %552 : vector<16x256xf32> to vector<16x256xbf16>
    %c10 = arith.constant 10 : index
    %c0_564 = arith.constant 0 : index
    %c0_565 = arith.constant 0 : index
    %554 = vector.load %arg8[%c10, %c0_564, %c0_565] : memref<11x256x256xbf16, #tpu.memory_space<vmem>>, vector<1x256x256xbf16>
    %555 = vector.shape_cast %554 : vector<1x256x256xbf16> to vector<256x256xbf16>
    %cst_566 = arith.constant dense<0.000000e+00> : vector<16x256xf32>
    %556 = tpu.matmul %553, %555, %cst_566 {dimension_numbers = #tpu.dot_dimension_numbers<[1], [0], [0], [1], [0, 0, 1, 1], [], []>} : vector<16x256xbf16>, vector<256x256xbf16>, vector<16x256xf32> -> vector<16x256xf32>
    %c0_567 = arith.constant 0 : index
    %c0_568 = arith.constant 0 : index
    %557 = vector.load %arg10[%c0_567, %c0_568] : memref<16x256xf32, #tpu.memory_space<vmem>>, vector<16x256xf32>
    %558 = arith.addf %557, %556 : vector<16x256xf32>
    %c0_569 = arith.constant 0 : index
    %c0_570 = arith.constant 0 : index
    %559 = vector.load %arg10[%c0_569, %c0_570] : memref<16x256xf32, #tpu.memory_space<vmem>>, vector<16x256xf32>
    tpu.vector_store %arg10[%c0_569, %c0_570], %558 {strides = array<i32>} : memref<16x256xf32, #tpu.memory_space<vmem>>, vector<16x256xf32>,
    return
  }
  func.func @transform_0(%arg0: i32) -> (i32, i32, i32) {
    %c0_i32 = arith.constant 0 : i32
    %c0_i32_0 = arith.constant 0 : i32
    %c0_i32_1 = arith.constant 0 : i32
    return %c0_i32, %arg0, %c0_i32_0 : i32, i32, i32
  }
  func.func @transform_1(%arg0: i32) -> (i32, i32) {
    %c0_i32 = arith.constant 0 : i32
    %c0_i32_0 = arith.constant 0 : i32
    %c0_i32_1 = arith.constant 0 : i32
    return %c0_i32, %c0_i32_0 : i32, i32
  }
  func.func @transform_2(%arg0: i32) -> (i32, i32) {
    %c0_i32 = arith.constant 0 : i32
    %c0_i32_0 = arith.constant 0 : i32
    %c0_i32_1 = arith.constant 0 : i32
    return %c0_i32, %c0_i32_0 : i32, i32
  }
  func.func @transform_3(%arg0: i32) -> (i32, i32, i32) {
    %c0_i32 = arith.constant 0 : i32
    %c0_i32_0 = arith.constant 0 : i32
    %c0_i32_1 = arith.constant 0 : i32
    %c0_i32_2 = arith.constant 0 : i32
    return %c0_i32, %c0_i32_0, %c0_i32_1 : i32, i32, i32
  }
  func.func @transform_4(%arg0: i32) -> (i32, i32) {
    %c0_i32 = arith.constant 0 : i32
    %c0_i32_0 = arith.constant 0 : i32
    %c0_i32_1 = arith.constant 0 : i32
    return %c0_i32, %c0_i32_0 : i32, i32
  }
  func.func @transform_5(%arg0: i32) -> (i32, i32, i32) {
    %c0_i32 = arith.constant 0 : i32
    %c0_i32_0 = arith.constant 0 : i32
    %c0_i32_1 = arith.constant 0 : i32
    %c0_i32_2 = arith.constant 0 : i32
    return %c0_i32, %c0_i32_0, %c0_i32_1 : i32, i32, i32
  }
  func.func @transform_6(%arg0: i32) -> (i32, i32) {
    %c0_i32 = arith.constant 0 : i32
    %c0_i32_0 = arith.constant 0 : i32
    %c0_i32_1 = arith.constant 0 : i32
    return %c0_i32, %c0_i32_0 : i32, i32
  }
  func.func @transform_7(%arg0: i32) -> (i32, i32, i32) {
    %c0_i32 = arith.constant 0 : i32
    %c0_i32_0 = arith.constant 0 : i32
    %c0_i32_1 = arith.constant 0 : i32
    %c0_i32_2 = arith.constant 0 : i32
    return %c0_i32, %c0_i32_0, %c0_i32_1 : i32, i32, i32
  }
  func.func @transform_8(%arg0: i32) -> (i32, i32) {
    %c0_i32 = arith.constant 0 : i32
    %c0_i32_0 = arith.constant 0 : i32
    %c0_i32_1 = arith.constant 0 : i32
    return %c0_i32, %c0_i32_0 : i32, i32
  }
  func.func @transform_9(%arg0: i32) -> (i32, i32) {
    %c0_i32 = arith.constant 0 : i32
    %c0_i32_0 = arith.constant 0 : i32
    return %arg0, %c0_i32 : i32, i32
  }
}

</mosaic_0001>

<bundles_post_ra>
// kernel: tpu_custom_call.1
= control target key start
LH: loop header
LB: loop body
LE: loop exit
PB: predicated region body
PF: predicated region fallthrough
CT: control target
= control target key end

     0   :  { %14 = vsyncpa [#allocation5], 0  ;;  %s16487_s0 = inlined_call_operand.hbm [shape: bf16[11,16,18], index: 0, kind: input, shape index: {}]   ;;  %s16488_s1 = inlined_call_operand.hbm [shape: bf16[18,64], index: 1, kind: input, shape index: {}]   ;;  %s16489_s2 = inlined_call_operand.hbm [shape: f32[1,64], index: 2, kind: input, shape index: {}]   ;;  %s16490_s3 = inlined_call_operand.hbm [shape: bf16[3,64,128], index: 3, kind: input, shape index: {}]   ;;  %s16491_s4 = inlined_call_operand.hbm [shape: f32[1,128], index: 4, kind: input, shape index: {}]   ;;  %s16492_s5 = inlined_call_operand.hbm [shape: bf16[3,128,256], index: 5, kind: input, shape index: {}]   ;;  %s16493_s6 = inlined_call_operand.hbm [shape: f32[1,256], index: 6, kind: input, shape index: {}]   ;;  %s16494_s7 = inlined_call_operand.hbm [shape: bf16[11,256,256], index: 7, kind: input, shape index: {}]   ;;  %s16495_s8 = inlined_call_operand.hbm [shape: f32[1,256], index: 8, kind: input, shape index: {}]   ;;  %s16496_s9 = inlined_call_operand.hbm [shape: f32[16,256], index: 9, kind: output, shape index: {}]  }
   0x1   :  { %15 = vsyncpa [#allocation8], 0 }
   0x2   :  { %16 = vsyncpa [#allocation11], 0 }
   0x3   :  { %17 = vsyncpa [#allocation14], 0 }
   0x4   :  { %18 = vsyncpa [#allocation17], 0 }
   0x5   :  { %19 = vsyncpa [#allocation6], 0  ;;  %s14843_s30 = smov [#allocation7]   ;;  %s14844_s11 = smov [#allocation10]  }
   0x6   :  { %s37_s10 = sshll.u32 %s14843_s30, 4  ;;  %s59_s12 = sshll.u32 %s14844_s11, 4  ;;  %s38_s10 = int_to_ptr.vmem [resolvable:$true] %s37_s10  ;;  %s60_s12 = int_to_ptr.vmem [resolvable:$true] %s59_s12 }
   0x7   :  { %s14639_s13 = scalar_lea.vmem %s38_s10, 192  ;;  %p14644_p1 = scmp.lt.s32.totalorder %s38_s10, %s38_s10 }
   0x8   :  { %p14640_p0 = scmp.ne.s32.totalorder %s38_s10, %s14639_s13  ;;  %p14645_p2 = scmp.lt.s32.totalorder %s14639_s13, %s14639_s13 }
   0xa   :  { %p14646_p3 = por %p14645_p2, %p14644_p1 }
   0xc   :  { %p14647_p4 = pnand %p14646_p3, %p14640_p0 }
   0xe   :  { %14650 = shalt.err (!%p14647_p4)
}
   0xf   :  { %s14845_s14 = smov 64   ;;  %s14846_s15 = smov 4  }
  0x10   :  { %43 = dma.hbm_to_vmem [thread:$0]  %s16488_s1, 192, %s38_s10, [#allocation8], %s14845_s14, %s14845_s14, %s14846_s15  }
  0x11   :  { %s14659_s18 = scalar_lea.vmem %s60_s12, 1536  ;;  %p14664_p6 = scmp.lt.s32.totalorder %s60_s12, %s60_s12 }
  0x12   :  { %p14660_p5 = scmp.ne.s32.totalorder %s60_s12, %s14659_s18  ;;  %p14665_p7 = scmp.lt.s32.totalorder %s14659_s18, %s14659_s18 }
  0x14   :  { %p14666_p8 = por %p14665_p7, %p14664_p6 }
  0x16   :  { %p14667_p9 = pnand %p14666_p8, %p14660_p5 }
  0x18   :  { %14670 = shalt.err (!%p14667_p9)
}
  0x19   :  { %65 = dma.hbm_to_vmem [thread:$0]  %s16490_s3, 1536, %s60_s12, [#allocation11], %s14845_s14, %s14845_s14, %s14846_s15  }
  0x1a   :  { %s14847_s21 = smov [#allocation13]  }
  0x1b   :  { %s81_s22 = sshll.u32 %s14847_s21, 4  ;;  %s82_s22 = int_to_ptr.vmem [resolvable:$true] %s81_s22 }
  0x1c   :  { %s14679_s23 = scalar_lea.vmem %s82_s22, 6144  ;;  %p14684_p11 = scmp.lt.s32.totalorder %s82_s22, %s82_s22 }
  0x1d   :  { %p14680_p10 = scmp.ne.s32.totalorder %s82_s22, %s14679_s23  ;;  %p14685_p12 = scmp.lt.s32.totalorder %s14679_s23, %s14679_s23 }
  0x1f   :  { %p14686_p13 = por %p14685_p12, %p14684_p11 }
  0x21   :  { %p14687_p0 = pnand %p14686_p13, %p14680_p10 }
  0x23   :  { %14690 = shalt.err (!%p14687_p0)
}
  0x24   :  { %s14848_s1 = smov 128   ;;  %s14849_s24 = smov 8  }
  0x25   :  { %87 = dma.hbm_to_vmem [thread:$0]  %s16492_s5, 6144, %s82_s22, [#allocation14], %s14848_s1, %s14848_s1, %s14849_s24  }
  0x26   :  { %s14850_s27 = smov [#allocation16]   ;;  %s14851_s3 = smov [#allocation4]  }
  0x27   :  { %s103_s28 = sshll.u32 %s14850_s27, 4  ;;  %s25_s29 = sshll.u32 %s14851_s3, 4  ;;  %s104_s28 = int_to_ptr.vmem [resolvable:$true] %s103_s28  ;;  %s26_s29 = int_to_ptr.vmem [resolvable:$true] %s25_s29 }
  0x28   :  { %s14699_s30 = scalar_lea.vmem %s104_s28, 45056  ;;  %p14704_p2 = scmp.lt.s32.totalorder %s104_s28, %s104_s28 }
  0x29   :  { %p14700_p1 = scmp.ne.s32.totalorder %s104_s28, %s14699_s30  ;;  %p14705_p3 = scmp.lt.s32.totalorder %s14699_s30, %s14699_s30 }
  0x2b   :  { %p14706_p4 = por %p14705_p3, %p14704_p2 }
  0x2d   :  { %p14707_p5 = pnand %p14706_p4, %p14700_p1 }
  0x2f   :  { %14710 = shalt.err (!%p14707_p5)
}
  0x30   :  { %109 = dma.hbm_to_vmem [thread:$0]  %s16494_s7, 45056, %s104_s28, [#allocation17], %s14848_s1, %s14848_s1, %s14849_s24  }
  0x31   :  { %s14719_s12 = scalar_lea.vmem %s26_s29, 1408  ;;  %p14724_p7 = scmp.lt.s32.totalorder %s26_s29, %s26_s29 }
  0x32   :  { %p14720_p6 = scmp.ne.s32.totalorder %s26_s29, %s14719_s12  ;;  %p14725_p8 = scmp.lt.s32.totalorder %s14719_s12, %s14719_s12 }
  0x34   :  { %p14726_p9 = por %p14725_p8, %p14724_p7 }
  0x36   :  { %p14727_p10 = pnand %p14726_p9, %p14720_p6 }
  0x38   :  { %14730 = shalt.err (!%p14727_p10)
}
  0x39   :  { %31 = dma.hbm_to_vmem [thread:$0]  %s16487_s0, 1408, %s26_s29, [#allocation5], %s14845_s14, %s14845_s14, %s14846_s15  }
  0x3a   :  { %s14852_s16 = smov [#allocation9]   ;;  %s14853_s18 = smov [#allocation12]  }
  0x3b   :  { %s50_s17 = sshll.u32 %s14852_s16, 4  ;;  %s72_s7 = sshll.u32 %s14853_s18, 4  ;;  %s51_s17 = int_to_ptr.vmem [resolvable:$true] %s50_s17  ;;  %s73_s7 = int_to_ptr.vmem [resolvable:$true] %s72_s7 }
  0x3c   :  { %s14739_s19 = scalar_lea.vmem %s51_s17, 16  ;;  %s14743_s20 = scalar_lea.vmem %s51_s17, 32 }
  0x3d   :  { %p14740_p11 = scmp.ne.s32.totalorder %s51_s17, %s14739_s19  ;;  %p14744_p12 = scmp.lt.s32.totalorder %s51_s17, %s51_s17 }
  0x3e   :  { %p14745_p13 = scmp.lt.s32.totalorder %s14743_s20, %s14739_s19 }
  0x40   :  { %p14746_p0 = por %p14745_p13, %p14744_p12 }
  0x42   :  { %p14747_p1 = pnand %p14746_p0, %p14740_p11 }
  0x44   :  { %14750 = shalt.err (!%p14747_p1)
}
  0x45   :  { %53 = dma.hbm_to_vmem [thread:$0]  %s16489_s2, 16, %s51_s17, [#allocation8]  }
  0x46   :  { %s14759_s23 = scalar_lea.vmem %s73_s7, 16  ;;  %s14763_s0 = scalar_lea.vmem %s73_s7, 32 }
  0x47   :  { %p14760_p2 = scmp.ne.s32.totalorder %s73_s7, %s14759_s23  ;;  %p14764_p3 = scmp.lt.s32.totalorder %s73_s7, %s73_s7 }
  0x48   :  { %p14765_p4 = scmp.lt.s32.totalorder %s14763_s0, %s14759_s23 }
  0x4a   :  { %p14766_p5 = por %p14765_p4, %p14764_p3 }
  0x4c   :  { %p14767_p6 = pnand %p14766_p5, %p14760_p2 }
  0x4e   :  { %14770 = shalt.err (!%p14767_p6)
}
  0x4f   :  { %75 = dma.hbm_to_vmem [thread:$0]  %s16491_s4, 16, %s73_s7, [#allocation11]  }
  0x50   :  { %s14854_s1 = smov [#allocation15]   ;;  %s14855_s25 = smov [#allocation18]  }
  0x51   :  { %s94_s24 = sshll.u32 %s14854_s1, 4  ;;  %s116_s26 = sshll.u32 %s14855_s25, 4  ;;  %s95_s24 = int_to_ptr.vmem [resolvable:$true] %s94_s24  ;;  %s117_s26 = int_to_ptr.vmem [resolvable:$true] %s116_s26 }
  0x52   :  { %s14779_s27 = scalar_lea.vmem %s95_s24, 32  ;;  %p14784_p8 = scmp.lt.s32.totalorder %s95_s24, %s95_s24 }
  0x53   :  { %p14780_p7 = scmp.ne.s32.totalorder %s95_s24, %s14779_s27  ;;  %p14785_p9 = scmp.lt.s32.totalorder %s14779_s27, %s14779_s27 }
  0x55   :  { %p14786_p10 = por %p14785_p9, %p14784_p8 }
  0x57   :  { %p14787_p11 = pnand %p14786_p10, %p14780_p7 }
  0x59   :  { %14790 = shalt.err (!%p14787_p11)
}
  0x5a   :  { %97 = dma.hbm_to_vmem [thread:$0]  %s16493_s6, 32, %s95_s24, [#allocation14]  }
  0x5b   :  { %s14799_s3 = scalar_lea.vmem %s117_s26, 32  ;;  %p14804_p13 = scmp.lt.s32.totalorder %s117_s26, %s117_s26 }
  0x5c   :  { %p14800_p12 = scmp.ne.s32.totalorder %s117_s26, %s14799_s3  ;;  %p14805_p0 = scmp.lt.s32.totalorder %s14799_s3, %s14799_s3 }
  0x5e   :  { %p14806_p1 = por %p14805_p0, %p14804_p13 }
  0x60   :  { %p14807_p2 = pnand %p14806_p1, %p14800_p12 }
  0x62   :  { %14810 = shalt.err (!%p14807_p2)
}
  0x63   :  { %119 = dma.hbm_to_vmem [thread:$0]  %s16495_s8, 32, %s117_s26, [#allocation17]  }
  0x64   :  { %14831 = dma.done.wait [#allocation5], 1408  }
  0x65   :  { %14832 = vsyncadd [#allocation5], 4294965888 }
  0x66   :  { %14833 = dma.done.wait [#allocation8], 208  }
  0x67   :  { %14834 = vsyncadd [#allocation8], 4294967088 }
  0x68   :  { %14835 = dma.done.wait [#allocation11], 1552  }
  0x69   :  { %14836 = vsyncadd [#allocation11], 4294965744 }
  0x6a   :  { %14837 = dma.done.wait [#allocation14], 6176  }
  0x6b   :  { %14838 = vsyncadd [#allocation14], 4294961120 }
  0x6c   :  { %14839 = dma.done.wait [#allocation17], 45088  }
  0x6d   :  { %14840 = vsyncadd [#allocation17], 4294922208  ;;  %v14856_v0 = vmov 0.0   ;;  %vm14857_vm0 = vmmov 0   ;;  %vm287_vm1 = vcmask 1040384   ;;  %v13461_v3 = vld [vmem:[#allocation7] sm:$0xff]  }
  0x6e   :  { %12997 = vmatprep.subr.bf16.mxu0 %v14856_v0  ;;  %13001 = vmatprep.mubr.msk.bf16.mxu0 %vm14857_vm0, %v14856_v0  ;;  %v13460_v1 = vld [vmem:[#allocation7 + $0x8] ss:$0 sps:$4 sm:$0x11]   ;;  %vm253_vm2 = vcmask 146432   ;;  %v13472_v6 = vld [vmem:[#allocation10 + $0x30] sm:$0xff]   ;;  %v13463_v7 = vld [vmem:[#allocation4 + $0x8] sm:$0xff]  }
  0x6f   :  { %13057 = vmatprep.subr.bf16.mxu1 %v14856_v0  ;;  %13065 = vmatprep.mubr.msk.bf16.mxu1 %vm14857_vm0, %v14856_v0  ;;  %v289_v2 = vsel %vm287_vm1, %v13460_v1, 0  ;;  %v13462_v4 = vld [vmem:[#allocation4] sm:$0xff]   ;;  %v13473_v9 = vld [vmem:[#allocation10 + $0x28] sm:$0xff]   ;;  %v13475_v10 = vld [vmem:[#allocation10 + $0x10] sm:$0xff]   ;;  %vm148_vm3 = vcmask 519168   ;;  %v16497_v19 = vmov 0  }
  0x70   :  { %12998 = vmatpush3.bf16.msra.mxu0 %v289_v2  ;;  %v13469_v5 = vld [vmem:[#allocation10 + $0x38] sm:$0xff]   ;;  %v13464_v11 = vld [vmem:[#allocation4 + $0x10] sm:$0xff]   ;;  %v13467_v14 = vld [vmem:[#allocation4 + $0x28] sm:$0xff]   ;;  %149 = vst.msk [vmem:[#allocation2] sm:$0xf] %vm148_vm3, %v16497_v19  ;;  %vm616_vm4 = vcmask 523264  }
  0x71   :  { %12999 = vmatprep.subr.bf16.mxu0 %v14856_v0  ;;  %v13474_v8 = vld [vmem:[#allocation10 + $0x18] sm:$0xff]   ;;  %v13468_v15 = vld [vmem:[#allocation4 + $0x30] sm:$0xff]   ;;  %150 = vst.msk [vmem:[#allocation2 + $0x4] sm:$0xf] %vm148_vm3, %v16497_v19  ;;  %151 = vst.msk [vmem:[#allocation2 + $0x60] sm:$0xf] %vm148_vm3, %v16497_v19 }
  0x72   :  { %13058 = vmatpush3.bf16.msra.mxu1 %v13474_v8  ;;  %v13465_v12 = vld [vmem:[#allocation4 + $0x18] sm:$0xff]   ;;  %v13466_v13 = vld [vmem:[#allocation4 + $0x20] sm:$0xff]   ;;  %v13477_v18 = vld [vmem:[#allocation10 + $0x8] sm:$0xff]   ;;  %152 = vst.msk [vmem:[#allocation2 + $0x64] sm:$0xf] %vm148_vm3, %v16497_v19  ;;  %s14859_s6 = smov [#allocation19]  }
  0x73   :  { %13059 = vmatprep.subr.bf16.mxu1 %v14856_v0  ;;  %v13470_v16 = vld [vmem:[#allocation4 + $0x38] sm:$0xff]   ;;  %v13471_v17 = vld [vmem:[#allocation4 + $0x40] sm:$0xff]   ;;  %153 = vst [vmem:[#allocation3] sm:$0xf] %v16497_v19  ;;  %154 = vst [vmem:[#allocation3 + $0x4] sm:$0xf] %v16497_v19 }
  0x74   :  { %13000 = vmatpush3.bf16.msra.mxu0 %v13461_v3  ;;  %155 = vst [vmem:[#allocation3 + $0x60] sm:$0xf] %v16497_v19  ;;  %156 = vst [vmem:[#allocation3 + $0x64] sm:$0xf] %v16497_v19  ;;  %v13476_v20 = vld [vmem:[#allocation4 + $0x48] sm:$0xff]   ;;  %v13481_v23 = vld [vmem:[#allocation4 + $0x50] sm:$0xff]  }
  0x75   :  { %13045 = vmatprep.subr.bf16.mxu0 %v14856_v0  ;;  %v13478_v21 = vld [vmem:[#allocation10] sm:$0xff]   ;;  %v13482_v24 = vld [vmem:[#allocation10 + $0x58] sm:$0xff]   ;;  %v13483_v26 = vld [vmem:[#allocation10 + $0x50] sm:$0xff]   ;;  %s11502_s8 = sshll.u32 %s14859_s6, 4  ;;  %s11503_s8 = int_to_ptr.vmem [resolvable:$true] %s11502_s8 }
  0x76   :  { %13060 = vmatpush3.bf16.msra.mxu1 %v13475_v10  ;;  %v13480_v25 = vld [vmem:[#allocation10 + $0x20] sm:$0xff]   ;;  %v13485_v27 = vld [vmem:[#allocation10 + $0x48] sm:$0xff]   ;;  %v15016_v29 = vld [vmem:[#allocation9] ss:$0 sm:$0xff]  ;;  %s14811_s30 = scalar_lea.vmem %s11503_s8, 512  ;;  %p14816_p4 = scmp.lt.s32.totalorder %s11503_s8, %s11503_s8 }
  0x77   :  { %13002 = vmatmul.mubr.msk.bf16.vlgmr.msra.gmra.mxu0 %vm253_vm2, %v13462_v4  ;;  %13061 = vmatprep.subr.bf16.mxu1 %v14856_v0  ;;  %v13487_v28 = vld [vmem:[#allocation10 + $0x40] sm:$0xff]   ;;  %v13486_v55 = vld [vmem:[#allocation10 + $0x58] sm:$0xff]   ;;  %v13488_v63 = vld [vmem:[#allocation10 + $0x50] sm:$0xff]   ;;  %p14812_p3 = scmp.ne.s32.totalorder %s11503_s8, %s14811_s30  ;;  %p14817_p5 = scmp.lt.s32.totalorder %s14811_s30, %s14811_s30 }
  0x78   :  { %13005 = vmatprep.mubr.msk.bf16.mxu0 %vm14857_vm0, %v14856_v0  ;;  %13046 = vmatpush3.bf16.msra.mxu0 %v13469_v5  ;;  %v13479_v22 = vld [vmem:[#allocation2] sm:$0xff]  }
  0x79   :  { %13047 = vmatprep.subr.bf16.mxu0 %v14856_v0  ;;  %p14818_p6 = por %p14817_p5, %p14816_p4 }
  0x7a   :  { %13062 = vmatpush3.bf16.msra.mxu1 %v13477_v18 }
  0x7b   :  { %13063 = vmatprep.subr.bf16.mxu1 %v14856_v0  ;;  %p14819_p7 = pnand %p14818_p6, %p14812_p3 }
  0x7c   :  { %13048 = vmatpush3.bf16.msra.mxu0 %v13472_v6  ;;  %v13490_v6 = vld [vmem:[#allocation10 + $0x38] sm:$0xff]  }
  0x7d   :  { %13049 = vmatprep.subr.bf16.mxu0 %v14856_v0 }
  0x7e   :  { %13064 = vmatpush3.bf16.msra.mxu1 %v13478_v21 }
  0x7f   :  { %13006 = vmatmul.mubr.msk.bf16.gmra.mxu0 %vm253_vm2, %v13463_v7  ;;  %13069 = vmatprep.subr.bf16.mxu1 %v14856_v0  ;;  %v13491_v7 = vld [vmem:[#allocation10 + $0x48] sm:$0xff]  }
  0x80   :  { %13009 = vmatprep.mubr.msk.bf16.mxu0 %vm14857_vm0, %v14856_v0  ;;  %13050 = vmatpush3.bf16.msra.mxu0 %v13473_v9 }
  0x81   :  { %13051 = vmatprep.subr.bf16.mxu0 %v14856_v0  ;;  %13066 = vmatmul.mubr.msk.bf16.vlgmr.msra.gmra.mxu1 %vm616_vm4, %v13479_v22 }
  0x82   :  { %13077 = vmatprep.mubr.msk.bf16.mxu1 %vm14857_vm0, %v14856_v0  ;;  %13070 = vmatpush3.bf16.msra.mxu1 %v13482_v24  ;;  %v13496_v24 = vld [vmem:[#allocation10 + $0x18] sm:$0xff]  }
  0x83   :  { %13071 = vmatprep.subr.bf16.mxu1 %v14856_v0 }
  0x84   :  { %13052 = vmatpush3.bf16.msra.mxu0 %v13480_v25 }
  0x85   :  { %13105 = vmatprep.subr.bf16.mxu0 %v14856_v0 }
  0x86   :  { %13072 = vmatpush3.bf16.msra.mxu1 %v13483_v26 }
  0x87   :  { %13010 = vmatmul.mubr.msk.bf16.gmra.mxu0 %vm253_vm2, %v13464_v11  ;;  %13073 = vmatprep.subr.bf16.mxu1 %v14856_v0 }
  0x88   :  { %13013 = vmatprep.mubr.msk.bf16.mxu0 %vm14857_vm0, %v14856_v0 }
  0x8a   :  { %13074 = vmatpush3.bf16.msra.mxu1 %v13485_v27 }
  0x8b   :  { %13075 = vmatprep.subr.bf16.mxu1 %v14856_v0 }
  0x8e   :  { %13076 = vmatpush3.bf16.msra.mxu1 %v13487_v28 }
  0x8f   :  { %13014 = vmatmul.mubr.msk.bf16.gmra.mxu0 %vm253_vm2, %v13465_v12  ;;  %13081 = vmatprep.subr.bf16.mxu1 %v14856_v0 }
  0x90   :  { %13017 = vmatprep.mubr.msk.bf16.mxu0 %vm14857_vm0, %v14856_v0 }
  0x97   :  { %13018 = vmatmul.mubr.msk.bf16.gmra.mxu0 %vm253_vm2, %v13466_v13 }
  0x98   :  { %13021 = vmatprep.mubr.msk.bf16.mxu0 %vm14857_vm0, %v14856_v0 }
  0x9f   :  { %13022 = vmatmul.mubr.msk.bf16.gmra.mxu0 %vm253_vm2, %v13467_v14 }
  0xa0   :  { %13025 = vmatprep.mubr.msk.bf16.mxu0 %vm14857_vm0, %v14856_v0 }
  0xa7   :  { %13026 = vmatmul.mubr.msk.bf16.gmra.mxu0 %vm253_vm2, %v13468_v15 }
  0xa8   :  { %13029 = vmatprep.mubr.msk.bf16.mxu0 %vm14857_vm0, %v14856_v0 }
  0xaf   :  { %13030 = vmatmul.mubr.msk.bf16.gmra.mxu0 %vm253_vm2, %v13470_v16  ;;  %v13492_v16 = vld [vmem:[#allocation10 + $0x30] sm:$0xff]  }
  0xb0   :  { %13033 = vmatprep.mubr.msk.bf16.mxu0 %vm14857_vm0, %v14856_v0 }
  0xb7   :  { %13034 = vmatmul.mubr.msk.bf16.gmra.mxu0 %vm253_vm2, %v13471_v17  ;;  %v13493_v17 = vld [vmem:[#allocation10 + $0x40] sm:$0xff]  }
  0xb8   :  { %13037 = vmatprep.mubr.msk.bf16.mxu0 %vm14857_vm0, %v14856_v0 }
  0xbf   :  { %13038 = vmatmul.mubr.msk.bf16.gmra.mxu0 %vm253_vm2, %v13476_v20 }
  0xc0   :  { %13041 = vmatprep.mubr.msk.bf16.mxu0 %vm14857_vm0, %v14856_v0 }
  0xc7   :  { %13042 = vmatmul.mubr.msk.bf16.gmra.mxu0 %vm253_vm2, %v13481_v23  ;;  %v13494_v23 = vld [vmem:[#allocation10 + $0x28] sm:$0xff]  }
  0xc8   :  { %13053 = vmatprep.mubr.msk.bf16.mxu0 %vm14857_vm0, %v14856_v0 }
 0x137   :  { %v325_v30 = vpop.f32.mrf.mxu0 }
 0x138   :  { %v326_v31 = vadd.f32 %v15016_v29, %v325_v30 }
 0x139   :  { %v13003_v32 = vpop.f32.mrf.mxu0 }
 0x13a   :  { %v412_v33 = vmul.f32 0.1, %v326_v31 }
 0x13b   :  { %v328_v34 = vpop.f32.mrf.mxu0 }
 0x13c   :  { %v434_v35 = vmax.f32 %v326_v31, %v412_v33  ;;  %v329_v36 = vadd.f32 %v15016_v29, %v328_v34 }
 0x13d   :  { %v13004_v37 = vpop.f32.mrf.mxu0 }
 0x13e   :  { %v12709_v38 = vpack.c.bf16 %v434_v35, %v434_v35  ;;  %v413_v39 = vmul.f32 0.1, %v329_v36  ;;  %v13497_v35 = vld [vmem:[#allocation10 + $0x20] sm:$0xff]  }
 0x13f   :  { %v333_v40 = vpop.f32.mrf.mxu0 }
 0x140   :  { %544 = vst.msk [vmem:[#allocation2 + $0x8] sm:$0xf] %vm148_vm3, %v12709_v38  ;;  %v435_v41 = vmax.f32 %v329_v36, %v413_v39  ;;  %v334_v42 = vadd.f32 %v15016_v29, %v333_v40  ;;  %v13498_v36 = vld [vmem:[#allocation10 + $0x10] sm:$0xff]  }
 0x141   :  { %v13007_v43 = vpop.f32.mrf.mxu0 }
 0x142   :  { %v12710_v44 = vpack.c.bf16 %v435_v41, %v435_v41  ;;  %v414_v45 = vmul.f32 0.1, %v334_v42  ;;  %v13500_v41 = vld [vmem:[#allocation10 + $0x18] sm:$0xff]  }
 0x143   :  { %v336_v46 = vpop.f32.mrf.mxu0 }
 0x144   :  { %545 = vst.msk [vmem:[#allocation2 + $0xc] sm:$0xf] %vm148_vm3, %v12710_v44  ;;  %v436_v47 = vmax.f32 %v334_v42, %v414_v45  ;;  %v337_v48 = vadd.f32 %v15016_v29, %v336_v46  ;;  %v13501_v42 = vld [vmem:[#allocation10 + $0x8] sm:$0xff]  }
 0x145   :  { %v13008_v49 = vpop.f32.mrf.mxu0 }
 0x146   :  { %v12711_v50 = vpack.c.bf16 %v436_v47, %v436_v47  ;;  %v415_v51 = vmul.f32 0.1, %v337_v48 }
 0x147   :  { %v341_v52 = vpop.f32.mrf.mxu0 }
 0x148   :  { %546 = vst.msk [vmem:[#allocation2 + $0x10] sm:$0xf] %vm148_vm3, %v12711_v50  ;;  %v437_v53 = vmax.f32 %v337_v48, %v415_v51  ;;  %v342_v54 = vadd.f32 %v15016_v29, %v341_v52  ;;  %v13502_v52 = vld [vmem:[#allocation10 + $0x10] sm:$0xff]  }
 0x149   :  { %v13011_v56 = vpop.f32.mrf.mxu0 }
 0x14a   :  { %v12712_v57 = vpack.c.bf16 %v437_v53, %v437_v53  ;;  %v416_v58 = vmul.f32 0.1, %v342_v54  ;;  %v13503_v53 = vld [vmem:[#allocation10] sm:$0xff]  }
 0x14b   :  { %v344_v59 = vpop.f32.mrf.mxu0  ;;  %v13484_v60 = vld [vmem:[#allocation2 + $0x8] sm:$0xff]  }
 0x14c   :  { %547 = vst.msk [vmem:[#allocation2 + $0x14] sm:$0xf] %vm148_vm3, %v12712_v57  ;;  %v438_v61 = vmax.f32 %v342_v54, %v416_v58  ;;  %v345_v62 = vadd.f32 %v15016_v29, %v344_v59  ;;  %13054 = vmatmul.mubr.msk.bf16.vlgmr.msra.gmra.mxu0 %vm616_vm4, %v13484_v60  ;;  %v13505_v58 = vld [vmem:[#allocation10 + $0x8] sm:$0xff]   ;;  %v13506_v59 = vld [vmem:[#allocation10 + $0x38] sm:$0xff]  }
 0x14d   :  { %v13012_v1 = vpop.f32.mrf.mxu0  ;;  %13106 = vmatpush3.bf16.msra.mxu0 %v13486_v55  ;;  %13113 = vmatprep.mubr.msk.bf16.mxu0 %vm14857_vm0, %v14856_v0 }
 0x14e   :  { %v12713_v2 = vpack.c.bf16 %v438_v61, %v438_v61  ;;  %v417_v3 = vmul.f32 0.1, %v345_v62  ;;  %13107 = vmatprep.subr.bf16.mxu0 %v14856_v0 }
 0x14f   :  { %v349_v4 = vpop.f32.mrf.mxu0 }
 0x150   :  { %548 = vst.msk [vmem:[#allocation2 + $0x18] sm:$0xf] %vm148_vm3, %v12713_v2  ;;  %v439_v5 = vmax.f32 %v345_v62, %v417_v3  ;;  %v350_v8 = vadd.f32 %v15016_v29, %v349_v4 }
 0x151   :  { %v13015_v9 = vpop.f32.mrf.mxu0  ;;  %13108 = vmatpush3.bf16.msra.mxu0 %v13488_v63 }
 0x152   :  { %v12714_v10 = vpack.c.bf16 %v439_v5, %v439_v5  ;;  %v418_v11 = vmul.f32 0.1, %v350_v8  ;;  %13109 = vmatprep.subr.bf16.mxu0 %v14856_v0 }
 0x153   :  { %v13489_v12 = vld [vmem:[#allocation2 + $0x10] sm:$0xff]   ;;  %v352_v13 = vpop.f32.mrf.mxu0 }
 0x154   :  { %549 = vst.msk [vmem:[#allocation2 + $0x1c] sm:$0xf] %vm148_vm3, %v12714_v10  ;;  %v440_v14 = vmax.f32 %v350_v8, %v418_v11  ;;  %v353_v15 = vadd.f32 %v15016_v29, %v352_v13  ;;  %13078 = vmatmul.mubr.msk.bf16.vlgmr.msra.gmra.mxu1 %vm616_vm4, %v13489_v12  ;;  %v13499_v48 = vld [vmem:[#allocation2 + $0x10] sm:$0xff]   ;;  %v13511_v13 = vld [vmem:[#allocation10 + $0x28] sm:$0xff]  }
 0x155   :  { %v13016_v18 = vpop.f32.mrf.mxu0  ;;  %13082 = vmatpush3.bf16.msra.mxu1 %v13490_v6  ;;  %13110 = vmatpush3.bf16.msra.mxu0 %v13491_v7  ;;  %v13504_v2 = vld [vmem:[#allocation2 + $0x10] sm:$0xff]   ;;  %v13508_v7 = vld [vmem:[#allocation10 + $0x30] sm:$0xff]  }
 0x156   :  { %v12715_v20 = vpack.c.bf16 %v440_v14, %v440_v14  ;;  %v419_v21 = vmul.f32 0.1, %v353_v15  ;;  %13083 = vmatprep.subr.bf16.mxu1 %v14856_v0  ;;  %13111 = vmatprep.subr.bf16.mxu0 %v14856_v0  ;;  %v13507_v6 = vld [vmem:[#allocation10] sm:$0xff]   ;;  %v13510_v12 = vld [vmem:[#allocation10 + $0x38] sm:$0xff]  }
 0x157   :  { %v357_v22 = vpop.f32.mrf.mxu0  ;;  %13089 = vmatprep.mubr.msk.bf16.mxu1 %vm14857_vm0, %v14856_v0 }
 0x158   :  { %550 = vst.msk [vmem:[#allocation2 + $0x20] sm:$0xf] %vm148_vm3, %v12715_v20  ;;  %v441_v25 = vmax.f32 %v353_v15, %v419_v21  ;;  %v358_v26 = vadd.f32 %v15016_v29, %v357_v22  ;;  %v13509_v20 = vld [vmem:[#allocation2 + $0x8] sm:$0xff]  }
 0x159   :  { %v13019_v27 = vpop.f32.mrf.mxu0  ;;  %13084 = vmatpush3.bf16.msra.mxu1 %v13492_v16  ;;  %13112 = vmatpush3.bf16.msra.mxu0 %v13493_v17 }
 0x15a   :  { %v12716_v28 = vpack.c.bf16 %v441_v25, %v441_v25  ;;  %v420_v30 = vmul.f32 0.1, %v358_v26  ;;  %13085 = vmatprep.subr.bf16.mxu1 %v14856_v0  ;;  %13129 = vmatprep.subr.bf16.mxu0 %v14856_v0  ;;  %v13513_v25 = vld [vmem:[#allocation10 + $0x20] sm:$0xff]  }
 0x15b   :  { %v13495_v31 = vld [vmem:[#allocation2 + $0x18] sm:$0xff]   ;;  %v360_v32 = vpop.f32.mrf.mxu0 }
 0x15c   :  { %551 = vst.msk [vmem:[#allocation2 + $0x24] sm:$0xf] %vm148_vm3, %v12716_v28  ;;  %v442_v33 = vmax.f32 %v358_v26, %v420_v30  ;;  %v361_v34 = vadd.f32 %v15016_v29, %v360_v32  ;;  %13114 = vmatmul.mubr.msk.bf16.vlgmr.msra.gmra.mxu0 %vm616_vm4, %v13495_v31  ;;  %v13515_v32 = vld [vmem:[#allocation10 + $0x28] sm:$0xff]  }
 0x15d   :  { %v13020_v37 = vpop.f32.mrf.mxu0  ;;  %13086 = vmatpush3.bf16.msra.mxu1 %v13494_v23  ;;  %13130 = vmatpush3.bf16.msra.mxu0 %v13496_v24  ;;  %v13512_v24 = vld [vmem:[#allocation10 + $0x30] sm:$0xff]  }
 0x15e   :  { %v12717_v38 = vpack.c.bf16 %v442_v33, %v442_v33  ;;  %v421_v39 = vmul.f32 0.1, %v361_v34  ;;  %13087 = vmatprep.subr.bf16.mxu1 %v14856_v0  ;;  %13131 = vmatprep.subr.bf16.mxu0 %v14856_v0  ;;  %v13516_v33 = vld [vmem:[#allocation10 + $0x58] sm:$0xff]  }
 0x15f   :  { %v365_v40 = vpop.f32.mrf.mxu0  ;;  %13137 = vmatprep.mubr.msk.bf16.mxu0 %vm14857_vm0, %v14856_v0 }
 0x160   :  { %552 = vst.msk [vmem:[#allocation2 + $0x28] sm:$0xf] %vm148_vm3, %v12717_v38  ;;  %v443_v43 = vmax.f32 %v361_v34, %v421_v39  ;;  %v366_v44 = vadd.f32 %v15016_v29, %v365_v40  ;;  %v13517_v40 = vld [vmem:[#allocation10 + $0x20] sm:$0xff]  }
 0x161   :  { %v13023_v45 = vpop.f32.mrf.mxu0  ;;  %13088 = vmatpush3.bf16.msra.mxu1 %v13497_v35  ;;  %13132 = vmatpush3.bf16.msra.mxu0 %v13498_v36 }
 0x162   :  { %v12718_v46 = vpack.c.bf16 %v443_v43, %v443_v43  ;;  %v422_v47 = vmul.f32 0.1, %v366_v44  ;;  %13093 = vmatprep.subr.bf16.mxu1 %v14856_v0  ;;  %13133 = vmatprep.subr.bf16.mxu0 %v14856_v0  ;;  %v13518_v43 = vld [vmem:[#allocation10 + $0x50] sm:$0xff]  }
 0x163   :  { %v368_v49 = vpop.f32.mrf.mxu0  ;;  %v13514_v31 = vld [vmem:[#allocation2 + $0x20] sm:$0xff]  }
 0x164   :  { %553 = vst.msk [vmem:[#allocation2 + $0x2c] sm:$0xf] %vm148_vm3, %v12718_v46  ;;  %v444_v50 = vmax.f32 %v366_v44, %v422_v47  ;;  %v369_v51 = vadd.f32 %v15016_v29, %v368_v49  ;;  %13090 = vmatmul.mubr.msk.bf16.vlgmr.msra.gmra.mxu1 %vm616_vm4, %v13499_v48  ;;  %v15095_v48 = vpop.f32.mrf.mxu1  ;;  %v13520_v49 = vld [vmem:[#allocation10 + $0x58] sm:$0xff]  }
 0x165   :  { %v13024_v54 = vpop.f32.mrf.mxu0  ;;  %13094 = vmatpush3.bf16.msra.mxu1 %v13500_v41  ;;  %13134 = vmatpush3.bf16.msra.mxu0 %v13501_v42 }
 0x166   :  { %v12719_v55 = vpack.c.bf16 %v444_v50, %v444_v50  ;;  %v423_v56 = vmul.f32 0.1, %v369_v51  ;;  %13095 = vmatprep.subr.bf16.mxu1 %v14856_v0  ;;  %13135 = vmatprep.subr.bf16.mxu0 %v14856_v0  ;;  %v13521_v50 = vld [vmem:[#allocation10 + $0x48] sm:$0xff]   ;;  %v13067_v54 = vpop.f32.mrf.mxu1 }
 0x167   :  { %v373_v57 = vpop.f32.mrf.mxu0  ;;  %13101 = vmatprep.mubr.msk.bf16.mxu1 %vm14857_vm0, %v14856_v0  ;;  %v13557_v54 = vld [vmem:[#allocation10 + $0x40] sm:$0xff]  }
 0x168   :  { %554 = vst.msk [vmem:[#allocation2 + $0x30] sm:$0xf] %vm148_vm3, %v12719_v55  ;;  %v445_v60 = vmax.f32 %v369_v51, %v423_v56  ;;  %v374_v61 = vadd.f32 %v15016_v29, %v373_v57  ;;  %v13519_v57 = vld [vmem:[#allocation2 + $0x18] sm:$0xff]  }
 0x169   :  { %v13027_v62 = vpop.f32.mrf.mxu0  ;;  %13096 = vmatpush3.bf16.msra.mxu1 %v13502_v52  ;;  %13136 = vmatpush3.bf16.msra.mxu0 %v13503_v53 }
 0x16a   :  { %v12720_v63 = vpack.c.bf16 %v445_v60, %v445_v60  ;;  %v424_v1 = vmul.f32 0.1, %v374_v61  ;;  %13097 = vmatprep.subr.bf16.mxu1 %v14856_v0  ;;  %13153 = vmatprep.subr.bf16.mxu0 %v14856_v0  ;;  %v13522_v62 = vld [vmem:[#allocation10 + $0x50] sm:$0xff]  }
 0x16b   :  { %v376_v3 = vpop.f32.mrf.mxu0 }
 0x16c   :  { %555 = vst.msk [vmem:[#allocation2 + $0x34] sm:$0xf] %vm148_vm3, %v12720_v63  ;;  %v446_v4 = vmax.f32 %v374_v61, %v424_v1  ;;  %v377_v5 = vadd.f32 %v15016_v29, %v376_v3  ;;  %13138 = vmatmul.mubr.msk.bf16.vlgmr.msra.gmra.mxu0 %vm616_vm4, %v13504_v2  ;;  %v13523_v63 = vld [vmem:[#allocation10 + $0x40] sm:$0xff]  }
 0x16d   :  { %v13028_v8 = vpop.f32.mrf.mxu0  ;;  %13098 = vmatpush3.bf16.msra.mxu1 %v13505_v58  ;;  %13154 = vmatpush3.bf16.msra.mxu0 %v13506_v59  ;;  %v15103_v59 = vpop.f32.mrf.mxu1 }
 0x16e   :  { %v12721_v9 = vpack.c.bf16 %v446_v4, %v446_v4  ;;  %v425_v10 = vmul.f32 0.1, %v377_v5  ;;  %13099 = vmatprep.subr.bf16.mxu1 %v14856_v0  ;;  %13155 = vmatprep.subr.bf16.mxu0 %v14856_v0  ;;  %v13526_v8 = vld [vmem:[#allocation10 + $0x18] sm:$0xff]  }
 0x16f   :  { %v381_v11 = vpop.f32.mrf.mxu0  ;;  %13161 = vmatprep.mubr.msk.bf16.mxu0 %vm14857_vm0, %v14856_v0  ;;  %v13068_v2 = vpop.f32.mrf.mxu1 }
 0x170   :  { %556 = vst.msk [vmem:[#allocation2 + $0x38] sm:$0xf] %vm148_vm3, %v12721_v9  ;;  %v447_v14 = vmax.f32 %v377_v5, %v425_v10  ;;  %v382_v15 = vadd.f32 %v15016_v29, %v381_v11  ;;  %v13567_v2 = vld [vmem:[#allocation10] sm:$0xff]  }
 0x171   :  { %v13031_v16 = vpop.f32.mrf.mxu0  ;;  %13100 = vmatpush3.bf16.msra.mxu1 %v13507_v6  ;;  %13156 = vmatpush3.bf16.msra.mxu0 %v13508_v7  ;;  %v13524_v6 = vld [vmem:[#allocation2 + $0x28] sm:$0xff]   ;;  %v13525_v7 = vld [vmem:[#allocation10 + $0x48] sm:$0xff]  }
 0x172   :  { %v12722_v17 = vpack.c.bf16 %v447_v14, %v447_v14  ;;  %v426_v18 = vmul.f32 0.1, %v382_v15  ;;  %13117 = vmatprep.subr.bf16.mxu1 %v14856_v0  ;;  %13157 = vmatprep.subr.bf16.mxu0 %v14856_v0 }
 0x173   :  { %v384_v21 = vpop.f32.mrf.mxu0 }
 0x174   :  { %557 = vst.msk [vmem:[#allocation2 + $0x3c] sm:$0xf] %vm148_vm3, %v12722_v17  ;;  %v448_v22 = vmax.f32 %v382_v15, %v426_v18  ;;  %v385_v23 = vadd.f32 %v15016_v29, %v384_v21  ;;  %13102 = vmatmul.mubr.msk.bf16.vlgmr.msra.gmra.mxu1 %vm616_vm4, %v13509_v20  ;;  %v13527_v15 = vld [vmem:[#allocation10 + $0x40] sm:$0xff]   ;;  %v13528_v18 = vld [vmem:[#allocation10 + $0x10] sm:$0xff]  }
 0x175   :  { %v13032_v26 = vpop.f32.mrf.mxu0  ;;  %13118 = vmatpush3.bf16.msra.mxu1 %v13510_v12  ;;  %13158 = vmatpush3.bf16.msra.mxu0 %v13511_v13 }
 0x176   :  { %v12723_v27 = vpack.c.bf16 %v448_v22, %v448_v22  ;;  %v427_v28 = vmul.f32 0.1, %v385_v23  ;;  %13119 = vmatprep.subr.bf16.mxu1 %v14856_v0  ;;  %13159 = vmatprep.subr.bf16.mxu0 %v14856_v0  ;;  %v13529_v26 = vld [vmem:[#allocation2 + $0x20] sm:$0xff]  }
 0x177   :  { %v389_v30 = vpop.f32.mrf.mxu0  ;;  %13125 = vmatprep.mubr.msk.bf16.mxu1 %vm14857_vm0, %v14856_v0 }
 0x178   :  { %558 = vst.msk [vmem:[#allocation2 + $0x40] sm:$0xf] %vm148_vm3, %v12723_v27  ;;  %v449_v34 = vmax.f32 %v385_v23, %v427_v28  ;;  %v390_v35 = vadd.f32 %v15016_v29, %v389_v30  ;;  %v13530_v23 = vld [vmem:[#allocation10 + $0x18] sm:$0xff]   ;;  %v13532_v27 = vld [vmem:[#allocation10 + $0x10] sm:$0xff]   ;;  %v13533_v28 = vld [vmem:[#allocation10] sm:$0xff]  }
 0x179   :  { %v13035_v36 = vpop.f32.mrf.mxu0  ;;  %13120 = vmatpush3.bf16.msra.mxu1 %v13512_v24  ;;  %13160 = vmatpush3.bf16.msra.mxu0 %v13513_v25  ;;  %v13531_v24 = vld [vmem:[#allocation10 + $0x8] sm:$0xff]  }
 0x17a   :  { %v12724_v37 = vpack.c.bf16 %v449_v34, %v449_v34  ;;  %v428_v38 = vmul.f32 0.1, %v390_v35  ;;  %13121 = vmatprep.subr.bf16.mxu1 %v14856_v0  ;;  %13177 = vmatprep.subr.bf16.mxu0 %v14856_v0  ;;  %v13535_v30 = vld [vmem:[#allocation10 + $0x8] sm:$0xff]   ;;  %v13538_v34 = vld [vmem:[#allocation10 + $0x30] sm:$0xff]  }
 0x17b   :  { %v392_v39 = vpop.f32.mrf.mxu0  ;;  %v13541_v36 = vld [vmem:[#allocation10 + $0x28] sm:$0xff]  }
 0x17c   :  { %559 = vst.msk [vmem:[#allocation2 + $0x44] sm:$0xf] %vm148_vm3, %v12724_v37  ;;  %v450_v41 = vmax.f32 %v390_v35, %v428_v38  ;;  %v393_v42 = vadd.f32 %v15016_v29, %v392_v39  ;;  %13162 = vmatmul.mubr.msk.bf16.vlgmr.msra.gmra.mxu0 %vm616_vm4, %v13514_v31  ;;  %v13536_v31 = vld [vmem:[#allocation10 + $0x38] sm:$0xff]   ;;  %v13539_v37 = vld [vmem:[#allocation2 + $0x18] sm:$0xff]   ;;  %v13542_v38 = vld [vmem:[#allocation10 + $0x30] sm:$0xff]  }
 0x17d   :  { %v13036_v44 = vpop.f32.mrf.mxu0  ;;  %13122 = vmatpush3.bf16.msra.mxu1 %v13515_v32  ;;  %13178 = vmatpush3.bf16.msra.mxu0 %v13516_v33  ;;  %v13534_v32 = vld [vmem:[#allocation2 + $0x20] sm:$0xff]   ;;  %v13537_v33 = vld [vmem:[#allocation10] sm:$0xff]   ;;  %v13540_v35 = vld [vmem:[#allocation10 + $0x38] sm:$0xff]  }
 0x17e   :  { %v12725_v45 = vpack.c.bf16 %v450_v41, %v450_v41  ;;  %v429_v46 = vmul.f32 0.1, %v393_v42  ;;  %13123 = vmatprep.subr.bf16.mxu1 %v14856_v0  ;;  %13179 = vmatprep.subr.bf16.mxu0 %v14856_v0  ;;  %v13543_v39 = vld [vmem:[#allocation10 + $0x20] sm:$0xff]   ;;  %v13545_v41 = vld [vmem:[#allocation10 + $0x28] sm:$0xff]   ;;  %v13548_v44 = vld [vmem:[#allocation10 + $0x50] sm:$0xff]  }
 0x17f   :  { %v397_v47 = vpop.f32.mrf.mxu0  ;;  %13185 = vmatprep.mubr.msk.bf16.mxu0 %vm14857_vm0, %v14856_v0 }
 0x180   :  { %560 = vst.msk [vmem:[#allocation2 + $0x48] sm:$0xf] %vm148_vm3, %v12725_v45  ;;  %v451_v51 = vmax.f32 %v393_v42, %v429_v46  ;;  %v398_v52 = vadd.f32 %v15016_v29, %v397_v47  ;;  %v13546_v42 = vld [vmem:[#allocation10 + $0x58] sm:$0xff]   ;;  %v13551_v46 = vld [vmem:[#allocation10 + $0x48] sm:$0xff]  }
 0x181   :  { %v13039_v53 = vpop.f32.mrf.mxu0  ;;  %13124 = vmatpush3.bf16.msra.mxu1 %v13517_v40  ;;  %13180 = vmatpush3.bf16.msra.mxu0 %v13518_v43  ;;  %v13544_v40 = vld [vmem:[#allocation2 + $0x30] sm:$0xff]   ;;  %v13549_v47 = vld [vmem:[#allocation2 + $0x28] sm:$0xff]  }
 0x182   :  { %v12726_v55 = vpack.c.bf16 %v451_v51, %v451_v51  ;;  %v430_v56 = vmul.f32 0.1, %v398_v52  ;;  %13141 = vmatprep.subr.bf16.mxu1 %v14856_v0  ;;  %13181 = vmatprep.subr.bf16.mxu0 %v14856_v0  ;;  %v13547_v43 = vld [vmem:[#allocation10 + $0x20] sm:$0xff]   ;;  %v13550_v45 = vld [vmem:[#allocation10 + $0x58] sm:$0xff]  }
 0x183   :  { %v400_v58 = vpop.f32.mrf.mxu0  ;;  %v13554_v51 = vld [vmem:[#allocation2 + $0x38] sm:$0xff]   ;;  %v13556_v53 = vld [vmem:[#allocation10 + $0x18] sm:$0xff]  }
 0x184   :  { %561 = vst.msk [vmem:[#allocation2 + $0x4c] sm:$0xf] %vm148_vm3, %v12726_v55  ;;  %v452_v60 = vmax.f32 %v398_v52, %v430_v56  ;;  %v401_v61 = vadd.f32 %v15016_v29, %v400_v58  ;;  %13126 = vmatmul.mubr.msk.bf16.vlgmr.msra.gmra.mxu1 %vm616_vm4, %v13519_v57  ;;  %v13555_v52 = vld [vmem:[#allocation10 + $0x48] sm:$0xff]   ;;  %v13558_v55 = vld [vmem:[#allocation10 + $0x10] sm:$0xff]   ;;  %v13560_v56 = vld [vmem:[#allocation10 + $0x18] sm:$0xff]  }
 0x185   :  { %v13040_v1 = vpop.f32.mrf.mxu0  ;;  %13142 = vmatpush3.bf16.msra.mxu1 %v13520_v49  ;;  %13182 = vmatpush3.bf16.msra.mxu0 %v13521_v50  ;;  %v13552_v49 = vld [vmem:[#allocation10 + $0x50] sm:$0xff]   ;;  %v13553_v50 = vld [vmem:[#allocation10 + $0x40] sm:$0xff]   ;;  %v13561_v57 = vld [vmem:[#allocation10 + $0x8] sm:$0xff]  }
 0x186   :  { %v12727_v3 = vpack.c.bf16 %v452_v60, %v452_v60  ;;  %v431_v4 = vmul.f32 0.1, %v401_v61  ;;  %13143 = vmatprep.subr.bf16.mxu1 %v14856_v0  ;;  %13183 = vmatprep.subr.bf16.mxu0 %v14856_v0  ;;  %v13559_v58 = vld [vmem:[#allocation2 + $0x30] sm:$0xff]   ;;  %v13562_v60 = vld [vmem:[#allocation10 + $0x10] sm:$0xff]  }
 0x187   :  { %v405_v5 = vpop.f32.mrf.mxu0  ;;  %13149 = vmatprep.mubr.msk.bf16.mxu1 %vm14857_vm0, %v14856_v0  ;;  %v13564_v1 = vld [vmem:[#allocation2 + $0x30] sm:$0xff]  }
 0x188   :  { %562 = vst.msk [vmem:[#allocation2 + $0x50] sm:$0xf] %vm148_vm3, %v12727_v3  ;;  %v453_v9 = vmax.f32 %v401_v61, %v431_v4  ;;  %v406_v10 = vadd.f32 %v15016_v29, %v405_v5  ;;  %v13563_v61 = vld [vmem:[#allocation10] sm:$0xff]   ;;  %v13568_v3 = vld [vmem:[#allocation10 + $0x30] sm:$0xff]   ;;  %v13570_v4 = vld [vmem:[#allocation10 + $0x38] sm:$0xff]  }
 0x189   :  { %v13043_v11 = vpop.f32.mrf.mxu0  ;;  %13144 = vmatpush3.bf16.msra.mxu1 %v13522_v62  ;;  %13184 = vmatpush3.bf16.msra.mxu0 %v13523_v63  ;;  %v13565_v62 = vld [vmem:[#allocation10 + $0x8] sm:$0xff]   ;;  %v13566_v63 = vld [vmem:[#allocation10 + $0x38] sm:$0xff]  }
 0x18a   :  { %v12728_v12 = vpack.c.bf16 %v453_v9, %v453_v9  ;;  %v432_v13 = vmul.f32 0.1, %v406_v10  ;;  %13145 = vmatprep.subr.bf16.mxu1 %v14856_v0  ;;  %13201 = vmatprep.subr.bf16.mxu0 %v14856_v0  ;;  %v13571_v5 = vld [vmem:[#allocation10 + $0x28] sm:$0xff]   ;;  %v13576_v11 = vld [vmem:[#allocation10 + $0x58] sm:$0xff]  }
 0x18b   :  { %v408_v14 = vpop.f32.mrf.mxu0  ;;  %v13574_v9 = vld [vmem:[#allocation2 + $0x40] sm:$0xff]  }
 0x18c   :  { %563 = vst.msk [vmem:[#allocation2 + $0x54] sm:$0xf] %vm148_vm3, %v12728_v12  ;;  %v454_v16 = vmax.f32 %v406_v10, %v432_v13  ;;  %v409_v17 = vadd.f32 %v15016_v29, %v408_v14  ;;  %13186 = vmatmul.mubr.msk.bf16.vlgmr.msra.gmra.mxu0 %vm616_vm4, %v13524_v6  ;;  %v13569_v6 = vld [vmem:[#allocation2 + $0x28] sm:$0xff]   ;;  %v13575_v10 = vld [vmem:[#allocation10 + $0x28] sm:$0xff]   ;;  %v13577_v12 = vld [vmem:[#allocation10 + $0x20] sm:$0xff]  }
 0x18d   :  { %v13044_v20 = vpop.f32.mrf.mxu0  ;;  %13146 = vmatpush3.bf16.msra.mxu1 %v13525_v7  ;;  %13202 = vmatpush3.bf16.msra.mxu0 %v13526_v8  ;;  %v13572_v7 = vld [vmem:[#allocation10 + $0x30] sm:$0xff]   ;;  %v13573_v8 = vld [vmem:[#allocation10 + $0x20] sm:$0xff]   ;;  %v13580_v14 = vld [vmem:[#allocation10 + $0x58] sm:$0xff]  }
 0x18e   :  { %v12729_v21 = vpack.c.bf16 %v454_v16, %v454_v16  ;;  %v433_v22 = vmul.f32 0.1, %v409_v17  ;;  %13147 = vmatprep.subr.bf16.mxu1 %v14856_v0  ;;  %13203 = vmatprep.subr.bf16.mxu0 %v14856_v0  ;;  %v13578_v13 = vld [vmem:[#allocation10 + $0x50] sm:$0xff]   ;;  %v13579_v16 = vld [vmem:[#allocation2 + $0x38] sm:$0xff]  }
 0x18f   :  { %13209 = vmatprep.mubr.msk.bf16.mxu0 %vm14857_vm0, %v14856_v0  ;;  %v13584_v20 = vld [vmem:[#allocation2 + $0x48] sm:$0xff]  }
 0x190   :  { %564 = vst.msk [vmem:[#allocation2 + $0x58] sm:$0xf] %vm148_vm3, %v12729_v21  ;;  %v455_v29 = vmax.f32 %v409_v17, %v433_v22  ;;  %v13582_v17 = vld [vmem:[#allocation10 + $0x50] sm:$0xff]   ;;  %v13585_v21 = vld [vmem:[#allocation10 + $0x48] sm:$0xff]   ;;  %v13586_v22 = vld [vmem:[#allocation10 + $0x18] sm:$0xff]  }
 0x191   :  { %13148 = vmatpush3.bf16.msra.mxu1 %v13527_v15  ;;  %13204 = vmatpush3.bf16.msra.mxu0 %v13528_v18  ;;  %v13581_v15 = vld [vmem:[#allocation10 + $0x48] sm:$0xff]   ;;  %v13583_v18 = vld [vmem:[#allocation10 + $0x40] sm:$0xff]  }
 0x192   :  { %v12730_v25 = vpack.c.bf16 %v455_v29, %v455_v29  ;;  %13165 = vmatprep.subr.bf16.mxu1 %v14856_v0  ;;  %13205 = vmatprep.subr.bf16.mxu0 %v14856_v0  ;;  %v13590_v29 = vld [vmem:[#allocation10 + $0x18] sm:$0xff]  }
 0x194   :  { %565 = vst.msk [vmem:[#allocation2 + $0x5c] sm:$0xf] %vm148_vm3, %v12730_v25  ;;  %13150 = vmatmul.mubr.msk.bf16.vlgmr.msra.gmra.mxu1 %vm616_vm4, %v13529_v26  ;;  %v13591_v25 = vld [vmem:[#allocation10 + $0x8] sm:$0xff]  }
 0x195   :  { %13166 = vmatpush3.bf16.msra.mxu1 %v13530_v23  ;;  %13206 = vmatpush3.bf16.msra.mxu0 %v13531_v24  ;;  %v13587_v23 = vld [vmem:[#allocation10 + $0x40] sm:$0xff]   ;;  %v13588_v24 = vld [vmem:[#allocation10 + $0x10] sm:$0xff]  }
 0x196   :  { %13167 = vmatprep.subr.bf16.mxu1 %v14856_v0  ;;  %13207 = vmatprep.subr.bf16.mxu0 %v14856_v0  ;;  %v13589_v26 = vld [vmem:[#allocation2 + $0x40] sm:$0xff]  }
 0x197   :  { %13173 = vmatprep.mubr.msk.bf16.mxu1 %vm14857_vm0, %v14856_v0 }
 0x199   :  { %13168 = vmatpush3.bf16.msra.mxu1 %v13532_v27  ;;  %13208 = vmatpush3.bf16.msra.mxu0 %v13533_v28  ;;  %v13592_v27 = vld [vmem:[#allocation10 + $0x10] sm:$0xff]   ;;  %v13593_v28 = vld [vmem:[#allocation10] sm:$0xff]  }
 0x19a   :  { %13169 = vmatprep.subr.bf16.mxu1 %v14856_v0  ;;  %13225 = vmatprep.subr.bf16.mxu0 %v14856_v0 }
 0x19c   :  { %13210 = vmatmul.mubr.msk.bf16.vlgmr.msra.gmra.mxu0 %vm616_vm4, %v13534_v32  ;;  %v13594_v32 = vld [vmem:[#allocation2 + $0x40] sm:$0xff]  }
 0x19d   :  { %13170 = vmatpush3.bf16.msra.mxu1 %v13535_v30  ;;  %13226 = vmatpush3.bf16.msra.mxu0 %v13536_v31  ;;  %v13595_v30 = vld [vmem:[#allocation10 + $0x8] sm:$0xff]   ;;  %v13596_v31 = vld [vmem:[#allocation10 + $0x38] sm:$0xff]  }
 0x19e   :  { %13171 = vmatprep.subr.bf16.mxu1 %v14856_v0  ;;  %13227 = vmatprep.subr.bf16.mxu0 %v14856_v0 }
 0x19f   :  { %13233 = vmatprep.mubr.msk.bf16.mxu0 %vm14857_vm0, %v14856_v0 }
 0x1a1   :  { %13172 = vmatpush3.bf16.msra.mxu1 %v13537_v33  ;;  %13228 = vmatpush3.bf16.msra.mxu0 %v13538_v34  ;;  %v13597_v33 = vld [vmem:[#allocation10] sm:$0xff]   ;;  %v13598_v34 = vld [vmem:[#allocation10 + $0x30] sm:$0xff]  }
 0x1a2   :  { %13189 = vmatprep.subr.bf16.mxu1 %v14856_v0  ;;  %13229 = vmatprep.subr.bf16.mxu0 %v14856_v0 }
 0x1a4   :  { %13174 = vmatmul.mubr.msk.bf16.vlgmr.msra.gmra.mxu1 %vm616_vm4, %v13539_v37  ;;  %v13599_v37 = vld [vmem:[#allocation2 + $0x38] sm:$0xff]  }
 0x1a5   :  { %13190 = vmatpush3.bf16.msra.mxu1 %v13540_v35  ;;  %13230 = vmatpush3.bf16.msra.mxu0 %v13541_v36  ;;  %v13600_v35 = vld [vmem:[#allocation10 + $0x38] sm:$0xff]   ;;  %v13601_v36 = vld [vmem:[#allocation10 + $0x28] sm:$0xff]  }
 0x1a6   :  { %13191 = vmatprep.subr.bf16.mxu1 %v14856_v0  ;;  %13231 = vmatprep.subr.bf16.mxu0 %v14856_v0 }
 0x1a7   :  { %13197 = vmatprep.mubr.msk.bf16.mxu1 %vm14857_vm0, %v14856_v0 }
 0x1a9   :  { %13192 = vmatpush3.bf16.msra.mxu1 %v13542_v38  ;;  %13232 = vmatpush3.bf16.msra.mxu0 %v13543_v39  ;;  %v13602_v38 = vld [vmem:[#allocation10 + $0x30] sm:$0xff]   ;;  %v13603_v39 = vld [vmem:[#allocation10 + $0x20] sm:$0xff]  }
 0x1aa   :  { %13193 = vmatprep.subr.bf16.mxu1 %v14856_v0  ;;  %13249 = vmatprep.subr.bf16.mxu0 %v14856_v0 }
 0x1ac   :  { %13234 = vmatmul.mubr.msk.bf16.vlgmr.msra.gmra.mxu0 %vm616_vm4, %v13544_v40  ;;  %v13604_v40 = vld [vmem:[#allocation2 + $0x50] sm:$0xff]  }
 0x1ad   :  { %13194 = vmatpush3.bf16.msra.mxu1 %v13545_v41  ;;  %13250 = vmatpush3.bf16.msra.mxu0 %v13546_v42  ;;  %v13605_v41 = vld [vmem:[#allocation10 + $0x28] sm:$0xff]   ;;  %v13606_v42 = vld [vmem:[#allocation10 + $0x58] sm:$0xff]  }
 0x1ae   :  { %13195 = vmatprep.subr.bf16.mxu1 %v14856_v0  ;;  %13251 = vmatprep.subr.bf16.mxu0 %v14856_v0 }
 0x1af   :  { %13257 = vmatprep.mubr.msk.bf16.mxu0 %vm14857_vm0, %v14856_v0 }
 0x1b1   :  { %13196 = vmatpush3.bf16.msra.mxu1 %v13547_v43  ;;  %13252 = vmatpush3.bf16.msra.mxu0 %v13548_v44  ;;  %v13607_v44 = vld [vmem:[#allocation10 + $0x20] sm:$0xff]  }
 0x1b2   :  { %13213 = vmatprep.subr.bf16.mxu1 %v14856_v0  ;;  %13253 = vmatprep.subr.bf16.mxu0 %v14856_v0 }
 0x1b4   :  { %13198 = vmatmul.mubr.msk.bf16.vlgmr.msra.gmra.mxu1 %vm616_vm4, %v13549_v47 }
 0x1b5   :  { %13214 = vmatpush3.bf16.msra.mxu1 %v13550_v45  ;;  %13254 = vmatpush3.bf16.msra.mxu0 %v13551_v46  ;;  %v13608_v45 = vld [vmem:[#allocation10 + $0x50] sm:$0xff]  }
 0x1b6   :  { %13215 = vmatprep.subr.bf16.mxu1 %v14856_v0  ;;  %13255 = vmatprep.subr.bf16.mxu0 %v14856_v0 }
 0x1b7   :  { %13221 = vmatprep.mubr.msk.bf16.mxu1 %vm14857_vm0, %v14856_v0 }
 0x1b9   :  { %13216 = vmatpush3.bf16.msra.mxu1 %v13552_v49  ;;  %13256 = vmatpush3.bf16.msra.mxu0 %v13553_v50  ;;  %v13610_v49 = vld [vmem:[#allocation10 + $0x58] sm:$0xff]   ;;  %v13611_v50 = vld [vmem:[#allocation10 + $0x48] sm:$0xff]  }
 0x1ba   :  { %13217 = vmatprep.subr.bf16.mxu1 %v14856_v0  ;;  %13273 = vmatprep.subr.bf16.mxu0 %v14856_v0 }
 0x1bc   :  { %13258 = vmatmul.mubr.msk.bf16.vlgmr.msra.gmra.mxu0 %vm616_vm4, %v13554_v51 }
 0x1bd   :  { %13218 = vmatpush3.bf16.msra.mxu1 %v13555_v52  ;;  %13274 = vmatpush3.bf16.msra.mxu0 %v13556_v53  ;;  %v13609_v52 = vld [vmem:[#allocation2 + $0x48] sm:$0xff]  }
 0x1be   :  { %13219 = vmatprep.subr.bf16.mxu1 %v14856_v0  ;;  %13275 = vmatprep.subr.bf16.mxu0 %v14856_v0 }
 0x1bf   :  { %13281 = vmatprep.mubr.msk.bf16.mxu0 %vm14857_vm0, %v14856_v0 }
 0x1c1   :  { %13220 = vmatpush3.bf16.msra.mxu1 %v13557_v54  ;;  %13276 = vmatpush3.bf16.msra.mxu0 %v13558_v55  ;;  %v15241_v55 = vld [vmem:[#allocation12] ss:$0 sm:$0xff] }
 0x1c2   :  { %13237 = vmatprep.subr.bf16.mxu1 %v14856_v0  ;;  %13277 = vmatprep.subr.bf16.mxu0 %v14856_v0 }
 0x1c4   :  { %13222 = vmatmul.mubr.msk.bf16.vlgmr.msra.gmra.mxu1 %vm616_vm4, %v13559_v58  ;;  %v13613_v58 = vld [vmem:[#allocation10 + $0x40] sm:$0xff]  }
 0x1c5   :  { %13238 = vmatpush3.bf16.msra.mxu1 %v13560_v56  ;;  %13278 = vmatpush3.bf16.msra.mxu0 %v13561_v57  ;;  %v13612_v57 = vld [vmem:[#allocation10 + $0x50] sm:$0xff]  }
 0x1c6   :  { %13239 = vmatprep.subr.bf16.mxu1 %v14856_v0  ;;  %13279 = vmatprep.subr.bf16.mxu0 %v14856_v0 }
 0x1c7   :  { %13245 = vmatprep.mubr.msk.bf16.mxu1 %vm14857_vm0, %v14856_v0 }
 0x1c9   :  { %13240 = vmatpush3.bf16.msra.mxu1 %v13562_v60  ;;  %13280 = vmatpush3.bf16.msra.mxu0 %v13563_v61 }
 0x1ca   :  { %13241 = vmatprep.subr.bf16.mxu1 %v14856_v0  ;;  %13297 = vmatprep.subr.bf16.mxu0 %v14856_v0 }
 0x1cc   :  { %13282 = vmatmul.mubr.msk.bf16.vlgmr.msra.gmra.mxu0 %vm616_vm4, %v13564_v1 }
 0x1cd   :  { %13242 = vmatpush3.bf16.msra.mxu1 %v13565_v62  ;;  %13298 = vmatpush3.bf16.msra.mxu0 %v13566_v63  ;;  %v13614_v63 = vld [vmem:[#allocation2 + $0x58] sm:$0xff]  }
 0x1ce   :  { %13243 = vmatprep.subr.bf16.mxu1 %v14856_v0  ;;  %13299 = vmatprep.subr.bf16.mxu0 %v14856_v0 }
 0x1cf   :  { %13305 = vmatprep.mubr.msk.bf16.mxu0 %vm14857_vm0, %v14856_v0 }
 0x1d1   :  { %13244 = vmatpush3.bf16.msra.mxu1 %v13567_v2  ;;  %13300 = vmatpush3.bf16.msra.mxu0 %v13568_v3  ;;  %v13615_v2 = vld [vmem:[#allocation10 + $0x48] sm:$0xff]   ;;  %v13616_v3 = vld [vmem:[#allocation10 + $0x18] sm:$0xff]  }
 0x1d2   :  { %13261 = vmatprep.subr.bf16.mxu1 %v14856_v0  ;;  %13301 = vmatprep.subr.bf16.mxu0 %v14856_v0 }
 0x1d4   :  { %13246 = vmatmul.mubr.msk.bf16.vlgmr.msra.gmra.mxu1 %vm616_vm4, %v13569_v6 }
 0x1d5   :  { %13262 = vmatpush3.bf16.msra.mxu1 %v13570_v4  ;;  %13302 = vmatpush3.bf16.msra.mxu0 %v13571_v5 }
 0x1d6   :  { %13263 = vmatprep.subr.bf16.mxu1 %v14856_v0  ;;  %13303 = vmatprep.subr.bf16.mxu0 %v14856_v0 }
 0x1d7   :  { %13269 = vmatprep.mubr.msk.bf16.mxu1 %vm14857_vm0, %v14856_v0 }
 0x1d9   :  { %13264 = vmatpush3.bf16.msra.mxu1 %v13572_v7  ;;  %13304 = vmatpush3.bf16.msra.mxu0 %v13573_v8  ;;  %v13617_v8 = vld [vmem:[#allocation10 + $0x40] sm:$0xff]  }
 0x1da   :  { %13265 = vmatprep.subr.bf16.mxu1 %v14856_v0  ;;  %13321 = vmatprep.subr.bf16.mxu0 %v14856_v0 }
 0x1dc   :  { %13306 = vmatmul.mubr.msk.bf16.vlgmr.msra.gmra.mxu0 %vm616_vm4, %v13574_v9  ;;  %v13618_v9 = vld [vmem:[#allocation10 + $0x10] sm:$0xff]  }
 0x1dd   :  { %13266 = vmatpush3.bf16.msra.mxu1 %v13575_v10  ;;  %13322 = vmatpush3.bf16.msra.mxu0 %v13576_v11 }
 0x1de   :  { %13267 = vmatprep.subr.bf16.mxu1 %v14856_v0  ;;  %13323 = vmatprep.subr.bf16.mxu0 %v14856_v0 }
 0x1df   :  { %13329 = vmatprep.mubr.msk.bf16.mxu0 %vm14857_vm0, %v14856_v0 }
 0x1e1   :  { %13268 = vmatpush3.bf16.msra.mxu1 %v13577_v12  ;;  %13324 = vmatpush3.bf16.msra.mxu0 %v13578_v13 }
 0x1e2   :  { %13285 = vmatprep.subr.bf16.mxu1 %v14856_v0  ;;  %13325 = vmatprep.subr.bf16.mxu0 %v14856_v0 }
 0x1e4   :  { %13270 = vmatmul.mubr.msk.bf16.vlgmr.msra.gmra.mxu1 %vm616_vm4, %v13579_v16  ;;  %v13621_v16 = vld [vmem:[#allocation10 + $0x8] sm:$0xff]  }
 0x1e5   :  { %13286 = vmatpush3.bf16.msra.mxu1 %v13580_v14  ;;  %13326 = vmatpush3.bf16.msra.mxu0 %v13581_v15  ;;  %v13620_v15 = vld [vmem:[#allocation10 + $0x18] sm:$0xff]  }
 0x1e6   :  { %13287 = vmatprep.subr.bf16.mxu1 %v14856_v0  ;;  %13327 = vmatprep.subr.bf16.mxu0 %v14856_v0 }
 0x1e7   :  { %13293 = vmatprep.mubr.msk.bf16.mxu1 %vm14857_vm0, %v14856_v0 }
 0x1e9   :  { %13288 = vmatpush3.bf16.msra.mxu1 %v13582_v17  ;;  %13328 = vmatpush3.bf16.msra.mxu0 %v13583_v18  ;;  %v13619_v18 = vld [vmem:[#allocation2 + $0x50] sm:$0xff]  }
 0x1ea   :  { %13289 = vmatprep.subr.bf16.mxu1 %v14856_v0  ;;  %13345 = vmatprep.subr.bf16.mxu0 %v14856_v0 }
 0x1ec   :  { %13330 = vmatmul.mubr.msk.bf16.vlgmr.msra.gmra.mxu0 %vm616_vm4, %v13584_v20 }
 0x1ed   :  { %13290 = vmatpush3.bf16.msra.mxu1 %v13585_v21  ;;  %13346 = vmatpush3.bf16.msra.mxu0 %v13586_v22  ;;  %v13622_v21 = vld [vmem:[#allocation10 + $0x10] sm:$0xff]   ;;  %v13623_v22 = vld [vmem:[#allocation10] sm:$0xff]  }
 0x1ee   :  { %13291 = vmatprep.subr.bf16.mxu1 %v14856_v0  ;;  %13347 = vmatprep.subr.bf16.mxu0 %v14856_v0 }
 0x1ef   :  { %13353 = vmatprep.mubr.msk.bf16.mxu0 %vm14857_vm0, %v14856_v0 }
 0x1f1   :  { %13292 = vmatpush3.bf16.msra.mxu1 %v13587_v23  ;;  %13348 = vmatpush3.bf16.msra.mxu0 %v13588_v24  ;;  %v15266_v24 = vld [vmem:[#allocation13 + $0xf4] ss:$8 sps:$4 sm:$0xff]  }
 0x1f2   :  { %13309 = vmatprep.subr.bf16.mxu1 %v14856_v0  ;;  %13349 = vmatprep.subr.bf16.mxu0 %v14856_v0 }
 0x1f4   :  { %13294 = vmatmul.mubr.msk.bf16.vlgmr.msra.gmra.mxu1 %vm616_vm4, %v13589_v26  ;;  %v15270_v26 = vld [vmem:[#allocation13 + $0xf0] ss:$8 sps:$4 sm:$0xff]  }
 0x1f5   :  { %13310 = vmatpush3.bf16.msra.mxu1 %v13590_v29  ;;  %13350 = vmatpush3.bf16.msra.mxu0 %v13591_v25  ;;  %v13624_v25 = vld [vmem:[#allocation2 + $0x50] sm:$0xff]  }
 0x1f6   :  { %13311 = vmatprep.subr.bf16.mxu1 %v14856_v0  ;;  %13351 = vmatprep.subr.bf16.mxu0 %v14856_v0 }
 0x1f7   :  { %13317 = vmatprep.mubr.msk.bf16.mxu1 %vm14857_vm0, %v14856_v0 }
 0x1f9   :  { %13312 = vmatpush3.bf16.msra.mxu1 %v13592_v27  ;;  %13352 = vmatpush3.bf16.msra.mxu0 %v13593_v28  ;;  %v13628_v27 = vld [vmem:[#allocation10 + $0x8] sm:$0xff]  }
 0x1fa   :  { %13313 = vmatprep.subr.bf16.mxu1 %v14856_v0  ;;  %13369 = vmatprep.subr.bf16.mxu0 %v14856_v0 }
 0x1fc   :  { %13354 = vmatmul.mubr.msk.bf16.vlgmr.msra.gmra.mxu0 %vm616_vm4, %v13594_v32  ;;  %v15280_v32 = vld [vmem:[#allocation13 + $0xe0] ss:$8 sps:$4 sm:$0xff]  }
 0x1fd   :  { %13314 = vmatpush3.bf16.msra.mxu1 %v13595_v30  ;;  %13370 = vmatpush3.bf16.msra.mxu0 %v13596_v31  ;;  %v15274_v30 = vld [vmem:[#allocation13 + $0xe4] ss:$8 sps:$4 sm:$0xff]  }
 0x1fe   :  { %13315 = vmatprep.subr.bf16.mxu1 %v14856_v0  ;;  %13371 = vmatprep.subr.bf16.mxu0 %v14856_v0 }
 0x1ff   :  { %13377 = vmatprep.mubr.msk.bf16.mxu0 %vm14857_vm0, %v14856_v0 }
 0x201   :  { %13316 = vmatpush3.bf16.msra.mxu1 %v13597_v33  ;;  %13372 = vmatpush3.bf16.msra.mxu0 %v13598_v34  ;;  %v13632_v33 = vld [vmem:[#allocation10] sm:$0xff]  }
 0x202   :  { %13333 = vmatprep.subr.bf16.mxu1 %v14856_v0  ;;  %13373 = vmatprep.subr.bf16.mxu0 %v14856_v0 }
 0x204   :  { %13318 = vmatmul.mubr.msk.bf16.vlgmr.msra.gmra.mxu1 %vm616_vm4, %v13599_v37  ;;  %v15290_v37 = vld [vmem:[#allocation13 + $0xd0] ss:$8 sps:$4 sm:$0xff]  }
 0x205   :  { %13334 = vmatpush3.bf16.msra.mxu1 %v13600_v35  ;;  %13374 = vmatpush3.bf16.msra.mxu0 %v13601_v36  ;;  %v15284_v35 = vld [vmem:[#allocation13 + $0xd4] ss:$8 sps:$4 sm:$0xff]  }
 0x206   :  { %13335 = vmatprep.subr.bf16.mxu1 %v14856_v0  ;;  %13375 = vmatprep.subr.bf16.mxu0 %v14856_v0 }
 0x207   :  { %13341 = vmatprep.mubr.msk.bf16.mxu1 %vm14857_vm0, %v14856_v0 }
 0x209   :  { %13336 = vmatpush3.bf16.msra.mxu1 %v13602_v38  ;;  %13376 = vmatpush3.bf16.msra.mxu0 %v13603_v39  ;;  %v13637_v38 = vld [vmem:[#allocation10 + $0x38] sm:$0xff]  }
 0x20a   :  { %13337 = vmatprep.subr.bf16.mxu1 %v14856_v0  ;;  %13393 = vmatprep.subr.bf16.mxu0 %v14856_v0 }
 0x20c   :  { %13378 = vmatmul.mubr.msk.bf16.vlgmr.msra.gmra.mxu0 %vm616_vm4, %v13604_v40  ;;  %v654_v43 = vpop.f32.mrf.mxu0  ;;  %v13633_v40 = vld [vmem:[#allocation2 + $0x48] sm:$0xff]  }
 0x20d   :  { %13338 = vmatpush3.bf16.msra.mxu1 %v13605_v41  ;;  %13394 = vmatpush3.bf16.msra.mxu0 %v13606_v42  ;;  %v728_v53 = vadd.f32 %v15095_v48, %v654_v43  ;;  %v15294_v41 = vld [vmem:[#allocation13 + $0xc4] ss:$8 sps:$4 sm:$0xff]  }
 0x20e   :  { %v13055_v46 = vpop.f32.mrf.mxu0  ;;  %13339 = vmatprep.subr.bf16.mxu1 %v14856_v0  ;;  %13395 = vmatprep.subr.bf16.mxu0 %v14856_v0 }
 0x20f   :  { %13401 = vmatprep.mubr.msk.bf16.mxu0 %vm14857_vm0, %v14856_v0 }
 0x210   :  { %v657_v47 = vpop.f32.mrf.mxu0 }
 0x211   :  { %13340 = vmatpush3.bf16.msra.mxu1 %v13607_v44  ;;  %13396 = vmatpush3.bf16.msra.mxu0 %v13608_v45  ;;  %v731_v61 = vadd.f32 %v15103_v59, %v657_v47  ;;  %v15298_v44 = vld [vmem:[#allocation13 + $0xc0] ss:$8 sps:$4 sm:$0xff]   ;;  %v13641_v45 = vld [vmem:[#allocation10 + $0x30] sm:$0xff]  }
 0x212   :  { %v13056_v51 = vpop.f32.mrf.mxu0  ;;  %13357 = vmatprep.subr.bf16.mxu1 %v14856_v0  ;;  %13397 = vmatprep.subr.bf16.mxu0 %v14856_v0  ;;  %v15302_v47 = vld [vmem:[#allocation13 + $0xb4] ss:$8 sps:$4 sm:$0xff]  }
 0x214   :  { %13342 = vmatmul.mubr.msk.bf16.vlgmr.msra.gmra.mxu1 %vm616_vm4, %v13609_v52  ;;  %v811_v54 = vpop.f32.mrf.mxu1 }
 0x215   :  { %v818_v56 = vadd.f32 %v811_v54, %v728_v53  ;;  %13358 = vmatpush3.bf16.msra.mxu1 %v13610_v49  ;;  %13398 = vmatpush3.bf16.msra.mxu0 %v13611_v50  ;;  %v15309_v53 = vld [vmem:[#allocation13 + $0xb0] ss:$8 sps:$4 sm:$0xff]   ;;  %v13645_v54 = vld [vmem:[#allocation10 + $0x28] sm:$0xff]  }
 0x216   :  { %v13079_v60 = vpop.f32.mrf.mxu1  ;;  %13359 = vmatprep.subr.bf16.mxu1 %v14856_v0  ;;  %13399 = vmatprep.subr.bf16.mxu0 %v14856_v0 }
 0x217   :  { %v827_v62 = vadd.f32 %v15241_v55, %v818_v56  ;;  %13365 = vmatprep.mubr.msk.bf16.mxu1 %vm14857_vm0, %v14856_v0 }
 0x218   :  { %v814_v48 = vpop.f32.mrf.mxu1 }
 0x219   :  { %v819_v1 = vadd.f32 %v814_v48, %v731_v61  ;;  %13360 = vmatpush3.bf16.msra.mxu1 %v13612_v57  ;;  %13400 = vmatpush3.bf16.msra.mxu0 %v13613_v58  ;;  %v829_v5 = vmul.f32 0.1, %v827_v62  ;;  %v15313_v57 = vld [vmem:[#allocation13 + $0xa4] ss:$8 sps:$4 sm:$0xff]   ;;  %v15320_v48 = vld [vmem:[#allocation13 + $0xa0] ss:$8 sps:$4 sm:$0xff]  }
 0x21a   :  { %v13080_v4 = vpop.f32.mrf.mxu1  ;;  %13361 = vmatprep.subr.bf16.mxu1 %v14856_v0  ;;  %13417 = vmatprep.subr.bf16.mxu0 %v14856_v0 }
 0x21b   :  { %v828_v59 = vadd.f32 %v15241_v55, %v819_v1  ;;  %v831_v11 = vmax.f32 %v827_v62, %v829_v5 }
 0x21c   :  { %13402 = vmatmul.mubr.msk.bf16.vlgmr.msra.gmra.mxu0 %vm616_vm4, %v13614_v63  ;;  %v15253_v6 = vpop.f32.mrf.mxu0  ;;  %v13649_v63 = vld [vmem:[#allocation10 + $0x20] sm:$0xff]  }
 0x21d   :  { %v830_v7 = vmul.f32 0.1, %v828_v59  ;;  %13362 = vmatpush3.bf16.msra.mxu1 %v13615_v2  ;;  %13418 = vmatpush3.bf16.msra.mxu0 %v13616_v3  ;;  %v15324_v2 = vld [vmem:[#allocation13 + $0x94] ss:$8 sps:$4 sm:$0xff]  }
 0x21e   :  { %v13115_v10 = vpop.f32.mrf.mxu0  ;;  %13363 = vmatprep.subr.bf16.mxu1 %v14856_v0  ;;  %13419 = vmatprep.subr.bf16.mxu0 %v14856_v0 }
 0x21f   :  { %v832_v12 = vmax.f32 %v828_v59, %v830_v7  ;;  %13425 = vmatprep.mubr.msk.bf16.mxu0 %vm14857_vm0, %v14856_v0  ;;  %v13654_v7 = vld [vmem:[#allocation10 + $0x58] sm:$0xff]   ;;  %v15333_v10 = vld [vmem:[#allocation13 + $0x84] ss:$8 sps:$4 sm:$0xff]  }
 0x220   :  { %v15259_v13 = vpop.f32.mrf.mxu0 }
 0x221   :  { %v12756_v14 = vpack.c.bf16 %v832_v12, %v831_v11  ;;  %13364 = vmatpush3.bf16.msra.mxu1 %v13617_v8  ;;  %13420 = vmatpush3.bf16.msra.mxu0 %v13618_v9  ;;  %v13650_v9 = vld [vmem:[#allocation2 + $0x58] sm:$0xff]  }
 0x222   :  { %v13116_v17 = vpop.f32.mrf.mxu0  ;;  %13381 = vmatprep.subr.bf16.mxu1 %v14856_v0  ;;  %13421 = vmatprep.subr.bf16.mxu0 %v14856_v0 }
 0x223   :  { %12808 = vst [vmem:[#allocation3 + $0x8] sm:$0xff] %v12756_v14   ;;  %v13658_v14 = vld [vmem:[#allocation10 + $0x50] sm:$0xff]  }
 0x224   :  { %v929_v20 = vpop.f32.mrf.mxu1  ;;  %13366 = vmatmul.mubr.msk.bf16.vlgmr.msra.gmra.mxu1 %vm616_vm4, %v13619_v18  ;;  %v13660_v18 = vld [vmem:[#allocation13 + $0x170] ss:$8 sps:$4 sm:$0xff]  }
 0x225   :  { %13382 = vmatpush3.bf16.msra.mxu1 %v13620_v15  ;;  %13422 = vmatpush3.bf16.msra.mxu0 %v13621_v16  ;;  %v13662_v16 = vld [vmem:[#allocation13 + $0x174] ss:$8 sps:$4 sm:$0xff]  }
 0x226   :  { %v13091_v23 = vpop.f32.mrf.mxu1  ;;  %13383 = vmatprep.subr.bf16.mxu1 %v14856_v0  ;;  %13423 = vmatprep.subr.bf16.mxu0 %v14856_v0 }
 0x227   :  { %13389 = vmatprep.mubr.msk.bf16.mxu1 %vm14857_vm0, %v14856_v0  ;;  %v13666_v23 = vld [vmem:[#allocation13 + $0x164] ss:$8 sps:$4 sm:$0xff]  }
 0x228   :  { %v932_v29 = vpop.f32.mrf.mxu1 }
 0x229   :  { %13384 = vmatpush3.bf16.msra.mxu1 %v13622_v21  ;;  %13424 = vmatpush3.bf16.msra.mxu0 %v13623_v22 }
 0x22a   :  { %v13092_v28 = vpop.f32.mrf.mxu1  ;;  %13385 = vmatprep.subr.bf16.mxu1 %v14856_v0  ;;  %3706 = vmatprep.subr.bf16.mxu0 %v15266_v24  ;;  %v13659_v22 = vld [vmem:[#allocation3 + $0x8] sm:$0xff]  }
 0x22b   :  { %v15347_v28 = vld [vmem:[#allocation13 + $0x74] ss:$8 sps:$4 sm:$0xff]  }
 0x22c   :  { %v15276_v31 = vpop.f32.mrf.mxu0  ;;  %13426 = vmatmul.mubr.msk.bf16.vlgmr.msra.gmra.mxu0 %vm616_vm4, %v13624_v25 }
 0x22d   :  { %13386 = vmatpush3.bf16.msra.mxu1 %v13628_v27  ;;  %3707 = vmatpush1.bf16.msra.mxu0 %v15270_v26  ;;  %v13667_v27 = vld [vmem:[#allocation10 + $0x40] sm:$0xff]  }
 0x22e   :  { %v13139_v34 = vpop.f32.mrf.mxu0  ;;  %13387 = vmatprep.subr.bf16.mxu1 %v14856_v0  ;;  %3708 = vmatprep.subr.bf16.mxu0 %v15274_v30 }
 0x22f   :  { %3738 = vmatprep.mubr.bf16.mxu0 %v16497_v19  ;;  %v13674_v34 = vld [vmem:[#allocation13 + $0x154] ss:$8 sps:$4 sm:$0xff]  }
 0x230   :  { %v15287_v36 = vpop.f32.mrf.mxu0 }
 0x231   :  { %13388 = vmatpush3.bf16.msra.mxu1 %v13632_v33  ;;  %3709 = vmatpush1.bf16.msra.mxu0 %v15280_v32 }
 0x232   :  { %v13140_v39 = vpop.f32.mrf.mxu0  ;;  %13405 = vmatprep.subr.bf16.mxu1 %v14856_v0  ;;  %3710 = vmatprep.subr.bf16.mxu0 %v15284_v35 }
 0x233   :  { %v13668_v39 = vld [vmem:[#allocation2 + $0x60] sm:$0xff]  }
 0x234   :  { %v1002_v42 = vpop.f32.mrf.mxu1  ;;  %13390 = vmatmul.mubr.msk.bf16.vlgmr.msra.gmra.mxu1 %vm616_vm4, %v13633_v40  ;;  %v15353_v40 = vld [vmem:[#allocation13 + $0x70] ss:$8 sps:$4 sm:$0xff]  }
 0x235   :  { %v1003_v43 = vadd.f32 %v1002_v42, %v929_v20  ;;  %13406 = vmatpush3.bf16.msra.mxu1 %v13637_v38  ;;  %3711 = vmatpush1.bf16.msra.mxu0 %v15290_v37  ;;  %v13663_v20 = vld [vmem:[#allocation10 + $0x48] sm:$0xff]   ;;  %v13672_v42 = vld [vmem:[#allocation13 + $0x150] ss:$8 sps:$4 sm:$0xff]  }
 0x236   :  { %v13103_v46 = vpop.f32.mrf.mxu1  ;;  %13407 = vmatprep.subr.bf16.mxu1 %v14856_v0  ;;  %3712 = vmatprep.subr.bf16.mxu0 %v15294_v41 }
 0x237   :  { %v1092_v49 = vadd.f32 %v15253_v6, %v1003_v43  ;;  %13413 = vmatprep.mubr.msk.bf16.mxu1 %vm14857_vm0, %v14856_v0  ;;  %v15329_v6 = vld [vmem:[#allocation13 + $0x90] ss:$8 sps:$4 sm:$0xff]   ;;  %v13680_v46 = vld [vmem:[#allocation13 + $0x144] ss:$8 sps:$4 sm:$0xff]  }
 0x238   :  { %v1005_v50 = vpop.f32.mrf.mxu1 }
 0x239   :  { %v1101_v51 = vadd.f32 %v15241_v55, %v1092_v49  ;;  %v1006_v52 = vadd.f32 %v1005_v50, %v932_v29  ;;  %13408 = vmatpush3.bf16.msra.mxu1 %v13641_v45  ;;  %3713 = vmatpush1.bf16.msra.mxu0 %v15298_v44  ;;  %v13664_v29 = vld [vmem:[#allocation13 + $0x160] ss:$8 sps:$4 sm:$0xff]   ;;  %v15356_v45 = vld [vmem:[#allocation13 + $0x64] ss:$8 sps:$4 sm:$0xff]  }
 0x23a   :  { %v13104_v56 = vpop.f32.mrf.mxu1  ;;  %13409 = vmatprep.subr.bf16.mxu1 %v14856_v0  ;;  %3714 = vmatprep.subr.bf16.mxu0 %v15302_v47 }
 0x23b   :  { %v1093_v58 = vadd.f32 %v15259_v13, %v1006_v52  ;;  %v1103_v61 = vmul.f32 0.1, %v1101_v51  ;;  %v15337_v13 = vld [vmem:[#allocation13 + $0x80] ss:$8 sps:$4 sm:$0xff]   ;;  %v15364_v56 = vld [vmem:[#allocation13 + $0x54] ss:$8 sps:$4 sm:$0xff]  }
 0x23c   :  { %v15316_v60 = vpop.f32.mrf.mxu0  ;;  %v13678_v52 = vld [vmem:[#allocation13 + $0x140] ss:$8 sps:$4 sm:$0xff]  }
 0x23d   :  { %v1102_v62 = vadd.f32 %v15241_v55, %v1093_v58  ;;  %13410 = vmatpush3.bf16.msra.mxu1 %v13645_v54  ;;  %3715 = vmatpush1.bf16.msra.mxu0 %v15309_v53  ;;  %v1105_v5 = vmax.f32 %v1101_v51, %v1103_v61  ;;  %v15361_v51 = vld [vmem:[#allocation13 + $0x60] ss:$8 sps:$4 sm:$0xff]   ;;  %v13686_v58 = vld [vmem:[#allocation13 + $0x134] ss:$8 sps:$4 sm:$0xff]  }
 0x23e   :  { %v13163_v1 = vpop.f32.mrf.mxu0  ;;  %13411 = vmatprep.subr.bf16.mxu1 %v14856_v0  ;;  %3716 = vmatprep.subr.bf16.mxu0 %v15313_v57 }
 0x23f   :  { %v1104_v3 = vmul.f32 0.1, %v1102_v62  ;;  %v15370_v1 = vld [vmem:[#allocation13 + $0x50] ss:$8 sps:$4 sm:$0xff]  }
 0x240   :  { %v15326_v4 = vpop.f32.mrf.mxu0 }
 0x241   :  { %v1106_v59 = vmax.f32 %v1102_v62, %v1104_v3  ;;  %13412 = vmatpush3.bf16.msra.mxu1 %v13649_v63  ;;  %3717 = vmatpush1.bf16.msra.mxu0 %v15320_v48  ;;  %v13684_v3 = vld [vmem:[#allocation13 + $0x130] ss:$8 sps:$4 sm:$0xff]  }
 0x242   :  { %v13164_v8 = vpop.f32.mrf.mxu0  ;;  %13429 = vmatprep.subr.bf16.mxu1 %v14856_v0  ;;  %3718 = vmatprep.subr.bf16.mxu0 %v15324_v2 }
 0x243   :  { %v12761_v11 = vpack.c.bf16 %v1106_v59, %v1105_v5  ;;  %v15373_v59 = vld [vmem:[#allocation13 + $0x44] ss:$8 sps:$4 sm:$0xff]  }
 0x244   :  { %v1203_v12 = vpop.f32.mrf.mxu1  ;;  %13414 = vmatmul.mubr.msk.bf16.vlgmr.msra.gmra.mxu1 %vm616_vm4, %v13650_v9 }
 0x245   :  { %12809 = vst [vmem:[#allocation3 + $0x10] sm:$0xff] %v12761_v11   ;;  %13430 = vmatpush3.bf16.msra.mxu1 %v13654_v7  ;;  %3719 = vmatpush1.bf16.msra.mxu0 %v15329_v6  ;;  %v13692_v7 = vld [vmem:[#allocation13 + $0x124] ss:$8 sps:$4 sm:$0xff]  }
 0x246   :  { %v13127_v15 = vpop.f32.mrf.mxu1  ;;  %13431 = vmatprep.subr.bf16.mxu1 %v14856_v0  ;;  %3720 = vmatprep.subr.bf16.mxu0 %v15333_v10 }
 0x247   :  { %13437 = vmatprep.mubr.msk.bf16.mxu1 %vm14857_vm0, %v14856_v0 }
 0x248   :  { %v1206_v17 = vpop.f32.mrf.mxu1 }
 0x249   :  { %13432 = vmatpush3.bf16.msra.mxu1 %v13658_v14  ;;  %3721 = vmatpush1.bf16.msra.mxu0 %v15337_v13  ;;  %v1280_v61 = vadd.f32 %v15287_v36, %v1206_v17  ;;  %v13690_v14 = vld [vmem:[#allocation13 + $0x120] ss:$8 sps:$4 sm:$0xff]   ;;  %v15384_v17 = vld [vmem:[#allocation13 + $0x114] ss:$8 sps:$4 sm:$0xff]  }
 0x24a   :  { %v13128_v21 = vpop.f32.mrf.mxu1  ;;  %13433 = vmatprep.subr.bf16.mxu1 %v14856_v0  ;;  %3983 = vmatprep.subr.bf16.mxu0 %v13662_v16  ;;  %v15382_v16 = vld [vmem:[#allocation13 + $0x34] ss:$8 sps:$4 sm:$0xff]  }
 0x24c   :  { %v15345_v25 = vpop.f32.mrf.mxu0  ;;  %3739 = vmatmul.mubr.bf16.vlgmr.msra.gmra.mxu0 %v13659_v22 }
 0x24d   :  { %13434 = vmatpush3.bf16.msra.mxu1 %v13663_v20  ;;  %3984 = vmatpush1.bf16.msra.mxu0 %v13660_v18 }
 0x24e   :  { %v13187_v33 = vpop.f32.mrf.mxu0  ;;  %13435 = vmatprep.subr.bf16.mxu1 %v14856_v0  ;;  %3985 = vmatprep.subr.bf16.mxu0 %v13666_v23  ;;  %v1277_v0 = vadd.f32 %v15276_v31, %v1203_v12  ;;  %v15379_v12 = vld [vmem:[#allocation13 + $0x40] ss:$8 sps:$4 sm:$0xff]   ;;  %v15389_v23 = vld [vmem:[#allocation13 + $0x30] ss:$8 sps:$4 sm:$0xff]  }
 0x24f   :  { %4015 = vmatprep.mubr.bf16.mxu0 %v16497_v19  ;;  %v15395_v33 = vld [vmem:[#allocation13 + $0x24] ss:$8 sps:$4 sm:$0xff]  }
 0x250   :  { %v15351_v38 = vpop.f32.mrf.mxu0 }
 0x251   :  { %13436 = vmatpush3.bf16.msra.mxu1 %v13667_v27  ;;  %3986 = vmatpush1.bf16.msra.mxu0 %v13664_v29  ;;  %v15391_v29 = vld [vmem:[#allocation13 + $0x110] ss:$8 sps:$4 sm:$0xff]  }
 0x252   :  { %v13188_v43 = vpop.f32.mrf.mxu0  ;;  %3835 = vmatprep.subr.bf16.mxu1 %v15347_v28  ;;  %3987 = vmatprep.subr.bf16.mxu0 %v13674_v34  ;;  %v15397_v34 = vld [vmem:[#allocation13 + $0x104] ss:$8 sps:$4 sm:$0xff]  }
 0x253   :  { %v15402_v43 = vld [vmem:[#allocation13 + $0x20] ss:$8 sps:$4 sm:$0xff]  }
 0x254   :  { %v1359_v49 = vpop.f32.mrf.mxu1  ;;  %13438 = vmatmul.mubr.msk.bf16.vlgmr.msra.gmra.mxu1 %vm616_vm4, %v13668_v39 }
 0x255   :  { %v1366_v50 = vadd.f32 %v1359_v49, %v1277_v0  ;;  %3836 = vmatpush1.bf16.msra.mxu1 %v15353_v40  ;;  %3988 = vmatpush1.bf16.msra.mxu0 %v13672_v42  ;;  %v15408_v49 = vld [vmem:[#allocation13 + $0x14] ss:$8 sps:$4 sm:$0xff]  }
 0x256   :  { %v13151_v54 = vpop.f32.mrf.mxu1  ;;  %3837 = vmatprep.subr.bf16.mxu1 %v15356_v45  ;;  %3989 = vmatprep.subr.bf16.mxu0 %v13680_v46  ;;  %v15404_v46 = vld [vmem:[#allocation13 + $0x100] ss:$8 sps:$4 sm:$0xff]  }
 0x257   :  { %v1375_v31 = vadd.f32 %v15241_v55, %v1366_v50  ;;  %3867 = vmatprep.mubr.bf16.mxu1 %v16497_v19 }
 0x258   :  { %v1362_v62 = vpop.f32.mrf.mxu1 }
 0x259   :  { %v1367_v63 = vadd.f32 %v1362_v62, %v1280_v61  ;;  %3838 = vmatpush1.bf16.msra.mxu1 %v15361_v51  ;;  %3990 = vmatpush1.bf16.msra.mxu0 %v13678_v52  ;;  %v1377_v36 = vmul.f32 0.1, %v1375_v31  ;;  %v15417_v61 = vld [vmem:[#allocation13 + $0x4] ss:$8 sps:$4 sm:$0xff]  }
 0x25a   :  { %v13152_v5 = vpop.f32.mrf.mxu1  ;;  %3839 = vmatprep.subr.bf16.mxu1 %v15364_v56  ;;  %3991 = vmatprep.subr.bf16.mxu0 %v13686_v58  ;;  %v15415_v58 = vld [vmem:[#allocation13 + $0x10] ss:$8 sps:$4 sm:$0xff]   ;;  %v13708_v62 = vld [vmem:[#allocation3 + $0x10] sm:$0xff]  }
 0x25b   :  { %v1376_v8 = vadd.f32 %v15241_v55, %v1367_v63  ;;  %v1379_v18 = vmax.f32 %v1375_v31, %v1377_v36  ;;  %v15427_v5 = vld [vmem:[#allocation13] ss:$8 sps:$4 sm:$0xff]   ;;  %v13712_v36 = vld [vmem:[#allocation3] sm:$0xff]  }
 0x25c   :  { %v15376_v9 = vpop.f32.mrf.mxu0 }
 0x25d   :  { %v1378_v11 = vmul.f32 0.1, %v1376_v8  ;;  %3840 = vmatpush1.bf16.msra.mxu1 %v15370_v1  ;;  %3992 = vmatpush1.bf16.msra.mxu0 %v13684_v3 }
 0x25e   :  { %v13211_v15 = vpop.f32.mrf.mxu0  ;;  %3841 = vmatprep.subr.bf16.mxu1 %v15373_v59  ;;  %3993 = vmatprep.subr.bf16.mxu0 %v13692_v7 }
 0x25f   :  { %v1380_v20 = vmax.f32 %v1376_v8, %v1378_v11 }
 0x260   :  { %v15386_v21 = vpop.f32.mrf.mxu0 }
 0x261   :  { %v12766_v22 = vpack.c.bf16 %v1380_v20, %v1379_v18  ;;  %3842 = vmatpush1.bf16.msra.mxu1 %v15379_v12  ;;  %3994 = vmatpush1.bf16.msra.mxu0 %v13690_v14 }
 0x262   :  { %v13212_v27 = vpop.f32.mrf.mxu0  ;;  %3843 = vmatprep.subr.bf16.mxu1 %v15382_v16  ;;  %3995 = vmatprep.subr.bf16.mxu0 %v15384_v17 }
 0x263   :  { %12810 = vst [vmem:[#allocation3 + $0x18] sm:$0xff] %v12766_v22  }
 0x264   :  { %v1550_v39 = vpop.f32.mrf.mxu1 }
 0x265   :  { %v1551_v42 = vadd.f32 %v1550_v39, %v15316_v60  ;;  %3844 = vmatpush1.bf16.msra.mxu1 %v15389_v23  ;;  %3996 = vmatpush1.bf16.msra.mxu0 %v15391_v29  ;;  %v13717_v39 = vld [vmem:[#allocation16 + $0x74] ss:$8 sps:$4 sm:$0xff]  }
 0x266   :  { %v13175_v0 = vpop.f32.mrf.mxu1  ;;  %3845 = vmatprep.subr.bf16.mxu1 %v15395_v33  ;;  %3997 = vmatprep.subr.bf16.mxu0 %v15397_v34 }
 0x267   :  { %v1640_v50 = vadd.f32 %v15345_v25, %v1551_v42 }
 0x268   :  { %v1553_v52 = vpop.f32.mrf.mxu1 }
 0x269   :  { %v1649_v60 = vadd.f32 %v15241_v55, %v1640_v50  ;;  %v1554_v54 = vadd.f32 %v1553_v52, %v15326_v4  ;;  %3846 = vmatpush1.bf16.msra.mxu1 %v15402_v43  ;;  %3998 = vmatpush1.bf16.msra.mxu0 %v15404_v46  ;;  %v13720_v50 = vld [vmem:[#allocation16 + $0x64] ss:$8 sps:$4 sm:$0xff]  }
 0x26a   :  { %v13176_v31 = vpop.f32.mrf.mxu1  ;;  %3847 = vmatprep.subr.bf16.mxu1 %v15408_v49  ;;  %4429 = vmatprep.subr.bf16.mxu0 %v15266_v24 }
 0x26b   :  { %v1641_v25 = vadd.f32 %v15351_v38, %v1554_v54  ;;  %v1651_v4 = vmul.f32 0.1, %v1649_v60  ;;  %v13721_v54 = vld [vmem:[#allocation16 + $0x50] ss:$8 sps:$4 sm:$0xff]  }
 0x26c   :  { %v15422_v63 = vpop.f32.mrf.mxu0  ;;  %4016 = vmatmul.mubr.bf16.vlgmr.msra.gmra.mxu0 %v13708_v62 }
 0x26d   :  { %v1650_v3 = vadd.f32 %v15241_v55, %v1641_v25  ;;  %3848 = vmatpush1.bf16.msra.mxu1 %v15415_v58  ;;  %4430 = vmatpush1.bf16.msra.mxu0 %v15270_v26  ;;  %v1653_v8 = vmax.f32 %v1649_v60, %v1651_v4 }
 0x26e   :  { %v13235_v7 = vpop.f32.mrf.mxu0  ;;  %3849 = vmatprep.subr.bf16.mxu1 %v15417_v61  ;;  %4431 = vmatprep.subr.bf16.mxu0 %v15274_v30 }
 0x26f   :  { %v1652_v24 = vmul.f32 0.1, %v1650_v3  ;;  %4461 = vmatprep.mubr.bf16.mxu0 %v16497_v19  ;;  %v13726_v7 = vld [vmem:[#allocation16 + $0x44] ss:$8 sps:$4 sm:$0xff]  }
 0x270   :  { %v15432_v38 = vpop.f32.mrf.mxu0 }
 0x271   :  { %v1654_v11 = vmax.f32 %v1650_v3, %v1652_v24  ;;  %3850 = vmatpush1.bf16.msra.mxu1 %v15427_v5  ;;  %4432 = vmatpush1.bf16.msra.mxu0 %v15280_v32 }
 0x272   :  { %v13236_v26 = vpop.f32.mrf.mxu0  ;;  %4433 = vmatprep.subr.bf16.mxu0 %v15284_v35  ;;  %4260 = vmatprep.subr.bf16.mxu1 %v13717_v39 }
 0x273   :  { %v12771_v14 = vpack.c.bf16 %v1654_v11, %v1653_v8  ;;  %v13729_v8 = vld [vmem:[#allocation16 + $0x34] ss:$8 sps:$4 sm:$0xff]  }
 0x274   :  { %v1751_v15 = vpop.f32.mrf.mxu1  ;;  %3868 = vmatmul.mubr.bf16.vlgmr.msra.gmra.mxu1 %v13712_v36 }
 0x275   :  { %12811 = vst [vmem:[#allocation3 + $0x20] sm:$0xff] %v12771_v14   ;;  %4434 = vmatpush1.bf16.msra.mxu0 %v15290_v37 }
 0x276   :  { %v13199_v30 = vpop.f32.mrf.mxu1  ;;  %4435 = vmatprep.subr.bf16.mxu0 %v15294_v41  ;;  %v1825_v41 = vadd.f32 %v15376_v9, %v1751_v15  ;;  %v13713_v9 = vld [vmem:[#allocation3 + $0x10] sm:$0xff]  }
 0x278   :  { %v1754_v18 = vpop.f32.mrf.mxu1 }
 0x279   :  { %4436 = vmatpush1.bf16.msra.mxu0 %v15298_v44 }
 0x27a   :  { %v13200_v20 = vpop.f32.mrf.mxu1  ;;  %4437 = vmatprep.subr.bf16.mxu0 %v15302_v47 }
 0x27c   :  { %v2181_v22 = vpop.f32.mrf.mxu0 }
 0x27d   :  { %4438 = vmatpush1.bf16.msra.mxu0 %v15309_v53  ;;  %v13715_v53 = vld [vmem:[#allocation16 + $0x70] ss:$8 sps:$4 sm:$0xff]  }
 0x27e   :  { %v13259_v32 = vpop.f32.mrf.mxu0  ;;  %4439 = vmatprep.subr.bf16.mxu0 %v15313_v57  ;;  %v1828_v57 = vadd.f32 %v15386_v21, %v1754_v18  ;;  %4261 = vmatpush1.bf16.msra.mxu1 %v13715_v53  ;;  %v13739_v53 = vld [vmem:[#allocation16 + $0xf0] ss:$8 sps:$4 sm:$0xff]  }
 0x27f   :  { %4262 = vmatprep.subr.bf16.mxu1 %v13720_v50  ;;  %v13750_v50 = vld [vmem:[#allocation16 + $0xc4] ss:$8 sps:$4 sm:$0xff]  }
 0x280   :  { %v15443_v35 = vpop.f32.mrf.mxu0 }
 0x281   :  { %4440 = vmatpush1.bf16.msra.mxu0 %v15320_v48 }
 0x282   :  { %v13260_v37 = vpop.f32.mrf.mxu0  ;;  %4441 = vmatprep.subr.bf16.mxu0 %v15324_v2 }
 0x284   :  { %v1907_v27 = vpop.f32.mrf.mxu1 }
 0x285   :  { %v1914_v44 = vadd.f32 %v1907_v27, %v1825_v41  ;;  %4442 = vmatpush1.bf16.msra.mxu0 %v15329_v6  ;;  %v13718_v6 = vld [vmem:[#allocation16 + $0x60] ss:$8 sps:$4 sm:$0xff]  }
 0x286   :  { %v13223_v47 = vpop.f32.mrf.mxu1  ;;  %4443 = vmatprep.subr.bf16.mxu0 %v15333_v10  ;;  %4263 = vmatpush1.bf16.msra.mxu1 %v13718_v6  ;;  %v13736_v27 = vld [vmem:[#allocation16] ss:$8 sps:$4 sm:$0xff]  }
 0x287   :  { %v1923_v42 = vadd.f32 %v15241_v55, %v1914_v44  ;;  %v13741_v44 = vld [vmem:[#allocation16 + $0xf4] ss:$8 sps:$4 sm:$0xff]   ;;  %v13748_v6 = vld [vmem:[#allocation16 + $0xc0] ss:$8 sps:$4 sm:$0xff]  }
 0x288   :  { %v1910_v0 = vpop.f32.mrf.mxu1 }
 0x289   :  { %v1915_v48 = vadd.f32 %v1910_v0, %v1828_v57  ;;  %4444 = vmatpush1.bf16.msra.mxu0 %v15337_v13  ;;  %v1925_v52 = vmul.f32 0.1, %v1923_v42  ;;  %v13714_v57 = vld [vmem:[#allocation3 + $0x8] sm:$0xff]  }
 0x28a   :  { %v13224_v2 = vpop.f32.mrf.mxu1  ;;  %4558 = vmatprep.subr.bf16.mxu0 %v15347_v28  ;;  %v13723_v28 = vld [vmem:[#allocation16 + $0x54] ss:$8 sps:$4 sm:$0xff]  }
 0x28b   :  { %v1924_v10 = vadd.f32 %v15241_v55, %v1915_v48  ;;  %v1927_v31 = vmax.f32 %v1923_v42, %v1925_v52  ;;  %4264 = vmatprep.subr.bf16.mxu1 %v13723_v28  ;;  %v13742_v42 = vld [vmem:[#allocation16 + $0xe0] ss:$8 sps:$4 sm:$0xff]   ;;  %v13747_v2 = vld [vmem:[#allocation16 + $0xd4] ss:$8 sps:$4 sm:$0xff]  }
 0x28c   :  { %v15455_v60 = vpop.f32.mrf.mxu0  ;;  %4462 = vmatmul.mubr.bf16.vlgmr.msra.gmra.mxu0 %v13713_v9  ;;  %4265 = vmatpush1.bf16.msra.mxu1 %v13721_v54  ;;  %v13753_v54 = vld [vmem:[#allocation16 + $0xb4] ss:$8 sps:$4 sm:$0xff]  }
 0x28d   :  { %v1926_v21 = vmul.f32 0.1, %v1924_v10  ;;  %4559 = vmatpush1.bf16.msra.mxu0 %v15353_v40  ;;  %4590 = vmatprep.mubr.bf16.mxu0 %v16497_v19  ;;  %v13724_v40 = vld [vmem:[#allocation16 + $0x40] ss:$8 sps:$4 sm:$0xff]  }
 0x28e   :  { %v13283_v13 = vpop.f32.mrf.mxu0  ;;  %4560 = vmatprep.subr.bf16.mxu0 %v15356_v45  ;;  %4266 = vmatprep.subr.bf16.mxu1 %v13726_v7  ;;  %v13756_v7 = vld [vmem:[#allocation16 + $0xa4] ss:$8 sps:$4 sm:$0xff]  }
 0x28f   :  { %v1928_v62 = vmax.f32 %v1924_v10, %v1926_v21  ;;  %v15485_v10 = vld [vmem:[#allocation12] ss:$0 sm:$0xff] }
 0x290   :  { %v15460_v25 = vpop.f32.mrf.mxu0  ;;  %4267 = vmatpush1.bf16.msra.mxu1 %v13724_v40 }
 0x291   :  { %v12776_v4 = vpack.c.bf16 %v1928_v62, %v1927_v31  ;;  %4561 = vmatpush1.bf16.msra.mxu0 %v15361_v51  ;;  %v13727_v51 = vld [vmem:[#allocation16 + $0x30] ss:$8 sps:$4 sm:$0xff]   ;;  %4268 = vmatprep.subr.bf16.mxu1 %v13729_v8 }
 0x292   :  { %v13284_v3 = vpop.f32.mrf.mxu0  ;;  %4562 = vmatprep.subr.bf16.mxu0 %v15364_v56  ;;  %v13751_v62 = vld [vmem:[#allocation16 + $0xb0] ss:$8 sps:$4 sm:$0xff]  }
 0x293   :  { %12812 = vst [vmem:[#allocation3 + $0x28] sm:$0xff] %v12776_v4  }
 0x294   :  { %v2098_v24 = vpop.f32.mrf.mxu1  ;;  %4269 = vmatpush1.bf16.msra.mxu1 %v13727_v51  ;;  %v13759_v51 = vld [vmem:[#allocation16 + $0x94] ss:$8 sps:$4 sm:$0xff]  }
 0x295   :  { %v2099_v45 = vadd.f32 %v2098_v24, %v15422_v63  ;;  %4563 = vmatpush1.bf16.msra.mxu0 %v15370_v1  ;;  %v13732_v1 = vld [vmem:[#allocation16 + $0x24] ss:$8 sps:$4 sm:$0xff]  }
 0x296   :  { %v13247_v36 = vpop.f32.mrf.mxu1  ;;  %4564 = vmatprep.subr.bf16.mxu0 %v15373_v59  ;;  %v13730_v59 = vld [vmem:[#allocation16 + $0x20] ss:$8 sps:$4 sm:$0xff]   ;;  %4270 = vmatprep.subr.bf16.mxu1 %v13732_v1  ;;  %v13762_v1 = vld [vmem:[#allocation16 + $0x84] ss:$8 sps:$4 sm:$0xff]  }
 0x297   :  { %v2188_v11 = vadd.f32 %v2181_v22, %v2099_v45  ;;  %v13754_v45 = vld [vmem:[#allocation16 + $0xa0] ss:$8 sps:$4 sm:$0xff]  }
 0x298   :  { %v2101_v26 = vpop.f32.mrf.mxu1  ;;  %4271 = vmatpush1.bf16.msra.mxu1 %v13730_v59  ;;  %v13760_v59 = vld [vmem:[#allocation16 + $0x80] ss:$8 sps:$4 sm:$0xff]  }
 0x299   :  { %v2197_v56 = vadd.f32 %v15241_v55, %v2188_v11  ;;  %v2102_v14 = vadd.f32 %v2101_v26, %v15432_v38  ;;  %4565 = vmatpush1.bf16.msra.mxu0 %v15379_v12  ;;  %v13735_v12 = vld [vmem:[#allocation16 + $0x14] ss:$8 sps:$4 sm:$0xff]  }
 0x29a   :  { %v13248_v15 = vpop.f32.mrf.mxu1  ;;  %4566 = vmatprep.subr.bf16.mxu0 %v15382_v16  ;;  %v13733_v16 = vld [vmem:[#allocation16 + $0x10] ss:$8 sps:$4 sm:$0xff]   ;;  %4272 = vmatprep.subr.bf16.mxu1 %v13735_v12 }
 0x29b   :  { %v2189_v63 = vadd.f32 %v15443_v35, %v2102_v14  ;;  %v2199_v18 = vmul.f32 0.1, %v2197_v56  ;;  %v15491_v12 = vld [vmem:[#allocation13 + $0x174] ss:$8 sps:$4 sm:$0xff]  }
 0x29c   :  { %v15472_v30 = vpop.f32.mrf.mxu0  ;;  %4273 = vmatpush1.bf16.msra.mxu1 %v13733_v16 }
 0x29d   :  { %v2198_v20 = vadd.f32 %v15241_v55, %v2189_v63  ;;  %4567 = vmatpush1.bf16.msra.mxu0 %v15389_v23  ;;  %v2201_v35 = vmax.f32 %v2197_v56, %v2199_v18  ;;  %v13738_v55 = vld [vmem:[#allocation16 + $0x4] ss:$8 sps:$4 sm:$0xff]   ;;  %v13757_v56 = vld [vmem:[#allocation16 + $0x90] ss:$8 sps:$4 sm:$0xff]  }
 0x29e   :  { %v13307_v22 = vpop.f32.mrf.mxu0  ;;  %4568 = vmatprep.subr.bf16.mxu0 %v15395_v33  ;;  %4274 = vmatprep.subr.bf16.mxu1 %v13738_v55 }
 0x29f   :  { %v2200_v38 = vmul.f32 0.1, %v2198_v20 }
 0x2a0   :  { %v15477_v32 = vpop.f32.mrf.mxu0  ;;  %4275 = vmatpush1.bf16.msra.mxu1 %v13736_v27 }
 0x2a1   :  { %v2202_v37 = vmax.f32 %v2198_v20, %v2200_v38  ;;  %4569 = vmatpush1.bf16.msra.mxu0 %v15402_v43  ;;  %4276 = vmatprep.subr.bf16.mxu1 %v13741_v44  ;;  %v13744_v43 = vld [vmem:[#allocation16 + $0xe4] ss:$8 sps:$4 sm:$0xff]  }
 0x2a2   :  { %v13308_v41 = vpop.f32.mrf.mxu0  ;;  %4570 = vmatprep.subr.bf16.mxu0 %v15408_v49 }
 0x2a3   :  { %v12781_v23 = vpack.c.bf16 %v2202_v37, %v2201_v35 }
 0x2a4   :  { %v2299_v33 = vpop.f32.mrf.mxu1  ;;  %4277 = vmatpush2.bf16.msra.mxu1 %v13739_v53 }
 0x2a5   :  { %12813 = vst [vmem:[#allocation3 + $0x30] sm:$0xff] %v12781_v23   ;;  %4571 = vmatpush1.bf16.msra.mxu0 %v15415_v58  ;;  %4278 = vmatprep.subr.bf16.mxu1 %v13744_v43  ;;  %v13745_v58 = vld [vmem:[#allocation16 + $0xd0] ss:$8 sps:$4 sm:$0xff]   ;;  %v2373_v52 = vadd.f32 %v15455_v60, %v2299_v33 }
 0x2a6   :  { %v13271_v47 = vpop.f32.mrf.mxu1  ;;  %4572 = vmatprep.subr.bf16.mxu0 %v15417_v61 }
 0x2a8   :  { %v2302_v39 = vpop.f32.mrf.mxu1  ;;  %4279 = vmatpush2.bf16.msra.mxu1 %v13742_v42 }
 0x2a9   :  { %4573 = vmatpush1.bf16.msra.mxu0 %v15427_v5  ;;  %4280 = vmatprep.subr.bf16.mxu1 %v13747_v2  ;;  %v2376_v28 = vadd.f32 %v15460_v25, %v2302_v39 }
 0x2aa   :  { %v13272_v49 = vpop.f32.mrf.mxu1 }
 0x2ac   :  { %v2729_v0 = vpop.f32.mrf.mxu0  ;;  %4591 = vmatmul.mubr.bf16.vlgmr.msra.gmra.mxu0 %v13714_v57  ;;  %4281 = vmatpush2.bf16.msra.mxu1 %v13745_v58 }
 0x2ad   :  { %4282 = vmatprep.subr.bf16.mxu1 %v13750_v50 }
 0x2ae   :  { %v13331_v48 = vpop.f32.mrf.mxu0 }
 0x2b0   :  { %v2732_v9 = vpop.f32.mrf.mxu0  ;;  %4283 = vmatpush2.bf16.msra.mxu1 %v13748_v6 }
 0x2b1   :  { %4284 = vmatprep.subr.bf16.mxu1 %v13753_v54 }
 0x2b2   :  { %v13332_v61 = vpop.f32.mrf.mxu0 }
 0x2b4   :  { %v2455_v5 = vpop.f32.mrf.mxu1  ;;  %4285 = vmatpush2.bf16.msra.mxu1 %v13751_v62 }
 0x2b5   :  { %v2462_v21 = vadd.f32 %v2455_v5, %v2373_v52  ;;  %4286 = vmatprep.subr.bf16.mxu1 %v13756_v7 }
 0x2b6   :  { %v13295_v13 = vpop.f32.mrf.mxu1 }
 0x2b7   :  { %v2471_v31 = vadd.f32 %v15485_v10, %v2462_v21 }
 0x2b8   :  { %v2458_v4 = vpop.f32.mrf.mxu1  ;;  %4287 = vmatpush2.bf16.msra.mxu1 %v13754_v45 }
 0x2b9   :  { %v2463_v3 = vadd.f32 %v2458_v4, %v2376_v28  ;;  %v2473_v60 = vmul.f32 0.1, %v2471_v31  ;;  %4288 = vmatprep.subr.bf16.mxu1 %v13759_v51 }
 0x2ba   :  { %v13296_v40 = vpop.f32.mrf.mxu1 }
 0x2bb   :  { %v2472_v24 = vadd.f32 %v15485_v10, %v2463_v3  ;;  %v2475_v25 = vmax.f32 %v2471_v31, %v2473_v60 }
 0x2bc   :  { %v2920_v36 = vpop.f32.mrf.mxu0  ;;  %4289 = vmatpush2.bf16.msra.mxu1 %v13757_v56 }
 0x2bd   :  { %v2474_v8 = vmul.f32 0.1, %v2472_v24  ;;  %4290 = vmatprep.subr.bf16.mxu1 %v13762_v1 }
 0x2be   :  { %v13355_v11 = vpop.f32.mrf.mxu0 }
 0x2bf   :  { %v2476_v26 = vmax.f32 %v2472_v24, %v2474_v8 }
 0x2c0   :  { %v2923_v14 = vpop.f32.mrf.mxu0  ;;  %4291 = vmatpush2.bf16.msra.mxu1 %v13760_v59 }
 0x2c1   :  { %v12786_v15 = vpack.c.bf16 %v2476_v26, %v2475_v25  ;;  %4705 = vmatprep.subr.bf16.mxu1 %v15491_v12 }
 0x2c2   :  { %v13356_v63 = vpop.f32.mrf.mxu0 }
 0x2c3   :  { %12814 = vst [vmem:[#allocation3 + $0x38] sm:$0xff] %v12786_v15  }
 0x2c4   :  { %v2646_v18 = vpop.f32.mrf.mxu1 }
 0x2c5   :  { %v2647_v20 = vadd.f32 %v2646_v18, %v15472_v30 }
 0x2c6   :  { %v13319_v22 = vpop.f32.mrf.mxu1 }
 0x2c7   :  { %v2736_v38 = vadd.f32 %v2729_v0, %v2647_v20 }
 0x2c8   :  { %v2649_v16 = vpop.f32.mrf.mxu1 }
 0x2c9   :  { %v2745_v35 = vadd.f32 %v15485_v10, %v2736_v38  ;;  %v2650_v37 = vadd.f32 %v2649_v16, %v15477_v32 }
 0x2ca   :  { %v13320_v41 = vpop.f32.mrf.mxu1 }
 0x2cb   :  { %v2737_v55 = vadd.f32 %v2732_v9, %v2650_v37  ;;  %v2747_v27 = vmul.f32 0.1, %v2745_v35 }
 0x2cc   :  { %v3121_v23 = vpop.f32.mrf.mxu0 }
 0x2cd   :  { %v2746_v44 = vadd.f32 %v15485_v10, %v2737_v55  ;;  %v2749_v53 = vmax.f32 %v2745_v35, %v2747_v27 }
 0x2ce   :  { %v13379_v33 = vpop.f32.mrf.mxu0 }
 0x2cf   :  { %v2748_v30 = vmul.f32 0.1, %v2746_v44 }
 0x2d0   :  { %v3124_v47 = vpop.f32.mrf.mxu0 }
 0x2d1   :  { %v2750_v43 = vmax.f32 %v2746_v44, %v2748_v30 }
 0x2d2   :  { %v13380_v39 = vpop.f32.mrf.mxu0 }
 0x2d3   :  { %v12791_v49 = vpack.c.bf16 %v2750_v43, %v2749_v53 }
 0x2d4   :  { %v2847_v57 = vpop.f32.mrf.mxu1 }
 0x2d5   :  { %12815 = vst [vmem:[#allocation3 + $0x40] sm:$0xff] %v12791_v49   ;;  %v2921_v61 = vadd.f32 %v2920_v36, %v2847_v57 }
 0x2d6   :  { %v13343_v42 = vpop.f32.mrf.mxu1 }
 0x2d8   :  { %v2850_v0 = vpop.f32.mrf.mxu1 }
 0x2d9   :  { %v2924_v5 = vadd.f32 %v2923_v14, %v2850_v0 }
 0x2da   :  { %v13344_v48 = vpop.f32.mrf.mxu1 }
 0x2dc   :  { %v3277_v58 = vpop.f32.mrf.mxu0 }
 0x2de   :  { %v13403_v32 = vpop.f32.mrf.mxu0 }
 0x2e0   :  { %v3280_v2 = vpop.f32.mrf.mxu0 }
 0x2e2   :  { %v13404_v9 = vpop.f32.mrf.mxu0 }
 0x2e3   :  { %v13834_v9 = vld [vmem:[#allocation16 + $0x174] ss:$8 sps:$4 sm:$0xff]  }
 0x2e4   :  { %v3003_v6 = vpop.f32.mrf.mxu1  ;;  %4971 = vmatprep.subr.bf16.mxu0 %v13834_v9  ;;  %v15549_v9 = vld [vmem:[#allocation13 + $0xf0] ss:$8 sps:$4 sm:$0xff]  }
 0x2e5   :  { %v3010_v50 = vadd.f32 %v3003_v6, %v2921_v61  ;;  %v13837_v61 = vld [vmem:[#allocation16 + $0x164] ss:$8 sps:$4 sm:$0xff]  }
 0x2e6   :  { %v13367_v52 = vpop.f32.mrf.mxu1 }
 0x2e7   :  { %v3019_v21 = vadd.f32 %v15485_v10, %v3010_v50  ;;  %v13835_v50 = vld [vmem:[#allocation16 + $0x160] ss:$8 sps:$4 sm:$0xff]   ;;  %v4032_v52 = vlaneseq }
 0x2e8   :  { %v3006_v13 = vpop.f32.mrf.mxu1 }
 0x2e9   :  { %v3011_v54 = vadd.f32 %v3006_v13, %v2924_v5  ;;  %v3021_v31 = vmul.f32 0.1, %v3019_v21  ;;  %v13840_v5 = vld [vmem:[#allocation16 + $0x154] ss:$8 sps:$4 sm:$0xff]  }
 0x2ea   :  { %v13368_v28 = vpop.f32.mrf.mxu1 }
 0x2eb   :  { %v3020_v62 = vadd.f32 %v15485_v10, %v3011_v54  ;;  %v3023_v7 = vmax.f32 %v3019_v21, %v3021_v31  ;;  %v4033_v54 = vshrl.u32 %v4032_v52, 7  ;;  %v13843_v28 = vld [vmem:[#allocation16 + $0x144] ss:$8 sps:$4 sm:$0xff]   ;;  %v15571_v52 = vld [vmem:[#allocation13 + $0xb4] ss:$8 sps:$4 sm:$0xff]  }
 0x2ec   :  { %v3468_v4 = vpop.f32.mrf.mxu0 }
 0x2ed   :  { %v3022_v3 = vmul.f32 0.1, %v3020_v62  ;;  %v15503_v31 = vsub.s32 1, %v4033_v54 }
 0x2ee   :  { %v13427_v40 = vpop.f32.mrf.mxu0 }
 0x2ef   :  { %v3024_v60 = vmax.f32 %v3020_v62, %v3022_v3  ;;  %16544 = vst [vmem:[#allocation26_spill] sm:$0xff] %v15503_v31  ;;  %v13841_v62 = vld [vmem:[#allocation16 + $0x140] ss:$8 sps:$4 sm:$0xff]   ;;  %v15505_v40 = vsub.s32 0, %v4033_v54  ;;  %v15586_v54 = vld [vmem:[#allocation13 + $0x90] ss:$8 sps:$4 sm:$0xff]  }
 0x2f0   :  { %v3471_v24 = vpop.f32.mrf.mxu0 }
 0x2f1   :  { %v12796_v45 = vpack.c.bf16 %v3024_v60, %v3023_v7  ;;  %16545 = vst [vmem:[#allocation27_spill] sm:$0xff] %v15505_v40  ;;  %v4030_v60 = vld [vmem:[#allocation15] sm:$0x3] }
 0x2f2   :  { %v13428_v36 = vpop.f32.mrf.mxu0 }
 0x2f3   :  { %12816 = vst [vmem:[#allocation3 + $0x48] sm:$0xff] %v12796_v45   ;;  %v4039_v36 = vrot.slane %v4030_v60, %v15503_v31 }
 0x2f4   :  { %v3194_v8 = vpop.f32.mrf.mxu1 }
 0x2f5   :  { %v3195_v11 = vadd.f32 %v3194_v8, %v3121_v23 }
 0x2f6   :  { %v13391_v51 = vpop.f32.mrf.mxu1 }
 0x2f7   :  { %v3284_v25 = vadd.f32 %v3277_v58, %v3195_v11  ;;  %v4035_v51 = vrot.slane %v4030_v60, %v15505_v40  ;;  %v15601_v60 = vld [vmem:[#allocation13 + $0x64] ss:$8 sps:$4 sm:$0xff]  }
 0x2f8   :  { %v3197_v26 = vpop.f32.mrf.mxu1 }
 0x2f9   :  { %v3293_v56 = vadd.f32 %v15485_v10, %v3284_v25  ;;  %v3198_v14 = vadd.f32 %v3197_v26, %v3124_v47 }
 0x2fa   :  { %v13392_v15 = vpop.f32.mrf.mxu1 }
 0x2fb   :  { %v3285_v1 = vadd.f32 %v3280_v2, %v3198_v14  ;;  %v3295_v63 = vmul.f32 0.1, %v3293_v56  ;;  %v13832_v2 = vld [vmem:[#allocation16 + $0x170] ss:$8 sps:$4 sm:$0xff]  }
 0x2fc   :  { %4972 = vmatpush1.bf16.msra.mxu0 %v13832_v2  ;;  %v15546_v2 = vld [vmem:[#allocation13 + $0xf4] ss:$8 sps:$4 sm:$0xff]  }
 0x2fd   :  { %v3294_v59 = vadd.f32 %v15485_v10, %v3285_v1  ;;  %v3297_v20 = vmax.f32 %v3293_v56, %v3295_v63  ;;  %4973 = vmatprep.subr.bf16.mxu0 %v13837_v61  ;;  %v13781_v61 = vld [vmem:[#allocation3 + $0x18] sm:$0xff]  }
 0x2ff   :  { %v3296_v18 = vmul.f32 0.1, %v3294_v59 }
 0x300   :  { %4974 = vmatpush1.bf16.msra.mxu0 %v13835_v50  ;;  %v15555_v50 = vld [vmem:[#allocation13 + $0xe0] ss:$8 sps:$4 sm:$0xff]  }
 0x301   :  { %v3298_v22 = vmax.f32 %v3294_v59, %v3296_v18  ;;  %4975 = vmatprep.subr.bf16.mxu0 %v13840_v5  ;;  %v15574_v5 = vld [vmem:[#allocation13 + $0xb0] ss:$8 sps:$4 sm:$0xff]  }
 0x303   :  { %v12801_v38 = vpack.c.bf16 %v3298_v22, %v3297_v20 }
 0x304   :  { %v3395_v16 = vpop.f32.mrf.mxu1 }
 0x305   :  { %12817 = vst [vmem:[#allocation3 + $0x50] sm:$0xff] %v12801_v38   ;;  %v3469_v55 = vadd.f32 %v3468_v4, %v3395_v16 }
 0x306   :  { %v13415_v35 = vpop.f32.mrf.mxu1 }
 0x308   :  { %v3398_v37 = vpop.f32.mrf.mxu1 }
 0x309   :  { %v3472_v33 = vadd.f32 %v3471_v24, %v3398_v37 }
 0x30a   :  { %v13416_v41 = vpop.f32.mrf.mxu1 }
 0x30c   :  { %v3740_v58 = vpop.f32.mrf.mxu0 }
 0x30e   :  { %v3742_v32 = vpop.f32.mrf.mxu0 }
 0x310   :  { %v3744_v6 = vpop.f32.mrf.mxu0 }
 0x312   :  { %v3746_v21 = vpop.f32.mrf.mxu0 }
 0x314   :  { %v3551_v23 = vpop.f32.mrf.mxu1 }
 0x315   :  { %v3558_v27 = vadd.f32 %v3551_v23, %v3469_v55 }
 0x316   :  { %v13439_v44 = vpop.f32.mrf.mxu1 }
 0x317   :  { %v3567_v30 = vadd.f32 %v15485_v10, %v3558_v27 }
 0x318   :  { %v3554_v47 = vpop.f32.mrf.mxu1 }
 0x319   :  { %v3559_v53 = vadd.f32 %v3554_v47, %v3472_v33  ;;  %v3569_v39 = vmul.f32 0.1, %v3567_v30 }
 0x31a   :  { %v13440_v43 = vpop.f32.mrf.mxu1 }
 0x31b   :  { %v3568_v49 = vadd.f32 %v15485_v10, %v3559_v53  ;;  %v3571_v42 = vmax.f32 %v3567_v30, %v3569_v39  ;;  %v13838_v10 = vld [vmem:[#allocation16 + $0x150] ss:$8 sps:$4 sm:$0xff]   ;;  %v15511_v53 = vld [vmem:[#allocation13 + $0x164] ss:$8 sps:$4 sm:$0xff]   ;;  %v15514_v43 = vld [vmem:[#allocation13 + $0x160] ss:$8 sps:$4 sm:$0xff]  }
 0x31c   :  { %4976 = vmatpush1.bf16.msra.mxu0 %v13838_v10  ;;  %v15509_v30 = vld [vmem:[#allocation13 + $0x170] ss:$8 sps:$4 sm:$0xff]   ;;  %v15518_v39 = vld [vmem:[#allocation13 + $0x154] ss:$8 sps:$4 sm:$0xff]   ;;  %v15580_v10 = vld [vmem:[#allocation13 + $0xa0] ss:$8 sps:$4 sm:$0xff]  }
 0x31d   :  { %v3570_v57 = vmul.f32 0.1, %v3568_v49  ;;  %4977 = vmatprep.subr.bf16.mxu0 %v13843_v28  ;;  %v15589_v28 = vld [vmem:[#allocation13 + $0x84] ss:$8 sps:$4 sm:$0xff]  }
 0x31f   :  { %v3572_v0 = vmax.f32 %v3568_v49, %v3570_v57  ;;  %v15521_v49 = vld [vmem:[#allocation13 + $0x150] ss:$8 sps:$4 sm:$0xff]   ;;  %v15524_v57 = vld [vmem:[#allocation13 + $0x144] ss:$8 sps:$4 sm:$0xff]  }
 0x320   :  { %4978 = vmatpush1.bf16.msra.mxu0 %v13841_v62  ;;  %v15592_v62 = vld [vmem:[#allocation13 + $0x80] ss:$8 sps:$4 sm:$0xff]  }
 0x321   :  { %v12806_v48 = vpack.c.bf16 %v3572_v0, %v3571_v42  ;;  %v15527_v42 = vld [vmem:[#allocation13 + $0x140] ss:$8 sps:$4 sm:$0xff]   ;;  %v15530_v0 = vld [vmem:[#allocation13 + $0x134] ss:$8 sps:$4 sm:$0xff]  }
 0x323   :  { %12818 = vst [vmem:[#allocation3 + $0x58] sm:$0xff] %v12806_v48   ;;  %v15533_v48 = vld [vmem:[#allocation13 + $0x130] ss:$8 sps:$4 sm:$0xff]  }
 0x32c   :  { %v4017_v13 = vpop.f32.mrf.mxu0 }
 0x32e   :  { %v4019_v4 = vpop.f32.mrf.mxu0 }
 0x330   :  { %v4021_v8 = vpop.f32.mrf.mxu0 }
 0x332   :  { %v4023_v59 = vpop.f32.mrf.mxu0 }
 0x334   :  { %v3869_v3 = vpop.f32.mrf.mxu1 }
 0x335   :  { %v3870_v7 = vadd.f32 %v3869_v3, %v3740_v58  ;;  %v15536_v58 = vld [vmem:[#allocation13 + $0x124] ss:$8 sps:$4 sm:$0xff]   ;;  %v15598_v3 = vld [vmem:[#allocation13 + $0x70] ss:$8 sps:$4 sm:$0xff]  }
 0x336   :  { %v3871_v24 = vpop.f32.mrf.mxu1 }
 0x337   :  { %v3872_v45 = vadd.f32 %v3871_v24, %v3742_v32  ;;  %v4026_v11 = vadd.f32 %v4017_v13, %v3870_v7  ;;  %v15539_v32 = vld [vmem:[#allocation13 + $0x120] ss:$8 sps:$4 sm:$0xff]   ;;  %v15583_v13 = vld [vmem:[#allocation13 + $0x94] ss:$8 sps:$4 sm:$0xff]  }
 0x338   :  { %v3873_v25 = vpop.f32.mrf.mxu1  ;;  %v13806_v7 = vld [vmem:[#allocation3 + $0x18] sm:$0xff]   ;;  %v13846_v24 = vld [vmem:[#allocation16 + $0x134] ss:$8 sps:$4 sm:$0xff]  }
 0x339   :  { %v4027_v26 = vadd.f32 %v4019_v4, %v3872_v45  ;;  %v3874_v56 = vadd.f32 %v3873_v25, %v3744_v6  ;;  %v4042_v18 = vadd.f32 %v4035_v51, %v4026_v11  ;;  %v15552_v6 = vld [vmem:[#allocation13 + $0xe4] ss:$8 sps:$4 sm:$0xff]   ;;  %v15595_v4 = vld [vmem:[#allocation13 + $0x74] ss:$8 sps:$4 sm:$0xff]   ;;  %v15604_v45 = vld [vmem:[#allocation13 + $0x60] ss:$8 sps:$4 sm:$0xff]   ;;  %4979 = vmatprep.subr.bf16.mxu0 %v13846_v24 }
 0x33a   :  { %v3875_v14 = vpop.f32.mrf.mxu1  ;;  %v13849_v11 = vld [vmem:[#allocation16 + $0x124] ss:$8 sps:$4 sm:$0xff]   ;;  %v13847_v25 = vld [vmem:[#allocation16 + $0x120] ss:$8 sps:$4 sm:$0xff]   ;;  %v13870_v24 = vld [vmem:[#allocation16 + $0x1b4] ss:$8 sps:$4 sm:$0xff]  }
 0x33b   :  { %v4043_v15 = vadd.f32 %v4039_v36, %v4027_v26  ;;  %v4028_v1 = vadd.f32 %v4021_v8, %v3874_v56  ;;  %v3876_v63 = vadd.f32 %v3875_v14, %v3746_v21  ;;  %v4046_v37 = vmul.f32 0.1, %v4042_v18  ;;  %v15577_v21 = vld [vmem:[#allocation13 + $0xa4] ss:$8 sps:$4 sm:$0xff]   ;;  %v15608_v8 = vld [vmem:[#allocation13 + $0x54] ss:$8 sps:$4 sm:$0xff]  }
 0x33c   :  { %v15614_v26 = vld [vmem:[#allocation13 + $0x44] ss:$8 sps:$4 sm:$0xff]   ;;  %v13850_v56 = vld [vmem:[#allocation16 + $0x110] ss:$8 sps:$4 sm:$0xff]   ;;  %v13852_v14 = vld [vmem:[#allocation16 + $0x114] ss:$8 sps:$4 sm:$0xff]  }
 0x33d   :  { %v4044_v20 = vadd.f32 %v4035_v51, %v4028_v1  ;;  %v4029_v22 = vadd.f32 %v4023_v59, %v3876_v63  ;;  %v4047_v38 = vmul.f32 0.1, %v4043_v15  ;;  %v4050_v44 = vmax.f32 %v4042_v18, %v4046_v37  ;;  %v15611_v51 = vld [vmem:[#allocation13 + $0x50] ss:$8 sps:$4 sm:$0xff]   ;;  %v15617_v1 = vld [vmem:[#allocation13 + $0x40] ss:$8 sps:$4 sm:$0xff]  }
 0x33e   :  { %v15620_v63 = vld [vmem:[#allocation13 + $0x34] ss:$8 sps:$4 sm:$0xff]   ;;  %v13853_v59 = vld [vmem:[#allocation16 + $0x100] ss:$8 sps:$4 sm:$0xff]  }
 0x33f   :  { %v4048_v16 = vmul.f32 0.1, %v4044_v20  ;;  %v4045_v35 = vadd.f32 %v4039_v36, %v4029_v22  ;;  %v4051_v23 = vmax.f32 %v4043_v15, %v4047_v38  ;;  %v13844_v36 = vld [vmem:[#allocation16 + $0x130] ss:$8 sps:$4 sm:$0xff]   ;;  %v13855_v15 = vld [vmem:[#allocation16 + $0x104] ss:$8 sps:$4 sm:$0xff]  }
 0x340   :  { %4980 = vmatpush1.bf16.msra.mxu0 %v13844_v36  ;;  %16546 = vst [vmem:[#allocation28_spill] sm:$0xff] %v15620_v63  ;;  %v13858_v18 = vld [vmem:[#allocation16 + $0x1f4] ss:$8 sps:$4 sm:$0xff]   ;;  %v15626_v22 = vld [vmem:[#allocation13 + $0x24] ss:$8 sps:$4 sm:$0xff]  }
 0x341   :  { %v4049_v41 = vmul.f32 0.1, %v4045_v35  ;;  %v4052_v55 = vmax.f32 %v4044_v20, %v4048_v16  ;;  %4981 = vmatprep.subr.bf16.mxu0 %v13849_v11  ;;  %v15623_v20 = vld [vmem:[#allocation13 + $0x30] ss:$8 sps:$4 sm:$0xff]   ;;  %16548 = vst [vmem:[#allocation30_spill] sm:$0xff] %v15626_v22 }
 0x342   :  { %16547 = vst [vmem:[#allocation29_spill] sm:$0xff] %v15623_v20  ;;  %v13856_v38 = vld [vmem:[#allocation16 + $0x1f0] ss:$8 sps:$4 sm:$0xff]   ;;  %v13861_v16 = vld [vmem:[#allocation16 + $0x1e4] ss:$8 sps:$4 sm:$0xff]  }
 0x343   :  { %v4053_v27 = vmax.f32 %v4045_v35, %v4049_v41  ;;  %v4054_v47 = vpack.c.bf16 %v4052_v55, %v4050_v44  ;;  %v15629_v35 = vld [vmem:[#allocation13 + $0x20] ss:$8 sps:$4 sm:$0xff]   ;;  %v15632_v37 = vld [vmem:[#allocation13 + $0x14] ss:$8 sps:$4 sm:$0xff]  }
 0x344   :  { %4982 = vmatpush1.bf16.msra.mxu0 %v13847_v25  ;;  %16549 = vst [vmem:[#allocation31_spill] sm:$0xff] %v15629_v35  ;;  %16550 = vst [vmem:[#allocation32_spill] sm:$0xff] %v15632_v37  ;;  %v13859_v41 = vld [vmem:[#allocation16 + $0x1e0] ss:$8 sps:$4 sm:$0xff]   ;;  %v13864_v55 = vld [vmem:[#allocation16 + $0x1d4] ss:$8 sps:$4 sm:$0xff]  }
 0x345   :  { %v4055_v33 = vpack.c.bf16 %v4053_v27, %v4051_v23  ;;  %4983 = vmatprep.subr.bf16.mxu0 %v13852_v14  ;;  %v15635_v23 = vld [vmem:[#allocation13 + $0x10] ss:$8 sps:$4 sm:$0xff]   ;;  %v15638_v27 = vld [vmem:[#allocation13 + $0x4] ss:$8 sps:$4 sm:$0xff]  }
 0x346   :  { %16551 = vst [vmem:[#allocation33_spill] sm:$0xff] %v15635_v23  ;;  %16552 = vst [vmem:[#allocation34_spill] sm:$0xff] %v15638_v27  ;;  %v13862_v44 = vld [vmem:[#allocation16 + $0x1d0] ss:$8 sps:$4 sm:$0xff]   ;;  %v13873_v11 = vld [vmem:[#allocation16 + $0x1a4] ss:$8 sps:$4 sm:$0xff]  }
 0x347   :  { %4292 = vmatprep.mubr.bf16.mxu1 %v4055_v33  ;;  %v13867_v33 = vld [vmem:[#allocation16 + $0x1c4] ss:$8 sps:$4 sm:$0xff]   ;;  %v13868_v36 = vld [vmem:[#allocation16 + $0x1b0] ss:$8 sps:$4 sm:$0xff]   ;;  %v13871_v25 = vld [vmem:[#allocation16 + $0x1a0] ss:$8 sps:$4 sm:$0xff]  }
 0x348   :  { %4293 = vmatmul.mubr.bf16.vlgmr.msra.gmra.mxu1 %v4054_v47  ;;  %4984 = vmatpush1.bf16.msra.mxu0 %v13850_v56  ;;  %v15641_v47 = vld [vmem:[#allocation13] ss:$8 sps:$4 sm:$0xff]   ;;  %v13874_v14 = vld [vmem:[#allocation16 + $0x190] ss:$8 sps:$4 sm:$0xff]  }
 0x349   :  { %4706 = vmatpush1.bf16.msra.mxu1 %v15509_v30  ;;  %4737 = vmatprep.mubr.bf16.mxu1 %v16497_v19  ;;  %16553 = vst [vmem:[#allocation35_spill] sm:$0xff] %v15641_v47  ;;  %v13876_v56 = vld [vmem:[#allocation16 + $0x194] ss:$8 sps:$4 sm:$0xff]  }
 0x34a   :  { %4707 = vmatprep.subr.bf16.mxu1 %v15511_v53  ;;  %4985 = vmatprep.subr.bf16.mxu0 %v13855_v15  ;;  %v13879_v15 = vld [vmem:[#allocation16 + $0x184] ss:$8 sps:$4 sm:$0xff]  }
 0x34c   :  { %4986 = vmatpush1.bf16.msra.mxu0 %v13853_v59  ;;  %v13877_v59 = vld [vmem:[#allocation16 + $0x180] ss:$8 sps:$4 sm:$0xff]  }
 0x34d   :  { %4708 = vmatpush1.bf16.msra.mxu1 %v15514_v43  ;;  %4987 = vmatprep.subr.bf16.mxu0 %v13858_v18  ;;  %v4463_v18 = vpop.f32.mrf.mxu0 }
 0x34e   :  { %4709 = vmatprep.subr.bf16.mxu1 %v15518_v39 }
 0x350   :  { %4988 = vmatpush2.bf16.msra.mxu0 %v13856_v38  ;;  %v4465_v38 = vpop.f32.mrf.mxu0 }
 0x351   :  { %4710 = vmatpush1.bf16.msra.mxu1 %v15521_v49  ;;  %4989 = vmatprep.subr.bf16.mxu0 %v13861_v16 }
 0x352   :  { %4711 = vmatprep.subr.bf16.mxu1 %v15524_v57  ;;  %v4467_v16 = vpop.f32.mrf.mxu0 }
 0x354   :  { %4990 = vmatpush2.bf16.msra.mxu0 %v13859_v41 }
 0x355   :  { %4712 = vmatpush1.bf16.msra.mxu1 %v15527_v42  ;;  %4991 = vmatprep.subr.bf16.mxu0 %v13864_v55  ;;  %v13889_v55 = vld [vmem:[#allocation16 + $0x270] ss:$8 sps:$4 sm:$0xff]  }
 0x356   :  { %4713 = vmatprep.subr.bf16.mxu1 %v15530_v0 }
 0x358   :  { %4992 = vmatpush2.bf16.msra.mxu0 %v13862_v44  ;;  %v13891_v44 = vld [vmem:[#allocation16 + $0x274] ss:$8 sps:$4 sm:$0xff]  }
 0x359   :  { %4714 = vmatpush1.bf16.msra.mxu1 %v15533_v48  ;;  %4993 = vmatprep.subr.bf16.mxu0 %v13867_v33  ;;  %v13894_v33 = vld [vmem:[#allocation16 + $0x264] ss:$8 sps:$4 sm:$0xff]  }
 0x35a   :  { %4715 = vmatprep.subr.bf16.mxu1 %v15536_v58 }
 0x35d   :  { %4716 = vmatpush1.bf16.msra.mxu1 %v15539_v32 }
 0x35e   :  { %4717 = vmatprep.subr.bf16.mxu1 %v15384_v17  ;;  %v15559_v17 = vld [vmem:[#allocation13 + $0xd4] ss:$8 sps:$4 sm:$0xff]  }
 0x361   :  { %4718 = vmatpush1.bf16.msra.mxu1 %v15391_v29  ;;  %v15562_v29 = vld [vmem:[#allocation13 + $0xd0] ss:$8 sps:$4 sm:$0xff]  }
 0x362   :  { %4719 = vmatprep.subr.bf16.mxu1 %v15397_v34  ;;  %v15565_v34 = vld [vmem:[#allocation13 + $0xc4] ss:$8 sps:$4 sm:$0xff]  }
 0x365   :  { %4720 = vmatpush1.bf16.msra.mxu1 %v15404_v46  ;;  %v15568_v46 = vld [vmem:[#allocation13 + $0xc0] ss:$8 sps:$4 sm:$0xff]  }
 0x366   :  { %5148 = vmatprep.subr.bf16.mxu1 %v15546_v2 }
 0x368   :  { %4738 = vmatmul.mubr.bf16.vlgmr.msra.gmra.mxu1 %v13781_v61  ;;  %v13865_v61 = vld [vmem:[#allocation16 + $0x1c0] ss:$8 sps:$4 sm:$0xff]  }
 0x369   :  { %5149 = vmatpush1.bf16.msra.mxu1 %v15549_v9  ;;  %5180 = vmatprep.mubr.bf16.mxu1 %v16497_v19 }
 0x36a   :  { %5150 = vmatprep.subr.bf16.mxu1 %v15552_v6  ;;  %4994 = vmatpush2.bf16.msra.mxu0 %v13865_v61  ;;  %v4469_v61 = vpop.f32.mrf.mxu0 }
 0x36b   :  { %4995 = vmatprep.subr.bf16.mxu0 %v13870_v24 }
 0x36c   :  { %v4592_v24 = vpop.f32.mrf.mxu0 }
 0x36d   :  { %5151 = vmatpush1.bf16.msra.mxu1 %v15555_v50 }
 0x36e   :  { %5152 = vmatprep.subr.bf16.mxu1 %v15559_v17  ;;  %4996 = vmatpush2.bf16.msra.mxu0 %v13868_v36 }
 0x36f   :  { %4997 = vmatprep.subr.bf16.mxu0 %v13873_v11  ;;  %v13897_v11 = vld [vmem:[#allocation16 + $0x254] ss:$8 sps:$4 sm:$0xff]  }
 0x371   :  { %5153 = vmatpush1.bf16.msra.mxu1 %v15562_v29 }
 0x372   :  { %5154 = vmatprep.subr.bf16.mxu1 %v15565_v34  ;;  %4998 = vmatpush2.bf16.msra.mxu0 %v13871_v25  ;;  %v13895_v25 = vld [vmem:[#allocation16 + $0x250] ss:$8 sps:$4 sm:$0xff]  }
 0x373   :  { %4999 = vmatprep.subr.bf16.mxu0 %v13876_v56 }
 0x375   :  { %5155 = vmatpush1.bf16.msra.mxu1 %v15568_v46 }
 0x376   :  { %5156 = vmatprep.subr.bf16.mxu1 %v15571_v52  ;;  %5000 = vmatpush2.bf16.msra.mxu0 %v13874_v14  ;;  %v13900_v14 = vld [vmem:[#allocation16 + $0x244] ss:$8 sps:$4 sm:$0xff]  }
 0x377   :  { %5001 = vmatprep.subr.bf16.mxu0 %v13879_v15  ;;  %v13898_v15 = vld [vmem:[#allocation16 + $0x240] ss:$8 sps:$4 sm:$0xff]  }
 0x379   :  { %5157 = vmatpush1.bf16.msra.mxu1 %v15574_v5 }
 0x37a   :  { %5158 = vmatprep.subr.bf16.mxu1 %v15577_v21  ;;  %5002 = vmatpush2.bf16.msra.mxu0 %v13877_v59 }
 0x37b   :  { %5424 = vmatprep.subr.bf16.mxu0 %v15491_v12  ;;  %v4594_v12 = vpop.f32.mrf.mxu0 }
 0x37d   :  { %5159 = vmatpush1.bf16.msra.mxu1 %v15580_v10  ;;  %v4596_v59 = vpop.f32.mrf.mxu0 }
 0x37e   :  { %5160 = vmatprep.subr.bf16.mxu1 %v15583_v13 }
 0x381   :  { %5161 = vmatpush1.bf16.msra.mxu1 %v15586_v54 }
 0x382   :  { %5162 = vmatprep.subr.bf16.mxu1 %v15589_v28 }
 0x385   :  { %5163 = vmatpush1.bf16.msra.mxu1 %v15592_v62 }
 0x386   :  { %5277 = vmatprep.subr.bf16.mxu1 %v15595_v4 }
 0x388   :  { %5181 = vmatmul.mubr.bf16.vlgmr.msra.gmra.mxu1 %v13806_v7  ;;  %v13831_v7 = vld [vmem:[#allocation3 + $0x10] sm:$0xff]  }
 0x389   :  { %5278 = vmatpush1.bf16.msra.mxu1 %v15598_v3  ;;  %5309 = vmatprep.mubr.bf16.mxu1 %v16497_v19 }
 0x38a   :  { %5279 = vmatprep.subr.bf16.mxu1 %v15601_v60 }
 0x38d   :  { %5280 = vmatpush1.bf16.msra.mxu1 %v15604_v45 }
 0x38e   :  { %5281 = vmatprep.subr.bf16.mxu1 %v15608_v8 }
 0x391   :  { %5282 = vmatpush1.bf16.msra.mxu1 %v15611_v51 }
 0x392   :  { %5283 = vmatprep.subr.bf16.mxu1 %v15614_v26 }
 0x395   :  { %5284 = vmatpush1.bf16.msra.mxu1 %v15617_v1 }
 0x396   :  { %5285 = vmatprep.subr.bf16.mxu1 %v15620_v63 }
 0x399   :  { %5286 = vmatpush1.bf16.msra.mxu1 %v15623_v20 }
 0x39a   :  { %5287 = vmatprep.subr.bf16.mxu1 %v15626_v22 }
 0x39d   :  { %5288 = vmatpush1.bf16.msra.mxu1 %v15629_v35 }
 0x39e   :  { %5289 = vmatprep.subr.bf16.mxu1 %v15632_v37 }
 0x3a1   :  { %5290 = vmatpush1.bf16.msra.mxu1 %v15635_v23 }
 0x3a2   :  { %5291 = vmatprep.subr.bf16.mxu1 %v15638_v27 }
 0x3a5   :  { %5292 = vmatpush1.bf16.msra.mxu1 %v15641_v47  ;;  %v4595_v47 = vadd.f32 %v4594_v12, %v4465_v38 }
 0x3a6   :  { %5690 = vmatprep.subr.bf16.mxu1 %v13891_v44  ;;  %v4593_v44 = vadd.f32 %v4592_v24, %v4463_v18 }
 0x3a8   :  { %5310 = vmatmul.mubr.bf16.vlgmr.msra.gmra.mxu1 %v13831_v7  ;;  %v13892_v7 = vld [vmem:[#allocation16 + $0x260] ss:$8 sps:$4 sm:$0xff]  }
 0x3a9   :  { %5691 = vmatpush1.bf16.msra.mxu1 %v13889_v55  ;;  %v4752_v55 = vld [vmem:[#allocation15] sm:$0x3] }
 0x3aa   :  { %5692 = vmatprep.subr.bf16.mxu1 %v13894_v33  ;;  %v4761_v33 = vrot.slane %v4752_v55, %v15503_v31  ;;  %v4757_v27 = vrot.slane %v4752_v55, %v15505_v40 }
 0x3ad   :  { %5693 = vmatpush1.bf16.msra.mxu1 %v13892_v7  ;;  %v4598_v7 = vpop.f32.mrf.mxu0 }
 0x3ae   :  { %5694 = vmatprep.subr.bf16.mxu1 %v13897_v11  ;;  %v4597_v11 = vadd.f32 %v4596_v59, %v4467_v16  ;;  %v4599_v37 = vadd.f32 %v4598_v7, %v4469_v61 }
 0x3b1   :  { %5695 = vmatpush1.bf16.msra.mxu1 %v13895_v25 }
 0x3b2   :  { %5696 = vmatprep.subr.bf16.mxu1 %v13900_v14 }
 0x3b5   :  { %5697 = vmatpush1.bf16.msra.mxu1 %v13898_v15 }
 0x408   :  { %v15646_v41 = vpop.f32.mrf.mxu1 }
 0x409   :  { %16554 = vst [vmem:[#allocation36_spill] sm:$0xff] %v15646_v41 }
 0x40a   :  { %v15648_v36 = vpop.f32.mrf.mxu1 }
 0x40b   :  { %16555 = vst [vmem:[#allocation37_spill] sm:$0xff] %v15648_v36 }
 0x40c   :  { %v15650_v56 = vpop.f32.mrf.mxu1 }
 0x40d   :  { %16556 = vst [vmem:[#allocation38_spill] sm:$0xff] %v15650_v56 }
 0x40e   :  { %v15652_v19 = vpop.f32.mrf.mxu1 }
 0x40f   :  { %16557 = vst [vmem:[#allocation39_spill] sm:$0xff] %v15652_v19 }
 0x410   :  { %v16569_v61 = vld [vmem:[#allocation36_spill] sm:$0xff] }
 0x412   :  { %v16570_v59 = vld [vmem:[#allocation37_spill] sm:$0xff] }
 0x428   :  { %v4739_v41 = vpop.f32.mrf.mxu1 }
 0x429   :  { %v4748_v36 = vadd.f32 %v4739_v41, %v4593_v44 }
 0x42a   :  { %v4741_v56 = vpop.f32.mrf.mxu1 }
 0x42b   :  { %v4749_v23 = vadd.f32 %v4741_v56, %v4595_v47  ;;  %v4764_v19 = vadd.f32 %v4757_v27, %v4748_v36 }
 0x42c   :  { %v4743_v25 = vpop.f32.mrf.mxu1 }
 0x42d   :  { %v4765_v35 = vadd.f32 %v4761_v33, %v4749_v23  ;;  %v4750_v22 = vadd.f32 %v4743_v25, %v4597_v11  ;;  %v4768_v31 = vmul.f32 0.1, %v4764_v19  ;;  %v16558_v23 = vmov 0   ;;  %v16571_v25 = vld [vmem:[#allocation38_spill] sm:$0xff] }
 0x42e   :  { %v4745_v14 = vpop.f32.mrf.mxu1 }
 0x42f   :  { %v4766_v20 = vadd.f32 %v4757_v27, %v4750_v22  ;;  %v4751_v18 = vadd.f32 %v4745_v14, %v4599_v37  ;;  %v4769_v24 = vmul.f32 0.1, %v4765_v35  ;;  %v4772_v55 = vmax.f32 %v4764_v19, %v4768_v31  ;;  %v15667_v19 = vld [vmem:[#allocation13 + $0x114] ss:$8 sps:$4 sm:$0xff]   ;;  %v15670_v31 = vld [vmem:[#allocation13 + $0x110] ss:$8 sps:$4 sm:$0xff]  }
 0x430   :  { %v4088_v22 = vld [vmem:[#allocation18] sm:$0x3]  ;;  %v16568_v27 = vld [vmem:[#allocation26_spill] sm:$0xff] }
 0x431   :  { %v4770_v38 = vmul.f32 0.1, %v4766_v20  ;;  %v4767_v12 = vadd.f32 %v4761_v33, %v4751_v18  ;;  %v4773_v41 = vmax.f32 %v4765_v35, %v4769_v24  ;;  %v16567_v35 = vld [vmem:[#allocation27_spill] sm:$0xff]  ;;  %v4097_v47 = vrot.slane %v4088_v22, %v16568_v27 }
 0x432   :  { %v4093_v37 = vrot.slane %v4088_v22, %v16567_v35 }
 0x433   :  { %v4771_v15 = vmul.f32 0.1, %v4767_v12  ;;  %v4774_v63 = vmax.f32 %v4766_v20, %v4770_v38  ;;  %v15714_v20 = vld [vmem:[#allocation13 + $0x174] ss:$8 sps:$4 sm:$0xff]   ;;  %v4297_v33 = vadd.f32 %v16570_v59, %v4097_v47  ;;  %v16572_v38 = vld [vmem:[#allocation39_spill] sm:$0xff] }
 0x434   :  { %v4295_v36 = vadd.f32 %v16569_v61, %v4093_v37  ;;  %v4299_v14 = vadd.f32 %v16571_v25, %v4093_v37  ;;  %v15735_v25 = vld [vmem:[#allocation13 + $0x164] ss:$8 sps:$4 sm:$0xff]  }
 0x435   :  { %v4775_v44 = vmax.f32 %v4767_v12, %v4771_v15  ;;  %v4776_v16 = vpack.c.bf16 %v4774_v63, %v4772_v55  ;;  %v13934_v63 = vld [vmem:[#allocation16 + $0x280] ss:$8 sps:$4 sm:$0xff]   ;;  %v4301_v12 = vadd.f32 %v16572_v38, %v4097_v47  ;;  %v15745_v38 = vld [vmem:[#allocation13 + $0x150] ss:$8 sps:$4 sm:$0xff]  }
 0x437   :  { %v4777_v40 = vpack.c.bf16 %v4775_v44, %v4773_v41 }
 0x439   :  { %5003 = vmatprep.mubr.bf16.mxu0 %v4777_v40  ;;  %v15673_v40 = vld [vmem:[#allocation13 + $0x104] ss:$8 sps:$4 sm:$0xff]  }
 0x43a   :  { %5004 = vmatmul.mubr.bf16.vlgmr.msra.gmra.mxu0 %v4776_v16 }
 0x43b   :  { %5425 = vmatpush1.bf16.msra.mxu0 %v15509_v30  ;;  %5456 = vmatprep.mubr.bf16.mxu0 %v16558_v23  ;;  %v15676_v30 = vld [vmem:[#allocation13 + $0x100] ss:$8 sps:$4 sm:$0xff]  }
 0x43c   :  { %5426 = vmatprep.subr.bf16.mxu0 %v15511_v53  ;;  %v13886_v53 = vld [vmem:[#allocation3 + $0x20] sm:$0xff]  }
 0x43f   :  { %5427 = vmatpush1.bf16.msra.mxu0 %v15514_v43  ;;  %v13887_v43 = vld [vmem:[#allocation3 + $0x20] sm:$0xff]  }
 0x440   :  { %5428 = vmatprep.subr.bf16.mxu0 %v15518_v39  ;;  %v13903_v39 = vld [vmem:[#allocation16 + $0x234] ss:$8 sps:$4 sm:$0xff]  }
 0x441   :  { %5698 = vmatprep.subr.bf16.mxu1 %v13903_v39  ;;  %v14008_v39 = vld [vmem:[#allocation16 + $0x374] ss:$8 sps:$4 sm:$0xff]  }
 0x443   :  { %5429 = vmatpush1.bf16.msra.mxu0 %v15521_v49  ;;  %v13901_v49 = vld [vmem:[#allocation16 + $0x230] ss:$8 sps:$4 sm:$0xff]  }
 0x444   :  { %5430 = vmatprep.subr.bf16.mxu0 %v15524_v57  ;;  %5699 = vmatpush1.bf16.msra.mxu1 %v13901_v49  ;;  %v13906_v57 = vld [vmem:[#allocation16 + $0x224] ss:$8 sps:$4 sm:$0xff]  }
 0x445   :  { %5700 = vmatprep.subr.bf16.mxu1 %v13906_v57  ;;  %v14011_v49 = vld [vmem:[#allocation16 + $0x364] ss:$8 sps:$4 sm:$0xff]  }
 0x447   :  { %5431 = vmatpush1.bf16.msra.mxu0 %v15527_v42  ;;  %v13904_v42 = vld [vmem:[#allocation16 + $0x220] ss:$8 sps:$4 sm:$0xff]  }
 0x448   :  { %5432 = vmatprep.subr.bf16.mxu0 %v15530_v0  ;;  %5701 = vmatpush1.bf16.msra.mxu1 %v13904_v42  ;;  %v13907_v0 = vld [vmem:[#allocation16 + $0x210] ss:$8 sps:$4 sm:$0xff]   ;;  %v5182_v55 = vpop.f32.mrf.mxu1  ;;  %v14009_v42 = vld [vmem:[#allocation16 + $0x360] ss:$8 sps:$4 sm:$0xff]  }
 0x44a   :  { %v5184_v16 = vpop.f32.mrf.mxu1 }
 0x44b   :  { %5433 = vmatpush1.bf16.msra.mxu0 %v15533_v48  ;;  %v13909_v48 = vld [vmem:[#allocation16 + $0x214] ss:$8 sps:$4 sm:$0xff]  }
 0x44c   :  { %5434 = vmatprep.subr.bf16.mxu0 %v15536_v58  ;;  %v13912_v58 = vld [vmem:[#allocation16 + $0x204] ss:$8 sps:$4 sm:$0xff]   ;;  %5702 = vmatprep.subr.bf16.mxu1 %v13909_v48  ;;  %v14014_v48 = vld [vmem:[#allocation16 + $0x354] ss:$8 sps:$4 sm:$0xff]  }
 0x44d   :  { %5703 = vmatpush1.bf16.msra.mxu1 %v13907_v0 }
 0x44e   :  { %5704 = vmatprep.subr.bf16.mxu1 %v13912_v58  ;;  %v14012_v58 = vld [vmem:[#allocation16 + $0x350] ss:$8 sps:$4 sm:$0xff]  }
 0x44f   :  { %5435 = vmatpush1.bf16.msra.mxu0 %v15539_v32  ;;  %v13910_v32 = vld [vmem:[#allocation16 + $0x200] ss:$8 sps:$4 sm:$0xff]  }
 0x450   :  { %5436 = vmatprep.subr.bf16.mxu0 %v15667_v19 }
 0x451   :  { %5705 = vmatpush1.bf16.msra.mxu1 %v13910_v32 }
 0x453   :  { %5437 = vmatpush1.bf16.msra.mxu0 %v15670_v31 }
 0x454   :  { %5438 = vmatprep.subr.bf16.mxu0 %v15673_v40 }
 0x457   :  { %5439 = vmatpush1.bf16.msra.mxu0 %v15676_v30 }
 0x458   :  { %5867 = vmatprep.subr.bf16.mxu0 %v15546_v2  ;;  %v13915_v2 = vld [vmem:[#allocation16 + $0x2f4] ss:$8 sps:$4 sm:$0xff]  }
 0x459   :  { %5706 = vmatprep.subr.bf16.mxu1 %v13915_v2  ;;  %v14017_v2 = vld [vmem:[#allocation16 + $0x344] ss:$8 sps:$4 sm:$0xff]  }
 0x45a   :  { %5457 = vmatmul.mubr.bf16.vlgmr.msra.gmra.mxu0 %v13886_v53  ;;  %v5186_v53 = vpop.f32.mrf.mxu1 }
 0x45b   :  { %5868 = vmatpush1.bf16.msra.mxu0 %v15549_v9  ;;  %5899 = vmatprep.mubr.bf16.mxu0 %v16558_v23  ;;  %v16559_v9 = vld [vmem:[#allocation28_spill] sm:$0xff] }
 0x45c   :  { %5869 = vmatprep.subr.bf16.mxu0 %v15552_v6  ;;  %v13913_v6 = vld [vmem:[#allocation16 + $0x2f0] ss:$8 sps:$4 sm:$0xff]   ;;  %v5188_v57 = vpop.f32.mrf.mxu1 }
 0x45d   :  { %5707 = vmatpush2.bf16.msra.mxu1 %v13913_v6 }
 0x45f   :  { %5870 = vmatpush1.bf16.msra.mxu0 %v15555_v50  ;;  %v13918_v50 = vld [vmem:[#allocation16 + $0x2e4] ss:$8 sps:$4 sm:$0xff]  }
 0x460   :  { %5871 = vmatprep.subr.bf16.mxu0 %v15559_v17  ;;  %v16560_v17 = vld [vmem:[#allocation29_spill] sm:$0xff]  ;;  %5708 = vmatprep.subr.bf16.mxu1 %v13918_v50 }
 0x461   :  { %v5471_v50 = vld [vmem:[#allocation15] sm:$0x3] }
 0x463   :  { %5872 = vmatpush1.bf16.msra.mxu0 %v15562_v29  ;;  %v16561_v29 = vld [vmem:[#allocation30_spill] sm:$0xff] }
 0x464   :  { %5873 = vmatprep.subr.bf16.mxu0 %v15565_v34  ;;  %v13916_v34 = vld [vmem:[#allocation16 + $0x2e0] ss:$8 sps:$4 sm:$0xff]  }
 0x465   :  { %5709 = vmatpush2.bf16.msra.mxu1 %v13916_v34 }
 0x467   :  { %5874 = vmatpush1.bf16.msra.mxu0 %v15568_v46  ;;  %v13921_v46 = vld [vmem:[#allocation16 + $0x2d4] ss:$8 sps:$4 sm:$0xff]  }
 0x468   :  { %5875 = vmatprep.subr.bf16.mxu0 %v15571_v52  ;;  %v16562_v52 = vld [vmem:[#allocation31_spill] sm:$0xff]  ;;  %5710 = vmatprep.subr.bf16.mxu1 %v13921_v46  ;;  %v5311_v0 = vpop.f32.mrf.mxu1  ;;  %v5480_v46 = vrot.slane %v5471_v50, %v16568_v27 }
 0x46a   :  { %v5313_v32 = vpop.f32.mrf.mxu1 }
 0x46b   :  { %5876 = vmatpush1.bf16.msra.mxu0 %v15574_v5  ;;  %v16563_v5 = vld [vmem:[#allocation32_spill] sm:$0xff]  ;;  %v5314_v34 = vadd.f32 %v5313_v32, %v5184_v16  ;;  %v15801_v32 = vld [vmem:[#allocation13 + $0xa4] ss:$8 sps:$4 sm:$0xff]  }
 0x46c   :  { %5877 = vmatprep.subr.bf16.mxu0 %v15577_v21  ;;  %v13919_v21 = vld [vmem:[#allocation16 + $0x2d0] ss:$8 sps:$4 sm:$0xff]   ;;  %v5315_v6 = vpop.f32.mrf.mxu1 }
 0x46d   :  { %5711 = vmatpush2.bf16.msra.mxu1 %v13919_v21  ;;  %v5476_v21 = vrot.slane %v5471_v50, %v16567_v35  ;;  %v15757_v16 = vld [vmem:[#allocation13 + $0x130] ss:$8 sps:$4 sm:$0xff]   ;;  %v15813_v50 = vld [vmem:[#allocation13 + $0x84] ss:$8 sps:$4 sm:$0xff]  }
 0x46f   :  { %5878 = vmatpush1.bf16.msra.mxu0 %v15580_v10  ;;  %v13924_v10 = vld [vmem:[#allocation16 + $0x2c4] ss:$8 sps:$4 sm:$0xff]  }
 0x470   :  { %5879 = vmatprep.subr.bf16.mxu0 %v15583_v13  ;;  %v16564_v13 = vld [vmem:[#allocation33_spill] sm:$0xff]  ;;  %5712 = vmatprep.subr.bf16.mxu1 %v13924_v10 }
 0x473   :  { %5880 = vmatpush1.bf16.msra.mxu0 %v15586_v54  ;;  %v16565_v54 = vld [vmem:[#allocation34_spill] sm:$0xff] }
 0x474   :  { %5881 = vmatprep.subr.bf16.mxu0 %v15589_v28  ;;  %v13922_v28 = vld [vmem:[#allocation16 + $0x2c0] ss:$8 sps:$4 sm:$0xff]  }
 0x475   :  { %5713 = vmatpush2.bf16.msra.mxu1 %v13922_v28 }
 0x477   :  { %5882 = vmatpush1.bf16.msra.mxu0 %v15592_v62  ;;  %v16566_v62 = vld [vmem:[#allocation35_spill] sm:$0xff] }
 0x478   :  { %5996 = vmatprep.subr.bf16.mxu0 %v15595_v4  ;;  %v13888_v4 = vld [vmem:[#allocation3 + $0x18] sm:$0xff]  }
 0x47a   :  { %5900 = vmatmul.mubr.bf16.vlgmr.msra.gmra.mxu0 %v13887_v43  ;;  %v14006_v43 = vld [vmem:[#allocation16 + $0x370] ss:$8 sps:$4 sm:$0xff]  }
 0x47b   :  { %5997 = vmatpush1.bf16.msra.mxu0 %v15598_v3  ;;  %6028 = vmatprep.mubr.bf16.mxu0 %v16558_v23  ;;  %v13927_v3 = vld [vmem:[#allocation16 + $0x2b4] ss:$8 sps:$4 sm:$0xff]  }
 0x47c   :  { %5998 = vmatprep.subr.bf16.mxu0 %v15601_v60  ;;  %v13925_v60 = vld [vmem:[#allocation16 + $0x2b0] ss:$8 sps:$4 sm:$0xff]   ;;  %5714 = vmatprep.subr.bf16.mxu1 %v13927_v3 }
 0x47d   :  { %5715 = vmatpush2.bf16.msra.mxu1 %v13925_v60 }
 0x47f   :  { %5999 = vmatpush1.bf16.msra.mxu0 %v15604_v45  ;;  %v13930_v45 = vld [vmem:[#allocation16 + $0x2a4] ss:$8 sps:$4 sm:$0xff]  }
 0x480   :  { %6000 = vmatprep.subr.bf16.mxu0 %v15608_v8  ;;  %v13928_v8 = vld [vmem:[#allocation16 + $0x2a0] ss:$8 sps:$4 sm:$0xff]   ;;  %5716 = vmatprep.subr.bf16.mxu1 %v13930_v45 }
 0x481   :  { %5717 = vmatpush2.bf16.msra.mxu1 %v13928_v8 }
 0x483   :  { %6001 = vmatpush1.bf16.msra.mxu0 %v15611_v51  ;;  %v13933_v51 = vld [vmem:[#allocation16 + $0x294] ss:$8 sps:$4 sm:$0xff]  }
 0x484   :  { %6002 = vmatprep.subr.bf16.mxu0 %v15614_v26  ;;  %v13931_v26 = vld [vmem:[#allocation16 + $0x290] ss:$8 sps:$4 sm:$0xff]   ;;  %5718 = vmatprep.subr.bf16.mxu1 %v13933_v51 }
 0x485   :  { %5719 = vmatpush2.bf16.msra.mxu1 %v13931_v26 }
 0x487   :  { %6003 = vmatpush1.bf16.msra.mxu0 %v15617_v1  ;;  %v13936_v1 = vld [vmem:[#allocation16 + $0x284] ss:$8 sps:$4 sm:$0xff]  }
 0x488   :  { %6004 = vmatprep.subr.bf16.mxu0 %v16559_v9  ;;  %5720 = vmatprep.subr.bf16.mxu1 %v13936_v1  ;;  %v14015_v9 = vld [vmem:[#allocation16 + $0x340] ss:$8 sps:$4 sm:$0xff]  }
 0x489   :  { %5721 = vmatpush2.bf16.msra.mxu1 %v13934_v63 }
 0x48a   :  { %6143 = vmatprep.subr.bf16.mxu1 %v15714_v20 }
 0x48b   :  { %6005 = vmatpush1.bf16.msra.mxu0 %v16560_v17  ;;  %v5312_v17 = vadd.f32 %v5311_v0, %v5182_v55  ;;  %v15754_v55 = vld [vmem:[#allocation13 + $0x134] ss:$8 sps:$4 sm:$0xff]   ;;  %v15779_v0 = vld [vmem:[#allocation13 + $0xe0] ss:$8 sps:$4 sm:$0xff]  }
 0x48c   :  { %6006 = vmatprep.subr.bf16.mxu0 %v16561_v29 }
 0x48f   :  { %6007 = vmatpush1.bf16.msra.mxu0 %v16562_v52  ;;  %v5317_v52 = vpop.f32.mrf.mxu1 }
 0x490   :  { %6008 = vmatprep.subr.bf16.mxu0 %v16563_v5 }
 0x493   :  { %6009 = vmatpush1.bf16.msra.mxu0 %v16564_v13  ;;  %v5316_v13 = vadd.f32 %v5315_v6, %v5186_v53  ;;  %v15760_v53 = vld [vmem:[#allocation13 + $0x124] ss:$8 sps:$4 sm:$0xff]   ;;  %v15810_v6 = vld [vmem:[#allocation13 + $0x90] ss:$8 sps:$4 sm:$0xff]  }
 0x494   :  { %6010 = vmatprep.subr.bf16.mxu0 %v16565_v54 }
 0x497   :  { %6011 = vmatpush1.bf16.msra.mxu0 %v16566_v62  ;;  %v5318_v62 = vadd.f32 %v5317_v52, %v5188_v57  ;;  %v13955_v57 = vld [vmem:[#allocation3 + $0x28] sm:$0xff]   ;;  %v15825_v52 = vld [vmem:[#allocation13 + $0x64] ss:$8 sps:$4 sm:$0xff]  }
 0x498   :  { %6409 = vmatprep.subr.bf16.mxu0 %v14008_v39  ;;  %v15770_v39 = vld [vmem:[#allocation13 + $0xf4] ss:$8 sps:$4 sm:$0xff]  }
 0x49a   :  { %6029 = vmatmul.mubr.bf16.vlgmr.msra.gmra.mxu0 %v13888_v4 }
 0x49b   :  { %6410 = vmatpush1.bf16.msra.mxu0 %v14006_v43  ;;  %v15763_v43 = vld [vmem:[#allocation13 + $0x120] ss:$8 sps:$4 sm:$0xff]  }
 0x49c   :  { %6411 = vmatprep.subr.bf16.mxu0 %v14011_v49  ;;  %v15773_v49 = vld [vmem:[#allocation13 + $0xf0] ss:$8 sps:$4 sm:$0xff]  }
 0x49f   :  { %6412 = vmatpush1.bf16.msra.mxu0 %v14009_v42  ;;  %v15776_v42 = vld [vmem:[#allocation13 + $0xe4] ss:$8 sps:$4 sm:$0xff]  }
 0x4a0   :  { %6413 = vmatprep.subr.bf16.mxu0 %v14014_v48  ;;  %v15795_v48 = vld [vmem:[#allocation13 + $0xb4] ss:$8 sps:$4 sm:$0xff]  }
 0x4a3   :  { %6414 = vmatpush1.bf16.msra.mxu0 %v14012_v58  ;;  %v15798_v58 = vld [vmem:[#allocation13 + $0xb0] ss:$8 sps:$4 sm:$0xff]  }
 0x4a4   :  { %6415 = vmatprep.subr.bf16.mxu0 %v14017_v2  ;;  %v15804_v2 = vld [vmem:[#allocation13 + $0xa0] ss:$8 sps:$4 sm:$0xff]  }
 0x4a7   :  { %6416 = vmatpush1.bf16.msra.mxu0 %v14015_v9  ;;  %v15807_v9 = vld [vmem:[#allocation13 + $0x94] ss:$8 sps:$4 sm:$0xff]  }
 0x4fa   :  { %v5005_v56 = vpop.f32.mrf.mxu0 }
 0x4fb   :  { %v15721_v7 = vadd.f32 %v5005_v56, %v4295_v36 }
 0x4fc   :  { %v5007_v11 = vpop.f32.mrf.mxu0 }
 0x4fd   :  { %v15724_v18 = vadd.f32 %v5007_v11, %v4297_v33  ;;  %v15733_v33 = vld [vmem:[#allocation13 + $0x170] ss:$8 sps:$4 sm:$0xff]  }
 0x4fe   :  { %v5009_v24 = vpop.f32.mrf.mxu0 }
 0x4ff   :  { %v15727_v15 = vadd.f32 %v5009_v24, %v4299_v14  ;;  %v15738_v14 = vld [vmem:[#allocation13 + $0x160] ss:$8 sps:$4 sm:$0xff]   ;;  %v15742_v24 = vld [vmem:[#allocation13 + $0x154] ss:$8 sps:$4 sm:$0xff]  }
 0x500   :  { %v5011_v41 = vpop.f32.mrf.mxu0 }
 0x501   :  { %v15729_v44 = vadd.f32 %v5011_v41, %v4301_v12  ;;  %v15748_v12 = vld [vmem:[#allocation13 + $0x144] ss:$8 sps:$4 sm:$0xff]   ;;  %v15751_v41 = vld [vmem:[#allocation13 + $0x140] ss:$8 sps:$4 sm:$0xff]  }
 0x51a   :  { %v5458_v29 = vpop.f32.mrf.mxu0 }
 0x51b   :  { %v5467_v5 = vadd.f32 %v5458_v29, %v5312_v17  ;;  %v15816_v17 = vld [vmem:[#allocation13 + $0x80] ss:$8 sps:$4 sm:$0xff]   ;;  %v15819_v29 = vld [vmem:[#allocation13 + $0x74] ss:$8 sps:$4 sm:$0xff]  }
 0x51c   :  { %v5460_v10 = vpop.f32.mrf.mxu0 }
 0x51d   :  { %v5468_v54 = vadd.f32 %v5460_v10, %v5314_v34  ;;  %v5483_v60 = vadd.f32 %v5476_v21, %v5467_v5  ;;  %v15822_v34 = vld [vmem:[#allocation13 + $0x70] ss:$8 sps:$4 sm:$0xff]   ;;  %v15828_v10 = vld [vmem:[#allocation13 + $0x60] ss:$8 sps:$4 sm:$0xff]  }
 0x51e   :  { %v5462_v28 = vpop.f32.mrf.mxu0  ;;  %v14020_v5 = vld [vmem:[#allocation16 + $0x334] ss:$8 sps:$4 sm:$0xff]  }
 0x51f   :  { %v5484_v4 = vadd.f32 %v5480_v46, %v5468_v54  ;;  %v5469_v3 = vadd.f32 %v5462_v28, %v5316_v13  ;;  %v5487_v22 = vmul.f32 0.1, %v5483_v60  ;;  %v15832_v13 = vld [vmem:[#allocation13 + $0x54] ss:$8 sps:$4 sm:$0xff]   ;;  %6417 = vmatprep.subr.bf16.mxu0 %v14020_v5  ;;  %v14023_v54 = vld [vmem:[#allocation16 + $0x324] ss:$8 sps:$4 sm:$0xff]  }
 0x520   :  { %v5464_v45 = vpop.f32.mrf.mxu0  ;;  %v14021_v28 = vld [vmem:[#allocation16 + $0x320] ss:$8 sps:$4 sm:$0xff]   ;;  %v14041_v5 = vld [vmem:[#allocation16 + $0x3c4] ss:$8 sps:$4 sm:$0xff]  }
 0x521   :  { %v5485_v8 = vadd.f32 %v5476_v21, %v5469_v3  ;;  %v5470_v51 = vadd.f32 %v5464_v45, %v5318_v62  ;;  %v5488_v26 = vmul.f32 0.1, %v5484_v4  ;;  %v5491_v56 = vmax.f32 %v5483_v60, %v5487_v22  ;;  %v14018_v21 = vld [vmem:[#allocation16 + $0x330] ss:$8 sps:$4 sm:$0xff]   ;;  %v14026_v60 = vld [vmem:[#allocation16 + $0x314] ss:$8 sps:$4 sm:$0xff]  }
 0x522   :  { %6418 = vmatpush1.bf16.msra.mxu0 %v14018_v21  ;;  %v15835_v62 = vld [vmem:[#allocation13 + $0x50] ss:$8 sps:$4 sm:$0xff]   ;;  %v15850_v22 = vld [vmem:[#allocation13 + $0x24] ss:$8 sps:$4 sm:$0xff]   ;;  %v15865_v21 = vld [vmem:[#allocation13] ss:$8 sps:$4 sm:$0xff]  }
 0x523   :  { %v5489_v1 = vmul.f32 0.1, %v5485_v8  ;;  %v5486_v63 = vadd.f32 %v5480_v46, %v5470_v51  ;;  %v5492_v61 = vmax.f32 %v5484_v4, %v5488_v26  ;;  %v13980_v46 = vld [vmem:[#allocation3 + $0x28] sm:$0xff]   ;;  %6419 = vmatprep.subr.bf16.mxu0 %v14023_v54  ;;  %v15838_v4 = vld [vmem:[#allocation13 + $0x44] ss:$8 sps:$4 sm:$0xff]   ;;  %16576 = vst [vmem:[#allocation31_spill] sm:$0xff] %v15850_v22 }
 0x524   :  { %v14024_v3 = vld [vmem:[#allocation16 + $0x310] ss:$8 sps:$4 sm:$0xff]   ;;  %v14029_v45 = vld [vmem:[#allocation16 + $0x304] ss:$8 sps:$4 sm:$0xff]   ;;  %v14027_v26 = vld [vmem:[#allocation16 + $0x300] ss:$8 sps:$4 sm:$0xff]  }
 0x525   :  { %v5490_v37 = vmul.f32 0.1, %v5486_v63  ;;  %v5493_v47 = vmax.f32 %v5485_v8, %v5489_v1  ;;  %v15841_v8 = vld [vmem:[#allocation13 + $0x40] ss:$8 sps:$4 sm:$0xff]   ;;  %v15844_v51 = vld [vmem:[#allocation13 + $0x34] ss:$8 sps:$4 sm:$0xff]  }
 0x526   :  { %6420 = vmatpush1.bf16.msra.mxu0 %v14021_v28  ;;  %16573 = vst [vmem:[#allocation28_spill] sm:$0xff] %v15841_v8  ;;  %16574 = vst [vmem:[#allocation29_spill] sm:$0xff] %v15844_v51  ;;  %v14032_v1 = vld [vmem:[#allocation16 + $0x3f4] ss:$8 sps:$4 sm:$0xff]   ;;  %v14039_v54 = vld [vmem:[#allocation16 + $0x3c0] ss:$8 sps:$4 sm:$0xff]  }
 0x527   :  { %v5494_v36 = vmax.f32 %v5486_v63, %v5490_v37  ;;  %v5495_v11 = vpack.c.bf16 %v5493_v47, %v5491_v56  ;;  %6421 = vmatprep.subr.bf16.mxu0 %v14026_v60  ;;  %v15847_v63 = vld [vmem:[#allocation13 + $0x30] ss:$8 sps:$4 sm:$0xff]   ;;  %v14033_v56 = vld [vmem:[#allocation16 + $0x3e0] ss:$8 sps:$4 sm:$0xff]   ;;  %16581 = vst [vmem:[#allocation36_spill] sm:$0xff] %v15865_v21 }
 0x528   :  { %16575 = vst [vmem:[#allocation30_spill] sm:$0xff] %v15847_v63  ;;  %v14030_v37 = vld [vmem:[#allocation16 + $0x3f0] ss:$8 sps:$4 sm:$0xff]   ;;  %v14035_v47 = vld [vmem:[#allocation16 + $0x3e4] ss:$8 sps:$4 sm:$0xff]  }
 0x529   :  { %v5496_v59 = vpack.c.bf16 %v5494_v36, %v5492_v61  ;;  %v15853_v61 = vld [vmem:[#allocation13 + $0x20] ss:$8 sps:$4 sm:$0xff]   ;;  %v15856_v36 = vld [vmem:[#allocation13 + $0x14] ss:$8 sps:$4 sm:$0xff]  }
 0x52a   :  { %6422 = vmatpush1.bf16.msra.mxu0 %v14024_v3  ;;  %16577 = vst [vmem:[#allocation32_spill] sm:$0xff] %v15853_v61  ;;  %16578 = vst [vmem:[#allocation33_spill] sm:$0xff] %v15856_v36  ;;  %v14005_v28 = vld [vmem:[#allocation3 + $0x20] sm:$0xff]  }
 0x52b   :  { %5722 = vmatprep.mubr.bf16.mxu1 %v5496_v59  ;;  %6423 = vmatprep.subr.bf16.mxu0 %v14029_v45  ;;  %v14038_v59 = vld [vmem:[#allocation16 + $0x3d4] ss:$8 sps:$4 sm:$0xff]   ;;  %v14042_v60 = vld [vmem:[#allocation16 + $0x3b0] ss:$8 sps:$4 sm:$0xff]   ;;  %v14047_v45 = vld [vmem:[#allocation16 + $0x3a4] ss:$8 sps:$4 sm:$0xff]  }
 0x52c   :  { %5723 = vmatmul.mubr.bf16.vlgmr.msra.gmra.mxu1 %v5495_v11  ;;  %v15859_v11 = vld [vmem:[#allocation13 + $0x10] ss:$8 sps:$4 sm:$0xff]  }
 0x52d   :  { %6144 = vmatpush1.bf16.msra.mxu1 %v15733_v33  ;;  %6175 = vmatprep.mubr.bf16.mxu1 %v16558_v23  ;;  %16579 = vst [vmem:[#allocation34_spill] sm:$0xff] %v15859_v11  ;;  %v14044_v3 = vld [vmem:[#allocation16 + $0x3b4] ss:$8 sps:$4 sm:$0xff]  }
 0x52e   :  { %6145 = vmatprep.subr.bf16.mxu1 %v15735_v25  ;;  %6424 = vmatpush1.bf16.msra.mxu0 %v14027_v26  ;;  %v14045_v26 = vld [vmem:[#allocation16 + $0x3a0] ss:$8 sps:$4 sm:$0xff]  }
 0x52f   :  { %6425 = vmatprep.subr.bf16.mxu0 %v14032_v1  ;;  %v14050_v1 = vld [vmem:[#allocation16 + $0x394] ss:$8 sps:$4 sm:$0xff]  }
 0x531   :  { %6146 = vmatpush1.bf16.msra.mxu1 %v15738_v14 }
 0x532   :  { %6147 = vmatprep.subr.bf16.mxu1 %v15742_v24  ;;  %6426 = vmatpush2.bf16.msra.mxu0 %v14030_v37  ;;  %v14048_v37 = vld [vmem:[#allocation16 + $0x390] ss:$8 sps:$4 sm:$0xff]  }
 0x533   :  { %6427 = vmatprep.subr.bf16.mxu0 %v14035_v47  ;;  %v14053_v47 = vld [vmem:[#allocation16 + $0x384] ss:$8 sps:$4 sm:$0xff]  }
 0x535   :  { %6148 = vmatpush1.bf16.msra.mxu1 %v15745_v38 }
 0x536   :  { %6149 = vmatprep.subr.bf16.mxu1 %v15748_v12  ;;  %6428 = vmatpush2.bf16.msra.mxu0 %v14033_v56  ;;  %v14051_v56 = vld [vmem:[#allocation16 + $0x380] ss:$8 sps:$4 sm:$0xff]  }
 0x537   :  { %6429 = vmatprep.subr.bf16.mxu0 %v14038_v59 }
 0x539   :  { %6150 = vmatpush1.bf16.msra.mxu1 %v15751_v41 }
 0x53a   :  { %6151 = vmatprep.subr.bf16.mxu1 %v15754_v55 }
 0x53d   :  { %6152 = vmatpush1.bf16.msra.mxu1 %v15757_v16 }
 0x53e   :  { %6153 = vmatprep.subr.bf16.mxu1 %v15760_v53 }
 0x541   :  { %6154 = vmatpush1.bf16.msra.mxu1 %v15763_v43 }
 0x542   :  { %6155 = vmatprep.subr.bf16.mxu1 %v15667_v19  ;;  %v15783_v19 = vld [vmem:[#allocation13 + $0xd4] ss:$8 sps:$4 sm:$0xff]  }
 0x545   :  { %6156 = vmatpush1.bf16.msra.mxu1 %v15670_v31  ;;  %v15786_v31 = vld [vmem:[#allocation13 + $0xd0] ss:$8 sps:$4 sm:$0xff]  }
 0x546   :  { %6157 = vmatprep.subr.bf16.mxu1 %v15673_v40  ;;  %v15789_v40 = vld [vmem:[#allocation13 + $0xc4] ss:$8 sps:$4 sm:$0xff]  }
 0x549   :  { %6158 = vmatpush1.bf16.msra.mxu1 %v15676_v30  ;;  %v15792_v30 = vld [vmem:[#allocation13 + $0xc0] ss:$8 sps:$4 sm:$0xff]  }
 0x54a   :  { %6586 = vmatprep.subr.bf16.mxu1 %v15770_v39 }
 0x54c   :  { %6176 = vmatmul.mubr.bf16.vlgmr.msra.gmra.mxu1 %v13955_v57  ;;  %v15862_v57 = vld [vmem:[#allocation13 + $0x4] ss:$8 sps:$4 sm:$0xff]  }
 0x54d   :  { %6587 = vmatpush1.bf16.msra.mxu1 %v15773_v49  ;;  %6618 = vmatprep.mubr.bf16.mxu1 %v16558_v23  ;;  %16580 = vst [vmem:[#allocation35_spill] sm:$0xff] %v15862_v57 }
 0x54e   :  { %6588 = vmatprep.subr.bf16.mxu1 %v15776_v42 }
 0x551   :  { %6589 = vmatpush1.bf16.msra.mxu1 %v15779_v0 }
 0x552   :  { %6590 = vmatprep.subr.bf16.mxu1 %v15783_v19 }
 0x555   :  { %6591 = vmatpush1.bf16.msra.mxu1 %v15786_v31 }
 0x556   :  { %6592 = vmatprep.subr.bf16.mxu1 %v15789_v40 }
 0x559   :  { %6593 = vmatpush1.bf16.msra.mxu1 %v15792_v30 }
 0x55a   :  { %6594 = vmatprep.subr.bf16.mxu1 %v15795_v48 }
 0x55d   :  { %6595 = vmatpush1.bf16.msra.mxu1 %v15798_v58 }
 0x55e   :  { %6596 = vmatprep.subr.bf16.mxu1 %v15801_v32 }
 0x561   :  { %6597 = vmatpush1.bf16.msra.mxu1 %v15804_v2 }
 0x562   :  { %6598 = vmatprep.subr.bf16.mxu1 %v15807_v9 }
 0x565   :  { %6599 = vmatpush1.bf16.msra.mxu1 %v15810_v6 }
 0x566   :  { %6600 = vmatprep.subr.bf16.mxu1 %v15813_v50 }
 0x569   :  { %6601 = vmatpush1.bf16.msra.mxu1 %v15816_v17 }
 0x56a   :  { %6715 = vmatprep.subr.bf16.mxu1 %v15819_v29 }
 0x56c   :  { %6619 = vmatmul.mubr.bf16.vlgmr.msra.gmra.mxu1 %v13980_v46  ;;  %v14036_v46 = vld [vmem:[#allocation16 + $0x3d0] ss:$8 sps:$4 sm:$0xff]  }
 0x56d   :  { %6716 = vmatpush1.bf16.msra.mxu1 %v15822_v34  ;;  %6747 = vmatprep.mubr.bf16.mxu1 %v16558_v23 }
 0x56e   :  { %6717 = vmatprep.subr.bf16.mxu1 %v15825_v52  ;;  %6430 = vmatpush2.bf16.msra.mxu0 %v14036_v46 }
 0x56f   :  { %6431 = vmatprep.subr.bf16.mxu0 %v14041_v5 }
 0x571   :  { %6718 = vmatpush1.bf16.msra.mxu1 %v15828_v10 }
 0x572   :  { %6719 = vmatprep.subr.bf16.mxu1 %v15832_v13  ;;  %6432 = vmatpush2.bf16.msra.mxu0 %v14039_v54 }
 0x573   :  { %6433 = vmatprep.subr.bf16.mxu0 %v14044_v3 }
 0x575   :  { %6720 = vmatpush1.bf16.msra.mxu1 %v15835_v62 }
 0x576   :  { %6721 = vmatprep.subr.bf16.mxu1 %v15838_v4  ;;  %6434 = vmatpush2.bf16.msra.mxu0 %v14042_v60 }
 0x577   :  { %6435 = vmatprep.subr.bf16.mxu0 %v14047_v45 }
 0x579   :  { %6722 = vmatpush1.bf16.msra.mxu1 %v15841_v8 }
 0x57a   :  { %6723 = vmatprep.subr.bf16.mxu1 %v15844_v51  ;;  %6436 = vmatpush2.bf16.msra.mxu0 %v14045_v26  ;;  %v5901_v26 = vpop.f32.mrf.mxu0 }
 0x57b   :  { %6437 = vmatprep.subr.bf16.mxu0 %v14050_v1 }
 0x57c   :  { %v5903_v1 = vpop.f32.mrf.mxu0 }
 0x57d   :  { %6724 = vmatpush1.bf16.msra.mxu1 %v15847_v63 }
 0x57e   :  { %6725 = vmatprep.subr.bf16.mxu1 %v15850_v22  ;;  %6438 = vmatpush2.bf16.msra.mxu0 %v14048_v37  ;;  %v5905_v37 = vpop.f32.mrf.mxu0 }
 0x57f   :  { %6439 = vmatprep.subr.bf16.mxu0 %v14053_v47  ;;  %v14065_v47 = vld [vmem:[#allocation16 + $0x474] ss:$8 sps:$4 sm:$0xff]  }
 0x581   :  { %6726 = vmatpush1.bf16.msra.mxu1 %v15853_v61 }
 0x582   :  { %6727 = vmatprep.subr.bf16.mxu1 %v15856_v36  ;;  %6440 = vmatpush2.bf16.msra.mxu0 %v14051_v56  ;;  %v14068_v56 = vld [vmem:[#allocation16 + $0x464] ss:$8 sps:$4 sm:$0xff]  }
 0x583   :  { %6862 = vmatprep.subr.bf16.mxu0 %v15714_v20  ;;  %v14063_v20 = vld [vmem:[#allocation16 + $0x470] ss:$8 sps:$4 sm:$0xff]  }
 0x585   :  { %6728 = vmatpush1.bf16.msra.mxu1 %v15859_v11 }
 0x586   :  { %6729 = vmatprep.subr.bf16.mxu1 %v15862_v57 }
 0x589   :  { %6730 = vmatpush1.bf16.msra.mxu1 %v15865_v21 }
 0x58a   :  { %7128 = vmatprep.subr.bf16.mxu1 %v14065_v47 }
 0x58c   :  { %6748 = vmatmul.mubr.bf16.vlgmr.msra.gmra.mxu1 %v14005_v28 }
 0x58d   :  { %7129 = vmatpush1.bf16.msra.mxu1 %v14063_v20 }
 0x58e   :  { %7130 = vmatprep.subr.bf16.mxu1 %v14068_v56 }
 0x5ec   :  { %v5724_v59 = vpop.f32.mrf.mxu1 }
 0x5ed   :  { %v15871_v46 = vadd.f32 %v5724_v59, %v15721_v7  ;;  %v5907_v7 = vpop.f32.mrf.mxu0  ;;  %v14066_v59 = vld [vmem:[#allocation16 + $0x460] ss:$8 sps:$4 sm:$0xff]  }
 0x5ee   :  { %v5726_v5 = vpop.f32.mrf.mxu1  ;;  %7131 = vmatpush1.bf16.msra.mxu1 %v14066_v59 }
 0x5ef   :  { %16582 = vst [vmem:[#allocation37_spill] sm:$0xff] %v15871_v46  ;;  %v15874_v54 = vadd.f32 %v5726_v5, %v15724_v18  ;;  %v6030_v18 = vpop.f32.mrf.mxu0  ;;  %v14071_v5 = vld [vmem:[#allocation16 + $0x454] ss:$8 sps:$4 sm:$0xff]  }
 0x5f0   :  { %v5728_v28 = vpop.f32.mrf.mxu1  ;;  %7132 = vmatprep.subr.bf16.mxu1 %v14071_v5 }
 0x5f1   :  { %16583 = vst [vmem:[#allocation38_spill] sm:$0xff] %v15874_v54  ;;  %v15877_v3 = vadd.f32 %v5728_v28, %v15727_v15  ;;  %v14069_v15 = vld [vmem:[#allocation16 + $0x450] ss:$8 sps:$4 sm:$0xff]   ;;  %v6032_v28 = vpop.f32.mrf.mxu0  ;;  %v6031_v54 = vadd.f32 %v6030_v18, %v5901_v26 }
 0x5f2   :  { %v5730_v60 = vpop.f32.mrf.mxu1  ;;  %7133 = vmatpush1.bf16.msra.mxu1 %v14069_v15  ;;  %v6033_v21 = vadd.f32 %v6032_v28, %v5903_v1 }
 0x5f3   :  { %16584 = vst [vmem:[#allocation39_spill] sm:$0xff] %v15877_v3  ;;  %v15880_v45 = vadd.f32 %v5730_v60, %v15729_v44  ;;  %v14074_v3 = vld [vmem:[#allocation16 + $0x444] ss:$8 sps:$4 sm:$0xff]   ;;  %v14072_v44 = vld [vmem:[#allocation16 + $0x440] ss:$8 sps:$4 sm:$0xff]   ;;  %v6034_v60 = vpop.f32.mrf.mxu0 }
 0x5f4   :  { %7134 = vmatprep.subr.bf16.mxu1 %v14074_v3  ;;  %v6035_v11 = vadd.f32 %v6034_v60, %v5905_v37 }
 0x5f5   :  { %16585 = vst [vmem:[#allocation40_spill] sm:$0xff] %v15880_v45  ;;  %v6190_v45 = vld [vmem:[#allocation15] sm:$0x3]  ;;  %v6036_v20 = vpop.f32.mrf.mxu0 }
 0x5f6   :  { %v6199_v47 = vrot.slane %v6190_v45, %v16568_v27  ;;  %7135 = vmatpush1.bf16.msra.mxu1 %v14072_v44  ;;  %v6195_v56 = vrot.slane %v6190_v45, %v16567_v35  ;;  %v6037_v61 = vadd.f32 %v6036_v20, %v5907_v7 }
 0x5f8   :  { %v16596_v7 = vld [vmem:[#allocation38_spill] sm:$0xff] }
 0x5fa   :  { %v16597_v20 = vld [vmem:[#allocation39_spill] sm:$0xff] }
 0x60c   :  { %v6177_v46 = vpop.f32.mrf.mxu1 }
 0x60d   :  { %v6186_v57 = vadd.f32 %v6177_v46, %v6031_v54 }
 0x60e   :  { %v6179_v59 = vpop.f32.mrf.mxu1 }
 0x60f   :  { %v6187_v36 = vadd.f32 %v6179_v59, %v6033_v21  ;;  %v6202_v63 = vadd.f32 %v6195_v56, %v6186_v57 }
 0x610   :  { %v6181_v5 = vpop.f32.mrf.mxu1 }
 0x611   :  { %v6203_v15 = vadd.f32 %v6199_v47, %v6187_v36  ;;  %v6188_v22 = vadd.f32 %v6181_v5, %v6035_v11  ;;  %v6206_v27 = vmul.f32 0.1, %v6202_v63  ;;  %v16595_v11 = vld [vmem:[#allocation37_spill] sm:$0xff]  ;;  %v16598_v5 = vld [vmem:[#allocation40_spill] sm:$0xff] }
 0x612   :  { %v6183_v3 = vpop.f32.mrf.mxu1 }
 0x613   :  { %v6204_v51 = vadd.f32 %v6195_v56, %v6188_v22  ;;  %v6189_v26 = vadd.f32 %v6183_v3, %v6037_v61  ;;  %v6207_v18 = vmul.f32 0.1, %v6203_v15  ;;  %v6210_v45 = vmax.f32 %v6202_v63, %v6206_v27  ;;  %v15898_v27 = vld [vmem:[#allocation13 + $0x110] ss:$8 sps:$4 sm:$0xff]   ;;  %v14108_v22 = vld [vmem:[#allocation16 + $0x480] ss:$8 sps:$4 sm:$0xff]  }
 0x614   :  { %v14110_v63 = vld [vmem:[#allocation16 + $0x484] ss:$8 sps:$4 sm:$0xff]   ;;  %v15942_v61 = vld [vmem:[#allocation13 + $0x174] ss:$8 sps:$4 sm:$0xff]  }
 0x615   :  { %v6208_v1 = vmul.f32 0.1, %v6204_v51  ;;  %v6205_v28 = vadd.f32 %v6199_v47, %v6189_v26  ;;  %v6211_v46 = vmax.f32 %v6203_v15, %v6207_v18 }
 0x617   :  { %v6209_v44 = vmul.f32 0.1, %v6205_v28  ;;  %v6212_v8 = vmax.f32 %v6204_v51, %v6208_v1  ;;  %v14105_v51 = vld [vmem:[#allocation16 + $0x490] ss:$8 sps:$4 sm:$0xff]  }
 0x618   :  { %v14180_v1 = vld [vmem:[#allocation16 + $0x570] ss:$8 sps:$4 sm:$0xff]  }
 0x619   :  { %v6213_v54 = vmax.f32 %v6205_v28, %v6209_v44  ;;  %v6214_v37 = vpack.c.bf16 %v6212_v8, %v6210_v45  ;;  %v14107_v8 = vld [vmem:[#allocation16 + $0x494] ss:$8 sps:$4 sm:$0xff]   ;;  %v14185_v44 = vld [vmem:[#allocation16 + $0x564] ss:$8 sps:$4 sm:$0xff]  }
 0x61a   :  { %v14182_v28 = vld [vmem:[#allocation16 + $0x574] ss:$8 sps:$4 sm:$0xff]  }
 0x61b   :  { %v6215_v35 = vpack.c.bf16 %v6213_v54, %v6211_v46  ;;  %v14183_v54 = vld [vmem:[#allocation16 + $0x560] ss:$8 sps:$4 sm:$0xff]  }
 0x61d   :  { %6441 = vmatprep.mubr.bf16.mxu0 %v6215_v35  ;;  %v15895_v35 = vld [vmem:[#allocation13 + $0x114] ss:$8 sps:$4 sm:$0xff]  }
 0x61e   :  { %6442 = vmatmul.mubr.bf16.vlgmr.msra.gmra.mxu0 %v6214_v37  ;;  %v14188_v37 = vld [vmem:[#allocation16 + $0x554] ss:$8 sps:$4 sm:$0xff]  }
 0x61f   :  { %6863 = vmatpush1.bf16.msra.mxu0 %v15733_v33  ;;  %6894 = vmatprep.mubr.bf16.mxu0 %v16558_v23  ;;  %v15901_v33 = vld [vmem:[#allocation13 + $0x104] ss:$8 sps:$4 sm:$0xff]  }
 0x620   :  { %6864 = vmatprep.subr.bf16.mxu0 %v15735_v25  ;;  %v15904_v25 = vld [vmem:[#allocation13 + $0x100] ss:$8 sps:$4 sm:$0xff]  }
 0x623   :  { %6865 = vmatpush1.bf16.msra.mxu0 %v15738_v14  ;;  %v14060_v14 = vld [vmem:[#allocation3 + $0x30] sm:$0xff]  }
 0x624   :  { %6866 = vmatprep.subr.bf16.mxu0 %v15742_v24  ;;  %v14061_v24 = vld [vmem:[#allocation3 + $0x30] sm:$0xff]  }
 0x627   :  { %6867 = vmatpush1.bf16.msra.mxu0 %v15745_v38  ;;  %v14077_v38 = vld [vmem:[#allocation16 + $0x434] ss:$8 sps:$4 sm:$0xff]  }
 0x628   :  { %6868 = vmatprep.subr.bf16.mxu0 %v15748_v12  ;;  %v14075_v12 = vld [vmem:[#allocation16 + $0x430] ss:$8 sps:$4 sm:$0xff]   ;;  %7136 = vmatprep.subr.bf16.mxu1 %v14077_v38  ;;  %v14191_v38 = vld [vmem:[#allocation16 + $0x544] ss:$8 sps:$4 sm:$0xff]  }
 0x629   :  { %7137 = vmatpush1.bf16.msra.mxu1 %v14075_v12  ;;  %v14189_v12 = vld [vmem:[#allocation16 + $0x540] ss:$8 sps:$4 sm:$0xff]  }
 0x62b   :  { %6869 = vmatpush1.bf16.msra.mxu0 %v15751_v41  ;;  %v14080_v41 = vld [vmem:[#allocation16 + $0x424] ss:$8 sps:$4 sm:$0xff]  }
 0x62c   :  { %6870 = vmatprep.subr.bf16.mxu0 %v15754_v55  ;;  %v14078_v55 = vld [vmem:[#allocation16 + $0x420] ss:$8 sps:$4 sm:$0xff]   ;;  %7138 = vmatprep.subr.bf16.mxu1 %v14080_v41  ;;  %v6620_v3 = vpop.f32.mrf.mxu1 }
 0x62d   :  { %7139 = vmatpush1.bf16.msra.mxu1 %v14078_v55  ;;  %v6909_v55 = vld [vmem:[#allocation15] sm:$0x3] }
 0x62e   :  { %v6622_v26 = vpop.f32.mrf.mxu1 }
 0x62f   :  { %6871 = vmatpush1.bf16.msra.mxu0 %v15757_v16  ;;  %v14081_v16 = vld [vmem:[#allocation16 + $0x410] ss:$8 sps:$4 sm:$0xff]  }
 0x630   :  { %6872 = vmatprep.subr.bf16.mxu0 %v15760_v53  ;;  %v14083_v53 = vld [vmem:[#allocation16 + $0x414] ss:$8 sps:$4 sm:$0xff]   ;;  %v6624_v18 = vpop.f32.mrf.mxu1 }
 0x631   :  { %7140 = vmatprep.subr.bf16.mxu1 %v14083_v53 }
 0x632   :  { %7141 = vmatpush1.bf16.msra.mxu1 %v14081_v16  ;;  %v6626_v46 = vpop.f32.mrf.mxu1 }
 0x633   :  { %6873 = vmatpush1.bf16.msra.mxu0 %v15763_v43  ;;  %v14086_v43 = vld [vmem:[#allocation16 + $0x404] ss:$8 sps:$4 sm:$0xff]  }
 0x634   :  { %6874 = vmatprep.subr.bf16.mxu0 %v15895_v35  ;;  %7142 = vmatprep.subr.bf16.mxu1 %v14086_v43 }
 0x637   :  { %6875 = vmatpush1.bf16.msra.mxu0 %v15898_v27 }
 0x638   :  { %6876 = vmatprep.subr.bf16.mxu0 %v15901_v33 }
 0x63b   :  { %6877 = vmatpush1.bf16.msra.mxu0 %v15904_v25 }
 0x63c   :  { %7305 = vmatprep.subr.bf16.mxu0 %v15770_v39  ;;  %v14084_v39 = vld [vmem:[#allocation16 + $0x400] ss:$8 sps:$4 sm:$0xff]  }
 0x63d   :  { %7143 = vmatpush1.bf16.msra.mxu1 %v14084_v39  ;;  %v16599_v39 = vld [vmem:[#allocation26_spill] sm:$0xff] }
 0x63e   :  { %6895 = vmatmul.mubr.bf16.vlgmr.msra.gmra.mxu0 %v14060_v14  ;;  %v14186_v14 = vld [vmem:[#allocation16 + $0x550] ss:$8 sps:$4 sm:$0xff]  }
 0x63f   :  { %7306 = vmatpush1.bf16.msra.mxu0 %v15773_v49  ;;  %7337 = vmatprep.mubr.bf16.mxu0 %v16558_v23  ;;  %v14089_v49 = vld [vmem:[#allocation16 + $0x4f4] ss:$8 sps:$4 sm:$0xff]  }
 0x640   :  { %7307 = vmatprep.subr.bf16.mxu0 %v15776_v42  ;;  %v16586_v42 = vld [vmem:[#allocation28_spill] sm:$0xff]  ;;  %7144 = vmatprep.subr.bf16.mxu1 %v14089_v49  ;;  %v6918_v49 = vrot.slane %v6909_v55, %v16599_v39 }
 0x643   :  { %7308 = vmatpush1.bf16.msra.mxu0 %v15779_v0  ;;  %v16587_v0 = vld [vmem:[#allocation29_spill] sm:$0xff] }
 0x644   :  { %7309 = vmatprep.subr.bf16.mxu0 %v15783_v19  ;;  %v14087_v19 = vld [vmem:[#allocation16 + $0x4f0] ss:$8 sps:$4 sm:$0xff]  }
 0x645   :  { %7145 = vmatpush2.bf16.msra.mxu1 %v14087_v19  ;;  %v16600_v19 = vld [vmem:[#allocation27_spill] sm:$0xff] }
 0x647   :  { %7310 = vmatpush1.bf16.msra.mxu0 %v15786_v31  ;;  %v14092_v31 = vld [vmem:[#allocation16 + $0x4e4] ss:$8 sps:$4 sm:$0xff]  }
 0x648   :  { %7311 = vmatprep.subr.bf16.mxu0 %v15789_v40  ;;  %v16588_v40 = vld [vmem:[#allocation30_spill] sm:$0xff]  ;;  %7146 = vmatprep.subr.bf16.mxu1 %v14092_v31  ;;  %v6914_v31 = vrot.slane %v6909_v55, %v16600_v19 }
 0x649   :  { %v16039_v55 = vld [vmem:[#allocation13 + $0x84] ss:$8 sps:$4 sm:$0xff]  }
 0x64b   :  { %7312 = vmatpush1.bf16.msra.mxu0 %v15792_v30  ;;  %v16589_v30 = vld [vmem:[#allocation31_spill] sm:$0xff] }
 0x64c   :  { %7313 = vmatprep.subr.bf16.mxu0 %v15795_v48  ;;  %v14090_v48 = vld [vmem:[#allocation16 + $0x4e0] ss:$8 sps:$4 sm:$0xff]   ;;  %v6749_v45 = vpop.f32.mrf.mxu1 }
 0x64d   :  { %7147 = vmatpush2.bf16.msra.mxu1 %v14090_v48  ;;  %v6750_v16 = vadd.f32 %v6749_v45, %v6620_v3  ;;  %v15980_v3 = vld [vmem:[#allocation13 + $0x134] ss:$8 sps:$4 sm:$0xff]   ;;  %v16005_v45 = vld [vmem:[#allocation13 + $0xe0] ss:$8 sps:$4 sm:$0xff]  }
 0x64f   :  { %7314 = vmatpush1.bf16.msra.mxu0 %v15798_v58  ;;  %v14095_v58 = vld [vmem:[#allocation16 + $0x4d4] ss:$8 sps:$4 sm:$0xff]  }
 0x650   :  { %7315 = vmatprep.subr.bf16.mxu0 %v15801_v32  ;;  %v16590_v32 = vld [vmem:[#allocation32_spill] sm:$0xff]  ;;  %7148 = vmatprep.subr.bf16.mxu1 %v14095_v58 }
 0x653   :  { %7316 = vmatpush1.bf16.msra.mxu0 %v15804_v2  ;;  %v16591_v2 = vld [vmem:[#allocation33_spill] sm:$0xff] }
 0x654   :  { %7317 = vmatprep.subr.bf16.mxu0 %v15807_v9  ;;  %v14093_v9 = vld [vmem:[#allocation16 + $0x4d0] ss:$8 sps:$4 sm:$0xff]  }
 0x655   :  { %7149 = vmatpush2.bf16.msra.mxu1 %v14093_v9 }
 0x657   :  { %7318 = vmatpush1.bf16.msra.mxu0 %v15810_v6  ;;  %v14098_v6 = vld [vmem:[#allocation16 + $0x4c4] ss:$8 sps:$4 sm:$0xff]  }
 0x658   :  { %7319 = vmatprep.subr.bf16.mxu0 %v15813_v50  ;;  %v16592_v50 = vld [vmem:[#allocation34_spill] sm:$0xff]  ;;  %7150 = vmatprep.subr.bf16.mxu1 %v14098_v6 }
 0x65b   :  { %7320 = vmatpush1.bf16.msra.mxu0 %v15816_v17  ;;  %v16593_v17 = vld [vmem:[#allocation35_spill] sm:$0xff] }
 0x65c   :  { %7434 = vmatprep.subr.bf16.mxu0 %v15819_v29  ;;  %v14096_v29 = vld [vmem:[#allocation16 + $0x4c0] ss:$8 sps:$4 sm:$0xff]  }
 0x65d   :  { %7151 = vmatpush2.bf16.msra.mxu1 %v14096_v29 }
 0x65e   :  { %7338 = vmatmul.mubr.bf16.vlgmr.msra.gmra.mxu0 %v14061_v24  ;;  %v6751_v24 = vpop.f32.mrf.mxu1 }
 0x65f   :  { %7435 = vmatpush1.bf16.msra.mxu0 %v15822_v34  ;;  %7466 = vmatprep.mubr.bf16.mxu0 %v16558_v23  ;;  %v16594_v34 = vld [vmem:[#allocation36_spill] sm:$0xff]  ;;  %v6752_v43 = vadd.f32 %v6751_v24, %v6622_v26  ;;  %v16027_v24 = vld [vmem:[#allocation13 + $0xa4] ss:$8 sps:$4 sm:$0xff]  }
 0x660   :  { %7436 = vmatprep.subr.bf16.mxu0 %v15825_v52  ;;  %v14062_v52 = vld [vmem:[#allocation3 + $0x28] sm:$0xff]   ;;  %v6753_v41 = vpop.f32.mrf.mxu1 }
 0x661   :  { %v15983_v26 = vld [vmem:[#allocation13 + $0x130] ss:$8 sps:$4 sm:$0xff]  }
 0x663   :  { %7437 = vmatpush1.bf16.msra.mxu0 %v15828_v10  ;;  %v14101_v10 = vld [vmem:[#allocation16 + $0x4b4] ss:$8 sps:$4 sm:$0xff]  }
 0x664   :  { %7438 = vmatprep.subr.bf16.mxu0 %v15832_v13  ;;  %v14099_v13 = vld [vmem:[#allocation16 + $0x4b0] ss:$8 sps:$4 sm:$0xff]   ;;  %7152 = vmatprep.subr.bf16.mxu1 %v14101_v10 }
 0x665   :  { %7153 = vmatpush2.bf16.msra.mxu1 %v14099_v13 }
 0x667   :  { %7439 = vmatpush1.bf16.msra.mxu0 %v15835_v62  ;;  %v14104_v62 = vld [vmem:[#allocation16 + $0x4a4] ss:$8 sps:$4 sm:$0xff]  }
 0x668   :  { %7440 = vmatprep.subr.bf16.mxu0 %v15838_v4  ;;  %v14102_v4 = vld [vmem:[#allocation16 + $0x4a0] ss:$8 sps:$4 sm:$0xff]   ;;  %7154 = vmatprep.subr.bf16.mxu1 %v14104_v62 }
 0x669   :  { %7155 = vmatpush2.bf16.msra.mxu1 %v14102_v4 }
 0x66a   :  { %7156 = vmatprep.subr.bf16.mxu1 %v14107_v8 }
 0x66b   :  { %7441 = vmatpush1.bf16.msra.mxu0 %v16586_v42  ;;  %v6755_v42 = vpop.f32.mrf.mxu1 }
 0x66c   :  { %7442 = vmatprep.subr.bf16.mxu0 %v16587_v0 }
 0x66d   :  { %7157 = vmatpush2.bf16.msra.mxu1 %v14105_v51 }
 0x66e   :  { %7158 = vmatprep.subr.bf16.mxu1 %v14110_v63 }
 0x66f   :  { %7443 = vmatpush1.bf16.msra.mxu0 %v16588_v40 }
 0x670   :  { %7444 = vmatprep.subr.bf16.mxu0 %v16589_v30  ;;  %v6754_v30 = vadd.f32 %v6753_v41, %v6624_v18  ;;  %v15986_v18 = vld [vmem:[#allocation13 + $0x124] ss:$8 sps:$4 sm:$0xff]   ;;  %v16036_v41 = vld [vmem:[#allocation13 + $0x90] ss:$8 sps:$4 sm:$0xff]  }
 0x671   :  { %7159 = vmatpush2.bf16.msra.mxu1 %v14108_v22 }
 0x672   :  { %7581 = vmatprep.subr.bf16.mxu1 %v15942_v61 }
 0x673   :  { %7445 = vmatpush1.bf16.msra.mxu0 %v16590_v32  ;;  %v6756_v32 = vadd.f32 %v6755_v42, %v6626_v46  ;;  %v14129_v46 = vld [vmem:[#allocation3 + $0x38] sm:$0xff]  }
 0x674   :  { %7446 = vmatprep.subr.bf16.mxu0 %v16591_v2  ;;  %v16051_v42 = vld [vmem:[#allocation13 + $0x64] ss:$8 sps:$4 sm:$0xff]  }
 0x677   :  { %7447 = vmatpush1.bf16.msra.mxu0 %v16592_v50 }
 0x678   :  { %7448 = vmatprep.subr.bf16.mxu0 %v16593_v17 }
 0x67b   :  { %7449 = vmatpush1.bf16.msra.mxu0 %v16594_v34 }
 0x67c   :  { %7847 = vmatprep.subr.bf16.mxu0 %v14182_v28  ;;  %v15996_v28 = vld [vmem:[#allocation13 + $0xf4] ss:$8 sps:$4 sm:$0xff]  }
 0x67e   :  { %7467 = vmatmul.mubr.bf16.vlgmr.msra.gmra.mxu0 %v14062_v52 }
 0x67f   :  { %7848 = vmatpush1.bf16.msra.mxu0 %v14180_v1  ;;  %v15989_v1 = vld [vmem:[#allocation13 + $0x120] ss:$8 sps:$4 sm:$0xff]  }
 0x680   :  { %7849 = vmatprep.subr.bf16.mxu0 %v14185_v44  ;;  %v15999_v44 = vld [vmem:[#allocation13 + $0xf0] ss:$8 sps:$4 sm:$0xff]  }
 0x683   :  { %7850 = vmatpush1.bf16.msra.mxu0 %v14183_v54  ;;  %v16002_v54 = vld [vmem:[#allocation13 + $0xe4] ss:$8 sps:$4 sm:$0xff]  }
 0x684   :  { %7851 = vmatprep.subr.bf16.mxu0 %v14188_v37  ;;  %v16021_v37 = vld [vmem:[#allocation13 + $0xb4] ss:$8 sps:$4 sm:$0xff]  }
 0x687   :  { %7852 = vmatpush1.bf16.msra.mxu0 %v14186_v14  ;;  %v16024_v14 = vld [vmem:[#allocation13 + $0xb0] ss:$8 sps:$4 sm:$0xff]  }
 0x688   :  { %7853 = vmatprep.subr.bf16.mxu0 %v14191_v38  ;;  %v16030_v38 = vld [vmem:[#allocation13 + $0xa0] ss:$8 sps:$4 sm:$0xff]  }
 0x68b   :  { %7854 = vmatpush1.bf16.msra.mxu0 %v14189_v12  ;;  %v16033_v12 = vld [vmem:[#allocation13 + $0x94] ss:$8 sps:$4 sm:$0xff]  }
 0x6de   :  { %v6443_v36 = vpop.f32.mrf.mxu0 }
 0x6df   :  { %v15946_v57 = vadd.f32 %v6443_v36, %v16595_v11  ;;  %v15959_v36 = vld [vmem:[#allocation13 + $0x170] ss:$8 sps:$4 sm:$0xff]  }
 0x6e0   :  { %v6445_v21 = vpop.f32.mrf.mxu0 }
 0x6e1   :  { %v15949_v60 = vadd.f32 %v6445_v21, %v16596_v7  ;;  %v15961_v21 = vld [vmem:[#allocation13 + $0x164] ss:$8 sps:$4 sm:$0xff]   ;;  %v15964_v7 = vld [vmem:[#allocation13 + $0x160] ss:$8 sps:$4 sm:$0xff]  }
 0x6e2   :  { %v6447_v47 = vpop.f32.mrf.mxu0 }
 0x6e3   :  { %v15952_v56 = vadd.f32 %v6447_v47, %v16597_v20  ;;  %v15968_v47 = vld [vmem:[#allocation13 + $0x154] ss:$8 sps:$4 sm:$0xff]   ;;  %v15971_v20 = vld [vmem:[#allocation13 + $0x150] ss:$8 sps:$4 sm:$0xff]  }
 0x6e4   :  { %v6449_v59 = vpop.f32.mrf.mxu0 }
 0x6e5   :  { %v15955_v15 = vadd.f32 %v6449_v59, %v16598_v5  ;;  %v15974_v59 = vld [vmem:[#allocation13 + $0x144] ss:$8 sps:$4 sm:$0xff]   ;;  %v15977_v5 = vld [vmem:[#allocation13 + $0x140] ss:$8 sps:$4 sm:$0xff]  }
 0x6fe   :  { %v6896_v53 = vpop.f32.mrf.mxu0 }
 0x6ff   :  { %v6905_v0 = vadd.f32 %v6896_v53, %v6750_v16  ;;  %v16042_v16 = vld [vmem:[#allocation13 + $0x80] ss:$8 sps:$4 sm:$0xff]   ;;  %v16045_v53 = vld [vmem:[#allocation13 + $0x74] ss:$8 sps:$4 sm:$0xff]  }
 0x700   :  { %v6898_v40 = vpop.f32.mrf.mxu0 }
 0x701   :  { %v6906_v48 = vadd.f32 %v6898_v40, %v6752_v43  ;;  %v6921_v6 = vadd.f32 %v6914_v31, %v6905_v0  ;;  %v16048_v43 = vld [vmem:[#allocation13 + $0x70] ss:$8 sps:$4 sm:$0xff]   ;;  %v16054_v40 = vld [vmem:[#allocation13 + $0x60] ss:$8 sps:$4 sm:$0xff]  }
 0x702   :  { %v6900_v58 = vpop.f32.mrf.mxu0  ;;  %v14194_v0 = vld [vmem:[#allocation16 + $0x534] ss:$8 sps:$4 sm:$0xff]  }
 0x703   :  { %v6922_v2 = vadd.f32 %v6918_v49, %v6906_v48  ;;  %v6907_v9 = vadd.f32 %v6900_v58, %v6754_v30  ;;  %v6925_v13 = vmul.f32 0.1, %v6921_v6  ;;  %v16058_v30 = vld [vmem:[#allocation13 + $0x54] ss:$8 sps:$4 sm:$0xff]   ;;  %7855 = vmatprep.subr.bf16.mxu0 %v14194_v0  ;;  %v14197_v48 = vld [vmem:[#allocation16 + $0x524] ss:$8 sps:$4 sm:$0xff]  }
 0x704   :  { %v6902_v50 = vpop.f32.mrf.mxu0  ;;  %v14195_v58 = vld [vmem:[#allocation16 + $0x520] ss:$8 sps:$4 sm:$0xff]   ;;  %v14215_v0 = vld [vmem:[#allocation16 + $0x5c4] ss:$8 sps:$4 sm:$0xff]  }
 0x705   :  { %v6923_v17 = vadd.f32 %v6914_v31, %v6907_v9  ;;  %v6908_v29 = vadd.f32 %v6902_v50, %v6756_v32  ;;  %v6926_v34 = vmul.f32 0.1, %v6922_v2  ;;  %v6929_v63 = vmax.f32 %v6921_v6, %v6925_v13  ;;  %v14192_v31 = vld [vmem:[#allocation16 + $0x530] ss:$8 sps:$4 sm:$0xff]   ;;  %v14200_v6 = vld [vmem:[#allocation16 + $0x514] ss:$8 sps:$4 sm:$0xff]  }
 0x706   :  { %7856 = vmatpush1.bf16.msra.mxu0 %v14192_v31  ;;  %v16061_v32 = vld [vmem:[#allocation13 + $0x50] ss:$8 sps:$4 sm:$0xff]   ;;  %v16076_v13 = vld [vmem:[#allocation13 + $0x24] ss:$8 sps:$4 sm:$0xff]   ;;  %v16091_v31 = vld [vmem:[#allocation13] ss:$8 sps:$4 sm:$0xff]  }
 0x707   :  { %v6927_v52 = vmul.f32 0.1, %v6923_v17  ;;  %v6924_v10 = vadd.f32 %v6918_v49, %v6908_v29  ;;  %v6930_v8 = vmax.f32 %v6922_v2, %v6926_v34  ;;  %v14154_v49 = vld [vmem:[#allocation3 + $0x38] sm:$0xff]   ;;  %7857 = vmatprep.subr.bf16.mxu0 %v14197_v48  ;;  %v14198_v9 = vld [vmem:[#allocation16 + $0x510] ss:$8 sps:$4 sm:$0xff]   ;;  %16604 = vst [vmem:[#allocation31_spill] sm:$0xff] %v16076_v13 }
 0x708   :  { %v16064_v2 = vld [vmem:[#allocation13 + $0x44] ss:$8 sps:$4 sm:$0xff]   ;;  %v16070_v29 = vld [vmem:[#allocation13 + $0x34] ss:$8 sps:$4 sm:$0xff]   ;;  %16609 = vst [vmem:[#allocation36_spill] sm:$0xff] %v16091_v31 }
 0x709   :  { %v6928_v62 = vmul.f32 0.1, %v6924_v10  ;;  %v6931_v4 = vmax.f32 %v6923_v17, %v6927_v52  ;;  %v14203_v50 = vld [vmem:[#allocation16 + $0x504] ss:$8 sps:$4 sm:$0xff]   ;;  %16602 = vst [vmem:[#allocation29_spill] sm:$0xff] %v16070_v29 }
 0x70a   :  { %7858 = vmatpush1.bf16.msra.mxu0 %v14195_v58  ;;  %v16067_v17 = vld [vmem:[#allocation13 + $0x40] ss:$8 sps:$4 sm:$0xff]  }
 0x70b   :  { %v6932_v51 = vmax.f32 %v6924_v10, %v6928_v62  ;;  %v6933_v11 = vpack.c.bf16 %v6931_v4, %v6929_v63  ;;  %16601 = vst [vmem:[#allocation28_spill] sm:$0xff] %v16067_v17  ;;  %7859 = vmatprep.subr.bf16.mxu0 %v14200_v6  ;;  %v14201_v34 = vld [vmem:[#allocation16 + $0x500] ss:$8 sps:$4 sm:$0xff]   ;;  %v14206_v52 = vld [vmem:[#allocation16 + $0x5f4] ss:$8 sps:$4 sm:$0xff]  }
 0x70c   :  { %v16073_v10 = vld [vmem:[#allocation13 + $0x30] ss:$8 sps:$4 sm:$0xff]   ;;  %v14207_v63 = vld [vmem:[#allocation16 + $0x5e0] ss:$8 sps:$4 sm:$0xff]  }
 0x70d   :  { %v6934_v22 = vpack.c.bf16 %v6932_v51, %v6930_v8  ;;  %16603 = vst [vmem:[#allocation30_spill] sm:$0xff] %v16073_v10  ;;  %v14204_v62 = vld [vmem:[#allocation16 + $0x5f0] ss:$8 sps:$4 sm:$0xff]   ;;  %v14209_v4 = vld [vmem:[#allocation16 + $0x5e4] ss:$8 sps:$4 sm:$0xff]  }
 0x70e   :  { %7860 = vmatpush1.bf16.msra.mxu0 %v14198_v9  ;;  %v16079_v8 = vld [vmem:[#allocation13 + $0x20] ss:$8 sps:$4 sm:$0xff]   ;;  %v16082_v51 = vld [vmem:[#allocation13 + $0x14] ss:$8 sps:$4 sm:$0xff]  }
 0x70f   :  { %7160 = vmatprep.mubr.bf16.mxu1 %v6934_v22  ;;  %7861 = vmatprep.subr.bf16.mxu0 %v14203_v50  ;;  %16605 = vst [vmem:[#allocation32_spill] sm:$0xff] %v16079_v8  ;;  %16606 = vst [vmem:[#allocation33_spill] sm:$0xff] %v16082_v51  ;;  %v14212_v22 = vld [vmem:[#allocation16 + $0x5d4] ss:$8 sps:$4 sm:$0xff]   ;;  %v14213_v48 = vld [vmem:[#allocation16 + $0x5c0] ss:$8 sps:$4 sm:$0xff]  }
 0x710   :  { %7161 = vmatmul.mubr.bf16.vlgmr.msra.gmra.mxu1 %v6933_v11  ;;  %v16085_v11 = vld [vmem:[#allocation13 + $0x10] ss:$8 sps:$4 sm:$0xff]   ;;  %v14179_v58 = vld [vmem:[#allocation3 + $0x30] sm:$0xff]  }
 0x711   :  { %7582 = vmatpush1.bf16.msra.mxu1 %v15959_v36  ;;  %7613 = vmatprep.mubr.bf16.mxu1 %v16558_v23  ;;  %16607 = vst [vmem:[#allocation34_spill] sm:$0xff] %v16085_v11  ;;  %v14218_v9 = vld [vmem:[#allocation16 + $0x5b4] ss:$8 sps:$4 sm:$0xff]   ;;  %v14216_v6 = vld [vmem:[#allocation16 + $0x5b0] ss:$8 sps:$4 sm:$0xff]  }
 0x712   :  { %7583 = vmatprep.subr.bf16.mxu1 %v15961_v21  ;;  %7862 = vmatpush1.bf16.msra.mxu0 %v14201_v34  ;;  %v14221_v50 = vld [vmem:[#allocation16 + $0x5a4] ss:$8 sps:$4 sm:$0xff]   ;;  %v14219_v34 = vld [vmem:[#allocation16 + $0x5a0] ss:$8 sps:$4 sm:$0xff]  }
 0x713   :  { %7863 = vmatprep.subr.bf16.mxu0 %v14206_v52  ;;  %v14224_v52 = vld [vmem:[#allocation16 + $0x594] ss:$8 sps:$4 sm:$0xff]  }
 0x715   :  { %7584 = vmatpush1.bf16.msra.mxu1 %v15964_v7 }
 0x716   :  { %7585 = vmatprep.subr.bf16.mxu1 %v15968_v47  ;;  %7864 = vmatpush2.bf16.msra.mxu0 %v14204_v62  ;;  %v14222_v62 = vld [vmem:[#allocation16 + $0x590] ss:$8 sps:$4 sm:$0xff]  }
 0x717   :  { %7865 = vmatprep.subr.bf16.mxu0 %v14209_v4  ;;  %v14227_v4 = vld [vmem:[#allocation16 + $0x584] ss:$8 sps:$4 sm:$0xff]  }
 0x719   :  { %7586 = vmatpush1.bf16.msra.mxu1 %v15971_v20 }
 0x71a   :  { %7587 = vmatprep.subr.bf16.mxu1 %v15974_v59  ;;  %7866 = vmatpush2.bf16.msra.mxu0 %v14207_v63  ;;  %v14225_v63 = vld [vmem:[#allocation16 + $0x580] ss:$8 sps:$4 sm:$0xff]  }
 0x71b   :  { %7867 = vmatprep.subr.bf16.mxu0 %v14212_v22 }
 0x71d   :  { %7588 = vmatpush1.bf16.msra.mxu1 %v15977_v5 }
 0x71e   :  { %7589 = vmatprep.subr.bf16.mxu1 %v15980_v3 }
 0x721   :  { %7590 = vmatpush1.bf16.msra.mxu1 %v15983_v26 }
 0x722   :  { %7591 = vmatprep.subr.bf16.mxu1 %v15986_v18 }
 0x725   :  { %7592 = vmatpush1.bf16.msra.mxu1 %v15989_v1 }
 0x726   :  { %7593 = vmatprep.subr.bf16.mxu1 %v15895_v35  ;;  %v16009_v35 = vld [vmem:[#allocation13 + $0xd4] ss:$8 sps:$4 sm:$0xff]  }
 0x729   :  { %7594 = vmatpush1.bf16.msra.mxu1 %v15898_v27  ;;  %v16012_v27 = vld [vmem:[#allocation13 + $0xd0] ss:$8 sps:$4 sm:$0xff]  }
 0x72a   :  { %7595 = vmatprep.subr.bf16.mxu1 %v15901_v33  ;;  %v16015_v33 = vld [vmem:[#allocation13 + $0xc4] ss:$8 sps:$4 sm:$0xff]  }
 0x72d   :  { %7596 = vmatpush1.bf16.msra.mxu1 %v15904_v25  ;;  %v16018_v25 = vld [vmem:[#allocation13 + $0xc0] ss:$8 sps:$4 sm:$0xff]  }
 0x72e   :  { %8024 = vmatprep.subr.bf16.mxu1 %v15996_v28 }
 0x730   :  { %7614 = vmatmul.mubr.bf16.vlgmr.msra.gmra.mxu1 %v14129_v46  ;;  %v16088_v46 = vld [vmem:[#allocation13 + $0x4] ss:$8 sps:$4 sm:$0xff]  }
 0x731   :  { %8025 = vmatpush1.bf16.msra.mxu1 %v15999_v44  ;;  %8056 = vmatprep.mubr.bf16.mxu1 %v16558_v23  ;;  %16608 = vst [vmem:[#allocation35_spill] sm:$0xff] %v16088_v46 }
 0x732   :  { %8026 = vmatprep.subr.bf16.mxu1 %v16002_v54 }
 0x735   :  { %8027 = vmatpush1.bf16.msra.mxu1 %v16005_v45 }
 0x736   :  { %8028 = vmatprep.subr.bf16.mxu1 %v16009_v35 }
 0x739   :  { %8029 = vmatpush1.bf16.msra.mxu1 %v16012_v27 }
 0x73a   :  { %8030 = vmatprep.subr.bf16.mxu1 %v16015_v33 }
 0x73d   :  { %8031 = vmatpush1.bf16.msra.mxu1 %v16018_v25 }
 0x73e   :  { %8032 = vmatprep.subr.bf16.mxu1 %v16021_v37 }
 0x741   :  { %8033 = vmatpush1.bf16.msra.mxu1 %v16024_v14 }
 0x742   :  { %8034 = vmatprep.subr.bf16.mxu1 %v16027_v24 }
 0x745   :  { %8035 = vmatpush1.bf16.msra.mxu1 %v16030_v38 }
 0x746   :  { %8036 = vmatprep.subr.bf16.mxu1 %v16033_v12 }
 0x749   :  { %8037 = vmatpush1.bf16.msra.mxu1 %v16036_v41 }
 0x74a   :  { %8038 = vmatprep.subr.bf16.mxu1 %v16039_v55 }
 0x74d   :  { %8039 = vmatpush1.bf16.msra.mxu1 %v16042_v16 }
 0x74e   :  { %8153 = vmatprep.subr.bf16.mxu1 %v16045_v53 }
 0x750   :  { %8057 = vmatmul.mubr.bf16.vlgmr.msra.gmra.mxu1 %v14154_v49  ;;  %v14210_v49 = vld [vmem:[#allocation16 + $0x5d0] ss:$8 sps:$4 sm:$0xff]  }
 0x751   :  { %8154 = vmatpush1.bf16.msra.mxu1 %v16048_v43  ;;  %8185 = vmatprep.mubr.bf16.mxu1 %v16558_v23 }
 0x752   :  { %8155 = vmatprep.subr.bf16.mxu1 %v16051_v42  ;;  %7868 = vmatpush2.bf16.msra.mxu0 %v14210_v49 }
 0x753   :  { %7869 = vmatprep.subr.bf16.mxu0 %v14215_v0 }
 0x755   :  { %8156 = vmatpush1.bf16.msra.mxu1 %v16054_v40 }
 0x756   :  { %8157 = vmatprep.subr.bf16.mxu1 %v16058_v30  ;;  %7870 = vmatpush2.bf16.msra.mxu0 %v14213_v48 }
 0x757   :  { %7871 = vmatprep.subr.bf16.mxu0 %v14218_v9 }
 0x759   :  { %8158 = vmatpush1.bf16.msra.mxu1 %v16061_v32 }
 0x75a   :  { %8159 = vmatprep.subr.bf16.mxu1 %v16064_v2  ;;  %7872 = vmatpush2.bf16.msra.mxu0 %v14216_v6 }
 0x75b   :  { %7873 = vmatprep.subr.bf16.mxu0 %v14221_v50 }
 0x75d   :  { %8160 = vmatpush1.bf16.msra.mxu1 %v16067_v17 }
 0x75e   :  { %8161 = vmatprep.subr.bf16.mxu1 %v16070_v29  ;;  %7874 = vmatpush2.bf16.msra.mxu0 %v14219_v34  ;;  %v7339_v34 = vpop.f32.mrf.mxu0 }
 0x75f   :  { %7875 = vmatprep.subr.bf16.mxu0 %v14224_v52 }
 0x760   :  { %v7341_v52 = vpop.f32.mrf.mxu0 }
 0x761   :  { %8162 = vmatpush1.bf16.msra.mxu1 %v16073_v10 }
 0x762   :  { %8163 = vmatprep.subr.bf16.mxu1 %v16076_v13  ;;  %7876 = vmatpush2.bf16.msra.mxu0 %v14222_v62  ;;  %v7343_v62 = vpop.f32.mrf.mxu0 }
 0x763   :  { %7877 = vmatprep.subr.bf16.mxu0 %v14227_v4  ;;  %v14239_v4 = vld [vmem:[#allocation16 + $0x674] ss:$8 sps:$4 sm:$0xff]  }
 0x765   :  { %8164 = vmatpush1.bf16.msra.mxu1 %v16079_v8 }
 0x766   :  { %8165 = vmatprep.subr.bf16.mxu1 %v16082_v51  ;;  %7878 = vmatpush2.bf16.msra.mxu0 %v14225_v63  ;;  %v14242_v63 = vld [vmem:[#allocation16 + $0x664] ss:$8 sps:$4 sm:$0xff]  }
 0x767   :  { %8300 = vmatprep.subr.bf16.mxu0 %v15942_v61  ;;  %v14237_v61 = vld [vmem:[#allocation16 + $0x670] ss:$8 sps:$4 sm:$0xff]  }
 0x769   :  { %8166 = vmatpush1.bf16.msra.mxu1 %v16085_v11 }
 0x76a   :  { %8167 = vmatprep.subr.bf16.mxu1 %v16088_v46 }
 0x76d   :  { %8168 = vmatpush1.bf16.msra.mxu1 %v16091_v31 }
 0x76e   :  { %8566 = vmatprep.subr.bf16.mxu1 %v14239_v4 }
 0x770   :  { %8186 = vmatmul.mubr.bf16.vlgmr.msra.gmra.mxu1 %v14179_v58 }
 0x771   :  { %8567 = vmatpush1.bf16.msra.mxu1 %v14237_v61 }
 0x772   :  { %8568 = vmatprep.subr.bf16.mxu1 %v14242_v63 }
 0x7d0   :  { %v7162_v22 = vpop.f32.mrf.mxu1 }
 0x7d1   :  { %v16097_v49 = vadd.f32 %v7162_v22, %v15946_v57  ;;  %v7345_v57 = vpop.f32.mrf.mxu0  ;;  %v14240_v22 = vld [vmem:[#allocation16 + $0x660] ss:$8 sps:$4 sm:$0xff]  }
 0x7d2   :  { %v7164_v0 = vpop.f32.mrf.mxu1  ;;  %8569 = vmatpush1.bf16.msra.mxu1 %v14240_v22 }
 0x7d3   :  { %16610 = vst [vmem:[#allocation37_spill] sm:$0xff] %v16097_v49  ;;  %v16100_v48 = vadd.f32 %v7164_v0, %v15949_v60  ;;  %v7468_v60 = vpop.f32.mrf.mxu0  ;;  %v14245_v0 = vld [vmem:[#allocation16 + $0x654] ss:$8 sps:$4 sm:$0xff]  }
 0x7d4   :  { %v7166_v58 = vpop.f32.mrf.mxu1  ;;  %8570 = vmatprep.subr.bf16.mxu1 %v14245_v0 }
 0x7d5   :  { %16611 = vst [vmem:[#allocation38_spill] sm:$0xff] %v16100_v48  ;;  %v16103_v9 = vadd.f32 %v7166_v58, %v15952_v56  ;;  %v14243_v56 = vld [vmem:[#allocation16 + $0x650] ss:$8 sps:$4 sm:$0xff]   ;;  %v7470_v58 = vpop.f32.mrf.mxu0  ;;  %v7469_v48 = vadd.f32 %v7468_v60, %v7339_v34 }
 0x7d6   :  { %v7168_v6 = vpop.f32.mrf.mxu1  ;;  %8571 = vmatpush1.bf16.msra.mxu1 %v14243_v56  ;;  %v7471_v31 = vadd.f32 %v7470_v58, %v7341_v52 }
 0x7d7   :  { %16612 = vst [vmem:[#allocation39_spill] sm:$0xff] %v16103_v9  ;;  %v16106_v50 = vadd.f32 %v7168_v6, %v15955_v15  ;;  %v14248_v9 = vld [vmem:[#allocation16 + $0x644] ss:$8 sps:$4 sm:$0xff]   ;;  %v14246_v15 = vld [vmem:[#allocation16 + $0x640] ss:$8 sps:$4 sm:$0xff]   ;;  %v7472_v6 = vpop.f32.mrf.mxu0 }
 0x7d8   :  { %8572 = vmatprep.subr.bf16.mxu1 %v14248_v9  ;;  %v7473_v11 = vadd.f32 %v7472_v6, %v7343_v62 }
 0x7d9   :  { %16613 = vst [vmem:[#allocation40_spill] sm:$0xff] %v16106_v50  ;;  %v7628_v50 = vld [vmem:[#allocation15] sm:$0x3]  ;;  %v7474_v61 = vpop.f32.mrf.mxu0 }
 0x7da   :  { %v7637_v4 = vrot.slane %v7628_v50, %v16599_v39  ;;  %8573 = vmatpush1.bf16.msra.mxu1 %v14246_v15  ;;  %v7633_v63 = vrot.slane %v7628_v50, %v16600_v19  ;;  %v7475_v8 = vadd.f32 %v7474_v61, %v7345_v57 }
 0x7dc   :  { %v16624_v57 = vld [vmem:[#allocation38_spill] sm:$0xff] }
 0x7de   :  { %v16625_v61 = vld [vmem:[#allocation39_spill] sm:$0xff] }
 0x7f0   :  { %v7615_v49 = vpop.f32.mrf.mxu1 }
 0x7f1   :  { %v7624_v46 = vadd.f32 %v7615_v49, %v7469_v48 }
 0x7f2   :  { %v7617_v22 = vpop.f32.mrf.mxu1 }
 0x7f3   :  { %v7625_v51 = vadd.f32 %v7617_v22, %v7471_v31  ;;  %v7640_v10 = vadd.f32 %v7633_v63, %v7624_v46 }
 0x7f4   :  { %v7619_v0 = vpop.f32.mrf.mxu1 }
 0x7f5   :  { %v7641_v56 = vadd.f32 %v7637_v4, %v7625_v51  ;;  %v7626_v13 = vadd.f32 %v7619_v0, %v7473_v11  ;;  %v7644_v39 = vmul.f32 0.1, %v7640_v10  ;;  %v16623_v11 = vld [vmem:[#allocation37_spill] sm:$0xff]  ;;  %v16626_v0 = vld [vmem:[#allocation40_spill] sm:$0xff] }
 0x7f6   :  { %v7621_v9 = vpop.f32.mrf.mxu1 }
 0x7f7   :  { %v7642_v29 = vadd.f32 %v7633_v63, %v7626_v13  ;;  %v7627_v34 = vadd.f32 %v7621_v9, %v7475_v8  ;;  %v7645_v60 = vmul.f32 0.1, %v7641_v56  ;;  %v7648_v50 = vmax.f32 %v7640_v10, %v7644_v39  ;;  %v16121_v39 = vld [vmem:[#allocation13 + $0x114] ss:$8 sps:$4 sm:$0xff]   ;;  %v14284_v10 = vld [vmem:[#allocation16 + $0x684] ss:$8 sps:$4 sm:$0xff]  }
 0x7f8   :  { %v14282_v13 = vld [vmem:[#allocation16 + $0x680] ss:$8 sps:$4 sm:$0xff]   ;;  %v16168_v8 = vld [vmem:[#allocation13 + $0x174] ss:$8 sps:$4 sm:$0xff]  }
 0x7f9   :  { %v7646_v52 = vmul.f32 0.1, %v7642_v29  ;;  %v7643_v58 = vadd.f32 %v7637_v4, %v7627_v34  ;;  %v7649_v49 = vmax.f32 %v7641_v56, %v7645_v60 }
 0x7fb   :  { %v7647_v15 = vmul.f32 0.1, %v7643_v58  ;;  %v7650_v17 = vmax.f32 %v7642_v29, %v7646_v52  ;;  %v14279_v29 = vld [vmem:[#allocation16 + $0x690] ss:$8 sps:$4 sm:$0xff]  }
 0x7fc   :  { %v14354_v52 = vld [vmem:[#allocation16 + $0x770] ss:$8 sps:$4 sm:$0xff]  }
 0x7fd   :  { %v7651_v48 = vmax.f32 %v7643_v58, %v7647_v15  ;;  %v7652_v62 = vpack.c.bf16 %v7650_v17, %v7648_v50  ;;  %v14281_v17 = vld [vmem:[#allocation16 + $0x694] ss:$8 sps:$4 sm:$0xff]   ;;  %v14359_v15 = vld [vmem:[#allocation16 + $0x764] ss:$8 sps:$4 sm:$0xff]  }
 0x7fe   :  { %v14356_v58 = vld [vmem:[#allocation16 + $0x774] ss:$8 sps:$4 sm:$0xff]  }
 0x7ff   :  { %v7653_v19 = vpack.c.bf16 %v7651_v48, %v7649_v49  ;;  %v14357_v48 = vld [vmem:[#allocation16 + $0x760] ss:$8 sps:$4 sm:$0xff]  }
 0x801   :  { %7879 = vmatprep.mubr.bf16.mxu0 %v7653_v19  ;;  %v16124_v19 = vld [vmem:[#allocation13 + $0x110] ss:$8 sps:$4 sm:$0xff]  }
 0x802   :  { %7880 = vmatmul.mubr.bf16.vlgmr.msra.gmra.mxu0 %v7652_v62  ;;  %v14362_v62 = vld [vmem:[#allocation16 + $0x754] ss:$8 sps:$4 sm:$0xff]  }
 0x803   :  { %8301 = vmatpush1.bf16.msra.mxu0 %v15959_v36  ;;  %8332 = vmatprep.mubr.bf16.mxu0 %v16558_v23  ;;  %v16127_v36 = vld [vmem:[#allocation13 + $0x104] ss:$8 sps:$4 sm:$0xff]  }
 0x804   :  { %8302 = vmatprep.subr.bf16.mxu0 %v15961_v21  ;;  %v16130_v21 = vld [vmem:[#allocation13 + $0x100] ss:$8 sps:$4 sm:$0xff]  }
 0x807   :  { %8303 = vmatpush1.bf16.msra.mxu0 %v15964_v7  ;;  %v14234_v7 = vld [vmem:[#allocation3 + $0x40] sm:$0xff]  }
 0x808   :  { %8304 = vmatprep.subr.bf16.mxu0 %v15968_v47  ;;  %v14235_v47 = vld [vmem:[#allocation3 + $0x40] sm:$0xff]  }
 0x80b   :  { %8305 = vmatpush1.bf16.msra.mxu0 %v15971_v20  ;;  %v14251_v20 = vld [vmem:[#allocation16 + $0x634] ss:$8 sps:$4 sm:$0xff]  }
 0x80c   :  { %8306 = vmatprep.subr.bf16.mxu0 %v15974_v59  ;;  %v14249_v59 = vld [vmem:[#allocation16 + $0x630] ss:$8 sps:$4 sm:$0xff]   ;;  %8574 = vmatprep.subr.bf16.mxu1 %v14251_v20  ;;  %v14365_v20 = vld [vmem:[#allocation16 + $0x744] ss:$8 sps:$4 sm:$0xff]  }
 0x80d   :  { %8575 = vmatpush1.bf16.msra.mxu1 %v14249_v59  ;;  %v14363_v59 = vld [vmem:[#allocation16 + $0x740] ss:$8 sps:$4 sm:$0xff]  }
 0x80f   :  { %8307 = vmatpush1.bf16.msra.mxu0 %v15977_v5  ;;  %v14254_v5 = vld [vmem:[#allocation16 + $0x624] ss:$8 sps:$4 sm:$0xff]  }
 0x810   :  { %8308 = vmatprep.subr.bf16.mxu0 %v15980_v3  ;;  %v14252_v3 = vld [vmem:[#allocation16 + $0x620] ss:$8 sps:$4 sm:$0xff]   ;;  %8576 = vmatprep.subr.bf16.mxu1 %v14254_v5  ;;  %v8058_v9 = vpop.f32.mrf.mxu1 }
 0x811   :  { %8577 = vmatpush1.bf16.msra.mxu1 %v14252_v3  ;;  %v8347_v3 = vld [vmem:[#allocation15] sm:$0x3] }
 0x812   :  { %v8060_v34 = vpop.f32.mrf.mxu1 }
 0x813   :  { %8309 = vmatpush1.bf16.msra.mxu0 %v15983_v26  ;;  %v14255_v26 = vld [vmem:[#allocation16 + $0x610] ss:$8 sps:$4 sm:$0xff]  }
 0x814   :  { %8310 = vmatprep.subr.bf16.mxu0 %v15986_v18  ;;  %v14257_v18 = vld [vmem:[#allocation16 + $0x614] ss:$8 sps:$4 sm:$0xff]   ;;  %v8062_v60 = vpop.f32.mrf.mxu1 }
 0x815   :  { %8578 = vmatprep.subr.bf16.mxu1 %v14257_v18 }
 0x816   :  { %8579 = vmatpush1.bf16.msra.mxu1 %v14255_v26  ;;  %v8064_v49 = vpop.f32.mrf.mxu1 }
 0x817   :  { %8311 = vmatpush1.bf16.msra.mxu0 %v15989_v1  ;;  %v14260_v1 = vld [vmem:[#allocation16 + $0x604] ss:$8 sps:$4 sm:$0xff]  }
 0x818   :  { %8312 = vmatprep.subr.bf16.mxu0 %v16121_v39  ;;  %8580 = vmatprep.subr.bf16.mxu1 %v14260_v1 }
 0x81b   :  { %8313 = vmatpush1.bf16.msra.mxu0 %v16124_v19 }
 0x81c   :  { %8314 = vmatprep.subr.bf16.mxu0 %v16127_v36 }
 0x81f   :  { %8315 = vmatpush1.bf16.msra.mxu0 %v16130_v21 }
 0x820   :  { %8743 = vmatprep.subr.bf16.mxu0 %v15996_v28  ;;  %v14258_v28 = vld [vmem:[#allocation16 + $0x600] ss:$8 sps:$4 sm:$0xff]  }
 0x821   :  { %8581 = vmatpush1.bf16.msra.mxu1 %v14258_v28  ;;  %v16627_v28 = vld [vmem:[#allocation26_spill] sm:$0xff] }
 0x822   :  { %8333 = vmatmul.mubr.bf16.vlgmr.msra.gmra.mxu0 %v14234_v7  ;;  %v14360_v7 = vld [vmem:[#allocation16 + $0x750] ss:$8 sps:$4 sm:$0xff]  }
 0x823   :  { %8744 = vmatpush1.bf16.msra.mxu0 %v15999_v44  ;;  %8775 = vmatprep.mubr.bf16.mxu0 %v16558_v23  ;;  %v14263_v44 = vld [vmem:[#allocation16 + $0x6f4] ss:$8 sps:$4 sm:$0xff]  }
 0x824   :  { %8745 = vmatprep.subr.bf16.mxu0 %v16002_v54  ;;  %v16614_v54 = vld [vmem:[#allocation28_spill] sm:$0xff]  ;;  %8582 = vmatprep.subr.bf16.mxu1 %v14263_v44  ;;  %v8356_v44 = vrot.slane %v8347_v3, %v16627_v28 }
 0x827   :  { %8746 = vmatpush1.bf16.msra.mxu0 %v16005_v45  ;;  %v16615_v45 = vld [vmem:[#allocation29_spill] sm:$0xff] }
 0x828   :  { %8747 = vmatprep.subr.bf16.mxu0 %v16009_v35  ;;  %v14261_v35 = vld [vmem:[#allocation16 + $0x6f0] ss:$8 sps:$4 sm:$0xff]  }
 0x829   :  { %8583 = vmatpush2.bf16.msra.mxu1 %v14261_v35  ;;  %v16628_v35 = vld [vmem:[#allocation27_spill] sm:$0xff] }
 0x82b   :  { %8748 = vmatpush1.bf16.msra.mxu0 %v16012_v27  ;;  %v14266_v27 = vld [vmem:[#allocation16 + $0x6e4] ss:$8 sps:$4 sm:$0xff]  }
 0x82c   :  { %8749 = vmatprep.subr.bf16.mxu0 %v16015_v33  ;;  %v16616_v33 = vld [vmem:[#allocation30_spill] sm:$0xff]  ;;  %8584 = vmatprep.subr.bf16.mxu1 %v14266_v27  ;;  %v8352_v27 = vrot.slane %v8347_v3, %v16628_v35 }
 0x82d   :  { %v16265_v3 = vld [vmem:[#allocation13 + $0x84] ss:$8 sps:$4 sm:$0xff]  }
 0x82f   :  { %8750 = vmatpush1.bf16.msra.mxu0 %v16018_v25  ;;  %v16617_v25 = vld [vmem:[#allocation31_spill] sm:$0xff] }
 0x830   :  { %8751 = vmatprep.subr.bf16.mxu0 %v16021_v37  ;;  %v14264_v37 = vld [vmem:[#allocation16 + $0x6e0] ss:$8 sps:$4 sm:$0xff]   ;;  %v8187_v50 = vpop.f32.mrf.mxu1 }
 0x831   :  { %8585 = vmatpush2.bf16.msra.mxu1 %v14264_v37  ;;  %v8188_v26 = vadd.f32 %v8187_v50, %v8058_v9  ;;  %v16206_v9 = vld [vmem:[#allocation13 + $0x134] ss:$8 sps:$4 sm:$0xff]   ;;  %v16231_v50 = vld [vmem:[#allocation13 + $0xe0] ss:$8 sps:$4 sm:$0xff]  }
 0x833   :  { %8752 = vmatpush1.bf16.msra.mxu0 %v16024_v14  ;;  %v14269_v14 = vld [vmem:[#allocation16 + $0x6d4] ss:$8 sps:$4 sm:$0xff]  }
 0x834   :  { %8753 = vmatprep.subr.bf16.mxu0 %v16027_v24  ;;  %v16618_v24 = vld [vmem:[#allocation32_spill] sm:$0xff]  ;;  %8586 = vmatprep.subr.bf16.mxu1 %v14269_v14 }
 0x837   :  { %8754 = vmatpush1.bf16.msra.mxu0 %v16030_v38  ;;  %v16619_v38 = vld [vmem:[#allocation33_spill] sm:$0xff] }
 0x838   :  { %8755 = vmatprep.subr.bf16.mxu0 %v16033_v12  ;;  %v14267_v12 = vld [vmem:[#allocation16 + $0x6d0] ss:$8 sps:$4 sm:$0xff]  }
 0x839   :  { %8587 = vmatpush2.bf16.msra.mxu1 %v14267_v12 }
 0x83b   :  { %8756 = vmatpush1.bf16.msra.mxu0 %v16036_v41  ;;  %v14272_v41 = vld [vmem:[#allocation16 + $0x6c4] ss:$8 sps:$4 sm:$0xff]  }
 0x83c   :  { %8757 = vmatprep.subr.bf16.mxu0 %v16039_v55  ;;  %v16620_v55 = vld [vmem:[#allocation34_spill] sm:$0xff]  ;;  %8588 = vmatprep.subr.bf16.mxu1 %v14272_v41 }
 0x83f   :  { %8758 = vmatpush1.bf16.msra.mxu0 %v16042_v16  ;;  %v16621_v16 = vld [vmem:[#allocation35_spill] sm:$0xff] }
 0x840   :  { %8872 = vmatprep.subr.bf16.mxu0 %v16045_v53  ;;  %v14270_v53 = vld [vmem:[#allocation16 + $0x6c0] ss:$8 sps:$4 sm:$0xff]  }
 0x841   :  { %8589 = vmatpush2.bf16.msra.mxu1 %v14270_v53 }
 0x842   :  { %8776 = vmatmul.mubr.bf16.vlgmr.msra.gmra.mxu0 %v14235_v47  ;;  %v8189_v47 = vpop.f32.mrf.mxu1 }
 0x843   :  { %8873 = vmatpush1.bf16.msra.mxu0 %v16048_v43  ;;  %8904 = vmatprep.mubr.bf16.mxu0 %v16558_v23  ;;  %v16622_v43 = vld [vmem:[#allocation36_spill] sm:$0xff]  ;;  %v8190_v1 = vadd.f32 %v8189_v47, %v8060_v34  ;;  %v16253_v47 = vld [vmem:[#allocation13 + $0xa4] ss:$8 sps:$4 sm:$0xff]  }
 0x844   :  { %8874 = vmatprep.subr.bf16.mxu0 %v16051_v42  ;;  %v14236_v42 = vld [vmem:[#allocation3 + $0x38] sm:$0xff]   ;;  %v8191_v5 = vpop.f32.mrf.mxu1  ;;  %v16209_v34 = vld [vmem:[#allocation13 + $0x130] ss:$8 sps:$4 sm:$0xff]  }
 0x847   :  { %8875 = vmatpush1.bf16.msra.mxu0 %v16054_v40  ;;  %v14275_v40 = vld [vmem:[#allocation16 + $0x6b4] ss:$8 sps:$4 sm:$0xff]  }
 0x848   :  { %8876 = vmatprep.subr.bf16.mxu0 %v16058_v30  ;;  %v14273_v30 = vld [vmem:[#allocation16 + $0x6b0] ss:$8 sps:$4 sm:$0xff]   ;;  %8590 = vmatprep.subr.bf16.mxu1 %v14275_v40 }
 0x849   :  { %8591 = vmatpush2.bf16.msra.mxu1 %v14273_v30 }
 0x84b   :  { %8877 = vmatpush1.bf16.msra.mxu0 %v16061_v32  ;;  %v14278_v32 = vld [vmem:[#allocation16 + $0x6a4] ss:$8 sps:$4 sm:$0xff]  }
 0x84c   :  { %8878 = vmatprep.subr.bf16.mxu0 %v16064_v2  ;;  %v14276_v2 = vld [vmem:[#allocation16 + $0x6a0] ss:$8 sps:$4 sm:$0xff]   ;;  %8592 = vmatprep.subr.bf16.mxu1 %v14278_v32 }
 0x84d   :  { %8593 = vmatpush2.bf16.msra.mxu1 %v14276_v2 }
 0x84e   :  { %8594 = vmatprep.subr.bf16.mxu1 %v14281_v17 }
 0x84f   :  { %8879 = vmatpush1.bf16.msra.mxu0 %v16614_v54  ;;  %v8193_v54 = vpop.f32.mrf.mxu1 }
 0x850   :  { %8880 = vmatprep.subr.bf16.mxu0 %v16615_v45 }
 0x851   :  { %8595 = vmatpush2.bf16.msra.mxu1 %v14279_v29 }
 0x852   :  { %8596 = vmatprep.subr.bf16.mxu1 %v14284_v10 }
 0x853   :  { %8881 = vmatpush1.bf16.msra.mxu0 %v16616_v33 }
 0x854   :  { %8882 = vmatprep.subr.bf16.mxu0 %v16617_v25  ;;  %v8192_v25 = vadd.f32 %v8191_v5, %v8062_v60  ;;  %v16212_v60 = vld [vmem:[#allocation13 + $0x124] ss:$8 sps:$4 sm:$0xff]   ;;  %v16262_v5 = vld [vmem:[#allocation13 + $0x90] ss:$8 sps:$4 sm:$0xff]  }
 0x855   :  { %8597 = vmatpush2.bf16.msra.mxu1 %v14282_v13 }
 0x856   :  { %9019 = vmatprep.subr.bf16.mxu1 %v16168_v8 }
 0x857   :  { %8883 = vmatpush1.bf16.msra.mxu0 %v16618_v24  ;;  %v8194_v24 = vadd.f32 %v8193_v54, %v8064_v49  ;;  %v14303_v49 = vld [vmem:[#allocation3 + $0x48] sm:$0xff]   ;;  %v16277_v54 = vld [vmem:[#allocation13 + $0x64] ss:$8 sps:$4 sm:$0xff]  }
 0x858   :  { %8884 = vmatprep.subr.bf16.mxu0 %v16619_v38 }
 0x85b   :  { %8885 = vmatpush1.bf16.msra.mxu0 %v16620_v55 }
 0x85c   :  { %8886 = vmatprep.subr.bf16.mxu0 %v16621_v16 }
 0x85f   :  { %8887 = vmatpush1.bf16.msra.mxu0 %v16622_v43 }
 0x860   :  { %9285 = vmatprep.subr.bf16.mxu0 %v14356_v58  ;;  %v16222_v58 = vld [vmem:[#allocation13 + $0xf4] ss:$8 sps:$4 sm:$0xff]  }
 0x862   :  { %8905 = vmatmul.mubr.bf16.vlgmr.msra.gmra.mxu0 %v14236_v42 }
 0x863   :  { %9286 = vmatpush1.bf16.msra.mxu0 %v14354_v52  ;;  %v16215_v52 = vld [vmem:[#allocation13 + $0x120] ss:$8 sps:$4 sm:$0xff]  }
 0x864   :  { %9287 = vmatprep.subr.bf16.mxu0 %v14359_v15  ;;  %v16225_v15 = vld [vmem:[#allocation13 + $0xf0] ss:$8 sps:$4 sm:$0xff]  }
 0x867   :  { %9288 = vmatpush1.bf16.msra.mxu0 %v14357_v48  ;;  %v16228_v48 = vld [vmem:[#allocation13 + $0xe4] ss:$8 sps:$4 sm:$0xff]  }
 0x868   :  { %9289 = vmatprep.subr.bf16.mxu0 %v14362_v62  ;;  %v16247_v62 = vld [vmem:[#allocation13 + $0xb4] ss:$8 sps:$4 sm:$0xff]  }
 0x86b   :  { %9290 = vmatpush1.bf16.msra.mxu0 %v14360_v7  ;;  %v16250_v7 = vld [vmem:[#allocation13 + $0xb0] ss:$8 sps:$4 sm:$0xff]  }
 0x86c   :  { %9291 = vmatprep.subr.bf16.mxu0 %v14365_v20  ;;  %v16256_v20 = vld [vmem:[#allocation13 + $0xa0] ss:$8 sps:$4 sm:$0xff]  }
 0x86f   :  { %9292 = vmatpush1.bf16.msra.mxu0 %v14363_v59  ;;  %v16259_v59 = vld [vmem:[#allocation13 + $0x94] ss:$8 sps:$4 sm:$0xff]  }
 0x8c2   :  { %v7881_v51 = vpop.f32.mrf.mxu0 }
 0x8c3   :  { %v16172_v46 = vadd.f32 %v7881_v51, %v16623_v11  ;;  %v16185_v51 = vld [vmem:[#allocation13 + $0x170] ss:$8 sps:$4 sm:$0xff]  }
 0x8c4   :  { %v7883_v31 = vpop.f32.mrf.mxu0 }
 0x8c5   :  { %v16175_v6 = vadd.f32 %v7883_v31, %v16624_v57  ;;  %v16187_v31 = vld [vmem:[#allocation13 + $0x164] ss:$8 sps:$4 sm:$0xff]   ;;  %v16190_v57 = vld [vmem:[#allocation13 + $0x160] ss:$8 sps:$4 sm:$0xff]  }
 0x8c6   :  { %v7885_v4 = vpop.f32.mrf.mxu0 }
 0x8c7   :  { %v16178_v63 = vadd.f32 %v7885_v4, %v16625_v61  ;;  %v16194_v4 = vld [vmem:[#allocation13 + $0x154] ss:$8 sps:$4 sm:$0xff]   ;;  %v16197_v61 = vld [vmem:[#allocation13 + $0x150] ss:$8 sps:$4 sm:$0xff]  }
 0x8c8   :  { %v7887_v22 = vpop.f32.mrf.mxu0 }
 0x8c9   :  { %v16181_v56 = vadd.f32 %v7887_v22, %v16626_v0  ;;  %v16200_v22 = vld [vmem:[#allocation13 + $0x144] ss:$8 sps:$4 sm:$0xff]   ;;  %v16203_v0 = vld [vmem:[#allocation13 + $0x140] ss:$8 sps:$4 sm:$0xff]  }
 0x8e2   :  { %v8334_v18 = vpop.f32.mrf.mxu0 }
 0x8e3   :  { %v8343_v45 = vadd.f32 %v8334_v18, %v8188_v26  ;;  %v16268_v26 = vld [vmem:[#allocation13 + $0x80] ss:$8 sps:$4 sm:$0xff]   ;;  %v16271_v18 = vld [vmem:[#allocation13 + $0x74] ss:$8 sps:$4 sm:$0xff]  }
 0x8e4   :  { %v8336_v33 = vpop.f32.mrf.mxu0 }
 0x8e5   :  { %v8344_v37 = vadd.f32 %v8336_v33, %v8190_v1  ;;  %v8359_v41 = vadd.f32 %v8352_v27, %v8343_v45  ;;  %v16274_v1 = vld [vmem:[#allocation13 + $0x70] ss:$8 sps:$4 sm:$0xff]   ;;  %v16280_v33 = vld [vmem:[#allocation13 + $0x60] ss:$8 sps:$4 sm:$0xff]  }
 0x8e6   :  { %v8338_v14 = vpop.f32.mrf.mxu0  ;;  %v14368_v45 = vld [vmem:[#allocation16 + $0x734] ss:$8 sps:$4 sm:$0xff]  }
 0x8e7   :  { %v8360_v38 = vadd.f32 %v8356_v44, %v8344_v37  ;;  %v8345_v12 = vadd.f32 %v8338_v14, %v8192_v25  ;;  %v8363_v30 = vmul.f32 0.1, %v8359_v41  ;;  %v16284_v25 = vld [vmem:[#allocation13 + $0x54] ss:$8 sps:$4 sm:$0xff]   ;;  %9293 = vmatprep.subr.bf16.mxu0 %v14368_v45  ;;  %v14371_v37 = vld [vmem:[#allocation16 + $0x724] ss:$8 sps:$4 sm:$0xff]  }
 0x8e8   :  { %v8340_v55 = vpop.f32.mrf.mxu0  ;;  %v14369_v14 = vld [vmem:[#allocation16 + $0x720] ss:$8 sps:$4 sm:$0xff]   ;;  %v14389_v45 = vld [vmem:[#allocation16 + $0x7c4] ss:$8 sps:$4 sm:$0xff]  }
 0x8e9   :  { %v8361_v16 = vadd.f32 %v8352_v27, %v8345_v12  ;;  %v8346_v53 = vadd.f32 %v8340_v55, %v8194_v24  ;;  %v8364_v43 = vmul.f32 0.1, %v8360_v38  ;;  %v8367_v10 = vmax.f32 %v8359_v41, %v8363_v30  ;;  %v14366_v27 = vld [vmem:[#allocation16 + $0x730] ss:$8 sps:$4 sm:$0xff]   ;;  %v14374_v41 = vld [vmem:[#allocation16 + $0x714] ss:$8 sps:$4 sm:$0xff]  }
 0x8ea   :  { %9294 = vmatpush1.bf16.msra.mxu0 %v14366_v27  ;;  %v16287_v24 = vld [vmem:[#allocation13 + $0x50] ss:$8 sps:$4 sm:$0xff]   ;;  %v16302_v30 = vld [vmem:[#allocation13 + $0x24] ss:$8 sps:$4 sm:$0xff]   ;;  %v16317_v27 = vld [vmem:[#allocation13] ss:$8 sps:$4 sm:$0xff]  }
 0x8eb   :  { %v8365_v42 = vmul.f32 0.1, %v8361_v16  ;;  %v8362_v40 = vadd.f32 %v8356_v44, %v8346_v53  ;;  %v8368_v17 = vmax.f32 %v8360_v38, %v8364_v43  ;;  %v14328_v44 = vld [vmem:[#allocation3 + $0x48] sm:$0xff]   ;;  %9295 = vmatprep.subr.bf16.mxu0 %v14371_v37  ;;  %v16290_v38 = vld [vmem:[#allocation13 + $0x44] ss:$8 sps:$4 sm:$0xff]   ;;  %16632 = vst [vmem:[#allocation31_spill] sm:$0xff] %v16302_v30 }
 0x8ec   :  { %v14372_v12 = vld [vmem:[#allocation16 + $0x710] ss:$8 sps:$4 sm:$0xff]   ;;  %v14377_v55 = vld [vmem:[#allocation16 + $0x704] ss:$8 sps:$4 sm:$0xff]   ;;  %v14375_v43 = vld [vmem:[#allocation16 + $0x700] ss:$8 sps:$4 sm:$0xff]  }
 0x8ed   :  { %v8366_v32 = vmul.f32 0.1, %v8362_v40  ;;  %v8369_v2 = vmax.f32 %v8361_v16, %v8365_v42  ;;  %v16293_v16 = vld [vmem:[#allocation13 + $0x40] ss:$8 sps:$4 sm:$0xff]   ;;  %v16296_v53 = vld [vmem:[#allocation13 + $0x34] ss:$8 sps:$4 sm:$0xff]  }
 0x8ee   :  { %9296 = vmatpush1.bf16.msra.mxu0 %v14369_v14  ;;  %16629 = vst [vmem:[#allocation28_spill] sm:$0xff] %v16293_v16  ;;  %16630 = vst [vmem:[#allocation29_spill] sm:$0xff] %v16296_v53  ;;  %v14380_v42 = vld [vmem:[#allocation16 + $0x7f4] ss:$8 sps:$4 sm:$0xff]   ;;  %v14387_v37 = vld [vmem:[#allocation16 + $0x7c0] ss:$8 sps:$4 sm:$0xff]  }
 0x8ef   :  { %v8370_v29 = vmax.f32 %v8362_v40, %v8366_v32  ;;  %v8371_v11 = vpack.c.bf16 %v8369_v2, %v8367_v10  ;;  %9297 = vmatprep.subr.bf16.mxu0 %v14374_v41  ;;  %v16299_v40 = vld [vmem:[#allocation13 + $0x30] ss:$8 sps:$4 sm:$0xff]   ;;  %v14381_v10 = vld [vmem:[#allocation16 + $0x7e0] ss:$8 sps:$4 sm:$0xff]   ;;  %16637 = vst [vmem:[#allocation36_spill] sm:$0xff] %v16317_v27 }
 0x8f0   :  { %16631 = vst [vmem:[#allocation30_spill] sm:$0xff] %v16299_v40  ;;  %v14378_v32 = vld [vmem:[#allocation16 + $0x7f0] ss:$8 sps:$4 sm:$0xff]   ;;  %v14383_v2 = vld [vmem:[#allocation16 + $0x7e4] ss:$8 sps:$4 sm:$0xff]  }
 0x8f1   :  { %v8372_v13 = vpack.c.bf16 %v8370_v29, %v8368_v17  ;;  %v16305_v17 = vld [vmem:[#allocation13 + $0x20] ss:$8 sps:$4 sm:$0xff]   ;;  %v16308_v29 = vld [vmem:[#allocation13 + $0x14] ss:$8 sps:$4 sm:$0xff]  }
 0x8f2   :  { %9298 = vmatpush1.bf16.msra.mxu0 %v14372_v12  ;;  %16633 = vst [vmem:[#allocation32_spill] sm:$0xff] %v16305_v17  ;;  %16634 = vst [vmem:[#allocation33_spill] sm:$0xff] %v16308_v29  ;;  %v14353_v14 = vld [vmem:[#allocation3 + $0x40] sm:$0xff]  }
 0x8f3   :  { %8598 = vmatprep.mubr.bf16.mxu1 %v8372_v13  ;;  %9299 = vmatprep.subr.bf16.mxu0 %v14377_v55  ;;  %v14386_v13 = vld [vmem:[#allocation16 + $0x7d4] ss:$8 sps:$4 sm:$0xff]   ;;  %v14390_v41 = vld [vmem:[#allocation16 + $0x7b0] ss:$8 sps:$4 sm:$0xff]   ;;  %v14395_v55 = vld [vmem:[#allocation16 + $0x7a4] ss:$8 sps:$4 sm:$0xff]  }
 0x8f4   :  { %8599 = vmatmul.mubr.bf16.vlgmr.msra.gmra.mxu1 %v8371_v11  ;;  %v16311_v11 = vld [vmem:[#allocation13 + $0x10] ss:$8 sps:$4 sm:$0xff]  }
 0x8f5   :  { %9020 = vmatpush1.bf16.msra.mxu1 %v16185_v51  ;;  %9051 = vmatprep.mubr.bf16.mxu1 %v16558_v23  ;;  %16635 = vst [vmem:[#allocation34_spill] sm:$0xff] %v16311_v11  ;;  %v14392_v12 = vld [vmem:[#allocation16 + $0x7b4] ss:$8 sps:$4 sm:$0xff]  }
 0x8f6   :  { %9021 = vmatprep.subr.bf16.mxu1 %v16187_v31  ;;  %9300 = vmatpush1.bf16.msra.mxu0 %v14375_v43  ;;  %v14393_v43 = vld [vmem:[#allocation16 + $0x7a0] ss:$8 sps:$4 sm:$0xff]  }
 0x8f7   :  { %9301 = vmatprep.subr.bf16.mxu0 %v14380_v42  ;;  %v14398_v42 = vld [vmem:[#allocation16 + $0x794] ss:$8 sps:$4 sm:$0xff]  }
 0x8f9   :  { %9022 = vmatpush1.bf16.msra.mxu1 %v16190_v57 }
 0x8fa   :  { %9023 = vmatprep.subr.bf16.mxu1 %v16194_v4  ;;  %9302 = vmatpush2.bf16.msra.mxu0 %v14378_v32  ;;  %v14396_v32 = vld [vmem:[#allocation16 + $0x790] ss:$8 sps:$4 sm:$0xff]  }
 0x8fb   :  { %9303 = vmatprep.subr.bf16.mxu0 %v14383_v2  ;;  %v14401_v2 = vld [vmem:[#allocation16 + $0x784] ss:$8 sps:$4 sm:$0xff]  }
 0x8fd   :  { %9024 = vmatpush1.bf16.msra.mxu1 %v16197_v61 }
 0x8fe   :  { %9025 = vmatprep.subr.bf16.mxu1 %v16200_v22  ;;  %9304 = vmatpush2.bf16.msra.mxu0 %v14381_v10  ;;  %v14399_v10 = vld [vmem:[#allocation16 + $0x780] ss:$8 sps:$4 sm:$0xff]  }
 0x8ff   :  { %9305 = vmatprep.subr.bf16.mxu0 %v14386_v13 }
 0x901   :  { %9026 = vmatpush1.bf16.msra.mxu1 %v16203_v0 }
 0x902   :  { %9027 = vmatprep.subr.bf16.mxu1 %v16206_v9 }
 0x905   :  { %9028 = vmatpush1.bf16.msra.mxu1 %v16209_v34 }
 0x906   :  { %9029 = vmatprep.subr.bf16.mxu1 %v16212_v60 }
 0x909   :  { %9030 = vmatpush1.bf16.msra.mxu1 %v16215_v52 }
 0x90a   :  { %9031 = vmatprep.subr.bf16.mxu1 %v16121_v39  ;;  %v16235_v39 = vld [vmem:[#allocation13 + $0xd4] ss:$8 sps:$4 sm:$0xff]  }
 0x90d   :  { %9032 = vmatpush1.bf16.msra.mxu1 %v16124_v19  ;;  %v16238_v19 = vld [vmem:[#allocation13 + $0xd0] ss:$8 sps:$4 sm:$0xff]  }
 0x90e   :  { %9033 = vmatprep.subr.bf16.mxu1 %v16127_v36  ;;  %v16241_v36 = vld [vmem:[#allocation13 + $0xc4] ss:$8 sps:$4 sm:$0xff]  }
 0x911   :  { %9034 = vmatpush1.bf16.msra.mxu1 %v16130_v21  ;;  %v16244_v21 = vld [vmem:[#allocation13 + $0xc0] ss:$8 sps:$4 sm:$0xff]  }
 0x912   :  { %9462 = vmatprep.subr.bf16.mxu1 %v16222_v58 }
 0x914   :  { %9052 = vmatmul.mubr.bf16.vlgmr.msra.gmra.mxu1 %v14303_v49  ;;  %v16314_v49 = vld [vmem:[#allocation13 + $0x4] ss:$8 sps:$4 sm:$0xff]  }
 0x915   :  { %9463 = vmatpush1.bf16.msra.mxu1 %v16225_v15  ;;  %9494 = vmatprep.mubr.bf16.mxu1 %v16558_v23  ;;  %16636 = vst [vmem:[#allocation35_spill] sm:$0xff] %v16314_v49 }
 0x916   :  { %9464 = vmatprep.subr.bf16.mxu1 %v16228_v48 }
 0x919   :  { %9465 = vmatpush1.bf16.msra.mxu1 %v16231_v50 }
 0x91a   :  { %9466 = vmatprep.subr.bf16.mxu1 %v16235_v39 }
 0x91d   :  { %9467 = vmatpush1.bf16.msra.mxu1 %v16238_v19 }
 0x91e   :  { %9468 = vmatprep.subr.bf16.mxu1 %v16241_v36 }
 0x921   :  { %9469 = vmatpush1.bf16.msra.mxu1 %v16244_v21 }
 0x922   :  { %9470 = vmatprep.subr.bf16.mxu1 %v16247_v62 }
 0x925   :  { %9471 = vmatpush1.bf16.msra.mxu1 %v16250_v7 }
 0x926   :  { %9472 = vmatprep.subr.bf16.mxu1 %v16253_v47 }
 0x929   :  { %9473 = vmatpush1.bf16.msra.mxu1 %v16256_v20 }
 0x92a   :  { %9474 = vmatprep.subr.bf16.mxu1 %v16259_v59 }
 0x92d   :  { %9475 = vmatpush1.bf16.msra.mxu1 %v16262_v5 }
 0x92e   :  { %9476 = vmatprep.subr.bf16.mxu1 %v16265_v3 }
 0x931   :  { %9477 = vmatpush1.bf16.msra.mxu1 %v16268_v26 }
 0x932   :  { %9591 = vmatprep.subr.bf16.mxu1 %v16271_v18 }
 0x934   :  { %9495 = vmatmul.mubr.bf16.vlgmr.msra.gmra.mxu1 %v14328_v44  ;;  %v14384_v44 = vld [vmem:[#allocation16 + $0x7d0] ss:$8 sps:$4 sm:$0xff]  }
 0x935   :  { %9592 = vmatpush1.bf16.msra.mxu1 %v16274_v1  ;;  %9623 = vmatprep.mubr.bf16.mxu1 %v16558_v23 }
 0x936   :  { %9593 = vmatprep.subr.bf16.mxu1 %v16277_v54  ;;  %9306 = vmatpush2.bf16.msra.mxu0 %v14384_v44 }
 0x937   :  { %9307 = vmatprep.subr.bf16.mxu0 %v14389_v45 }
 0x939   :  { %9594 = vmatpush1.bf16.msra.mxu1 %v16280_v33 }
 0x93a   :  { %9595 = vmatprep.subr.bf16.mxu1 %v16284_v25  ;;  %9308 = vmatpush2.bf16.msra.mxu0 %v14387_v37 }
 0x93b   :  { %9309 = vmatprep.subr.bf16.mxu0 %v14392_v12 }
 0x93d   :  { %9596 = vmatpush1.bf16.msra.mxu1 %v16287_v24 }
 0x93e   :  { %9597 = vmatprep.subr.bf16.mxu1 %v16290_v38  ;;  %9310 = vmatpush2.bf16.msra.mxu0 %v14390_v41 }
 0x93f   :  { %9311 = vmatprep.subr.bf16.mxu0 %v14395_v55 }
 0x941   :  { %9598 = vmatpush1.bf16.msra.mxu1 %v16293_v16 }
 0x942   :  { %9599 = vmatprep.subr.bf16.mxu1 %v16296_v53  ;;  %9312 = vmatpush2.bf16.msra.mxu0 %v14393_v43  ;;  %v8777_v43 = vpop.f32.mrf.mxu0 }
 0x943   :  { %9313 = vmatprep.subr.bf16.mxu0 %v14398_v42 }
 0x944   :  { %v8779_v42 = vpop.f32.mrf.mxu0 }
 0x945   :  { %9600 = vmatpush1.bf16.msra.mxu1 %v16299_v40 }
 0x946   :  { %9601 = vmatprep.subr.bf16.mxu1 %v16302_v30  ;;  %9314 = vmatpush2.bf16.msra.mxu0 %v14396_v32  ;;  %v8781_v32 = vpop.f32.mrf.mxu0 }
 0x947   :  { %9315 = vmatprep.subr.bf16.mxu0 %v14401_v2  ;;  %v14413_v2 = vld [vmem:[#allocation16 + $0x874] ss:$8 sps:$4 sm:$0xff]  }
 0x949   :  { %9602 = vmatpush1.bf16.msra.mxu1 %v16305_v17 }
 0x94a   :  { %9603 = vmatprep.subr.bf16.mxu1 %v16308_v29  ;;  %9316 = vmatpush2.bf16.msra.mxu0 %v14399_v10  ;;  %v14416_v10 = vld [vmem:[#allocation16 + $0x864] ss:$8 sps:$4 sm:$0xff]  }
 0x94b   :  { %9738 = vmatprep.subr.bf16.mxu0 %v16168_v8  ;;  %v14411_v8 = vld [vmem:[#allocation16 + $0x870] ss:$8 sps:$4 sm:$0xff]  }
 0x94d   :  { %9604 = vmatpush1.bf16.msra.mxu1 %v16311_v11 }
 0x94e   :  { %9605 = vmatprep.subr.bf16.mxu1 %v16314_v49 }
 0x951   :  { %9606 = vmatpush1.bf16.msra.mxu1 %v16317_v27 }
 0x952   :  { %10004 = vmatprep.subr.bf16.mxu1 %v14413_v2 }
 0x954   :  { %9624 = vmatmul.mubr.bf16.vlgmr.msra.gmra.mxu1 %v14353_v14 }
 0x955   :  { %10005 = vmatpush1.bf16.msra.mxu1 %v14411_v8 }
 0x956   :  { %10006 = vmatprep.subr.bf16.mxu1 %v14416_v10 }
 0x9b4   :  { %v8600_v13 = vpop.f32.mrf.mxu1 }
 0x9b5   :  { %v16323_v44 = vadd.f32 %v8600_v13, %v16172_v46  ;;  %v8783_v46 = vpop.f32.mrf.mxu0  ;;  %v14414_v13 = vld [vmem:[#allocation16 + $0x860] ss:$8 sps:$4 sm:$0xff]  }
 0x9b6   :  { %v8602_v45 = vpop.f32.mrf.mxu1  ;;  %10007 = vmatpush1.bf16.msra.mxu1 %v14414_v13 }
 0x9b7   :  { %16638 = vst [vmem:[#allocation37_spill] sm:$0xff] %v16323_v44  ;;  %v16326_v37 = vadd.f32 %v8602_v45, %v16175_v6  ;;  %v8906_v6 = vpop.f32.mrf.mxu0  ;;  %v14419_v45 = vld [vmem:[#allocation16 + $0x854] ss:$8 sps:$4 sm:$0xff]  }
 0x9b8   :  { %v8604_v14 = vpop.f32.mrf.mxu1  ;;  %10008 = vmatprep.subr.bf16.mxu1 %v14419_v45 }
 0x9b9   :  { %16639 = vst [vmem:[#allocation38_spill] sm:$0xff] %v16326_v37  ;;  %v16329_v12 = vadd.f32 %v8604_v14, %v16178_v63  ;;  %v14417_v63 = vld [vmem:[#allocation16 + $0x850] ss:$8 sps:$4 sm:$0xff]   ;;  %v8908_v14 = vpop.f32.mrf.mxu0  ;;  %v8907_v37 = vadd.f32 %v8906_v6, %v8777_v43 }
 0x9ba   :  { %v8606_v41 = vpop.f32.mrf.mxu1  ;;  %10009 = vmatpush1.bf16.msra.mxu1 %v14417_v63  ;;  %v8909_v27 = vadd.f32 %v8908_v14, %v8779_v42 }
 0x9bb   :  { %16640 = vst [vmem:[#allocation39_spill] sm:$0xff] %v16329_v12  ;;  %v16332_v55 = vadd.f32 %v8606_v41, %v16181_v56  ;;  %v14422_v12 = vld [vmem:[#allocation16 + $0x844] ss:$8 sps:$4 sm:$0xff]   ;;  %v14420_v56 = vld [vmem:[#allocation16 + $0x840] ss:$8 sps:$4 sm:$0xff]   ;;  %v8910_v41 = vpop.f32.mrf.mxu0 }
 0x9bc   :  { %10010 = vmatprep.subr.bf16.mxu1 %v14422_v12  ;;  %v8911_v11 = vadd.f32 %v8910_v41, %v8781_v32 }
 0x9bd   :  { %16641 = vst [vmem:[#allocation40_spill] sm:$0xff] %v16332_v55  ;;  %v9066_v55 = vld [vmem:[#allocation15] sm:$0x3]  ;;  %v8912_v8 = vpop.f32.mrf.mxu0 }
 0x9be   :  { %v9075_v2 = vrot.slane %v9066_v55, %v16627_v28  ;;  %10011 = vmatpush1.bf16.msra.mxu1 %v14420_v56  ;;  %v9071_v10 = vrot.slane %v9066_v55, %v16628_v35  ;;  %v8913_v17 = vadd.f32 %v8912_v8, %v8783_v46 }
 0x9c0   :  { %v16652_v46 = vld [vmem:[#allocation38_spill] sm:$0xff] }
 0x9c2   :  { %v16653_v8 = vld [vmem:[#allocation39_spill] sm:$0xff] }
 0x9d4   :  { %v9053_v44 = vpop.f32.mrf.mxu1 }
 0x9d5   :  { %v9062_v49 = vadd.f32 %v9053_v44, %v8907_v37 }
 0x9d6   :  { %v9055_v13 = vpop.f32.mrf.mxu1 }
 0x9d7   :  { %v9063_v29 = vadd.f32 %v9055_v13, %v8909_v27  ;;  %v9078_v40 = vadd.f32 %v9071_v10, %v9062_v49 }
 0x9d8   :  { %v9057_v45 = vpop.f32.mrf.mxu1 }
 0x9d9   :  { %v9079_v63 = vadd.f32 %v9075_v2, %v9063_v29  ;;  %v9064_v30 = vadd.f32 %v9057_v45, %v8911_v11  ;;  %v9082_v28 = vmul.f32 0.1, %v9078_v40  ;;  %v16651_v11 = vld [vmem:[#allocation37_spill] sm:$0xff]  ;;  %v16654_v45 = vld [vmem:[#allocation40_spill] sm:$0xff] }
 0x9da   :  { %v9059_v12 = vpop.f32.mrf.mxu1 }
 0x9db   :  { %v9080_v53 = vadd.f32 %v9071_v10, %v9064_v30  ;;  %v9065_v43 = vadd.f32 %v9059_v12, %v8913_v17  ;;  %v9083_v6 = vmul.f32 0.1, %v9079_v63  ;;  %v9086_v55 = vmax.f32 %v9078_v40, %v9082_v28  ;;  %v16347_v28 = vld [vmem:[#allocation13 + $0x114] ss:$8 sps:$4 sm:$0xff]   ;;  %v14458_v40 = vld [vmem:[#allocation16 + $0x884] ss:$8 sps:$4 sm:$0xff]  }
 0x9dc   :  { %v14456_v30 = vld [vmem:[#allocation16 + $0x880] ss:$8 sps:$4 sm:$0xff]   ;;  %v16394_v17 = vld [vmem:[#allocation13 + $0x174] ss:$8 sps:$4 sm:$0xff]  }
 0x9dd   :  { %v9084_v42 = vmul.f32 0.1, %v9080_v53  ;;  %v9081_v14 = vadd.f32 %v9075_v2, %v9065_v43  ;;  %v9087_v44 = vmax.f32 %v9079_v63, %v9083_v6 }
 0x9df   :  { %v9085_v56 = vmul.f32 0.1, %v9081_v14  ;;  %v9088_v16 = vmax.f32 %v9080_v53, %v9084_v42  ;;  %v14453_v53 = vld [vmem:[#allocation16 + $0x890] ss:$8 sps:$4 sm:$0xff]  }
 0x9e0   :  { %v14528_v42 = vld [vmem:[#allocation16 + $0x970] ss:$8 sps:$4 sm:$0xff]  }
 0x9e1   :  { %v9089_v37 = vmax.f32 %v9081_v14, %v9085_v56  ;;  %v9090_v32 = vpack.c.bf16 %v9088_v16, %v9086_v55  ;;  %v14455_v16 = vld [vmem:[#allocation16 + $0x894] ss:$8 sps:$4 sm:$0xff]   ;;  %v14533_v56 = vld [vmem:[#allocation16 + $0x964] ss:$8 sps:$4 sm:$0xff]  }
 0x9e2   :  { %v14530_v14 = vld [vmem:[#allocation16 + $0x974] ss:$8 sps:$4 sm:$0xff]  }
 0x9e3   :  { %v9091_v35 = vpack.c.bf16 %v9089_v37, %v9087_v44  ;;  %v14531_v37 = vld [vmem:[#allocation16 + $0x960] ss:$8 sps:$4 sm:$0xff]  }
 0x9e5   :  { %9317 = vmatprep.mubr.bf16.mxu0 %v9091_v35  ;;  %v16350_v35 = vld [vmem:[#allocation13 + $0x110] ss:$8 sps:$4 sm:$0xff]  }
 0x9e6   :  { %9318 = vmatmul.mubr.bf16.vlgmr.msra.gmra.mxu0 %v9090_v32  ;;  %v14536_v32 = vld [vmem:[#allocation16 + $0x954] ss:$8 sps:$4 sm:$0xff]  }
 0x9e7   :  { %9739 = vmatpush1.bf16.msra.mxu0 %v16185_v51  ;;  %9770 = vmatprep.mubr.bf16.mxu0 %v16558_v23  ;;  %v16353_v51 = vld [vmem:[#allocation13 + $0x104] ss:$8 sps:$4 sm:$0xff]  }
 0x9e8   :  { %9740 = vmatprep.subr.bf16.mxu0 %v16187_v31  ;;  %v16356_v31 = vld [vmem:[#allocation13 + $0x100] ss:$8 sps:$4 sm:$0xff]  }
 0x9eb   :  { %9741 = vmatpush1.bf16.msra.mxu0 %v16190_v57  ;;  %v14408_v57 = vld [vmem:[#allocation3 + $0x50] sm:$0xff]  }
 0x9ec   :  { %9742 = vmatprep.subr.bf16.mxu0 %v16194_v4  ;;  %v14409_v4 = vld [vmem:[#allocation3 + $0x50] sm:$0xff]  }
 0x9ef   :  { %9743 = vmatpush1.bf16.msra.mxu0 %v16197_v61  ;;  %v14425_v61 = vld [vmem:[#allocation16 + $0x834] ss:$8 sps:$4 sm:$0xff]  }
 0x9f0   :  { %9744 = vmatprep.subr.bf16.mxu0 %v16200_v22  ;;  %v14423_v22 = vld [vmem:[#allocation16 + $0x830] ss:$8 sps:$4 sm:$0xff]   ;;  %10012 = vmatprep.subr.bf16.mxu1 %v14425_v61  ;;  %v14539_v61 = vld [vmem:[#allocation16 + $0x944] ss:$8 sps:$4 sm:$0xff]  }
 0x9f1   :  { %10013 = vmatpush1.bf16.msra.mxu1 %v14423_v22  ;;  %v14537_v22 = vld [vmem:[#allocation16 + $0x940] ss:$8 sps:$4 sm:$0xff]  }
 0x9f3   :  { %9745 = vmatpush1.bf16.msra.mxu0 %v16203_v0  ;;  %v14428_v0 = vld [vmem:[#allocation16 + $0x824] ss:$8 sps:$4 sm:$0xff]  }
 0x9f4   :  { %9746 = vmatprep.subr.bf16.mxu0 %v16206_v9  ;;  %v14426_v9 = vld [vmem:[#allocation16 + $0x820] ss:$8 sps:$4 sm:$0xff]   ;;  %10014 = vmatprep.subr.bf16.mxu1 %v14428_v0  ;;  %v9496_v12 = vpop.f32.mrf.mxu1 }
 0x9f5   :  { %10015 = vmatpush1.bf16.msra.mxu1 %v14426_v9  ;;  %v9785_v9 = vld [vmem:[#allocation15] sm:$0x3] }
 0x9f6   :  { %v9498_v43 = vpop.f32.mrf.mxu1 }
 0x9f7   :  { %9747 = vmatpush1.bf16.msra.mxu0 %v16209_v34  ;;  %v14429_v34 = vld [vmem:[#allocation16 + $0x810] ss:$8 sps:$4 sm:$0xff]  }
 0x9f8   :  { %9748 = vmatprep.subr.bf16.mxu0 %v16212_v60  ;;  %v14431_v60 = vld [vmem:[#allocation16 + $0x814] ss:$8 sps:$4 sm:$0xff]   ;;  %v9500_v6 = vpop.f32.mrf.mxu1 }
 0x9f9   :  { %10016 = vmatprep.subr.bf16.mxu1 %v14431_v60 }
 0x9fa   :  { %10017 = vmatpush1.bf16.msra.mxu1 %v14429_v34  ;;  %v9502_v44 = vpop.f32.mrf.mxu1 }
 0x9fb   :  { %9749 = vmatpush1.bf16.msra.mxu0 %v16215_v52  ;;  %v14434_v52 = vld [vmem:[#allocation16 + $0x804] ss:$8 sps:$4 sm:$0xff]  }
 0x9fc   :  { %9750 = vmatprep.subr.bf16.mxu0 %v16347_v28  ;;  %10018 = vmatprep.subr.bf16.mxu1 %v14434_v52 }
 0x9ff   :  { %9751 = vmatpush1.bf16.msra.mxu0 %v16350_v35 }
 0xa00   :  { %9752 = vmatprep.subr.bf16.mxu0 %v16353_v51 }
 0xa03   :  { %9753 = vmatpush1.bf16.msra.mxu0 %v16356_v31 }
 0xa04   :  { %10181 = vmatprep.subr.bf16.mxu0 %v16222_v58  ;;  %v14432_v58 = vld [vmem:[#allocation16 + $0x800] ss:$8 sps:$4 sm:$0xff]  }
 0xa05   :  { %10019 = vmatpush1.bf16.msra.mxu1 %v14432_v58  ;;  %v16655_v58 = vld [vmem:[#allocation26_spill] sm:$0xff] }
 0xa06   :  { %9771 = vmatmul.mubr.bf16.vlgmr.msra.gmra.mxu0 %v14408_v57  ;;  %v14534_v57 = vld [vmem:[#allocation16 + $0x950] ss:$8 sps:$4 sm:$0xff]  }
 0xa07   :  { %10182 = vmatpush1.bf16.msra.mxu0 %v16225_v15  ;;  %10213 = vmatprep.mubr.bf16.mxu0 %v16558_v23  ;;  %v14437_v15 = vld [vmem:[#allocation16 + $0x8f4] ss:$8 sps:$4 sm:$0xff]  }
 0xa08   :  { %10183 = vmatprep.subr.bf16.mxu0 %v16228_v48  ;;  %v16642_v48 = vld [vmem:[#allocation28_spill] sm:$0xff]  ;;  %10020 = vmatprep.subr.bf16.mxu1 %v14437_v15  ;;  %v9794_v15 = vrot.slane %v9785_v9, %v16655_v58 }
 0xa0b   :  { %10184 = vmatpush1.bf16.msra.mxu0 %v16231_v50  ;;  %v16643_v50 = vld [vmem:[#allocation29_spill] sm:$0xff] }
 0xa0c   :  { %10185 = vmatprep.subr.bf16.mxu0 %v16235_v39  ;;  %v14435_v39 = vld [vmem:[#allocation16 + $0x8f0] ss:$8 sps:$4 sm:$0xff]  }
 0xa0d   :  { %10021 = vmatpush2.bf16.msra.mxu1 %v14435_v39  ;;  %v16656_v39 = vld [vmem:[#allocation27_spill] sm:$0xff] }
 0xa0f   :  { %10186 = vmatpush1.bf16.msra.mxu0 %v16238_v19  ;;  %v14440_v19 = vld [vmem:[#allocation16 + $0x8e4] ss:$8 sps:$4 sm:$0xff]  }
 0xa10   :  { %10187 = vmatprep.subr.bf16.mxu0 %v16241_v36  ;;  %v16644_v36 = vld [vmem:[#allocation30_spill] sm:$0xff]  ;;  %10022 = vmatprep.subr.bf16.mxu1 %v14440_v19  ;;  %v9790_v19 = vrot.slane %v9785_v9, %v16656_v39 }
 0xa11   :  { %v14501_v9 = vld [vmem:[#allocation13 + $0x84] ss:$8 sps:$4 sm:$0xff]  }
 0xa13   :  { %10188 = vmatpush1.bf16.msra.mxu0 %v16244_v21  ;;  %v16645_v21 = vld [vmem:[#allocation31_spill] sm:$0xff] }
 0xa14   :  { %10189 = vmatprep.subr.bf16.mxu0 %v16247_v62  ;;  %v14438_v62 = vld [vmem:[#allocation16 + $0x8e0] ss:$8 sps:$4 sm:$0xff]   ;;  %v9625_v55 = vpop.f32.mrf.mxu1 }
 0xa15   :  { %10023 = vmatpush2.bf16.msra.mxu1 %v14438_v62  ;;  %v9626_v34 = vadd.f32 %v9625_v55, %v9496_v12  ;;  %v16432_v12 = vld [vmem:[#allocation13 + $0x134] ss:$8 sps:$4 sm:$0xff]   ;;  %v14481_v55 = vld [vmem:[#allocation13 + $0xe0] ss:$8 sps:$4 sm:$0xff]  }
 0xa17   :  { %10190 = vmatpush1.bf16.msra.mxu0 %v16250_v7  ;;  %v14443_v7 = vld [vmem:[#allocation16 + $0x8d4] ss:$8 sps:$4 sm:$0xff]  }
 0xa18   :  { %10191 = vmatprep.subr.bf16.mxu0 %v16253_v47  ;;  %v16646_v47 = vld [vmem:[#allocation32_spill] sm:$0xff]  ;;  %10024 = vmatprep.subr.bf16.mxu1 %v14443_v7 }
 0xa1b   :  { %10192 = vmatpush1.bf16.msra.mxu0 %v16256_v20  ;;  %v16647_v20 = vld [vmem:[#allocation33_spill] sm:$0xff] }
 0xa1c   :  { %10193 = vmatprep.subr.bf16.mxu0 %v16259_v59  ;;  %v14441_v59 = vld [vmem:[#allocation16 + $0x8d0] ss:$8 sps:$4 sm:$0xff]  }
 0xa1d   :  { %10025 = vmatpush2.bf16.msra.mxu1 %v14441_v59 }
 0xa1f   :  { %10194 = vmatpush1.bf16.msra.mxu0 %v16262_v5  ;;  %v14446_v5 = vld [vmem:[#allocation16 + $0x8c4] ss:$8 sps:$4 sm:$0xff]  }
 0xa20   :  { %10195 = vmatprep.subr.bf16.mxu0 %v16265_v3  ;;  %v16648_v3 = vld [vmem:[#allocation34_spill] sm:$0xff]  ;;  %10026 = vmatprep.subr.bf16.mxu1 %v14446_v5 }
 0xa23   :  { %10196 = vmatpush1.bf16.msra.mxu0 %v16268_v26  ;;  %v16649_v26 = vld [vmem:[#allocation35_spill] sm:$0xff] }
 0xa24   :  { %10310 = vmatprep.subr.bf16.mxu0 %v16271_v18  ;;  %v14444_v18 = vld [vmem:[#allocation16 + $0x8c0] ss:$8 sps:$4 sm:$0xff]  }
 0xa25   :  { %10027 = vmatpush2.bf16.msra.mxu1 %v14444_v18 }
 0xa26   :  { %10214 = vmatmul.mubr.bf16.vlgmr.msra.gmra.mxu0 %v14409_v4  ;;  %v9627_v4 = vpop.f32.mrf.mxu1 }
 0xa27   :  { %10311 = vmatpush1.bf16.msra.mxu0 %v16274_v1  ;;  %10342 = vmatprep.mubr.bf16.mxu0 %v16558_v23  ;;  %v16650_v1 = vld [vmem:[#allocation36_spill] sm:$0xff]  ;;  %v9628_v52 = vadd.f32 %v9627_v4, %v9498_v43  ;;  %v14495_v4 = vld [vmem:[#allocation13 + $0xa4] ss:$8 sps:$4 sm:$0xff]  }
 0xa28   :  { %10312 = vmatprep.subr.bf16.mxu0 %v16277_v54  ;;  %v14410_v54 = vld [vmem:[#allocation3 + $0x48] sm:$0xff]   ;;  %v9629_v0 = vpop.f32.mrf.mxu1 }
 0xa29   :  { %v16435_v43 = vld [vmem:[#allocation13 + $0x130] ss:$8 sps:$4 sm:$0xff]  }
 0xa2b   :  { %10313 = vmatpush1.bf16.msra.mxu0 %v16280_v33  ;;  %v14449_v33 = vld [vmem:[#allocation16 + $0x8b4] ss:$8 sps:$4 sm:$0xff]  }
 0xa2c   :  { %10314 = vmatprep.subr.bf16.mxu0 %v16284_v25  ;;  %v14447_v25 = vld [vmem:[#allocation16 + $0x8b0] ss:$8 sps:$4 sm:$0xff]   ;;  %10028 = vmatprep.subr.bf16.mxu1 %v14449_v33 }
 0xa2d   :  { %10029 = vmatpush2.bf16.msra.mxu1 %v14447_v25 }
 0xa2f   :  { %10315 = vmatpush1.bf16.msra.mxu0 %v16287_v24  ;;  %v14452_v24 = vld [vmem:[#allocation16 + $0x8a4] ss:$8 sps:$4 sm:$0xff]  }
 0xa30   :  { %10316 = vmatprep.subr.bf16.mxu0 %v16290_v38  ;;  %v14450_v38 = vld [vmem:[#allocation16 + $0x8a0] ss:$8 sps:$4 sm:$0xff]   ;;  %10030 = vmatprep.subr.bf16.mxu1 %v14452_v24 }
 0xa31   :  { %10031 = vmatpush2.bf16.msra.mxu1 %v14450_v38 }
 0xa32   :  { %10032 = vmatprep.subr.bf16.mxu1 %v14455_v16 }
 0xa33   :  { %10317 = vmatpush1.bf16.msra.mxu0 %v16642_v48  ;;  %v9631_v48 = vpop.f32.mrf.mxu1 }
 0xa34   :  { %10318 = vmatprep.subr.bf16.mxu0 %v16643_v50 }
 0xa35   :  { %10033 = vmatpush2.bf16.msra.mxu1 %v14453_v53 }
 0xa36   :  { %10034 = vmatprep.subr.bf16.mxu1 %v14458_v40 }
 0xa37   :  { %10319 = vmatpush1.bf16.msra.mxu0 %v16644_v36 }
 0xa38   :  { %10320 = vmatprep.subr.bf16.mxu0 %v16645_v21  ;;  %v9630_v21 = vadd.f32 %v9629_v0, %v9500_v6  ;;  %v16438_v6 = vld [vmem:[#allocation13 + $0x124] ss:$8 sps:$4 sm:$0xff]   ;;  %v14496_v0 = vld [vmem:[#allocation13 + $0x90] ss:$8 sps:$4 sm:$0xff]  }
 0xa39   :  { %10035 = vmatpush2.bf16.msra.mxu1 %v14456_v30 }
 0xa3a   :  { %10457 = vmatprep.subr.bf16.mxu1 %v16394_v17 }
 0xa3b   :  { %10321 = vmatpush1.bf16.msra.mxu0 %v16646_v47  ;;  %v9632_v47 = vadd.f32 %v9631_v48, %v9502_v44  ;;  %v14477_v44 = vld [vmem:[#allocation3 + $0x58] sm:$0xff]  }
 0xa3c   :  { %10322 = vmatprep.subr.bf16.mxu0 %v16647_v20  ;;  %v14508_v48 = vld [vmem:[#allocation13 + $0x64] ss:$8 sps:$4 sm:$0xff]  }
 0xa3f   :  { %10323 = vmatpush1.bf16.msra.mxu0 %v16648_v3 }
 0xa40   :  { %10324 = vmatprep.subr.bf16.mxu0 %v16649_v26 }
 0xa43   :  { %10325 = vmatpush1.bf16.msra.mxu0 %v16650_v1 }
 0xa44   :  { %10723 = vmatprep.subr.bf16.mxu0 %v14530_v14  ;;  %v14480_v14 = vld [vmem:[#allocation13 + $0xf4] ss:$8 sps:$4 sm:$0xff]  }
 0xa46   :  { %10343 = vmatmul.mubr.bf16.vlgmr.msra.gmra.mxu0 %v14410_v54 }
 0xa47   :  { %10724 = vmatpush1.bf16.msra.mxu0 %v14528_v42  ;;  %v16441_v42 = vld [vmem:[#allocation13 + $0x120] ss:$8 sps:$4 sm:$0xff]  }
 0xa48   :  { %10725 = vmatprep.subr.bf16.mxu0 %v14533_v56  ;;  %v14478_v56 = vld [vmem:[#allocation13 + $0xf0] ss:$8 sps:$4 sm:$0xff]  }
 0xa4b   :  { %10726 = vmatpush1.bf16.msra.mxu0 %v14531_v37  ;;  %v14483_v37 = vld [vmem:[#allocation13 + $0xe4] ss:$8 sps:$4 sm:$0xff]  }
 0xa4c   :  { %10727 = vmatprep.subr.bf16.mxu0 %v14536_v32  ;;  %v14486_v32 = vld [vmem:[#allocation13 + $0xd4] ss:$8 sps:$4 sm:$0xff]  }
 0xa4f   :  { %10728 = vmatpush1.bf16.msra.mxu0 %v14534_v57  ;;  %v14492_v57 = vld [vmem:[#allocation13 + $0xb4] ss:$8 sps:$4 sm:$0xff]  }
 0xa50   :  { %10729 = vmatprep.subr.bf16.mxu0 %v14539_v61  ;;  %v14493_v61 = vld [vmem:[#allocation13 + $0xa0] ss:$8 sps:$4 sm:$0xff]  }
 0xa53   :  { %10730 = vmatpush1.bf16.msra.mxu0 %v14537_v22  ;;  %v14498_v22 = vld [vmem:[#allocation13 + $0x94] ss:$8 sps:$4 sm:$0xff]  }
 0xaa6   :  { %v9319_v29 = vpop.f32.mrf.mxu0 }
 0xaa7   :  { %v16398_v49 = vadd.f32 %v9319_v29, %v16651_v11  ;;  %v16411_v29 = vld [vmem:[#allocation13 + $0x170] ss:$8 sps:$4 sm:$0xff]  }
 0xaa8   :  { %v9321_v27 = vpop.f32.mrf.mxu0 }
 0xaa9   :  { %v16401_v41 = vadd.f32 %v9321_v27, %v16652_v46  ;;  %v16413_v27 = vld [vmem:[#allocation13 + $0x164] ss:$8 sps:$4 sm:$0xff]   ;;  %v16416_v46 = vld [vmem:[#allocation13 + $0x160] ss:$8 sps:$4 sm:$0xff]  }
 0xaaa   :  { %v9323_v2 = vpop.f32.mrf.mxu0 }
 0xaab   :  { %v16404_v10 = vadd.f32 %v9323_v2, %v16653_v8  ;;  %v16420_v2 = vld [vmem:[#allocation13 + $0x154] ss:$8 sps:$4 sm:$0xff]   ;;  %v16423_v8 = vld [vmem:[#allocation13 + $0x150] ss:$8 sps:$4 sm:$0xff]  }
 0xaac   :  { %v9325_v13 = vpop.f32.mrf.mxu0 }
 0xaad   :  { %v16407_v63 = vadd.f32 %v9325_v13, %v16654_v45  ;;  %v16426_v13 = vld [vmem:[#allocation13 + $0x144] ss:$8 sps:$4 sm:$0xff]   ;;  %v16429_v45 = vld [vmem:[#allocation13 + $0x140] ss:$8 sps:$4 sm:$0xff]  }
 0xac6   :  { %v9772_v60 = vpop.f32.mrf.mxu0 }
 0xac7   :  { %v9781_v50 = vadd.f32 %v9772_v60, %v9626_v34  ;;  %v14499_v34 = vld [vmem:[#allocation13 + $0x80] ss:$8 sps:$4 sm:$0xff]   ;;  %v14505_v60 = vld [vmem:[#allocation13 + $0x74] ss:$8 sps:$4 sm:$0xff]  }
 0xac8   :  { %v9774_v36 = vpop.f32.mrf.mxu0 }
 0xac9   :  { %v9782_v62 = vadd.f32 %v9774_v36, %v9628_v52  ;;  %v9797_v5 = vadd.f32 %v9790_v19, %v9781_v50  ;;  %v14503_v52 = vld [vmem:[#allocation13 + $0x70] ss:$8 sps:$4 sm:$0xff]   ;;  %v14506_v36 = vld [vmem:[#allocation13 + $0x60] ss:$8 sps:$4 sm:$0xff]  }
 0xaca   :  { %v9776_v7 = vpop.f32.mrf.mxu0  ;;  %v14542_v50 = vld [vmem:[#allocation16 + $0x934] ss:$8 sps:$4 sm:$0xff]  }
 0xacb   :  { %v9798_v20 = vadd.f32 %v9794_v15, %v9782_v62  ;;  %v9783_v59 = vadd.f32 %v9776_v7, %v9630_v21  ;;  %v9801_v25 = vmul.f32 0.1, %v9797_v5  ;;  %v14511_v21 = vld [vmem:[#allocation13 + $0x54] ss:$8 sps:$4 sm:$0xff]   ;;  %10731 = vmatprep.subr.bf16.mxu0 %v14542_v50  ;;  %v14545_v62 = vld [vmem:[#allocation16 + $0x924] ss:$8 sps:$4 sm:$0xff]  }
 0xacc   :  { %v9778_v3 = vpop.f32.mrf.mxu0  ;;  %v14543_v7 = vld [vmem:[#allocation16 + $0x920] ss:$8 sps:$4 sm:$0xff]  }
 0xacd   :  { %v9799_v26 = vadd.f32 %v9790_v19, %v9783_v59  ;;  %v9784_v18 = vadd.f32 %v9778_v3, %v9632_v47  ;;  %v9802_v1 = vmul.f32 0.1, %v9798_v20  ;;  %v9805_v40 = vmax.f32 %v9797_v5, %v9801_v25  ;;  %v14540_v19 = vld [vmem:[#allocation16 + $0x930] ss:$8 sps:$4 sm:$0xff]   ;;  %v14548_v5 = vld [vmem:[#allocation16 + $0x914] ss:$8 sps:$4 sm:$0xff]  }
 0xace   :  { %10732 = vmatpush1.bf16.msra.mxu0 %v14540_v19  ;;  %v14509_v47 = vld [vmem:[#allocation13 + $0x50] ss:$8 sps:$4 sm:$0xff]   ;;  %v14520_v25 = vld [vmem:[#allocation13 + $0x24] ss:$8 sps:$4 sm:$0xff]  }
 0xacf   :  { %v9803_v54 = vmul.f32 0.1, %v9799_v26  ;;  %v9800_v33 = vadd.f32 %v9794_v15, %v9784_v18  ;;  %v9806_v16 = vmax.f32 %v9798_v20, %v9802_v1  ;;  %v14502_v15 = vld [vmem:[#allocation3 + $0x58] sm:$0xff]   ;;  %10733 = vmatprep.subr.bf16.mxu0 %v14545_v62  ;;  %v14546_v59 = vld [vmem:[#allocation16 + $0x910] ss:$8 sps:$4 sm:$0xff]  }
 0xad0   :  { %v14514_v20 = vld [vmem:[#allocation13 + $0x44] ss:$8 sps:$4 sm:$0xff]   ;;  %v14517_v18 = vld [vmem:[#allocation13 + $0x34] ss:$8 sps:$4 sm:$0xff]  }
 0xad1   :  { %v9804_v24 = vmul.f32 0.1, %v9800_v33  ;;  %v9807_v38 = vmax.f32 %v9799_v26, %v9803_v54  ;;  %v14551_v3 = vld [vmem:[#allocation16 + $0x904] ss:$8 sps:$4 sm:$0xff]   ;;  %v14549_v1 = vld [vmem:[#allocation16 + $0x900] ss:$8 sps:$4 sm:$0xff]  }
 0xad2   :  { %10734 = vmatpush1.bf16.msra.mxu0 %v14543_v7  ;;  %v14512_v26 = vld [vmem:[#allocation13 + $0x40] ss:$8 sps:$4 sm:$0xff]  }
 0xad3   :  { %v9808_v53 = vmax.f32 %v9800_v33, %v9804_v24  ;;  %v9809_v11 = vpack.c.bf16 %v9807_v38, %v9805_v40  ;;  %10735 = vmatprep.subr.bf16.mxu0 %v14548_v5  ;;  %v14554_v54 = vld [vmem:[#allocation16 + $0x9f4] ss:$8 sps:$4 sm:$0xff]   ;;  %v14552_v24 = vld [vmem:[#allocation16 + $0x9f0] ss:$8 sps:$4 sm:$0xff]   ;;  %v14557_v38 = vld [vmem:[#allocation16 + $0x9e4] ss:$8 sps:$4 sm:$0xff]  }
 0xad4   :  { %v14515_v33 = vld [vmem:[#allocation13 + $0x30] ss:$8 sps:$4 sm:$0xff]   ;;  %v14555_v40 = vld [vmem:[#allocation16 + $0x9e0] ss:$8 sps:$4 sm:$0xff]  }
 0xad5   :  { %v9810_v30 = vpack.c.bf16 %v9808_v53, %v9806_v16  ;;  %v14518_v16 = vld [vmem:[#allocation13 + $0x20] ss:$8 sps:$4 sm:$0xff]   ;;  %v14523_v53 = vld [vmem:[#allocation13 + $0x14] ss:$8 sps:$4 sm:$0xff]  }
 0xad6   :  { %10736 = vmatpush1.bf16.msra.mxu0 %v14546_v59  ;;  %v14592_v50 = vld [vmem:[#allocation16 + $0xa40] ss:$8 sps:$4 sm:$0xff]  }
 0xad7   :  { %10036 = vmatprep.mubr.bf16.mxu1 %v9810_v30  ;;  %10737 = vmatprep.subr.bf16.mxu0 %v14551_v3  ;;  %v14560_v30 = vld [vmem:[#allocation16 + $0x9d4] ss:$8 sps:$4 sm:$0xff]  }
 0xad8   :  { %10037 = vmatmul.mubr.bf16.vlgmr.msra.gmra.mxu1 %v9809_v11  ;;  %v14521_v11 = vld [vmem:[#allocation13 + $0x10] ss:$8 sps:$4 sm:$0xff]  }
 0xad9   :  { %10458 = vmatpush1.bf16.msra.mxu1 %v16411_v29  ;;  %10489 = vmatprep.mubr.bf16.mxu1 %v16558_v23 }
 0xada   :  { %10459 = vmatprep.subr.bf16.mxu1 %v16413_v27  ;;  %10738 = vmatpush1.bf16.msra.mxu0 %v14549_v1 }
 0xadb   :  { %10739 = vmatprep.subr.bf16.mxu0 %v14554_v54  ;;  %v10504_v54 = vld [vmem:[#allocation15] sm:$0x3] }
 0xadd   :  { %10460 = vmatpush1.bf16.msra.mxu1 %v16416_v46 }
 0xade   :  { %10461 = vmatprep.subr.bf16.mxu1 %v16420_v2  ;;  %10740 = vmatpush2.bf16.msra.mxu0 %v14552_v24  ;;  %v10513_v24 = vrot.slane %v10504_v54, %v16655_v58 }
 0xadf   :  { %10741 = vmatprep.subr.bf16.mxu0 %v14557_v38 }
 0xae1   :  { %10462 = vmatpush1.bf16.msra.mxu1 %v16423_v8 }
 0xae2   :  { %10463 = vmatprep.subr.bf16.mxu1 %v16426_v13  ;;  %10742 = vmatpush2.bf16.msra.mxu0 %v14555_v40 }
 0xae3   :  { %10743 = vmatprep.subr.bf16.mxu0 %v14560_v30 }
 0xae5   :  { %10464 = vmatpush1.bf16.msra.mxu1 %v16429_v45 }
 0xae6   :  { %10465 = vmatprep.subr.bf16.mxu1 %v16432_v12  ;;  %v10215_v59 = vpop.f32.mrf.mxu0 }
 0xae8   :  { %v10217_v5 = vpop.f32.mrf.mxu0 }
 0xae9   :  { %10466 = vmatpush1.bf16.msra.mxu1 %v16435_v43 }
 0xaea   :  { %10467 = vmatprep.subr.bf16.mxu1 %v16438_v6  ;;  %v10219_v3 = vpop.f32.mrf.mxu0 }
 0xaed   :  { %10468 = vmatpush1.bf16.msra.mxu1 %v16441_v42 }
 0xaee   :  { %10469 = vmatprep.subr.bf16.mxu1 %v16347_v28  ;;  %v14484_v28 = vld [vmem:[#allocation13 + $0xd0] ss:$8 sps:$4 sm:$0xff]  }
 0xaf1   :  { %10470 = vmatpush1.bf16.msra.mxu1 %v16350_v35  ;;  %v14489_v35 = vld [vmem:[#allocation13 + $0xc4] ss:$8 sps:$4 sm:$0xff]  }
 0xaf2   :  { %10471 = vmatprep.subr.bf16.mxu1 %v16353_v51  ;;  %v14487_v51 = vld [vmem:[#allocation13 + $0xc0] ss:$8 sps:$4 sm:$0xff]  }
 0xaf5   :  { %10472 = vmatpush1.bf16.msra.mxu1 %v16356_v31  ;;  %v14490_v31 = vld [vmem:[#allocation13 + $0xb0] ss:$8 sps:$4 sm:$0xff]  }
 0xaf6   :  { %10900 = vmatprep.subr.bf16.mxu1 %v14480_v14  ;;  %v14526_v14 = vld [vmem:[#allocation13 + $0x4] ss:$8 sps:$4 sm:$0xff]  }
 0xaf8   :  { %10490 = vmatmul.mubr.bf16.vlgmr.msra.gmra.mxu1 %v14477_v44  ;;  %v14563_v44 = vld [vmem:[#allocation16 + $0x9c4] ss:$8 sps:$4 sm:$0xff]  }
 0xaf9   :  { %10901 = vmatpush1.bf16.msra.mxu1 %v14478_v56  ;;  %10932 = vmatprep.mubr.bf16.mxu1 %v16558_v23  ;;  %v14558_v56 = vld [vmem:[#allocation16 + $0x9d0] ss:$8 sps:$4 sm:$0xff]  }
 0xafa   :  { %10902 = vmatprep.subr.bf16.mxu1 %v14483_v37  ;;  %v14524_v37 = vld [vmem:[#allocation13] ss:$8 sps:$4 sm:$0xff]   ;;  %10744 = vmatpush2.bf16.msra.mxu0 %v14558_v56 }
 0xafb   :  { %10745 = vmatprep.subr.bf16.mxu0 %v14563_v44 }
 0xafd   :  { %10903 = vmatpush1.bf16.msra.mxu1 %v14481_v55  ;;  %v14561_v55 = vld [vmem:[#allocation16 + $0x9c0] ss:$8 sps:$4 sm:$0xff]  }
 0xafe   :  { %10904 = vmatprep.subr.bf16.mxu1 %v14486_v32  ;;  %v14527_v32 = vld [vmem:[#allocation3 + $0x50] sm:$0xff]   ;;  %10746 = vmatpush2.bf16.msra.mxu0 %v14561_v55 }
 0xb01   :  { %10905 = vmatpush1.bf16.msra.mxu1 %v14484_v28  ;;  %v14566_v28 = vld [vmem:[#allocation16 + $0x9b4] ss:$8 sps:$4 sm:$0xff]  }
 0xb02   :  { %10906 = vmatprep.subr.bf16.mxu1 %v14489_v35  ;;  %v14564_v35 = vld [vmem:[#allocation16 + $0x9b0] ss:$8 sps:$4 sm:$0xff]   ;;  %10747 = vmatprep.subr.bf16.mxu0 %v14566_v28 }
 0xb03   :  { %10748 = vmatpush2.bf16.msra.mxu0 %v14564_v35 }
 0xb05   :  { %10907 = vmatpush1.bf16.msra.mxu1 %v14487_v51  ;;  %v14569_v51 = vld [vmem:[#allocation16 + $0x9a4] ss:$8 sps:$4 sm:$0xff]  }
 0xb06   :  { %10908 = vmatprep.subr.bf16.mxu1 %v14492_v57  ;;  %v14567_v57 = vld [vmem:[#allocation16 + $0x9a0] ss:$8 sps:$4 sm:$0xff]   ;;  %10749 = vmatprep.subr.bf16.mxu0 %v14569_v51 }
 0xb07   :  { %10750 = vmatpush2.bf16.msra.mxu0 %v14567_v57 }
 0xb09   :  { %10909 = vmatpush1.bf16.msra.mxu1 %v14490_v31  ;;  %v14572_v31 = vld [vmem:[#allocation16 + $0x994] ss:$8 sps:$4 sm:$0xff]  }
 0xb0a   :  { %10910 = vmatprep.subr.bf16.mxu1 %v14495_v4  ;;  %v14570_v4 = vld [vmem:[#allocation16 + $0x990] ss:$8 sps:$4 sm:$0xff]   ;;  %10751 = vmatprep.subr.bf16.mxu0 %v14572_v31 }
 0xb0b   :  { %10752 = vmatpush2.bf16.msra.mxu0 %v14570_v4 }
 0xb0d   :  { %10911 = vmatpush1.bf16.msra.mxu1 %v14493_v61  ;;  %v14575_v61 = vld [vmem:[#allocation16 + $0x984] ss:$8 sps:$4 sm:$0xff]  }
 0xb0e   :  { %10912 = vmatprep.subr.bf16.mxu1 %v14498_v22  ;;  %v14573_v22 = vld [vmem:[#allocation16 + $0x980] ss:$8 sps:$4 sm:$0xff]   ;;  %10753 = vmatprep.subr.bf16.mxu0 %v14575_v61 }
 0xb0f   :  { %10754 = vmatpush2.bf16.msra.mxu0 %v14573_v22 }
 0xb10   :  { %11176 = vmatprep.subr.bf16.mxu0 %v16394_v17 }
 0xb11   :  { %10913 = vmatpush1.bf16.msra.mxu1 %v14496_v0  ;;  %v14583_v0 = vld [vmem:[#allocation16 + $0xa70] ss:$8 sps:$4 sm:$0xff]  }
 0xb12   :  { %10914 = vmatprep.subr.bf16.mxu1 %v14501_v9  ;;  %v14585_v9 = vld [vmem:[#allocation16 + $0xa74] ss:$8 sps:$4 sm:$0xff]  }
 0xb15   :  { %10915 = vmatpush1.bf16.msra.mxu1 %v14499_v34  ;;  %v14588_v34 = vld [vmem:[#allocation16 + $0xa64] ss:$8 sps:$4 sm:$0xff]  }
 0xb16   :  { %11029 = vmatprep.subr.bf16.mxu1 %v14505_v60  ;;  %v14586_v60 = vld [vmem:[#allocation16 + $0xa60] ss:$8 sps:$4 sm:$0xff]  }
 0xb18   :  { %10933 = vmatmul.mubr.bf16.vlgmr.msra.gmra.mxu1 %v14502_v15  ;;  %v14589_v15 = vld [vmem:[#allocation16 + $0xa50] ss:$8 sps:$4 sm:$0xff]  }
 0xb19   :  { %11030 = vmatpush1.bf16.msra.mxu1 %v14503_v52  ;;  %11061 = vmatprep.mubr.bf16.mxu1 %v16558_v23  ;;  %v14591_v52 = vld [vmem:[#allocation16 + $0xa54] ss:$8 sps:$4 sm:$0xff]  }
 0xb1a   :  { %11031 = vmatprep.subr.bf16.mxu1 %v14508_v48  ;;  %v14594_v48 = vld [vmem:[#allocation16 + $0xa44] ss:$8 sps:$4 sm:$0xff]  }
 0xb1d   :  { %11032 = vmatpush1.bf16.msra.mxu1 %v14506_v36 }
 0xb1e   :  { %11033 = vmatprep.subr.bf16.mxu1 %v14511_v21 }
 0xb21   :  { %11034 = vmatpush1.bf16.msra.mxu1 %v14509_v47 }
 0xb22   :  { %11035 = vmatprep.subr.bf16.mxu1 %v14514_v20 }
 0xb25   :  { %11036 = vmatpush1.bf16.msra.mxu1 %v14512_v26  ;;  %v10221_v26 = vpop.f32.mrf.mxu0 }
 0xb26   :  { %11037 = vmatprep.subr.bf16.mxu1 %v14517_v18 }
 0xb27   :  { %v10344_v18 = vpop.f32.mrf.mxu0 }
 0xb29   :  { %11038 = vmatpush1.bf16.msra.mxu1 %v14515_v33  ;;  %v10346_v1 = vpop.f32.mrf.mxu0  ;;  %v10345_v33 = vadd.f32 %v10344_v18, %v10215_v59  ;;  %v14621_v59 = vld [vmem:[#allocation16 + $0xab4] ss:$8 sps:$4 sm:$0xff]  }
 0xb2a   :  { %11039 = vmatprep.subr.bf16.mxu1 %v14520_v25  ;;  %v14627_v18 = vld [vmem:[#allocation16 + $0xa94] ss:$8 sps:$4 sm:$0xff]  }
 0xb2d   :  { %11040 = vmatpush1.bf16.msra.mxu1 %v14518_v16  ;;  %v10509_v16 = vrot.slane %v10504_v54, %v16656_v39  ;;  %v14628_v54 = vld [vmem:[#allocation16 + $0xa80] ss:$8 sps:$4 sm:$0xff]  }
 0xb2e   :  { %11041 = vmatprep.subr.bf16.mxu1 %v14523_v53 }
 0xb31   :  { %11042 = vmatpush1.bf16.msra.mxu1 %v14521_v11 }
 0xb32   :  { %11043 = vmatprep.subr.bf16.mxu1 %v14526_v14 }
 0xb35   :  { %11044 = vmatpush1.bf16.msra.mxu1 %v14524_v37 }
 0xb36   :  { %11442 = vmatprep.subr.bf16.mxu1 %v14585_v9 }
 0xb38   :  { %11062 = vmatmul.mubr.bf16.vlgmr.msra.gmra.mxu1 %v14527_v32 }
 0xb39   :  { %11443 = vmatpush1.bf16.msra.mxu1 %v14583_v0 }
 0xb3a   :  { %11444 = vmatprep.subr.bf16.mxu1 %v14588_v34 }
 0xb3d   :  { %11445 = vmatpush1.bf16.msra.mxu1 %v14586_v60  ;;  %v14604_v60 = vld [vmem:[#allocation16 + $0xa00] ss:$8 sps:$4 sm:$0xff]  }
 0xb3e   :  { %11446 = vmatprep.subr.bf16.mxu1 %v14591_v52  ;;  %v14609_v52 = vld [vmem:[#allocation16 + $0xaf4] ss:$8 sps:$4 sm:$0xff]  }
 0xb41   :  { %11447 = vmatpush1.bf16.msra.mxu1 %v14589_v15  ;;  %v14607_v15 = vld [vmem:[#allocation16 + $0xaf0] ss:$8 sps:$4 sm:$0xff]  }
 0xb42   :  { %11448 = vmatprep.subr.bf16.mxu1 %v14594_v48  ;;  %v14612_v48 = vld [vmem:[#allocation16 + $0xae4] ss:$8 sps:$4 sm:$0xff]  }
 0xb45   :  { %11449 = vmatpush1.bf16.msra.mxu1 %v14592_v50  ;;  %v14610_v50 = vld [vmem:[#allocation16 + $0xae0] ss:$8 sps:$4 sm:$0xff]  }
 0xb98   :  { %v10038_v19 = vpop.f32.mrf.mxu1 }
 0xb99   :  { %v16453_v36 = vadd.f32 %v10038_v19, %v16398_v49  ;;  %v10348_v49 = vpop.f32.mrf.mxu0  ;;  %v14615_v19 = vld [vmem:[#allocation16 + $0xad4] ss:$8 sps:$4 sm:$0xff]  }
 0xb9a   :  { %v10040_v17 = vpop.f32.mrf.mxu1 }
 0xb9b   :  { %v16456_v21 = vadd.f32 %v10040_v17, %v16401_v41  ;;  %v10347_v41 = vadd.f32 %v10346_v1, %v10217_v5  ;;  %v10350_v38 = vpop.f32.mrf.mxu0  ;;  %v14613_v17 = vld [vmem:[#allocation16 + $0xad0] ss:$8 sps:$4 sm:$0xff]  }
 0xb9c   :  { %v10042_v62 = vpop.f32.mrf.mxu1  ;;  %v10351_v11 = vadd.f32 %v10350_v38, %v10221_v26  ;;  %v14619_v5 = vld [vmem:[#allocation16 + $0xab0] ss:$8 sps:$4 sm:$0xff]   ;;  %v14622_v26 = vld [vmem:[#allocation16 + $0xaa0] ss:$8 sps:$4 sm:$0xff]  }
 0xb9d   :  { %v16459_v7 = vadd.f32 %v10042_v62, %v16404_v10  ;;  %v14618_v62 = vld [vmem:[#allocation16 + $0xac4] ss:$8 sps:$4 sm:$0xff]   ;;  %v14625_v1 = vld [vmem:[#allocation16 + $0xa90] ss:$8 sps:$4 sm:$0xff]  }
 0xb9e   :  { %v10044_v47 = vpop.f32.mrf.mxu1 }
 0xb9f   :  { %v16462_v20 = vadd.f32 %v10044_v47, %v16407_v63  ;;  %v10349_v63 = vadd.f32 %v10348_v49, %v10219_v3  ;;  %v14616_v47 = vld [vmem:[#allocation16 + $0xac0] ss:$8 sps:$4 sm:$0xff]   ;;  %v14624_v3 = vld [vmem:[#allocation16 + $0xaa4] ss:$8 sps:$4 sm:$0xff]  }
 0xba0   :  { %v14630_v49 = vld [vmem:[#allocation16 + $0xa84] ss:$8 sps:$4 sm:$0xff]  }
 0xbb8   :  { %v10491_v25 = vpop.f32.mrf.mxu1 }
 0xbb9   :  { %v10500_v10 = vadd.f32 %v10491_v25, %v10345_v33 }
 0xbba   :  { %v10493_v53 = vpop.f32.mrf.mxu1 }
 0xbbb   :  { %v10501_v40 = vadd.f32 %v10493_v53, %v10347_v41  ;;  %v10516_v44 = vadd.f32 %v10509_v16, %v10500_v10 }
 0xbbc   :  { %v10495_v30 = vpop.f32.mrf.mxu1 }
 0xbbd   :  { %v10517_v14 = vadd.f32 %v10513_v24, %v10501_v40  ;;  %v10502_v56 = vadd.f32 %v10495_v30, %v10349_v63  ;;  %v10520_v57 = vmul.f32 0.1, %v10516_v44 }
 0xbbe   :  { %v10497_v37 = vpop.f32.mrf.mxu1 }
 0xbbf   :  { %v10518_v55 = vadd.f32 %v10509_v16, %v10502_v56  ;;  %v10503_v32 = vadd.f32 %v10497_v37, %v10351_v11  ;;  %v10521_v28 = vmul.f32 0.1, %v10517_v14  ;;  %v10524_v0 = vmax.f32 %v10516_v44, %v10520_v57  ;;  %v11223_v37 = vld [vmem:[#allocation15] sm:$0x3] }
 0xbc1   :  { %v10522_v35 = vmul.f32 0.1, %v10518_v55  ;;  %v10519_v51 = vadd.f32 %v10513_v24, %v10503_v32  ;;  %v10525_v61 = vmax.f32 %v10517_v14, %v10521_v28  ;;  %v11232_v28 = vrot.slane %v11223_v37, %v16655_v58 }
 0xbc3   :  { %v10523_v31 = vmul.f32 0.1, %v10519_v51  ;;  %v10526_v4 = vmax.f32 %v10518_v55, %v10522_v35 }
 0xbc5   :  { %v10527_v22 = vmax.f32 %v10519_v51, %v10523_v31  ;;  %v10528_v34 = vpack.c.bf16 %v10526_v4, %v10524_v0 }
 0xbc7   :  { %v10529_v9 = vpack.c.bf16 %v10527_v22, %v10525_v61 }
 0xbc9   :  { %10755 = vmatprep.mubr.bf16.mxu0 %v10529_v9 }
 0xbca   :  { %10756 = vmatmul.mubr.bf16.vlgmr.msra.gmra.mxu0 %v10528_v34 }
 0xbcb   :  { %11177 = vmatpush1.bf16.msra.mxu0 %v16411_v29  ;;  %11208 = vmatprep.mubr.bf16.mxu0 %v16558_v23  ;;  %v14578_v29 = vld [vmem:[#allocation13 + $0x114] ss:$8 sps:$4 sm:$0xff]   ;;  %v14576_v23 = vld [vmem:[#allocation13 + $0x110] ss:$8 sps:$4 sm:$0xff]  }
 0xbcc   :  { %11178 = vmatprep.subr.bf16.mxu0 %v16413_v27  ;;  %v14581_v27 = vld [vmem:[#allocation13 + $0x104] ss:$8 sps:$4 sm:$0xff]  }
 0xbcf   :  { %11179 = vmatpush1.bf16.msra.mxu0 %v16416_v46  ;;  %v14579_v46 = vld [vmem:[#allocation13 + $0x100] ss:$8 sps:$4 sm:$0xff]  }
 0xbd0   :  { %11180 = vmatprep.subr.bf16.mxu0 %v16420_v2  ;;  %v14582_v2 = vld [vmem:[#allocation3 + $0x60] sm:$0xff]  }
 0xbd3   :  { %11181 = vmatpush1.bf16.msra.mxu0 %v16423_v8  ;;  %v14597_v8 = vld [vmem:[#allocation16 + $0xa34] ss:$8 sps:$4 sm:$0xff]  }
 0xbd4   :  { %11182 = vmatprep.subr.bf16.mxu0 %v16426_v13  ;;  %v14595_v13 = vld [vmem:[#allocation16 + $0xa30] ss:$8 sps:$4 sm:$0xff]   ;;  %11450 = vmatprep.subr.bf16.mxu1 %v14597_v8 }
 0xbd5   :  { %11451 = vmatpush1.bf16.msra.mxu1 %v14595_v13 }
 0xbd7   :  { %11183 = vmatpush1.bf16.msra.mxu0 %v16429_v45  ;;  %v14600_v45 = vld [vmem:[#allocation16 + $0xa24] ss:$8 sps:$4 sm:$0xff]  }
 0xbd8   :  { %11184 = vmatprep.subr.bf16.mxu0 %v16432_v12  ;;  %v14598_v12 = vld [vmem:[#allocation16 + $0xa20] ss:$8 sps:$4 sm:$0xff]   ;;  %11452 = vmatprep.subr.bf16.mxu1 %v14600_v45  ;;  %v10934_v63 = vpop.f32.mrf.mxu1 }
 0xbd9   :  { %11453 = vmatpush1.bf16.msra.mxu1 %v14598_v12 }
 0xbda   :  { %v10936_v40 = vpop.f32.mrf.mxu1 }
 0xbdb   :  { %11185 = vmatpush1.bf16.msra.mxu0 %v16435_v43  ;;  %v14601_v43 = vld [vmem:[#allocation16 + $0xa10] ss:$8 sps:$4 sm:$0xff]  }
 0xbdc   :  { %11186 = vmatprep.subr.bf16.mxu0 %v16438_v6  ;;  %v14603_v6 = vld [vmem:[#allocation16 + $0xa14] ss:$8 sps:$4 sm:$0xff]   ;;  %v10938_v30 = vpop.f32.mrf.mxu1 }
 0xbdd   :  { %11454 = vmatprep.subr.bf16.mxu1 %v14603_v6 }
 0xbde   :  { %11455 = vmatpush1.bf16.msra.mxu1 %v14601_v43  ;;  %v10940_v11 = vpop.f32.mrf.mxu1 }
 0xbdf   :  { %11187 = vmatpush1.bf16.msra.mxu0 %v16441_v42  ;;  %v14606_v42 = vld [vmem:[#allocation16 + $0xa04] ss:$8 sps:$4 sm:$0xff]  }
 0xbe0   :  { %11188 = vmatprep.subr.bf16.mxu0 %v14578_v29  ;;  %11456 = vmatprep.subr.bf16.mxu1 %v14606_v42 }
 0xbe2   :  { %11457 = vmatpush1.bf16.msra.mxu1 %v14604_v60 }
 0xbe3   :  { %11189 = vmatpush1.bf16.msra.mxu0 %v14576_v23  ;;  %11458 = vmatprep.subr.bf16.mxu1 %v14609_v52 }
 0xbe4   :  { %11190 = vmatprep.subr.bf16.mxu0 %v14581_v27 }
 0xbe6   :  { %11459 = vmatpush2.bf16.msra.mxu1 %v14607_v15 }
 0xbe7   :  { %11191 = vmatpush1.bf16.msra.mxu0 %v14579_v46  ;;  %11460 = vmatprep.subr.bf16.mxu1 %v14612_v48 }
 0xbea   :  { %11209 = vmatmul.mubr.bf16.vlgmr.msra.gmra.mxu0 %v14582_v2  ;;  %11461 = vmatpush2.bf16.msra.mxu1 %v14610_v50 }
 0xbeb   :  { %11462 = vmatprep.subr.bf16.mxu1 %v14615_v19 }
 0xbee   :  { %11463 = vmatpush2.bf16.msra.mxu1 %v14613_v17 }
 0xbef   :  { %11464 = vmatprep.subr.bf16.mxu1 %v14618_v62 }
 0xbf2   :  { %11465 = vmatpush2.bf16.msra.mxu1 %v14616_v47 }
 0xbf3   :  { %11466 = vmatprep.subr.bf16.mxu1 %v14621_v59 }
 0xbf6   :  { %11467 = vmatpush2.bf16.msra.mxu1 %v14619_v5 }
 0xbf7   :  { %11468 = vmatprep.subr.bf16.mxu1 %v14624_v3 }
 0xbf8   :  { %v11063_v14 = vpop.f32.mrf.mxu1 }
 0xbf9   :  { %v11064_v55 = vadd.f32 %v11063_v14, %v10934_v63 }
 0xbfa   :  { %11469 = vmatpush2.bf16.msra.mxu1 %v14622_v26  ;;  %v11065_v56 = vpop.f32.mrf.mxu1 }
 0xbfb   :  { %11470 = vmatprep.subr.bf16.mxu1 %v14627_v18 }
 0xbfc   :  { %v11067_v44 = vpop.f32.mrf.mxu1 }
 0xbfd   :  { %v11068_v57 = vadd.f32 %v11067_v44, %v10938_v30 }
 0xbfe   :  { %11471 = vmatpush2.bf16.msra.mxu1 %v14625_v1 }
 0xbff   :  { %11472 = vmatprep.subr.bf16.mxu1 %v14630_v49 }
 0xc02   :  { %11473 = vmatpush2.bf16.msra.mxu1 %v14628_v54 }
 0xc8a   :  { %v10757_v33 = vpop.f32.mrf.mxu0 }
 0xc8b   :  { %v10770_v25 = vadd.f32 %v10757_v33, %v16453_v36  ;;  %v11066_v36 = vadd.f32 %v11065_v56, %v10936_v40 }
 0xc8c   :  { %v10759_v41 = vpop.f32.mrf.mxu0 }
 0xc8d   :  { %v10771_v24 = vadd.f32 %v10759_v41, %v16456_v21  ;;  %v11069_v21 = vpop.f32.mrf.mxu1 }
 0xc8e   :  { %v10761_v38 = vpop.f32.mrf.mxu0  ;;  %v11070_v4 = vadd.f32 %v11069_v21, %v10940_v11 }
 0xc8f   :  { %v10772_v10 = vadd.f32 %v10761_v38, %v16459_v7  ;;  %v11228_v7 = vrot.slane %v11223_v37, %v16656_v39 }
 0xc90   :  { %v10763_v16 = vpop.f32.mrf.mxu0 }
 0xc91   :  { %v10773_v53 = vadd.f32 %v10763_v16, %v16462_v20 }
 0xcaa   :  { %v11210_v32 = vpop.f32.mrf.mxu0 }
 0xcab   :  { %v11219_v35 = vadd.f32 %v11210_v32, %v11064_v55 }
 0xcac   :  { %v11212_v51 = vpop.f32.mrf.mxu0 }
 0xcad   :  { %v11220_v20 = vadd.f32 %v11212_v51, %v11066_v36  ;;  %v11235_v0 = vadd.f32 %v11228_v7, %v11219_v35 }
 0xcae   :  { %v11214_v31 = vpop.f32.mrf.mxu0 }
 0xcaf   :  { %v11236_v61 = vadd.f32 %v11232_v28, %v11220_v20  ;;  %v11221_v22 = vadd.f32 %v11214_v31, %v11068_v57  ;;  %v11239_v2 = vmul.f32 0.1, %v11235_v0 }
 0xcb0   :  { %v11216_v9 = vpop.f32.mrf.mxu0 }
 0xcb1   :  { %v11237_v34 = vadd.f32 %v11228_v7, %v11221_v22  ;;  %v11222_v29 = vadd.f32 %v11216_v9, %v11070_v4  ;;  %v11240_v23 = vmul.f32 0.1, %v11236_v61  ;;  %v11243_v39 = vmax.f32 %v11235_v0, %v11239_v2 }
 0xcb3   :  { %v11241_v27 = vmul.f32 0.1, %v11237_v34  ;;  %v11238_v46 = vadd.f32 %v11232_v28, %v11222_v29  ;;  %v11244_v13 = vmax.f32 %v11236_v61, %v11240_v23 }
 0xcb5   :  { %v11242_v58 = vmul.f32 0.1, %v11238_v46  ;;  %v11245_v8 = vmax.f32 %v11237_v34, %v11241_v27 }
 0xcb7   :  { %v11246_v45 = vmax.f32 %v11238_v46, %v11242_v58  ;;  %v11247_v43 = vpack.c.bf16 %v11245_v8, %v11243_v39 }
 0xcb9   :  { %v11248_v12 = vpack.c.bf16 %v11246_v45, %v11244_v13 }
 0xcbb   :  { %11474 = vmatprep.mubr.bf16.mxu1 %v11248_v12 }
 0xcbc   :  { %11475 = vmatmul.mubr.bf16.vlgmr.msra.gmra.mxu1 %v11247_v43 }
 0xd7c   :  { %v11476_v6 = vpop.f32.mrf.mxu1 }
 0xd7d   :  { %v11489_v42 = vadd.f32 %v11476_v6, %v10770_v25 }
 0xd7e   :  { %v11478_v60 = vpop.f32.mrf.mxu1 }
 0xd7f   :  { %11493 = vst [vmem:[#allocation19] sm:$0xff] %v11489_v42  ;;  %v11490_v52 = vadd.f32 %v11478_v60, %v10771_v24 }
 0xd80   :  { %v11480_v15 = vpop.f32.mrf.mxu1 }
 0xd81   :  { %11494 = vst [vmem:[#allocation19 + $0x8] sm:$0xff] %v11490_v52  ;;  %v11491_v48 = vadd.f32 %v11480_v15, %v10772_v10 }
 0xd82   :  { %v11482_v50 = vpop.f32.mrf.mxu1 }
 0xd83   :  { %11495 = vst [vmem:[#allocation19 + $0x10] sm:$0xff] %v11491_v48  ;;  %v11492_v19 = vadd.f32 %v11482_v50, %v10773_v53 }
 0xd85   :  { %11496 = vst [vmem:[#allocation19 + $0x18] sm:$0xff] %v11492_v19 }
 0xd86   :  { %14822 = shalt.err (!%p14819_p7)
}
 0xd87   :  { %s14860_s10 = smov 256   ;;  %s14861_s11 = smov 16  }
 0xd88   :  { %11508 = dma.vmem_to_hbm [thread:$0]  %s11503_s8, 512, %s16496_s9, [#allocation6], %s14860_s10, %s14860_s10, %s14861_s11  }
 0xd89   :  { %14841 = dma.done.wait [#allocation6], 512  }
 0xd8a   :  { %14842 = vsyncadd [#allocation6], 4294966784 }
 0xd8b   :  { %11512 = vsyncpa [#allocation5], 1 }
 0xd8c   :  { %11513 = vsyncpa [#allocation8], 1 }
 0xd8d   :  { %11514 = vsyncpa [#allocation11], 1 }
 0xd8e   :  { %11515 = vsyncpa [#allocation14], 1 }
 0xd8f   :  { %11516 = vsyncpa [#allocation17], 1 }
 0xd90   :  { %11517 = vsyncpa [#allocation6], 1 }

</bundles_post_ra>
